<compile_context>
chip_gen: v7x
topology: tpu7x:2x2x1
jax: 0.10.0
libtpu: 0.0.40
codegen_flags: <defaults>
</compile_context>

<pallas_src>
import jax
import jax.numpy as jnp
from jax.experimental import pallas as pl
from jax.experimental.pallas import tpu as pltpu

EPS = 1e-5


# ----------------------------------------------------------------------------
# Fused Pallas kernel: implicit 3x3 conv + train-mode BN + ReLU, one Cout tile
# ----------------------------------------------------------------------------
def _fused_conv_bn_relu_kernel(x_ref, w_ref, g_ref, b_ref, o_ref):
    """x_ref: [3, Hp, N*W, Cin] bf16 kw-shifted, padded activations
              (x_ref[kw, hp, n*W + w, c] == x_padded[n, hp, w + kw, c])
       w_ref: [9, Cin, Ct] bf16, tap index t = 3*kh + kw
       g_ref, b_ref: [1, Ct] f32 BN gamma / beta
       o_ref: [M, Ct], rows ordered (h, n, w), M = H * N * W
    """
    _, hp, nw, cin = x_ref.shape
    h = hp - 2
    m = h * nw
    ct = o_ref.shape[-1]

    # 9 tap matmuls, f32 accumulation.  Same total MXU work as one full-K
    # pass; the kernel is DMA-bound so the extra pushes are free.
    y = jnp.zeros((m, ct), jnp.float32)
    for kh in range(3):
        for kw in range(3):
            # kh slices a leading dim; reshape merges the leading H dim into
            # the full 16-row sublane dim -> layout-preserving.
            patch = x_ref[kw, kh:kh + h, :, :].reshape(m, cin)
            y = y + jnp.dot(patch, w_ref[3 * kh + kw, :, :],
                            preferred_element_type=jnp.float32)

    # Train-mode BN over the fully resident batch*spatial axis (two-pass var).
    inv_m = 1.0 / m
    mean = jnp.sum(y, axis=0, keepdims=True) * inv_m
    d = y - mean
    var = jnp.sum(d * d, axis=0, keepdims=True) * inv_m
    scale = g_ref[...] * jax.lax.rsqrt(var + EPS)       # gamma / sqrt(var+eps)
    o_ref[...] = jnp.maximum(d * scale + b_ref[...], 0.0).astype(o_ref.dtype)


def fused_conv_bn_relu(x_shift, w, gamma, beta, *, out_dtype, cout_tile=128):
    """x_shift: [3, Hp, N*W, Cin] bf16, w: [9, Cin, C] bf16 -> [H*N*W, C]."""
    kw_dim, hp, nw, cin = x_shift.shape
    taps, k_w, c = w.shape
    assert kw_dim == 3 and taps == 9 and k_w == cin
    h = hp - 2
    m = h * nw
    assert m % 8 == 0 and nw % 8 == 0 and cin % 128 == 0
    assert cout_tile % 128 == 0 and c % cout_tile == 0
    n_tiles = c // cout_tile

    return pl.pallas_call(
        _fused_conv_bn_relu_kernel,
        out_shape=jax.ShapeDtypeStruct((m, c), out_dtype),
        grid_spec=pltpu.PrefetchScalarGridSpec(
            num_scalar_prefetch=0,
            grid=(n_tiles,),
            in_specs=[
                pl.BlockSpec((3, hp, nw, cin), lambda j: (0, 0, 0, 0)),   # acts
                pl.BlockSpec((9, cin, cout_tile), lambda j: (0, 0, j)),   # weights
                pl.BlockSpec((1, cout_tile), lambda j: (0, j)),           # gamma
                pl.BlockSpec((1, cout_tile), lambda j: (0, j)),           # beta
            ],
            out_specs=pl.BlockSpec((m, cout_tile), lambda j: (0, j)),
        ),
        compiler_params=pltpu.CompilerParams(
            dimension_semantics=("parallel",)),   # Cout tiles are independent
    )(x_shift, w, gamma.reshape(1, c), beta.reshape(1, c))


# ----------------------------------------------------------------------------
# Wrapper glue (kw pre-shift + pad; layout plumbing)
# ----------------------------------------------------------------------------
def shift_stack(x_hnwc):
    """[H, N, W, C] bf16 -> [3, H+2, N*W, C] kw-shifted, zero-padded (pad=1)."""
    h, n, w, c = x_hnwc.shape
    xp = jnp.pad(x_hnwc, ((1, 1), (0, 0), (1, 1), (0, 0)))
    hp = h + 2
    cols = [xp[:, :, kw:kw + w, :].reshape(hp, n * w, c) for kw in range(3)]
    return jnp.stack(cols, axis=0)


def conv_bn_relu_block(x_hnwc, w, gamma, beta, *, out_dtype, cout_tile=128):
    h, n, ww, _ = x_hnwc.shape
    c = w.shape[-1]
    xs = shift_stack(x_hnwc)                         # [3, H+2, N*W, Cin] bf16
    y = fused_conv_bn_relu(xs, w, gamma, beta,
                           out_dtype=out_dtype, cout_tile=cout_tile)
    return y.reshape(h, n, ww, c)                    # rows were (h, n, w)


@jax.jit
def theta2_forward(x_nchw, params):
    # NCHW -> (h, n, w, c) layout + bf16 (cast fuses with the entry transpose).
    x = jnp.transpose(x_nchw, (2, 0, 3, 1)).astype(jnp.bfloat16)
    # conv2 (512->256) + bn2 + relu : 2 Cout tiles of 128, bf16 intermediate.
    x = conv_bn_relu_block(x, params["w2"], params["g2"], params["be2"],
                           out_dtype=jnp.bfloat16)
    # conv3 (256->128) + bn3 + relu : 1 lane-dense Cout tile, f32 final output.
    x = conv_bn_relu_block(x, params["w3"], params["g3"], params["be3"],
                           out_dtype=jnp.float32)
    return jnp.transpose(x, (1, 3, 0, 2))            # (h,n,w,c) -> NCHW


# ----------------------------------------------------------------------------
# Parameter init (Xavier-uniform conv weights, stored bf16; BN gamma=1 beta=0)
# ----------------------------------------------------------------------------
def xavier_uniform_conv(key, cout, cin, k=3):
    """[k*k, Cin, Cout] bf16 matmul weight, tap ordering t = k*kh + kw."""
    fan_in = cin * k * k
    fan_out = cout * k * k
    bound = (6.0 / (fan_in + fan_out)) ** 0.5
    w = jax.random.uniform(key, (k * k, cin, cout), jnp.float32, -bound, bound)
    return w.astype(jnp.bfloat16)     # stored bf16: no per-forward cast pass


def init_params(key):
    k2, k3 = jax.random.split(key)
    return {
        # conv2: 512 -> 256 (bias omitted: zero-init and cancelled by train BN)
        "w2": xavier_uniform_conv(k2, 256, 512),
        "g2": jnp.ones((256,), jnp.float32),
        "be2": jnp.zeros((256,), jnp.float32),
        # conv3: 256 -> 128
        "w3": xavier_uniform_conv(k3, 128, 256),
        "g3": jnp.ones((128,), jnp.float32),
        "be3": jnp.zeros((128,), jnp.float32),
    }


if __name__ == "__main__":
    key = jax.random.PRNGKey(0)
    kx, kp = jax.random.split(key)
    # Channels (512 in) are fixed by the module; keep batch/spatial small.
    x = jax.random.normal(kx, (2, 512, 8, 8), jnp.float32)
    params = init_params(kp)

    out = theta2_forward(x, params)
    jax.block_until_ready(out)
    assert out.shape == (2, 128, 8, 8), out.shape
    assert out.dtype == jnp.float32
    assert bool(jnp.isfinite(out).all())
    print("KERNEL_OK")
</pallas_src>

<mosaic_0001>
module attributes {stable_mosaic.version = 11 : i64} {
  func.func @_fused_conv_bn_relu_kernel(%arg0: i32, %arg1: memref<3x10x16x512xbf16, #tpu.memory_space<vmem>>, %arg2: memref<9x512x128xbf16, #tpu.memory_space<vmem>>, %arg3: memref<1x128xf32, #tpu.memory_space<vmem>>, %arg4: memref<1x128xf32, #tpu.memory_space<vmem>>, %arg5: memref<128x128xbf16, #tpu.memory_space<vmem>>) attributes {dimension_semantics = [#tpu.dimension_semantics<parallel>], iteration_bounds = array<i64: 2>, scalar_prefetch = 0 : i64, scratch_operands = 0 : i64, tpu.core_type = #tpu.core_type<tc>, window_params = [{pipeline_mode = #tpu.pipeline_mode<synchronous>, transform_indices = @transform_0, window_bounds = array<i64: 3, 10, 16, 512>}, {transform_indices = @transform_1, window_bounds = array<i64: 9, 512, 128>}, {transform_indices = @transform_2, window_bounds = array<i64: 1, 128>}, {transform_indices = @transform_3, window_bounds = array<i64: 1, 128>}, {transform_indices = @transform_4, window_bounds = array<i64: 128, 128>}]} {
    %cst = arith.constant 0.000000e+00 : f32
    %0 = vector.broadcast %cst : f32 to vector<128x128xf32>
    %c0 = arith.constant 0 : index
    %c0_0 = arith.constant 0 : index
    %c0_1 = arith.constant 0 : index
    %c0_2 = arith.constant 0 : index
    %1 = vector.load %arg1[%c0, %c0_0, %c0_1, %c0_2] : memref<3x10x16x512xbf16, #tpu.memory_space<vmem>>, vector<1x8x16x512xbf16>
    %2 = vector.shape_cast %1 : vector<1x8x16x512xbf16> to vector<8x16x512xbf16>
    %3 = vector.shape_cast %2 : vector<8x16x512xbf16> to vector<128x512xbf16>
    %c0_3 = arith.constant 0 : index
    %c0_4 = arith.constant 0 : index
    %c0_5 = arith.constant 0 : index
    %4 = vector.load %arg2[%c0_3, %c0_4, %c0_5] : memref<9x512x128xbf16, #tpu.memory_space<vmem>>, vector<1x512x128xbf16>
    %5 = vector.shape_cast %4 : vector<1x512x128xbf16> to vector<512x128xbf16>
    %cst_6 = arith.constant dense<0.000000e+00> : vector<128x128xf32>
    %6 = tpu.matmul %3, %5, %cst_6 {dimension_numbers = #tpu.dot_dimension_numbers<[1], [0], [0], [1], [0, 0, 1, 1], [], []>} : vector<128x512xbf16>, vector<512x128xbf16>, vector<128x128xf32> -> vector<128x128xf32>
    %7 = arith.addf %0, %6 : vector<128x128xf32>
    %c1 = arith.constant 1 : index
    %c0_7 = arith.constant 0 : index
    %c0_8 = arith.constant 0 : index
    %c0_9 = arith.constant 0 : index
    %8 = vector.load %arg1[%c1, %c0_7, %c0_8, %c0_9] : memref<3x10x16x512xbf16, #tpu.memory_space<vmem>>, vector<1x8x16x512xbf16>
    %9 = vector.shape_cast %8 : vector<1x8x16x512xbf16> to vector<8x16x512xbf16>
    %10 = vector.shape_cast %9 : vector<8x16x512xbf16> to vector<128x512xbf16>
    %c1_10 = arith.constant 1 : index
    %c0_11 = arith.constant 0 : index
    %c0_12 = arith.constant 0 : index
    %11 = vector.load %arg2[%c1_10, %c0_11, %c0_12] : memref<9x512x128xbf16, #tpu.memory_space<vmem>>, vector<1x512x128xbf16>
    %12 = vector.shape_cast %11 : vector<1x512x128xbf16> to vector<512x128xbf16>
    %cst_13 = arith.constant dense<0.000000e+00> : vector<128x128xf32>
    %13 = tpu.matmul %10, %12, %cst_13 {dimension_numbers = #tpu.dot_dimension_numbers<[1], [0], [0], [1], [0, 0, 1, 1], [], []>} : vector<128x512xbf16>, vector<512x128xbf16>, vector<128x128xf32> -> vector<128x128xf32>
    %14 = arith.addf %7, %13 : vector<128x128xf32>
    %c2 = arith.constant 2 : index
    %c0_14 = arith.constant 0 : index
    %c0_15 = arith.constant 0 : index
    %c0_16 = arith.constant 0 : index
    %15 = vector.load %arg1[%c2, %c0_14, %c0_15, %c0_16] : memref<3x10x16x512xbf16, #tpu.memory_space<vmem>>, vector<1x8x16x512xbf16>
    %16 = vector.shape_cast %15 : vector<1x8x16x512xbf16> to vector<8x16x512xbf16>
    %17 = vector.shape_cast %16 : vector<8x16x512xbf16> to vector<128x512xbf16>
    %c2_17 = arith.constant 2 : index
    %c0_18 = arith.constant 0 : index
    %c0_19 = arith.constant 0 : index
    %18 = vector.load %arg2[%c2_17, %c0_18, %c0_19] : memref<9x512x128xbf16, #tpu.memory_space<vmem>>, vector<1x512x128xbf16>
    %19 = vector.shape_cast %18 : vector<1x512x128xbf16> to vector<512x128xbf16>
    %cst_20 = arith.constant dense<0.000000e+00> : vector<128x128xf32>
    %20 = tpu.matmul %17, %19, %cst_20 {dimension_numbers = #tpu.dot_dimension_numbers<[1], [0], [0], [1], [0, 0, 1, 1], [], []>} : vector<128x512xbf16>, vector<512x128xbf16>, vector<128x128xf32> -> vector<128x128xf32>
    %21 = arith.addf %14, %20 : vector<128x128xf32>
    %c0_21 = arith.constant 0 : index
    %c1_22 = arith.constant 1 : index
    %c0_23 = arith.constant 0 : index
    %c0_24 = arith.constant 0 : index
    %22 = vector.load %arg1[%c0_21, %c1_22, %c0_23, %c0_24] : memref<3x10x16x512xbf16, #tpu.memory_space<vmem>>, vector<1x8x16x512xbf16>
    %23 = vector.shape_cast %22 : vector<1x8x16x512xbf16> to vector<8x16x512xbf16>
    %24 = vector.shape_cast %23 : vector<8x16x512xbf16> to vector<128x512xbf16>
    %c3 = arith.constant 3 : index
    %c0_25 = arith.constant 0 : index
    %c0_26 = arith.constant 0 : index
    %25 = vector.load %arg2[%c3, %c0_25, %c0_26] : memref<9x512x128xbf16, #tpu.memory_space<vmem>>, vector<1x512x128xbf16>
    %26 = vector.shape_cast %25 : vector<1x512x128xbf16> to vector<512x128xbf16>
    %cst_27 = arith.constant dense<0.000000e+00> : vector<128x128xf32>
    %27 = tpu.matmul %24, %26, %cst_27 {dimension_numbers = #tpu.dot_dimension_numbers<[1], [0], [0], [1], [0, 0, 1, 1], [], []>} : vector<128x512xbf16>, vector<512x128xbf16>, vector<128x128xf32> -> vector<128x128xf32>
    %28 = arith.addf %21, %27 : vector<128x128xf32>
    %c1_28 = arith.constant 1 : index
    %c1_29 = arith.constant 1 : index
    %c0_30 = arith.constant 0 : index
    %c0_31 = arith.constant 0 : index
    %29 = vector.load %arg1[%c1_28, %c1_29, %c0_30, %c0_31] : memref<3x10x16x512xbf16, #tpu.memory_space<vmem>>, vector<1x8x16x512xbf16>
    %30 = vector.shape_cast %29 : vector<1x8x16x512xbf16> to vector<8x16x512xbf16>
    %31 = vector.shape_cast %30 : vector<8x16x512xbf16> to vector<128x512xbf16>
    %c4 = arith.constant 4 : index
    %c0_32 = arith.constant 0 : index
    %c0_33 = arith.constant 0 : index
    %32 = vector.load %arg2[%c4, %c0_32, %c0_33] : memref<9x512x128xbf16, #tpu.memory_space<vmem>>, vector<1x512x128xbf16>
    %33 = vector.shape_cast %32 : vector<1x512x128xbf16> to vector<512x128xbf16>
    %cst_34 = arith.constant dense<0.000000e+00> : vector<128x128xf32>
    %34 = tpu.matmul %31, %33, %cst_34 {dimension_numbers = #tpu.dot_dimension_numbers<[1], [0], [0], [1], [0, 0, 1, 1], [], []>} : vector<128x512xbf16>, vector<512x128xbf16>, vector<128x128xf32> -> vector<128x128xf32>
    %35 = arith.addf %28, %34 : vector<128x128xf32>
    %c2_35 = arith.constant 2 : index
    %c1_36 = arith.constant 1 : index
    %c0_37 = arith.constant 0 : index
    %c0_38 = arith.constant 0 : index
    %36 = vector.load %arg1[%c2_35, %c1_36, %c0_37, %c0_38] : memref<3x10x16x512xbf16, #tpu.memory_space<vmem>>, vector<1x8x16x512xbf16>
    %37 = vector.shape_cast %36 : vector<1x8x16x512xbf16> to vector<8x16x512xbf16>
    %38 = vector.shape_cast %37 : vector<8x16x512xbf16> to vector<128x512xbf16>
    %c5 = arith.constant 5 : index
    %c0_39 = arith.constant 0 : index
    %c0_40 = arith.constant 0 : index
    %39 = vector.load %arg2[%c5, %c0_39, %c0_40] : memref<9x512x128xbf16, #tpu.memory_space<vmem>>, vector<1x512x128xbf16>
    %40 = vector.shape_cast %39 : vector<1x512x128xbf16> to vector<512x128xbf16>
    %cst_41 = arith.constant dense<0.000000e+00> : vector<128x128xf32>
    %41 = tpu.matmul %38, %40, %cst_41 {dimension_numbers = #tpu.dot_dimension_numbers<[1], [0], [0], [1], [0, 0, 1, 1], [], []>} : vector<128x512xbf16>, vector<512x128xbf16>, vector<128x128xf32> -> vector<128x128xf32>
    %42 = arith.addf %35, %41 : vector<128x128xf32>
    %c0_42 = arith.constant 0 : index
    %c2_43 = arith.constant 2 : index
    %c0_44 = arith.constant 0 : index
    %c0_45 = arith.constant 0 : index
    %43 = vector.load %arg1[%c0_42, %c2_43, %c0_44, %c0_45] : memref<3x10x16x512xbf16, #tpu.memory_space<vmem>>, vector<1x8x16x512xbf16>
    %44 = vector.shape_cast %43 : vector<1x8x16x512xbf16> to vector<8x16x512xbf16>
    %45 = vector.shape_cast %44 : vector<8x16x512xbf16> to vector<128x512xbf16>
    %c6 = arith.constant 6 : index
    %c0_46 = arith.constant 0 : index
    %c0_47 = arith.constant 0 : index
    %46 = vector.load %arg2[%c6, %c0_46, %c0_47] : memref<9x512x128xbf16, #tpu.memory_space<vmem>>, vector<1x512x128xbf16>
    %47 = vector.shape_cast %46 : vector<1x512x128xbf16> to vector<512x128xbf16>
    %cst_48 = arith.constant dense<0.000000e+00> : vector<128x128xf32>
    %48 = tpu.matmul %45, %47, %cst_48 {dimension_numbers = #tpu.dot_dimension_numbers<[1], [0], [0], [1], [0, 0, 1, 1], [], []>} : vector<128x512xbf16>, vector<512x128xbf16>, vector<128x128xf32> -> vector<128x128xf32>
    %49 = arith.addf %42, %48 : vector<128x128xf32>
    %c1_49 = arith.constant 1 : index
    %c2_50 = arith.constant 2 : index
    %c0_51 = arith.constant 0 : index
    %c0_52 = arith.constant 0 : index
    %50 = vector.load %arg1[%c1_49, %c2_50, %c0_51, %c0_52] : memref<3x10x16x512xbf16, #tpu.memory_space<vmem>>, vector<1x8x16x512xbf16>
    %51 = vector.shape_cast %50 : vector<1x8x16x512xbf16> to vector<8x16x512xbf16>
    %52 = vector.shape_cast %51 : vector<8x16x512xbf16> to vector<128x512xbf16>
    %c7 = arith.constant 7 : index
    %c0_53 = arith.constant 0 : index
    %c0_54 = arith.constant 0 : index
    %53 = vector.load %arg2[%c7, %c0_53, %c0_54] : memref<9x512x128xbf16, #tpu.memory_space<vmem>>, vector<1x512x128xbf16>
    %54 = vector.shape_cast %53 : vector<1x512x128xbf16> to vector<512x128xbf16>
    %cst_55 = arith.constant dense<0.000000e+00> : vector<128x128xf32>
    %55 = tpu.matmul %52, %54, %cst_55 {dimension_numbers = #tpu.dot_dimension_numbers<[1], [0], [0], [1], [0, 0, 1, 1], [], []>} : vector<128x512xbf16>, vector<512x128xbf16>, vector<128x128xf32> -> vector<128x128xf32>
    %56 = arith.addf %49, %55 : vector<128x128xf32>
    %c2_56 = arith.constant 2 : index
    %c2_57 = arith.constant 2 : index
    %c0_58 = arith.constant 0 : index
    %c0_59 = arith.constant 0 : index
    %57 = vector.load %arg1[%c2_56, %c2_57, %c0_58, %c0_59] : memref<3x10x16x512xbf16, #tpu.memory_space<vmem>>, vector<1x8x16x512xbf16>
    %58 = vector.shape_cast %57 : vector<1x8x16x512xbf16> to vector<8x16x512xbf16>
    %59 = vector.shape_cast %58 : vector<8x16x512xbf16> to vector<128x512xbf16>
    %c8 = arith.constant 8 : index
    %c0_60 = arith.constant 0 : index
    %c0_61 = arith.constant 0 : index
    %60 = vector.load %arg2[%c8, %c0_60, %c0_61] : memref<9x512x128xbf16, #tpu.memory_space<vmem>>, vector<1x512x128xbf16>
    %61 = vector.shape_cast %60 : vector<1x512x128xbf16> to vector<512x128xbf16>
    %cst_62 = arith.constant dense<0.000000e+00> : vector<128x128xf32>
    %62 = tpu.matmul %59, %61, %cst_62 {dimension_numbers = #tpu.dot_dimension_numbers<[1], [0], [0], [1], [0, 0, 1, 1], [], []>} : vector<128x512xbf16>, vector<512x128xbf16>, vector<128x128xf32> -> vector<128x128xf32>
    %63 = arith.addf %56, %62 : vector<128x128xf32>
    %cst_63 = arith.constant dense<0.000000e+00> : vector<128xf32>
    %64 = vector.multi_reduction <add>, %63, %cst_63 [0] : vector<128x128xf32> to vector<128xf32>
    %65 = vector.shape_cast %64 : vector<128xf32> to vector<1x128xf32>
    %cst_64 = arith.constant 7.812500e-03 : f32
    %66 = vector.broadcast %cst_64 : f32 to vector<1x128xf32>
    %67 = arith.mulf %65, %66 : vector<1x128xf32>
    %68 = vector.broadcast %67 : vector<1x128xf32> to vector<128x128xf32>
    %69 = arith.subf %63, %68 : vector<128x128xf32>
    %70 = arith.mulf %69, %69 : vector<128x128xf32>
    %cst_65 = arith.constant dense<0.000000e+00> : vector<128xf32>
    %71 = vector.multi_reduction <add>, %70, %cst_65 [0] : vector<128x128xf32> to vector<128xf32>
    %72 = vector.shape_cast %71 : vector<128xf32> to vector<1x128xf32>
    %cst_66 = arith.constant 7.812500e-03 : f32
    %73 = vector.broadcast %cst_66 : f32 to vector<1x128xf32>
    %74 = arith.mulf %72, %73 : vector<1x128xf32>
    %c0_67 = arith.constant 0 : index
    %c0_68 = arith.constant 0 : index
    %75 = vector.load %arg3[%c0_67, %c0_68] : memref<1x128xf32, #tpu.memory_space<vmem>>, vector<1x128xf32>
    %cst_69 = arith.constant 9.99999974E-6 : f32
    %76 = vector.broadcast %cst_69 : f32 to vector<1x128xf32>
    %77 = arith.addf %74, %76 : vector<1x128xf32>
    %78 = math.rsqrt %77 : vector<1x128xf32>
    %79 = arith.mulf %75, %78 : vector<1x128xf32>
    %80 = vector.broadcast %79 : vector<1x128xf32> to vector<128x128xf32>
    %81 = arith.mulf %69, %80 : vector<128x128xf32>
    %c0_70 = arith.constant 0 : index
    %c0_71 = arith.constant 0 : index
    %82 = vector.load %arg4[%c0_70, %c0_71] : memref<1x128xf32, #tpu.memory_space<vmem>>, vector<1x128xf32>
    %83 = vector.broadcast %82 : vector<1x128xf32> to vector<128x128xf32>
    %84 = arith.addf %81, %83 : vector<128x128xf32>
    %cst_72 = arith.constant 0.000000e+00 : f32
    %85 = vector.broadcast %cst_72 : f32 to vector<128x128xf32>
    %86 = arith.maximumf %84, %85 : vector<128x128xf32>
    %87 = arith.truncf %86 : vector<128x128xf32> to vector<128x128xbf16>
    %c0_73 = arith.constant 0 : index
    %c0_74 = arith.constant 0 : index
    %88 = vector.load %arg5[%c0_73, %c0_74] : memref<128x128xbf16, #tpu.memory_space<vmem>>, vector<128x128xbf16>
    tpu.vector_store %arg5[%c0_73, %c0_74], %87 {strides = array<i32>} : memref<128x128xbf16, #tpu.memory_space<vmem>>, vector<128x128xbf16>,
    return
  }
  func.func @transform_0(%arg0: i32) -> (i32, i32, i32, i32) {
    %c0_i32 = arith.constant 0 : i32
    %c0_i32_0 = arith.constant 0 : i32
    %c0_i32_1 = arith.constant 0 : i32
    %c0_i32_2 = arith.constant 0 : i32
    %c0_i32_3 = arith.constant 0 : i32
    return %c0_i32, %c0_i32_0, %c0_i32_1, %c0_i32_2 : i32, i32, i32, i32
  }
  func.func @transform_1(%arg0: i32) -> (i32, i32, i32) {
    %c0_i32 = arith.constant 0 : i32
    %c0_i32_0 = arith.constant 0 : i32
    %c0_i32_1 = arith.constant 0 : i32
    return %c0_i32, %c0_i32_0, %arg0 : i32, i32, i32
  }
  func.func @transform_2(%arg0: i32) -> (i32, i32) {
    %c0_i32 = arith.constant 0 : i32
    %c0_i32_0 = arith.constant 0 : i32
    return %c0_i32, %arg0 : i32, i32
  }
  func.func @transform_3(%arg0: i32) -> (i32, i32) {
    %c0_i32 = arith.constant 0 : i32
    %c0_i32_0 = arith.constant 0 : i32
    return %c0_i32, %arg0 : i32, i32
  }
  func.func @transform_4(%arg0: i32) -> (i32, i32) {
    %c0_i32 = arith.constant 0 : i32
    %c0_i32_0 = arith.constant 0 : i32
    return %c0_i32, %arg0 : i32, i32
  }
}

module attributes {stable_mosaic.version = 11 : i64} {
  func.func @_fused_conv_bn_relu_kernel(%arg0: i32, %arg1: memref<3x10x16x256xbf16, #tpu.memory_space<vmem>>, %arg2: memref<9x256x128xbf16, #tpu.memory_space<vmem>>, %arg3: memref<1x128xf32, #tpu.memory_space<vmem>>, %arg4: memref<1x128xf32, #tpu.memory_space<vmem>>, %arg5: memref<128x128xf32, #tpu.memory_space<vmem>>) attributes {dimension_semantics = [#tpu.dimension_semantics<parallel>], iteration_bounds = array<i64: 1>, scalar_prefetch = 0 : i64, scratch_operands = 0 : i64, tpu.core_type = #tpu.core_type<tc>, window_params = [{pipeline_mode = #tpu.pipeline_mode<synchronous>, transform_indices = @transform_0, window_bounds = array<i64: 3, 10, 16, 256>}, {transform_indices = @transform_1, window_bounds = array<i64: 9, 256, 128>}, {transform_indices = @transform_2, window_bounds = array<i64: 1, 128>}, {transform_indices = @transform_3, window_bounds = array<i64: 1, 128>}, {transform_indices = @transform_4, window_bounds = array<i64: 128, 128>}]} {
    %cst = arith.constant 0.000000e+00 : f32
    %0 = vector.broadcast %cst : f32 to vector<128x128xf32>
    %c0 = arith.constant 0 : index
    %c0_0 = arith.constant 0 : index
    %c0_1 = arith.constant 0 : index
    %c0_2 = arith.constant 0 : index
    %1 = vector.load %arg1[%c0, %c0_0, %c0_1, %c0_2] : memref<3x10x16x256xbf16, #tpu.memory_space<vmem>>, vector<1x8x16x256xbf16>
    %2 = vector.shape_cast %1 : vector<1x8x16x256xbf16> to vector<8x16x256xbf16>
    %3 = vector.shape_cast %2 : vector<8x16x256xbf16> to vector<128x256xbf16>
    %c0_3 = arith.constant 0 : index
    %c0_4 = arith.constant 0 : index
    %c0_5 = arith.constant 0 : index
    %4 = vector.load %arg2[%c0_3, %c0_4, %c0_5] : memref<9x256x128xbf16, #tpu.memory_space<vmem>>, vector<1x256x128xbf16>
    %5 = vector.shape_cast %4 : vector<1x256x128xbf16> to vector<256x128xbf16>
    %cst_6 = arith.constant dense<0.000000e+00> : vector<128x128xf32>
    %6 = tpu.matmul %3, %5, %cst_6 {dimension_numbers = #tpu.dot_dimension_numbers<[1], [0], [0], [1], [0, 0, 1, 1], [], []>} : vector<128x256xbf16>, vector<256x128xbf16>, vector<128x128xf32> -> vector<128x128xf32>
    %7 = arith.addf %0, %6 : vector<128x128xf32>
    %c1 = arith.constant 1 : index
    %c0_7 = arith.constant 0 : index
    %c0_8 = arith.constant 0 : index
    %c0_9 = arith.constant 0 : index
    %8 = vector.load %arg1[%c1, %c0_7, %c0_8, %c0_9] : memref<3x10x16x256xbf16, #tpu.memory_space<vmem>>, vector<1x8x16x256xbf16>
    %9 = vector.shape_cast %8 : vector<1x8x16x256xbf16> to vector<8x16x256xbf16>
    %10 = vector.shape_cast %9 : vector<8x16x256xbf16> to vector<128x256xbf16>
    %c1_10 = arith.constant 1 : index
    %c0_11 = arith.constant 0 : index
    %c0_12 = arith.constant 0 : index
    %11 = vector.load %arg2[%c1_10, %c0_11, %c0_12] : memref<9x256x128xbf16, #tpu.memory_space<vmem>>, vector<1x256x128xbf16>
    %12 = vector.shape_cast %11 : vector<1x256x128xbf16> to vector<256x128xbf16>
    %cst_13 = arith.constant dense<0.000000e+00> : vector<128x128xf32>
    %13 = tpu.matmul %10, %12, %cst_13 {dimension_numbers = #tpu.dot_dimension_numbers<[1], [0], [0], [1], [0, 0, 1, 1], [], []>} : vector<128x256xbf16>, vector<256x128xbf16>, vector<128x128xf32> -> vector<128x128xf32>
    %14 = arith.addf %7, %13 : vector<128x128xf32>
    %c2 = arith.constant 2 : index
    %c0_14 = arith.constant 0 : index
    %c0_15 = arith.constant 0 : index
    %c0_16 = arith.constant 0 : index
    %15 = vector.load %arg1[%c2, %c0_14, %c0_15, %c0_16] : memref<3x10x16x256xbf16, #tpu.memory_space<vmem>>, vector<1x8x16x256xbf16>
    %16 = vector.shape_cast %15 : vector<1x8x16x256xbf16> to vector<8x16x256xbf16>
    %17 = vector.shape_cast %16 : vector<8x16x256xbf16> to vector<128x256xbf16>
    %c2_17 = arith.constant 2 : index
    %c0_18 = arith.constant 0 : index
    %c0_19 = arith.constant 0 : index
    %18 = vector.load %arg2[%c2_17, %c0_18, %c0_19] : memref<9x256x128xbf16, #tpu.memory_space<vmem>>, vector<1x256x128xbf16>
    %19 = vector.shape_cast %18 : vector<1x256x128xbf16> to vector<256x128xbf16>
    %cst_20 = arith.constant dense<0.000000e+00> : vector<128x128xf32>
    %20 = tpu.matmul %17, %19, %cst_20 {dimension_numbers = #tpu.dot_dimension_numbers<[1], [0], [0], [1], [0, 0, 1, 1], [], []>} : vector<128x256xbf16>, vector<256x128xbf16>, vector<128x128xf32> -> vector<128x128xf32>
    %21 = arith.addf %14, %20 : vector<128x128xf32>
    %c0_21 = arith.constant 0 : index
    %c1_22 = arith.constant 1 : index
    %c0_23 = arith.constant 0 : index
    %c0_24 = arith.constant 0 : index
    %22 = vector.load %arg1[%c0_21, %c1_22, %c0_23, %c0_24] : memref<3x10x16x256xbf16, #tpu.memory_space<vmem>>, vector<1x8x16x256xbf16>
    %23 = vector.shape_cast %22 : vector<1x8x16x256xbf16> to vector<8x16x256xbf16>
    %24 = vector.shape_cast %23 : vector<8x16x256xbf16> to vector<128x256xbf16>
    %c3 = arith.constant 3 : index
    %c0_25 = arith.constant 0 : index
    %c0_26 = arith.constant 0 : index
    %25 = vector.load %arg2[%c3, %c0_25, %c0_26] : memref<9x256x128xbf16, #tpu.memory_space<vmem>>, vector<1x256x128xbf16>
    %26 = vector.shape_cast %25 : vector<1x256x128xbf16> to vector<256x128xbf16>
    %cst_27 = arith.constant dense<0.000000e+00> : vector<128x128xf32>
    %27 = tpu.matmul %24, %26, %cst_27 {dimension_numbers = #tpu.dot_dimension_numbers<[1], [0], [0], [1], [0, 0, 1, 1], [], []>} : vector<128x256xbf16>, vector<256x128xbf16>, vector<128x128xf32> -> vector<128x128xf32>
    %28 = arith.addf %21, %27 : vector<128x128xf32>
    %c1_28 = arith.constant 1 : index
    %c1_29 = arith.constant 1 : index
    %c0_30 = arith.constant 0 : index
    %c0_31 = arith.constant 0 : index
    %29 = vector.load %arg1[%c1_28, %c1_29, %c0_30, %c0_31] : memref<3x10x16x256xbf16, #tpu.memory_space<vmem>>, vector<1x8x16x256xbf16>
    %30 = vector.shape_cast %29 : vector<1x8x16x256xbf16> to vector<8x16x256xbf16>
    %31 = vector.shape_cast %30 : vector<8x16x256xbf16> to vector<128x256xbf16>
    %c4 = arith.constant 4 : index
    %c0_32 = arith.constant 0 : index
    %c0_33 = arith.constant 0 : index
    %32 = vector.load %arg2[%c4, %c0_32, %c0_33] : memref<9x256x128xbf16, #tpu.memory_space<vmem>>, vector<1x256x128xbf16>
    %33 = vector.shape_cast %32 : vector<1x256x128xbf16> to vector<256x128xbf16>
    %cst_34 = arith.constant dense<0.000000e+00> : vector<128x128xf32>
    %34 = tpu.matmul %31, %33, %cst_34 {dimension_numbers = #tpu.dot_dimension_numbers<[1], [0], [0], [1], [0, 0, 1, 1], [], []>} : vector<128x256xbf16>, vector<256x128xbf16>, vector<128x128xf32> -> vector<128x128xf32>
    %35 = arith.addf %28, %34 : vector<128x128xf32>
    %c2_35 = arith.constant 2 : index
    %c1_36 = arith.constant 1 : index
    %c0_37 = arith.constant 0 : index
    %c0_38 = arith.constant 0 : index
    %36 = vector.load %arg1[%c2_35, %c1_36, %c0_37, %c0_38] : memref<3x10x16x256xbf16, #tpu.memory_space<vmem>>, vector<1x8x16x256xbf16>
    %37 = vector.shape_cast %36 : vector<1x8x16x256xbf16> to vector<8x16x256xbf16>
    %38 = vector.shape_cast %37 : vector<8x16x256xbf16> to vector<128x256xbf16>
    %c5 = arith.constant 5 : index
    %c0_39 = arith.constant 0 : index
    %c0_40 = arith.constant 0 : index
    %39 = vector.load %arg2[%c5, %c0_39, %c0_40] : memref<9x256x128xbf16, #tpu.memory_space<vmem>>, vector<1x256x128xbf16>
    %40 = vector.shape_cast %39 : vector<1x256x128xbf16> to vector<256x128xbf16>
    %cst_41 = arith.constant dense<0.000000e+00> : vector<128x128xf32>
    %41 = tpu.matmul %38, %40, %cst_41 {dimension_numbers = #tpu.dot_dimension_numbers<[1], [0], [0], [1], [0, 0, 1, 1], [], []>} : vector<128x256xbf16>, vector<256x128xbf16>, vector<128x128xf32> -> vector<128x128xf32>
    %42 = arith.addf %35, %41 : vector<128x128xf32>
    %c0_42 = arith.constant 0 : index
    %c2_43 = arith.constant 2 : index
    %c0_44 = arith.constant 0 : index
    %c0_45 = arith.constant 0 : index
    %43 = vector.load %arg1[%c0_42, %c2_43, %c0_44, %c0_45] : memref<3x10x16x256xbf16, #tpu.memory_space<vmem>>, vector<1x8x16x256xbf16>
    %44 = vector.shape_cast %43 : vector<1x8x16x256xbf16> to vector<8x16x256xbf16>
    %45 = vector.shape_cast %44 : vector<8x16x256xbf16> to vector<128x256xbf16>
    %c6 = arith.constant 6 : index
    %c0_46 = arith.constant 0 : index
    %c0_47 = arith.constant 0 : index
    %46 = vector.load %arg2[%c6, %c0_46, %c0_47] : memref<9x256x128xbf16, #tpu.memory_space<vmem>>, vector<1x256x128xbf16>
    %47 = vector.shape_cast %46 : vector<1x256x128xbf16> to vector<256x128xbf16>
    %cst_48 = arith.constant dense<0.000000e+00> : vector<128x128xf32>
    %48 = tpu.matmul %45, %47, %cst_48 {dimension_numbers = #tpu.dot_dimension_numbers<[1], [0], [0], [1], [0, 0, 1, 1], [], []>} : vector<128x256xbf16>, vector<256x128xbf16>, vector<128x128xf32> -> vector<128x128xf32>
    %49 = arith.addf %42, %48 : vector<128x128xf32>
    %c1_49 = arith.constant 1 : index
    %c2_50 = arith.constant 2 : index
    %c0_51 = arith.constant 0 : index
    %c0_52 = arith.constant 0 : index
    %50 = vector.load %arg1[%c1_49, %c2_50, %c0_51, %c0_52] : memref<3x10x16x256xbf16, #tpu.memory_space<vmem>>, vector<1x8x16x256xbf16>
    %51 = vector.shape_cast %50 : vector<1x8x16x256xbf16> to vector<8x16x256xbf16>
    %52 = vector.shape_cast %51 : vector<8x16x256xbf16> to vector<128x256xbf16>
    %c7 = arith.constant 7 : index
    %c0_53 = arith.constant 0 : index
    %c0_54 = arith.constant 0 : index
    %53 = vector.load %arg2[%c7, %c0_53, %c0_54] : memref<9x256x128xbf16, #tpu.memory_space<vmem>>, vector<1x256x128xbf16>
    %54 = vector.shape_cast %53 : vector<1x256x128xbf16> to vector<256x128xbf16>
    %cst_55 = arith.constant dense<0.000000e+00> : vector<128x128xf32>
    %55 = tpu.matmul %52, %54, %cst_55 {dimension_numbers = #tpu.dot_dimension_numbers<[1], [0], [0], [1], [0, 0, 1, 1], [], []>} : vector<128x256xbf16>, vector<256x128xbf16>, vector<128x128xf32> -> vector<128x128xf32>
    %56 = arith.addf %49, %55 : vector<128x128xf32>
    %c2_56 = arith.constant 2 : index
    %c2_57 = arith.constant 2 : index
    %c0_58 = arith.constant 0 : index
    %c0_59 = arith.constant 0 : index
    %57 = vector.load %arg1[%c2_56, %c2_57, %c0_58, %c0_59] : memref<3x10x16x256xbf16, #tpu.memory_space<vmem>>, vector<1x8x16x256xbf16>
    %58 = vector.shape_cast %57 : vector<1x8x16x256xbf16> to vector<8x16x256xbf16>
    %59 = vector.shape_cast %58 : vector<8x16x256xbf16> to vector<128x256xbf16>
    %c8 = arith.constant 8 : index
    %c0_60 = arith.constant 0 : index
    %c0_61 = arith.constant 0 : index
    %60 = vector.load %arg2[%c8, %c0_60, %c0_61] : memref<9x256x128xbf16, #tpu.memory_space<vmem>>, vector<1x256x128xbf16>
    %61 = vector.shape_cast %60 : vector<1x256x128xbf16> to vector<256x128xbf16>
    %cst_62 = arith.constant dense<0.000000e+00> : vector<128x128xf32>
    %62 = tpu.matmul %59, %61, %cst_62 {dimension_numbers = #tpu.dot_dimension_numbers<[1], [0], [0], [1], [0, 0, 1, 1], [], []>} : vector<128x256xbf16>, vector<256x128xbf16>, vector<128x128xf32> -> vector<128x128xf32>
    %63 = arith.addf %56, %62 : vector<128x128xf32>
    %cst_63 = arith.constant dense<0.000000e+00> : vector<128xf32>
    %64 = vector.multi_reduction <add>, %63, %cst_63 [0] : vector<128x128xf32> to vector<128xf32>
    %65 = vector.shape_cast %64 : vector<128xf32> to vector<1x128xf32>
    %cst_64 = arith.constant 7.812500e-03 : f32
    %66 = vector.broadcast %cst_64 : f32 to vector<1x128xf32>
    %67 = arith.mulf %65, %66 : vector<1x128xf32>
    %68 = vector.broadcast %67 : vector<1x128xf32> to vector<128x128xf32>
    %69 = arith.subf %63, %68 : vector<128x128xf32>
    %70 = arith.mulf %69, %69 : vector<128x128xf32>
    %cst_65 = arith.constant dense<0.000000e+00> : vector<128xf32>
    %71 = vector.multi_reduction <add>, %70, %cst_65 [0] : vector<128x128xf32> to vector<128xf32>
    %72 = vector.shape_cast %71 : vector<128xf32> to vector<1x128xf32>
    %cst_66 = arith.constant 7.812500e-03 : f32
    %73 = vector.broadcast %cst_66 : f32 to vector<1x128xf32>
    %74 = arith.mulf %72, %73 : vector<1x128xf32>
    %c0_67 = arith.constant 0 : index
    %c0_68 = arith.constant 0 : index
    %75 = vector.load %arg3[%c0_67, %c0_68] : memref<1x128xf32, #tpu.memory_space<vmem>>, vector<1x128xf32>
    %cst_69 = arith.constant 9.99999974E-6 : f32
    %76 = vector.broadcast %cst_69 : f32 to vector<1x128xf32>
    %77 = arith.addf %74, %76 : vector<1x128xf32>
    %78 = math.rsqrt %77 : vector<1x128xf32>
    %79 = arith.mulf %75, %78 : vector<1x128xf32>
    %80 = vector.broadcast %79 : vector<1x128xf32> to vector<128x128xf32>
    %81 = arith.mulf %69, %80 : vector<128x128xf32>
    %c0_70 = arith.constant 0 : index
    %c0_71 = arith.constant 0 : index
    %82 = vector.load %arg4[%c0_70, %c0_71] : memref<1x128xf32, #tpu.memory_space<vmem>>, vector<1x128xf32>
    %83 = vector.broadcast %82 : vector<1x128xf32> to vector<128x128xf32>
    %84 = arith.addf %81, %83 : vector<128x128xf32>
    %cst_72 = arith.constant 0.000000e+00 : f32
    %85 = vector.broadcast %cst_72 : f32 to vector<128x128xf32>
    %86 = arith.maximumf %84, %85 : vector<128x128xf32>
    %c0_73 = arith.constant 0 : index
    %c0_74 = arith.constant 0 : index
    %87 = vector.load %arg5[%c0_73, %c0_74] : memref<128x128xf32, #tpu.memory_space<vmem>>, vector<128x128xf32>
    tpu.vector_store %arg5[%c0_73, %c0_74], %86 {strides = array<i32>} : memref<128x128xf32, #tpu.memory_space<vmem>>, vector<128x128xf32>,
    return
  }
  func.func @transform_0(%arg0: i32) -> (i32, i32, i32, i32) {
    %c0_i32 = arith.constant 0 : i32
    %c0_i32_0 = arith.constant 0 : i32
    %c0_i32_1 = arith.constant 0 : i32
    %c0_i32_2 = arith.constant 0 : i32
    %c0_i32_3 = arith.constant 0 : i32
    return %c0_i32, %c0_i32_0, %c0_i32_1, %c0_i32_2 : i32, i32, i32, i32
  }
  func.func @transform_1(%arg0: i32) -> (i32, i32, i32) {
    %c0_i32 = arith.constant 0 : i32
    %c0_i32_0 = arith.constant 0 : i32
    %c0_i32_1 = arith.constant 0 : i32
    return %c0_i32, %c0_i32_0, %arg0 : i32, i32, i32
  }
  func.func @transform_2(%arg0: i32) -> (i32, i32) {
    %c0_i32 = arith.constant 0 : i32
    %c0_i32_0 = arith.constant 0 : i32
    return %c0_i32, %arg0 : i32, i32
  }
  func.func @transform_3(%arg0: i32) -> (i32, i32) {
    %c0_i32 = arith.constant 0 : i32
    %c0_i32_0 = arith.constant 0 : i32
    return %c0_i32, %arg0 : i32, i32
  }
  func.func @transform_4(%arg0: i32) -> (i32, i32) {
    %c0_i32 = arith.constant 0 : i32
    %c0_i32_0 = arith.constant 0 : i32
    return %c0_i32, %arg0 : i32, i32
  }
}

</mosaic_0001>

<bundles_post_ra>
// kernel: theta2_forward.3
= control target key start
LH: loop header
LB: loop body
LE: loop exit
PB: predicated region body
PF: predicated region fallthrough
CT: control target
= control target key end

     0   :  { %s6012_s1 = inlined_call_operand.vmem [shape: bf16[9,256,128], index: 1, kind: input, shape index: {}]   ;;  %s6013_s0 = inlined_call_operand.vmem [shape: bf16[3,10,16,256], index: 0, kind: input, shape index: {}]   ;;  %s6014_s2 = inlined_call_operand.vmem [shape: f32[1,128], index: 2, kind: input, shape index: {}]   ;;  %s6015_s3 = inlined_call_operand.vmem [shape: f32[1,128], index: 3, kind: input, shape index: {}]   ;;  %s6016_s4 = inlined_call_operand.vmem [shape: f32[128,128], index: 4, kind: output, shape index: {}]  }
   0x1   :  { %v4461_v0 = vld [vmem:[%s6012_s1 + $0xc0] sm:$0xff]   ;;  %v4463_v2 = vld [vmem:[%s6012_s1 + $0xc8] sm:$0xff]   ;;  %v4465_v4 = vld [vmem:[%s6012_s1 + $0xd0] sm:$0xff]  }
   0x2   :  { %v4462_v1 = vld [vmem:[%s6012_s1 + $0x80] sm:$0xff]   ;;  %3869 = vmatprep.subr.bf16.mxu0 %v4461_v0  ;;  %4445 = vmatprep.subr.bf16.mxu1 %v4461_v0  ;;  %v4464_v3 = vld [vmem:[%s6012_s1 + $0x88] sm:$0xff]   ;;  %v4466_v5 = vld [vmem:[%s6012_s1 + $0x90] sm:$0xff]  }
   0x3   :  { %3870 = vmatpush3.bf16.msra.mxu0 %v4462_v1  ;;  %4453 = vmatpush3.bf16.msra.mxu1 %v4462_v1  ;;  %v4467_v6 = vld [vmem:[%s6012_s1 + $0xd8] sm:$0xff]   ;;  %v4469_v8 = vld [vmem:[%s6012_s1 + $0xe0] sm:$0xff]   ;;  %v4471_v10 = vld [vmem:[%s6012_s1 + $0xe8] sm:$0xff]  }
   0x4   :  { %3871 = vmatprep.subr.bf16.mxu0 %v4463_v2  ;;  %4446 = vmatprep.subr.bf16.mxu1 %v4463_v2  ;;  %v4468_v7 = vld [vmem:[%s6012_s1 + $0x98] sm:$0xff]   ;;  %v4470_v9 = vld [vmem:[%s6012_s1 + $0xa0] sm:$0xff]   ;;  %v4472_v13 = vld [vmem:[%s6012_s1 + $0xa8] sm:$0xff]  }
   0x5   :  { %v4479_v11 = vld [vmem:[%s6013_s0 + $0xa4] ss:$8 sps:$4 sm:$0xff]   ;;  %v4473_v14 = vld [vmem:[%s6012_s1 + $0xf0] sm:$0xff]   ;;  %v4475_v16 = vld [vmem:[%s6012_s1 + $0xf8] sm:$0xff]  }
   0x6   :  { %v4482_v12 = vld [vmem:[%s6013_s0 + $0xe4] ss:$8 sps:$4 sm:$0xff]   ;;  %324 = vmatprep.mubr.bf16.mxu0 %v4479_v11  ;;  %v4474_v15 = vld [vmem:[%s6012_s1 + $0xb0] sm:$0xff]   ;;  %v4476_v17 = vld [vmem:[%s6012_s1 + $0xb8] sm:$0xff]  }
   0x7   :  { %3872 = vmatpush3.bf16.msra.mxu0 %v4464_v3  ;;  %4454 = vmatpush3.bf16.msra.mxu1 %v4464_v3  ;;  %v4477_v18 = vld [vmem:[%s6013_s0 + $0xa0] ss:$8 sps:$4 sm:$0xff]   ;;  %v4842_v26 = vld [vmem:[%s6013_s0 + $0xb4] ss:$8 sps:$4 sm:$0xff]   ;;  %v4861_v31 = vld [vmem:[%s6013_s0 + $0xb0] ss:$8 sps:$4 sm:$0xff]  }
   0x8   :  { %3873 = vmatprep.subr.bf16.mxu0 %v4465_v4  ;;  %4447 = vmatprep.subr.bf16.mxu1 %v4465_v4  ;;  %v4480_v19 = vld [vmem:[%s6013_s0 + $0xe0] ss:$8 sps:$4 sm:$0xff]   ;;  %v4850_v28 = vld [vmem:[%s6013_s0 + $0xf4] ss:$8 sps:$4 sm:$0xff]   ;;  %v4496_v33 = vld [vmem:[%s6013_s0 + $0xf0] ss:$8 sps:$4 sm:$0xff]  }
   0x9   :  { %356 = vmatprep.mubr.bf16.mxu1 %v4482_v12  ;;  %v4483_v20 = vld [vmem:[%s6012_s1 + $0x40] sm:$0xff]   ;;  %v4487_v24 = vld [vmem:[%s6012_s1 + $0x48] sm:$0xff]   ;;  %v4497_v30 = vld [vmem:[%s6012_s1 + $0x50] sm:$0xff]  }
   0xa   :  { %v4484_v21 = vld [vmem:[%s6012_s1 + $0x140] sm:$0xff]   ;;  %v4488_v25 = vld [vmem:[%s6012_s1 + $0x148] sm:$0xff]   ;;  %v4498_v32 = vld [vmem:[%s6012_s1 + $0x150] sm:$0xff]  }
   0xb   :  { %3874 = vmatpush3.bf16.msra.mxu0 %v4466_v5  ;;  %4455 = vmatpush3.bf16.msra.mxu1 %v4466_v5  ;;  %v4485_v22 = vld [vmem:[%s6012_s1] sm:$0xff]   ;;  %v4489_v27 = vld [vmem:[%s6012_s1 + $0x8] sm:$0xff]   ;;  %v4499_v34 = vld [vmem:[%s6012_s1 + $0x10] sm:$0xff]  }
   0xc   :  { %3875 = vmatprep.subr.bf16.mxu0 %v4467_v6  ;;  %4448 = vmatprep.subr.bf16.mxu1 %v4467_v6  ;;  %v4486_v23 = vld [vmem:[%s6012_s1 + $0x100] sm:$0xff]   ;;  %v4490_v29 = vld [vmem:[%s6012_s1 + $0x108] sm:$0xff]   ;;  %v4500_v35 = vld [vmem:[%s6012_s1 + $0x110] sm:$0xff]  }
   0xd   :  { %v4501_v36 = vld [vmem:[%s6012_s1 + $0x58] sm:$0xff]   ;;  %v4886_v38 = vld [vmem:[%s6013_s0 + $0xc4] ss:$8 sps:$4 sm:$0xff]   ;;  %v4906_v43 = vld [vmem:[%s6013_s0 + $0xc0] ss:$8 sps:$4 sm:$0xff]  }
   0xe   :  { %v4502_v37 = vld [vmem:[%s6012_s1 + $0x158] sm:$0xff]   ;;  %v4894_v40 = vld [vmem:[%s6013_s0 + $0x104] ss:$8 sps:$4 sm:$0xff]   ;;  %v4911_v44 = vld [vmem:[%s6013_s0 + $0x100] ss:$8 sps:$4 sm:$0xff]  }
   0xf   :  { %3876 = vmatpush3.bf16.msra.mxu0 %v4468_v7  ;;  %4456 = vmatpush3.bf16.msra.mxu1 %v4468_v7  ;;  %v4503_v39 = vld [vmem:[%s6012_s1 + $0x18] sm:$0xff]   ;;  %v4511_v42 = vld [vmem:[%s6012_s1 + $0x60] sm:$0xff]   ;;  %v4515_v48 = vld [vmem:[%s6012_s1 + $0x68] sm:$0xff]  }
  0x10   :  { %3877 = vmatprep.subr.bf16.mxu0 %v4469_v8  ;;  %4449 = vmatprep.subr.bf16.mxu1 %v4469_v8  ;;  %v4504_v41 = vld [vmem:[%s6012_s1 + $0x118] sm:$0xff]   ;;  %v4512_v45 = vld [vmem:[%s6012_s1 + $0x160] sm:$0xff]   ;;  %v4516_v49 = vld [vmem:[%s6012_s1 + $0x168] sm:$0xff]  }
  0x11   :  { %v4513_v46 = vld [vmem:[%s6012_s1 + $0x20] sm:$0xff]   ;;  %v4933_v50 = vld [vmem:[%s6013_s0 + $0xd4] ss:$8 sps:$4 sm:$0xff]   ;;  %v4517_v52 = vld [vmem:[%s6012_s1 + $0x28] sm:$0xff]  }
  0x12   :  { %v4514_v47 = vld [vmem:[%s6012_s1 + $0x120] sm:$0xff]   ;;  %v4938_v51 = vld [vmem:[%s6013_s0 + $0x114] ss:$8 sps:$4 sm:$0xff]   ;;  %v4518_v53 = vld [vmem:[%s6012_s1 + $0x128] sm:$0xff]  }
  0x13   :  { %3878 = vmatpush3.bf16.msra.mxu0 %v4470_v9  ;;  %4457 = vmatpush3.bf16.msra.mxu1 %v4470_v9  ;;  %v4525_v54 = vld [vmem:[%s6012_s1 + $0x70] sm:$0xff]   ;;  %v4529_v60 = vld [vmem:[%s6012_s1 + $0x78] sm:$0xff]   ;;  %v4535_v0 = vld [vmem:[%s6013_s0 + $0x4] ss:$8 sps:$4 sm:$0xff]  }
  0x14   :  { %3879 = vmatprep.subr.bf16.mxu0 %v4471_v10  ;;  %4450 = vmatprep.subr.bf16.mxu1 %v4471_v10  ;;  %v4954_v55 = vld [vmem:[%s6013_s0 + $0xd0] ss:$8 sps:$4 sm:$0xff]   ;;  %v4533_v1 = vld [vmem:[%s6013_s0] ss:$8 sps:$4 sm:$0xff]   ;;  %v4538_v3 = vld [vmem:[%s6013_s0 + $0x144] ss:$8 sps:$4 sm:$0xff]  }
  0x15   :  { %v4959_v56 = vld [vmem:[%s6013_s0 + $0x110] ss:$8 sps:$4 sm:$0xff]   ;;  %v4536_v2 = vld [vmem:[%s6013_s0 + $0x140] ss:$8 sps:$4 sm:$0xff]   ;;  %v5013_v8 = vld [vmem:[%s6013_s0 + $0x14] ss:$8 sps:$4 sm:$0xff]  }
  0x16   :  { %v4526_v57 = vld [vmem:[%s6012_s1 + $0x170] sm:$0xff]   ;;  %v4530_v61 = vld [vmem:[%s6012_s1 + $0x178] sm:$0xff]   ;;  %v4539_v4 = vld [vmem:[%s6012_s1 + $0x1c0] sm:$0xff]  }
  0x17   :  { %3880 = vmatpush3.bf16.msra.mxu0 %v4472_v13  ;;  %4458 = vmatpush3.bf16.msra.mxu1 %v4472_v13  ;;  %v4527_v58 = vld [vmem:[%s6012_s1 + $0x30] sm:$0xff]   ;;  %v4531_v62 = vld [vmem:[%s6012_s1 + $0x38] sm:$0xff]   ;;  %v4540_v5 = vld [vmem:[%s6012_s1 + $0x180] sm:$0xff]  }
  0x18   :  { %3881 = vmatprep.subr.bf16.mxu0 %v4473_v14  ;;  %4451 = vmatprep.subr.bf16.mxu1 %v4473_v14  ;;  %v4528_v59 = vld [vmem:[%s6012_s1 + $0x130] sm:$0xff]   ;;  %v4532_v63 = vld [vmem:[%s6012_s1 + $0x138] sm:$0xff]   ;;  %v4541_v6 = vld [vmem:[%s6012_s1 + $0x240] sm:$0xff]  }
  0x19   :  { %v4542_v7 = vld [vmem:[%s6012_s1 + $0x200] sm:$0xff]   ;;  %v5018_v9 = vld [vmem:[%s6013_s0 + $0x154] ss:$8 sps:$4 sm:$0xff]   ;;  %v5024_v10 = vld [vmem:[%s6013_s0 + $0x10] ss:$8 sps:$4 sm:$0xff]  }
  0x1a   :  { %v5029_v11 = vld [vmem:[%s6013_s0 + $0x150] ss:$8 sps:$4 sm:$0xff]   ;;  %v4549_v12 = vld [vmem:[%s6012_s1 + $0x1c8] sm:$0xff]  }
  0x1b   :  { %3882 = vmatpush3.bf16.msra.mxu0 %v4474_v15  ;;  %4459 = vmatpush3.bf16.msra.mxu1 %v4474_v15  ;;  %v4550_v13 = vld [vmem:[%s6012_s1 + $0x188] sm:$0xff]  }
  0x1c   :  { %3883 = vmatprep.subr.bf16.mxu0 %v4475_v16  ;;  %4452 = vmatprep.subr.bf16.mxu1 %v4475_v16  ;;  %v4551_v14 = vld [vmem:[%s6012_s1 + $0x248] sm:$0xff]  }
  0x1d   :  { %v4552_v15 = vld [vmem:[%s6012_s1 + $0x208] sm:$0xff]  }
  0x1e   :  { %v5047_v16 = vld [vmem:[%s6013_s0 + $0x24] ss:$8 sps:$4 sm:$0xff]  }
  0x1f   :  { %3884 = vmatpush3.bf16.msra.mxu0 %v4476_v17  ;;  %4460 = vmatpush3.bf16.msra.mxu1 %v4476_v17  ;;  %v5052_v17 = vld [vmem:[%s6013_s0 + $0x164] ss:$8 sps:$4 sm:$0xff]  }
  0x20   :  { %3933 = vmatprep.subr.bf16.mxu1 %v4483_v20  ;;  %3997 = vmatprep.subr.bf16.mxu0 %v4484_v21  ;;  %v5069_v20 = vld [vmem:[%s6013_s0 + $0x160] ss:$8 sps:$4 sm:$0xff]   ;;  %v4560_v21 = vld [vmem:[%s6012_s1 + $0x190] sm:$0xff]  }
  0x22   :  { %325 = vmatmul.mubr.bf16.vlgmr.msra.gmra.mrb[0].mxu0 %v4477_v18  ;;  %357 = vmatmul.mubr.bf16.vlgmr.msra.gmra.mrb[0].mxu1 %v4480_v19  ;;  %v4559_v18 = vld [vmem:[%s6012_s1 + $0x1d0] sm:$0xff]   ;;  %v5064_v19 = vld [vmem:[%s6013_s0 + $0x20] ss:$8 sps:$4 sm:$0xff]  }
  0x23   :  { %3934 = vmatpush3.bf16.msra.mxu1 %v4485_v22  ;;  %3998 = vmatpush3.bf16.msra.mxu0 %v4486_v23  ;;  %v4561_v22 = vld [vmem:[%s6012_s1 + $0x250] sm:$0xff]  }
  0x24   :  { %3935 = vmatprep.subr.bf16.mxu1 %v4487_v24  ;;  %3999 = vmatprep.subr.bf16.mxu0 %v4488_v25  ;;  %v4562_v23 = vld [vmem:[%s6012_s1 + $0x210] sm:$0xff]  }
  0x25   :  { %332 = vmatprep.mubr.bf16.mxu0 %v4842_v26  ;;  %364 = vmatprep.mubr.bf16.mxu1 %v4850_v28  ;;  %v5083_v24 = vld [vmem:[%s6013_s0 + $0x34] ss:$8 sps:$4 sm:$0xff]  }
  0x26   :  { %v5088_v25 = vld [vmem:[%s6013_s0 + $0x174] ss:$8 sps:$4 sm:$0xff]  }
  0x27   :  { %3936 = vmatpush3.bf16.msra.mxu1 %v4489_v27  ;;  %4000 = vmatpush3.bf16.msra.mxu0 %v4490_v29  ;;  %v4569_v27 = vld [vmem:[%s6012_s1 + $0x1d8] sm:$0xff]  }
  0x28   :  { %3937 = vmatprep.subr.bf16.mxu1 %v4497_v30  ;;  %4001 = vmatprep.subr.bf16.mxu0 %v4498_v32  ;;  %v4570_v29 = vld [vmem:[%s6012_s1 + $0x198] sm:$0xff]  }
  0x29   :  { %v5103_v30 = vld [vmem:[%s6013_s0 + $0x30] ss:$8 sps:$4 sm:$0xff]  }
  0x2a   :  { %333 = vmatmul.mubr.bf16.gmra.mrb[4].mxu0 %v4861_v31  ;;  %365 = vmatmul.mubr.bf16.gmra.mrb[4].mxu1 %v4496_v33  ;;  %v4571_v32 = vld [vmem:[%s6012_s1 + $0x258] sm:$0xff]  }
  0x2b   :  { %3938 = vmatpush3.bf16.msra.mxu1 %v4499_v34  ;;  %4002 = vmatpush3.bf16.msra.mxu0 %v4500_v35  ;;  %v4572_v33 = vld [vmem:[%s6012_s1 + $0x218] sm:$0xff]   ;;  %v5119_v35 = vld [vmem:[%s6013_s0 + $0x44] ss:$8 sps:$4 sm:$0xff]  }
  0x2c   :  { %3939 = vmatprep.subr.bf16.mxu1 %v4501_v36  ;;  %4003 = vmatprep.subr.bf16.mxu0 %v4502_v37  ;;  %v5114_v34 = vld [vmem:[%s6013_s0 + $0x170] ss:$8 sps:$4 sm:$0xff]   ;;  %v5124_v36 = vld [vmem:[%s6013_s0 + $0x184] ss:$8 sps:$4 sm:$0xff]  }
  0x2d   :  { %340 = vmatprep.mubr.bf16.mxu0 %v4886_v38  ;;  %372 = vmatprep.mubr.bf16.mxu1 %v4894_v40  ;;  %v4579_v37 = vld [vmem:[%s6012_s1 + $0x1e0] sm:$0xff]  }
  0x2f   :  { %3940 = vmatpush3.bf16.msra.mxu1 %v4503_v39  ;;  %4004 = vmatpush3.bf16.msra.mxu0 %v4504_v41  ;;  %v4580_v39 = vld [vmem:[%s6012_s1 + $0x1a0] sm:$0xff]  }
  0x30   :  { %3941 = vmatprep.subr.bf16.mxu1 %v4511_v42  ;;  %4005 = vmatprep.subr.bf16.mxu0 %v4512_v45  ;;  %v4581_v41 = vld [vmem:[%s6012_s1 + $0x260] sm:$0xff]  }
  0x31   :  { %v4582_v42 = vld [vmem:[%s6012_s1 + $0x220] sm:$0xff]  }
  0x32   :  { %341 = vmatmul.mubr.bf16.gmra.mrb[8].mxu0 %v4906_v43  ;;  %373 = vmatmul.mubr.bf16.gmra.mrb[8].mxu1 %v4911_v44  ;;  %v5145_v45 = vld [vmem:[%s6013_s0 + $0x40] ss:$8 sps:$4 sm:$0xff]  }
  0x33   :  { %3942 = vmatpush3.bf16.msra.mxu1 %v4513_v46  ;;  %4006 = vmatpush3.bf16.msra.mxu0 %v4514_v47  ;;  %v5150_v46 = vld [vmem:[%s6013_s0 + $0x180] ss:$8 sps:$4 sm:$0xff]   ;;  %v5155_v47 = vld [vmem:[%s6013_s0 + $0x54] ss:$8 sps:$4 sm:$0xff]  }
  0x34   :  { %3943 = vmatprep.subr.bf16.mxu1 %v4515_v48  ;;  %4007 = vmatprep.subr.bf16.mxu0 %v4516_v49  ;;  %v5160_v48 = vld [vmem:[%s6013_s0 + $0x194] ss:$8 sps:$4 sm:$0xff]   ;;  %v4589_v49 = vld [vmem:[%s6012_s1 + $0x1e8] sm:$0xff]  }
  0x35   :  { %348 = vmatprep.mubr.bf16.mxu0 %v4933_v50  ;;  %380 = vmatprep.mubr.bf16.mxu1 %v4938_v51 }
  0x37   :  { %3944 = vmatpush3.bf16.msra.mxu1 %v4517_v52  ;;  %4008 = vmatpush3.bf16.msra.mxu0 %v4518_v53  ;;  %v4590_v52 = vld [vmem:[%s6012_s1 + $0x1a8] sm:$0xff]  }
  0x38   :  { %3945 = vmatprep.subr.bf16.mxu1 %v4525_v54  ;;  %4009 = vmatprep.subr.bf16.mxu0 %v4526_v57  ;;  %v4591_v53 = vld [vmem:[%s6012_s1 + $0x268] sm:$0xff]   ;;  %v5181_v57 = vld [vmem:[%s6013_s0 + $0x50] ss:$8 sps:$4 sm:$0xff]  }
  0x39   :  { %v4592_v54 = vld [vmem:[%s6012_s1 + $0x228] sm:$0xff]  }
  0x3a   :  { %349 = vmatmul.mubr.bf16.gmra.mrb[12].mxu0 %v4954_v55  ;;  %381 = vmatmul.mubr.bf16.gmra.mrb[12].mxu1 %v4959_v56 }
  0x3b   :  { %3946 = vmatpush3.bf16.msra.mxu1 %v4527_v58  ;;  %4010 = vmatpush3.bf16.msra.mxu0 %v4528_v59  ;;  %v5186_v58 = vld [vmem:[%s6013_s0 + $0x190] ss:$8 sps:$4 sm:$0xff]   ;;  %v5191_v59 = vld [vmem:[%s6013_s0 + $0x64] ss:$8 sps:$4 sm:$0xff]  }
  0x3c   :  { %3947 = vmatprep.subr.bf16.mxu1 %v4529_v60  ;;  %4011 = vmatprep.subr.bf16.mxu0 %v4530_v61  ;;  %v5196_v60 = vld [vmem:[%s6013_s0 + $0x1a4] ss:$8 sps:$4 sm:$0xff]   ;;  %v4599_v61 = vld [vmem:[%s6012_s1 + $0x1f0] sm:$0xff]  }
  0x3d   :  { %597 = vmatprep.mubr.bf16.mxu1 %v4535_v0  ;;  %920 = vmatprep.mubr.bf16.mxu0 %v4538_v3  ;;  %v4602_v0 = vld [vmem:[%s6012_s1 + $0x230] sm:$0xff]   ;;  %v4609_v3 = vld [vmem:[%s6012_s1 + $0x1f8] sm:$0xff]  }
  0x3f   :  { %3948 = vmatpush3.bf16.msra.mxu1 %v4531_v62  ;;  %4012 = vmatpush3.bf16.msra.mxu0 %v4532_v63  ;;  %v4600_v62 = vld [vmem:[%s6012_s1 + $0x1b0] sm:$0xff]  }
  0x40   :  { %4061 = vmatprep.subr.bf16.mxu1 %v4539_v4  ;;  %4125 = vmatprep.subr.bf16.mxu0 %v4541_v6  ;;  %v4601_v63 = vld [vmem:[%s6012_s1 + $0x270] sm:$0xff]   ;;  %v4610_v6 = vld [vmem:[%s6012_s1 + $0x1b8] sm:$0xff]  }
  0x41   :  { %v5230_v4 = vld [vmem:[%s6013_s0 + $0x74] ss:$8 sps:$4 sm:$0xff]  }
  0x42   :  { %598 = vmatmul.mubr.bf16.vlgmr.msra.gmra.mrb[16].mxu1 %v4533_v1  ;;  %921 = vmatmul.mubr.bf16.vlgmr.msra.gmra.mrb[16].mxu0 %v4536_v2  ;;  %v5217_v1 = vld [vmem:[%s6013_s0 + $0x60] ss:$8 sps:$4 sm:$0xff]  }
  0x43   :  { %4062 = vmatpush3.bf16.msra.mxu1 %v4540_v5  ;;  %4126 = vmatpush3.bf16.msra.mxu0 %v4542_v7  ;;  %v5222_v2 = vld [vmem:[%s6013_s0 + $0x1a0] ss:$8 sps:$4 sm:$0xff]   ;;  %v5235_v5 = vld [vmem:[%s6013_s0 + $0x1b4] ss:$8 sps:$4 sm:$0xff]  }
  0x44   :  { %605 = vmatprep.mubr.bf16.mxu1 %v5013_v8  ;;  %928 = vmatprep.mubr.bf16.mxu0 %v5018_v9  ;;  %v4611_v7 = vld [vmem:[%s6012_s1 + $0x278] sm:$0xff]  }
  0x45   :  { %4063 = vmatprep.subr.bf16.mxu1 %v4549_v12  ;;  %4127 = vmatprep.subr.bf16.mxu0 %v4551_v14  ;;  %v4612_v12 = vld [vmem:[%s6012_s1 + $0x238] sm:$0xff]   ;;  %v4615_v14 = vld [vmem:[%s6012_s1 + $0x340] sm:$0xff]  }
  0x47   :  { %4064 = vmatpush3.bf16.msra.mxu1 %v4550_v13  ;;  %4128 = vmatpush3.bf16.msra.mxu0 %v4552_v15  ;;  %v4613_v13 = vld [vmem:[%s6012_s1 + $0x2c0] sm:$0xff]   ;;  %v5259_v15 = vld [vmem:[%s6013_s0 + $0x70] ss:$8 sps:$4 sm:$0xff]  }
  0x48   :  { %4065 = vmatprep.subr.bf16.mxu1 %v4559_v18  ;;  %4129 = vmatprep.subr.bf16.mxu0 %v4561_v22  ;;  %v5264_v18 = vld [vmem:[%s6013_s0 + $0x1b0] ss:$8 sps:$4 sm:$0xff]   ;;  %v4616_v22 = vld [vmem:[%s6012_s1 + $0x300] sm:$0xff]  }
  0x4a   :  { %606 = vmatmul.mubr.bf16.gmra.mrb[20].mxu1 %v5024_v10  ;;  %929 = vmatmul.mubr.bf16.gmra.mrb[20].mxu0 %v5029_v11 }
  0x4b   :  { %613 = vmatprep.mubr.bf16.mxu1 %v5047_v16  ;;  %936 = vmatprep.mubr.bf16.mxu0 %v5052_v17 }
  0x4c   :  { %4066 = vmatpush3.bf16.msra.mxu1 %v4560_v21  ;;  %4130 = vmatpush3.bf16.msra.mxu0 %v4562_v23  ;;  %v4614_v21 = vld [vmem:[%s6012_s1 + $0x280] sm:$0xff]   ;;  %v4617_v23 = vld [vmem:[%s6012_s1 + $0x2c8] sm:$0xff]  }
  0x4d   :  { %4067 = vmatprep.subr.bf16.mxu1 %v4569_v27  ;;  %4131 = vmatprep.subr.bf16.mxu0 %v4571_v32  ;;  %v4618_v27 = vld [vmem:[%s6012_s1 + $0x288] sm:$0xff]   ;;  %v4624_v32 = vld [vmem:[%s6012_s1 + $0x310] sm:$0xff]  }
  0x50   :  { %4068 = vmatpush3.bf16.msra.mxu1 %v4570_v29  ;;  %4132 = vmatpush3.bf16.msra.mxu0 %v4572_v33  ;;  %v4621_v29 = vld [vmem:[%s6012_s1 + $0x2d0] sm:$0xff]   ;;  %v4627_v33 = vld [vmem:[%s6012_s1 + $0x358] sm:$0xff]  }
  0x51   :  { %4069 = vmatprep.subr.bf16.mxu1 %v4579_v37  ;;  %4133 = vmatprep.subr.bf16.mxu0 %v4581_v41  ;;  %v4626_v37 = vld [vmem:[%s6012_s1 + $0x298] sm:$0xff]   ;;  %v4629_v41 = vld [vmem:[%s6012_s1 + $0x2e0] sm:$0xff]  }
  0x52   :  { %614 = vmatmul.mubr.bf16.gmra.mrb[24].mxu1 %v5064_v19  ;;  %937 = vmatmul.mubr.bf16.gmra.mrb[24].mxu0 %v5069_v20 }
  0x53   :  { %621 = vmatprep.mubr.bf16.mxu1 %v5083_v24  ;;  %944 = vmatprep.mubr.bf16.mxu0 %v5088_v25 }
  0x54   :  { %4070 = vmatpush3.bf16.msra.mxu1 %v4580_v39  ;;  %4134 = vmatpush3.bf16.msra.mxu0 %v4582_v42  ;;  %v4628_v39 = vld [vmem:[%s6012_s1 + $0x318] sm:$0xff]   ;;  %v4632_v42 = vld [vmem:[%s6012_s1 + $0x320] sm:$0xff]  }
  0x55   :  { %4071 = vmatprep.subr.bf16.mxu1 %v4589_v49  ;;  %4135 = vmatprep.subr.bf16.mxu0 %v4591_v53  ;;  %v4633_v49 = vld [vmem:[%s6012_s1 + $0x2e8] sm:$0xff]  }
  0x56   :  { %v4634_v53 = vld [vmem:[%s6012_s1 + $0x2a8] sm:$0xff]  }
  0x58   :  { %4072 = vmatpush3.bf16.msra.mxu1 %v4590_v52  ;;  %4136 = vmatpush3.bf16.msra.mxu0 %v4592_v54  ;;  %v4635_v52 = vld [vmem:[%s6012_s1 + $0x368] sm:$0xff]  }
  0x59   :  { %4073 = vmatprep.subr.bf16.mxu1 %v4599_v61  ;;  %4137 = vmatprep.subr.bf16.mxu0 %v4601_v63  ;;  %v4733_v54 = vld [vmem:[%s6013_s0 + $0xe4] ss:$8 sps:$4 sm:$0xff]   ;;  %v4638_v63 = vld [vmem:[%s6012_s1 + $0x2b0] sm:$0xff]  }
  0x5a   :  { %622 = vmatmul.mubr.bf16.gmra.mrb[28].mxu1 %v5103_v30  ;;  %945 = vmatmul.mubr.bf16.gmra.mrb[28].mxu0 %v5114_v34  ;;  %v4636_v61 = vld [vmem:[%s6012_s1 + $0x328] sm:$0xff]  }
  0x5b   :  { %629 = vmatprep.mubr.bf16.mxu1 %v5119_v35  ;;  %952 = vmatprep.mubr.bf16.mxu0 %v5124_v36 }
  0x5c   :  { %4074 = vmatpush3.bf16.msra.mxu1 %v4600_v62  ;;  %4138 = vmatpush3.bf16.msra.mxu0 %v4602_v0  ;;  %v4639_v62 = vld [vmem:[%s6012_s1 + $0x370] sm:$0xff]  }
  0x5d   :  { %4075 = vmatprep.subr.bf16.mxu1 %v4609_v3  ;;  %4139 = vmatprep.subr.bf16.mxu0 %v4611_v7  ;;  %v4640_v0 = vld [vmem:[%s6012_s1 + $0x330] sm:$0xff]   ;;  %v4647_v3 = vld [vmem:[%s6012_s1 + $0x2f8] sm:$0xff]   ;;  %v4734_v7 = vld [vmem:[%s6013_s0 + $0xe0] ss:$8 sps:$4 sm:$0xff]  }
  0x60   :  { %4076 = vmatpush3.bf16.msra.mxu1 %v4610_v6  ;;  %4140 = vmatpush3.bf16.msra.mxu0 %v4612_v12  ;;  %v4649_v6 = vld [vmem:[%s6012_s1 + $0x378] sm:$0xff]  }
  0x61   :  { %4189 = vmatprep.subr.bf16.mxu1 %v4613_v13  ;;  %4253 = vmatprep.subr.bf16.mxu0 %v4615_v14  ;;  %v4648_v12 = vld [vmem:[%s6012_s1 + $0x2b8] sm:$0xff]   ;;  %v4651_v14 = vld [vmem:[%s6012_s1 + $0x3c0] sm:$0xff]  }
  0x62   :  { %630 = vmatmul.mubr.bf16.gmra.mrb[32].mxu1 %v5145_v45  ;;  %953 = vmatmul.mubr.bf16.gmra.mrb[32].mxu0 %v5150_v46  ;;  %v4650_v13 = vld [vmem:[%s6012_s1 + $0x338] sm:$0xff]  }
  0x63   :  { %637 = vmatprep.mubr.bf16.mxu1 %v5155_v47  ;;  %960 = vmatprep.mubr.bf16.mxu0 %v5160_v48 }
  0x6a   :  { %638 = vmatmul.mubr.bf16.gmra.mrb[36].mxu1 %v5181_v57  ;;  %961 = vmatmul.mubr.bf16.gmra.mrb[36].mxu0 %v5186_v58 }
  0x6b   :  { %645 = vmatprep.mubr.bf16.mxu1 %v5191_v59  ;;  %968 = vmatprep.mubr.bf16.mxu0 %v5196_v60 }
  0x72   :  { %646 = vmatmul.mubr.bf16.gmra.mrb[40].mxu1 %v5217_v1  ;;  %969 = vmatmul.mubr.bf16.gmra.mrb[40].mxu0 %v5222_v2 }
  0x73   :  { %653 = vmatprep.mubr.bf16.mxu1 %v5230_v4  ;;  %976 = vmatprep.mubr.bf16.mxu0 %v5235_v5 }
  0x7a   :  { %654 = vmatmul.mubr.bf16.gmra.mrb[44].mxu1 %v5259_v15  ;;  %977 = vmatmul.mubr.bf16.gmra.mrb[44].mxu0 %v5264_v18 }
  0x7b   :  { %1259 = vmatprep.mubr.bf16.mxu1 %v5013_v8  ;;  %1598 = vmatprep.mubr.bf16.mxu0 %v4842_v26  ;;  %v4619_v26 = vld [vmem:[%s6012_s1 + $0x348] sm:$0xff]  }
  0x7c   :  { %v4620_v8 = vld [vmem:[%s6012_s1 + $0x308] sm:$0xff]  }
  0x82   :  { %1260 = vmatmul.mubr.bf16.vlgmr.msra.gmra.mrb[48].mxu1 %v5024_v10  ;;  %1599 = vmatmul.mubr.bf16.vlgmr.msra.gmra.mrb[48].mxu0 %v4861_v31  ;;  %v4623_v10 = vld [vmem:[%s6012_s1 + $0x350] sm:$0xff]  }
  0x83   :  { %4190 = vmatpush3.bf16.msra.mxu1 %v4614_v21  ;;  %4254 = vmatpush3.bf16.msra.mxu0 %v4616_v22  ;;  %v4622_v31 = vld [vmem:[%s6012_s1 + $0x290] sm:$0xff]   ;;  %v4653_v21 = vld [vmem:[%s6012_s1 + $0x440] sm:$0xff]  }
  0x84   :  { %1267 = vmatprep.mubr.bf16.mxu1 %v5047_v16  ;;  %1606 = vmatprep.mubr.bf16.mxu0 %v4886_v38  ;;  %v4625_v38 = vld [vmem:[%s6012_s1 + $0x2d8] sm:$0xff]   ;;  %v5399_v22 = vld [vmem:[%s6013_s0 + $0x84] ss:$8 sps:$4 sm:$0xff]  }
  0x85   :  { %4191 = vmatprep.subr.bf16.mxu1 %v4617_v23  ;;  %4255 = vmatprep.subr.bf16.mxu0 %v4619_v26  ;;  %v5404_v23 = vld [vmem:[%s6013_s0 + $0x124] ss:$8 sps:$4 sm:$0xff]  }
  0x86   :  { %v4657_v26 = vld [vmem:[%s6012_s1 + $0x448] sm:$0xff]  }
  0x87   :  { %4192 = vmatpush3.bf16.msra.mxu1 %v4618_v27  ;;  %4256 = vmatpush3.bf16.msra.mxu0 %v4620_v8  ;;  %v4655_v27 = vld [vmem:[%s6012_s1 + $0x3c8] sm:$0xff]   ;;  %v4660_v8 = vld [vmem:[%s6012_s1 + $0x390] sm:$0xff]  }
  0x88   :  { %4193 = vmatprep.subr.bf16.mxu1 %v4621_v29  ;;  %4257 = vmatprep.subr.bf16.mxu0 %v4623_v10  ;;  %v4665_v29 = vld [vmem:[%s6012_s1 + $0x458] sm:$0xff]  }
  0x89   :  { %v4664_v10 = vld [vmem:[%s6012_s1 + $0x398] sm:$0xff]  }
  0x8a   :  { %1268 = vmatmul.mubr.bf16.gmra.mrb[52].mxu1 %v5064_v19  ;;  %1607 = vmatmul.mubr.bf16.gmra.mrb[52].mxu0 %v4906_v43  ;;  %v4631_v43 = vld [vmem:[%s6012_s1 + $0x360] sm:$0xff]  }
  0x8b   :  { %1275 = vmatprep.mubr.bf16.mxu1 %v5083_v24  ;;  %1614 = vmatprep.mubr.bf16.mxu0 %v4933_v50  ;;  %v4630_v50 = vld [vmem:[%s6012_s1 + $0x2a0] sm:$0xff]  }
  0x8c   :  { %4194 = vmatpush3.bf16.msra.mxu1 %v4622_v31  ;;  %4258 = vmatpush3.bf16.msra.mxu0 %v4624_v32  ;;  %v4666_v31 = vld [vmem:[%s6012_s1 + $0x418] sm:$0xff]   ;;  %v4671_v32 = vld [vmem:[%s6012_s1 + $0x3e8] sm:$0xff]  }
  0x8d   :  { %4195 = vmatprep.subr.bf16.mxu1 %v4625_v38  ;;  %4259 = vmatprep.subr.bf16.mxu0 %v4627_v33  ;;  %v4673_v38 = vld [vmem:[%s6012_s1 + $0x468] sm:$0xff]  }
  0x8e   :  { %v4672_v33 = vld [vmem:[%s6012_s1 + $0x3a8] sm:$0xff]  }
  0x90   :  { %4196 = vmatpush3.bf16.msra.mxu1 %v4626_v37  ;;  %4260 = vmatpush3.bf16.msra.mxu0 %v4628_v39  ;;  %v4674_v37 = vld [vmem:[%s6012_s1 + $0x428] sm:$0xff]   ;;  %v4685_v39 = vld [vmem:[%s6012_s1 + $0x3f8] sm:$0xff]  }
  0x91   :  { %4197 = vmatprep.subr.bf16.mxu1 %v4629_v41  ;;  %4261 = vmatprep.subr.bf16.mxu0 %v4631_v43  ;;  %v4687_v41 = vld [vmem:[%s6012_s1 + $0x478] sm:$0xff]  }
  0x92   :  { %1276 = vmatmul.mubr.bf16.gmra.mrb[56].mxu1 %v5103_v30  ;;  %1615 = vmatmul.mubr.bf16.gmra.mrb[56].mxu0 %v4954_v55  ;;  %v4637_v55 = vld [vmem:[%s6012_s1 + $0x2f0] sm:$0xff]   ;;  %v4686_v43 = vld [vmem:[%s6012_s1 + $0x3b8] sm:$0xff]  }
  0x93   :  { %1283 = vmatprep.mubr.bf16.mxu1 %v5119_v35  ;;  %1622 = vmatprep.mubr.bf16.mxu0 %v4733_v54 }
  0x94   :  { %4198 = vmatpush3.bf16.msra.mxu1 %v4630_v50  ;;  %4262 = vmatpush3.bf16.msra.mxu0 %v4632_v42  ;;  %v4688_v50 = vld [vmem:[%s6012_s1 + $0x438] sm:$0xff]   ;;  %v4691_v42 = vld [vmem:[%s6013_s0 + $0xc4] ss:$8 sps:$4 sm:$0xff]  }
  0x95   :  { %4199 = vmatprep.subr.bf16.mxu1 %v4633_v49  ;;  %4263 = vmatprep.subr.bf16.mxu0 %v4635_v52  ;;  %v4694_v49 = vld [vmem:[%s6013_s0 + $0x164] ss:$8 sps:$4 sm:$0xff]  }
  0x98   :  { %4200 = vmatpush3.bf16.msra.mxu1 %v4634_v53  ;;  %4264 = vmatpush3.bf16.msra.mxu0 %v4636_v61 }
  0x99   :  { %4201 = vmatprep.subr.bf16.mxu1 %v4637_v55  ;;  %4265 = vmatprep.subr.bf16.mxu0 %v4639_v62 }
  0x9a   :  { %1284 = vmatmul.mubr.bf16.gmra.mrb[60].mxu1 %v5145_v45  ;;  %1623 = vmatmul.mubr.bf16.gmra.mrb[60].mxu0 %v4734_v7 }
  0x9b   :  { %1291 = vmatprep.mubr.bf16.mxu1 %v5155_v47  ;;  %1630 = vmatprep.mubr.bf16.mxu0 %v4850_v28  ;;  %v4735_v28 = vld [vmem:[%s6013_s0 + $0xf0] ss:$8 sps:$4 sm:$0xff]  }
  0x9c   :  { %4202 = vmatpush3.bf16.msra.mxu1 %v4638_v63  ;;  %4266 = vmatpush3.bf16.msra.mxu0 %v4640_v0 }
  0x9d   :  { %4203 = vmatprep.subr.bf16.mxu1 %v4647_v3  ;;  %4267 = vmatprep.subr.bf16.mxu0 %v4649_v6  ;;  %v4689_v3 = vld [vmem:[%s6013_s0 + $0xc0] ss:$8 sps:$4 sm:$0xff]  }
  0x9e   :  { %v4692_v6 = vld [vmem:[%s6013_s0 + $0x160] ss:$8 sps:$4 sm:$0xff]  }
  0xa0   :  { %4204 = vmatpush3.bf16.msra.mxu1 %v4648_v12  ;;  %4268 = vmatpush3.bf16.msra.mxu0 %v4650_v13 }
  0xa1   :  { %4317 = vmatprep.subr.bf16.mxu1 %v4651_v14  ;;  %4381 = vmatprep.subr.bf16.mxu0 %v4653_v21  ;;  %v4695_v21 = vld [vmem:[%s6013_s0 + $0xd4] ss:$8 sps:$4 sm:$0xff]  }
  0xa2   :  { %1292 = vmatmul.mubr.bf16.gmra.mrb[64].mxu1 %v5181_v57  ;;  %1631 = vmatmul.mubr.bf16.gmra.mrb[64].mxu0 %v4735_v28  ;;  %v4697_v28 = vld [vmem:[%s6013_s0 + $0x174] ss:$8 sps:$4 sm:$0xff]  }
  0xa3   :  { %1299 = vmatprep.mubr.bf16.mxu1 %v5191_v59  ;;  %1638 = vmatprep.mubr.bf16.mxu0 %v4894_v40  ;;  %v5413_v40 = vld [vmem:[%s6013_s0 + $0x80] ss:$8 sps:$4 sm:$0xff]  }
  0xaa   :  { %1300 = vmatmul.mubr.bf16.gmra.mrb[68].mxu1 %v5217_v1  ;;  %1639 = vmatmul.mubr.bf16.gmra.mrb[68].mxu0 %v4911_v44  ;;  %v5418_v44 = vld [vmem:[%s6013_s0 + $0x120] ss:$8 sps:$4 sm:$0xff]  }
  0xab   :  { %1307 = vmatprep.mubr.bf16.mxu1 %v5230_v4  ;;  %1646 = vmatprep.mubr.bf16.mxu0 %v4938_v51  ;;  %v4652_v51 = vld [vmem:[%s6012_s1 + $0x380] sm:$0xff]  }
  0xb2   :  { %1308 = vmatmul.mubr.bf16.gmra.mrb[72].mxu1 %v5259_v15  ;;  %1647 = vmatmul.mubr.bf16.gmra.mrb[72].mxu0 %v4959_v56  ;;  %v4654_v56 = vld [vmem:[%s6012_s1 + $0x400] sm:$0xff]  }
  0xb3   :  { %1315 = vmatprep.mubr.bf16.mxu1 %v5399_v22  ;;  %1654 = vmatprep.mubr.bf16.mxu0 %v5404_v23 }
  0xba   :  { %1316 = vmatmul.mubr.bf16.gmra.mrb[76].mxu1 %v5413_v40  ;;  %1655 = vmatmul.mubr.bf16.gmra.mrb[76].mxu0 %v5418_v44 }
  0xbb   :  { %1937 = vmatprep.mubr.bf16.mxu1 %v5018_v9  ;;  %2276 = vmatprep.mubr.bf16.mxu0 %v5047_v16  ;;  %v4656_v9 = vld [vmem:[%s6012_s1 + $0x388] sm:$0xff]  }
  0xbc   :  { %v4658_v16 = vld [vmem:[%s6012_s1 + $0x408] sm:$0xff]  }
  0xc2   :  { %1938 = vmatmul.mubr.bf16.vlgmr.msra.gmra.mrb[80].mxu1 %v5029_v11  ;;  %2277 = vmatmul.mubr.bf16.vlgmr.msra.gmra.mrb[80].mxu0 %v5064_v19  ;;  %v4659_v11 = vld [vmem:[%s6012_s1 + $0x3d0] sm:$0xff]  }
  0xc3   :  { %4318 = vmatpush3.bf16.msra.mxu1 %v4652_v51  ;;  %4382 = vmatpush3.bf16.msra.mxu0 %v4654_v56  ;;  %v4661_v19 = vld [vmem:[%s6012_s1 + $0x450] sm:$0xff]  }
  0xc4   :  { %1945 = vmatprep.mubr.bf16.mxu1 %v5052_v17  ;;  %2284 = vmatprep.mubr.bf16.mxu0 %v5083_v24  ;;  %v4662_v17 = vld [vmem:[%s6012_s1 + $0x410] sm:$0xff]   ;;  %v4663_v24 = vld [vmem:[%s6012_s1 + $0x3d8] sm:$0xff]  }
  0xc5   :  { %4319 = vmatprep.subr.bf16.mxu1 %v4655_v27  ;;  %4383 = vmatprep.subr.bf16.mxu0 %v4657_v26 }
  0xc7   :  { %4320 = vmatpush3.bf16.msra.mxu1 %v4656_v9  ;;  %4384 = vmatpush3.bf16.msra.mxu0 %v4658_v16 }
  0xc8   :  { %4321 = vmatprep.subr.bf16.mxu1 %v4659_v11  ;;  %4385 = vmatprep.subr.bf16.mxu0 %v4661_v19  ;;  %v4699_v11 = vld [vmem:[%s6013_s0 + $0xd0] ss:$8 sps:$4 sm:$0xff]  }
  0xc9   :  { %v4700_v19 = vld [vmem:[%s6013_s0 + $0x170] ss:$8 sps:$4 sm:$0xff]  }
  0xca   :  { %1946 = vmatmul.mubr.bf16.gmra.mrb[84].mxu1 %v5069_v20  ;;  %2285 = vmatmul.mubr.bf16.gmra.mrb[84].mxu0 %v5103_v30  ;;  %v4667_v20 = vld [vmem:[%s6012_s1 + $0x3e0] sm:$0xff]  }
  0xcb   :  { %1953 = vmatprep.mubr.bf16.mxu1 %v5088_v25  ;;  %2292 = vmatprep.mubr.bf16.mxu0 %v5119_v35  ;;  %v4669_v25 = vld [vmem:[%s6012_s1 + $0x460] sm:$0xff]  }
  0xcc   :  { %4322 = vmatpush3.bf16.msra.mxu1 %v4660_v8  ;;  %4386 = vmatpush3.bf16.msra.mxu0 %v4662_v17  ;;  %v4668_v30 = vld [vmem:[%s6012_s1 + $0x3a0] sm:$0xff]  }
  0xcd   :  { %4323 = vmatprep.subr.bf16.mxu1 %v4663_v24  ;;  %4387 = vmatprep.subr.bf16.mxu0 %v4665_v29  ;;  %v4670_v35 = vld [vmem:[%s6012_s1 + $0x420] sm:$0xff]  }
  0xd0   :  { %4324 = vmatpush3.bf16.msra.mxu1 %v4664_v10  ;;  %4388 = vmatpush3.bf16.msra.mxu0 %v4666_v31  ;;  %v4701_v10 = vld [vmem:[%s6013_s0 + $0xe4] ss:$8 sps:$4 sm:$0xff]  }
  0xd1   :  { %4325 = vmatprep.subr.bf16.mxu1 %v4667_v20  ;;  %4389 = vmatprep.subr.bf16.mxu0 %v4669_v25  ;;  %v4703_v31 = vld [vmem:[%s6013_s0 + $0x184] ss:$8 sps:$4 sm:$0xff]  }
  0xd2   :  { %1954 = vmatmul.mubr.bf16.gmra.mrb[88].mxu1 %v5114_v34  ;;  %2293 = vmatmul.mubr.bf16.gmra.mrb[88].mxu0 %v5145_v45  ;;  %v4675_v34 = vld [vmem:[%s6012_s1 + $0x3f0] sm:$0xff]  }
  0xd3   :  { %1961 = vmatprep.mubr.bf16.mxu1 %v5124_v36  ;;  %2300 = vmatprep.mubr.bf16.mxu0 %v5155_v47  ;;  %v4677_v36 = vld [vmem:[%s6012_s1 + $0x470] sm:$0xff]  }
  0xd4   :  { %4326 = vmatpush3.bf16.msra.mxu1 %v4668_v30  ;;  %4390 = vmatpush3.bf16.msra.mxu0 %v4670_v35  ;;  %v4676_v45 = vld [vmem:[%s6012_s1 + $0x3b0] sm:$0xff]  }
  0xd5   :  { %4327 = vmatprep.subr.bf16.mxu1 %v4671_v32  ;;  %4391 = vmatprep.subr.bf16.mxu0 %v4673_v38  ;;  %v4678_v47 = vld [vmem:[%s6012_s1 + $0x430] sm:$0xff]  }
  0xd8   :  { %4328 = vmatpush3.bf16.msra.mxu1 %v4672_v33  ;;  %4392 = vmatpush3.bf16.msra.mxu0 %v4674_v37 }
  0xd9   :  { %4329 = vmatprep.subr.bf16.mxu1 %v4675_v34  ;;  %4393 = vmatprep.subr.bf16.mxu0 %v4677_v36  ;;  %v4705_v34 = vld [vmem:[%s6013_s0 + $0xe0] ss:$8 sps:$4 sm:$0xff]  }
  0xda   :  { %1962 = vmatmul.mubr.bf16.gmra.mrb[92].mxu1 %v5150_v46  ;;  %2301 = vmatmul.mubr.bf16.gmra.mrb[92].mxu0 %v5181_v57  ;;  %v5541_v46 = vld [vmem:[%s6013_s0 + $0x1c4] ss:$8 sps:$4 sm:$0xff]   ;;  %v4706_v36 = vld [vmem:[%s6013_s0 + $0x180] ss:$8 sps:$4 sm:$0xff]  }
  0xdb   :  { %1969 = vmatprep.mubr.bf16.mxu1 %v5160_v48  ;;  %2308 = vmatprep.mubr.bf16.mxu0 %v5191_v59  ;;  %v4681_v48 = vld [vmem:[%s6013_s0 + $0x94] ss:$8 sps:$4 sm:$0xff]  }
  0xdc   :  { %4330 = vmatpush3.bf16.msra.mxu1 %v4676_v45  ;;  %4394 = vmatpush3.bf16.msra.mxu0 %v4678_v47 }
  0xdd   :  { %4331 = vmatprep.subr.bf16.mxu1 %v4685_v39  ;;  %4395 = vmatprep.subr.bf16.mxu0 %v4687_v41 }
  0xe0   :  { %4332 = vmatpush3.bf16.msra.mxu1 %v4686_v43  ;;  %4396 = vmatpush3.bf16.msra.mxu0 %v4688_v50  ;;  %v4707_v43 = vld [vmem:[%s6013_s0 + $0xf4] ss:$8 sps:$4 sm:$0xff]  }
  0xe1   :  { %v4709_v50 = vld [vmem:[%s6013_s0 + $0x194] ss:$8 sps:$4 sm:$0xff]  }
  0xe2   :  { %1970 = vmatmul.mubr.bf16.gmra.mrb[96].mxu1 %v5186_v58  ;;  %2309 = vmatmul.mubr.bf16.gmra.mrb[96].mxu0 %v5217_v1  ;;  %v5552_v1 = vld [vmem:[%s6013_s0 + $0x1c0] ss:$8 sps:$4 sm:$0xff]  }
  0xe3   :  { %1977 = vmatprep.mubr.bf16.mxu1 %v5196_v60  ;;  %2316 = vmatprep.mubr.bf16.mxu0 %v5230_v4 }
  0xea   :  { %1978 = vmatmul.mubr.bf16.gmra.mrb[100].mxu1 %v5222_v2  ;;  %2317 = vmatmul.mubr.bf16.gmra.mrb[100].mxu0 %v5259_v15  ;;  %v4684_v2 = vld [vmem:[%s6013_s0 + $0x90] ss:$8 sps:$4 sm:$0xff]  }
  0xeb   :  { %1985 = vmatprep.mubr.bf16.mxu1 %v5235_v5  ;;  %2324 = vmatprep.mubr.bf16.mxu0 %v5399_v22 }
  0xf2   :  { %1986 = vmatmul.mubr.bf16.gmra.mrb[104].mxu1 %v5264_v18  ;;  %2325 = vmatmul.mubr.bf16.gmra.mrb[104].mxu0 %v5413_v40 }
  0xf3   :  { %1993 = vmatprep.mubr.bf16.mxu1 %v5541_v46  ;;  %2332 = vmatprep.mubr.bf16.mxu0 %v4681_v48 }
  0xf5   :  { %v3885_v57 = vpop.f32.mrb[0].mxu0  ;;  %v3909_v58 = vpop.f32.mrb[0].mxu1 }
  0xf6   :  { %v3886_v59 = vpop.f32.mrb[1].mxu0  ;;  %v3910_v60 = vpop.f32.mrb[1].mxu1 }
  0xf7   :  { %v5557_v4 = vadd.f32 %v3886_v59, %v3885_v57  ;;  %v5559_v5 = vadd.f32 %v3910_v60, %v3909_v58  ;;  %v3888_v15 = vpop.f32.mrb[2].mxu0  ;;  %v3912_v18 = vpop.f32.mrb[2].mxu1 }
  0xf8   :  { %v3889_v52 = vpop.f32.mrb[3].mxu0  ;;  %v3913_v53 = vpop.f32.mrb[3].mxu1 }
  0xf9   :  { %v5567_v54 = vadd.f32 %v3889_v52, %v3888_v15  ;;  %v5569_v61 = vadd.f32 %v3913_v53, %v3912_v18 }
  0xfa   :  { %1994 = vmatmul.mubr.bf16.gmra.mrb[108].mxu1 %v5552_v1  ;;  %2333 = vmatmul.mubr.bf16.gmra.mrb[108].mxu0 %v4684_v2 }
  0xfb   :  { %2615 = vmatprep.mubr.bf16.mxu1 %v4691_v42  ;;  %2954 = vmatprep.mubr.bf16.mxu0 %v4694_v49  ;;  %v4711_v42 = vld [vmem:[%s6013_s0 + $0xf0] ss:$8 sps:$4 sm:$0xff]  }
  0xfc   :  { %v4712_v49 = vld [vmem:[%s6013_s0 + $0x190] ss:$8 sps:$4 sm:$0xff]  }
  0xfd   :  { %v3891_v55 = vpop.f32.mrb[4].mxu0  ;;  %v3915_v62 = vpop.f32.mrb[4].mxu1 }
  0xfe   :  { %v3892_v63 = vpop.f32.mrb[5].mxu0  ;;  %v3916_v0 = vpop.f32.mrb[5].mxu1 }
  0xff   :  { %v5578_v7 = vadd.f32 %v3892_v63, %v3891_v55  ;;  %v5580_v12 = vadd.f32 %v3916_v0, %v3915_v62  ;;  %v3894_v13 = vpop.f32.mrb[6].mxu0  ;;  %v3918_v14 = vpop.f32.mrb[6].mxu1  ;;  %v4713_v63 = vld [vmem:[%s6013_s0 + $0x104] ss:$8 sps:$4 sm:$0xff]  }
 0x100   :  { %v3895_v22 = vpop.f32.mrb[7].mxu0  ;;  %v3919_v40 = vpop.f32.mrb[7].mxu1  ;;  %v4715_v0 = vld [vmem:[%s6013_s0 + $0x1a4] ss:$8 sps:$4 sm:$0xff]  }
 0x101   :  { %v5588_v51 = vadd.f32 %v3895_v22, %v3894_v13  ;;  %v5590_v56 = vadd.f32 %v3919_v40, %v3918_v14 }
 0x102   :  { %2616 = vmatmul.mubr.bf16.vlgmr.msra.gmra.mrb[112].mxu1 %v4689_v3  ;;  %2955 = vmatmul.mubr.bf16.vlgmr.msra.gmra.mrb[112].mxu0 %v4692_v6 }
 0x103   :  { %2623 = vmatprep.mubr.bf16.mxu1 %v4695_v21  ;;  %2962 = vmatprep.mubr.bf16.mxu0 %v4697_v28 }
 0x105   :  { %v3897_v27 = vpop.f32.mrb[8].mxu0  ;;  %v3921_v26 = vpop.f32.mrb[8].mxu1 }
 0x106   :  { %v3898_v9 = vpop.f32.mrb[9].mxu0  ;;  %v3922_v16 = vpop.f32.mrb[9].mxu1 }
 0x107   :  { %v5598_v8 = vadd.f32 %v3898_v9, %v3897_v27  ;;  %v5600_v17 = vadd.f32 %v3922_v16, %v3921_v26  ;;  %v3900_v24 = vpop.f32.mrb[10].mxu0  ;;  %v3924_v29 = vpop.f32.mrb[10].mxu1 }
 0x108   :  { %v3901_v20 = vpop.f32.mrb[11].mxu0  ;;  %v3925_v25 = vpop.f32.mrb[11].mxu1 }
 0x109   :  { %v5608_v30 = vadd.f32 %v3901_v20, %v3900_v24  ;;  %v5610_v35 = vadd.f32 %v3925_v25, %v3924_v29 }
 0x10a   :  { %2624 = vmatmul.mubr.bf16.gmra.mrb[116].mxu1 %v4699_v11  ;;  %2963 = vmatmul.mubr.bf16.gmra.mrb[116].mxu0 %v4700_v19  ;;  %v4718_v11 = vld [vmem:[%s6013_s0 + $0x1a0] ss:$8 sps:$4 sm:$0xff]  }
 0x10b   :  { %2631 = vmatprep.mubr.bf16.mxu1 %v4701_v10  ;;  %2970 = vmatprep.mubr.bf16.mxu0 %v4703_v31  ;;  %v4719_v10 = vld [vmem:[%s6013_s0 + $0x114] ss:$8 sps:$4 sm:$0xff]  }
 0x10c   :  { %v4721_v31 = vld [vmem:[%s6013_s0 + $0x1b4] ss:$8 sps:$4 sm:$0xff]  }
 0x10d   :  { %v3903_v32 = vpop.f32.mrb[12].mxu0  ;;  %v3927_v38 = vpop.f32.mrb[12].mxu1 }
 0x10e   :  { %v3904_v33 = vpop.f32.mrb[13].mxu0  ;;  %v3928_v37 = vpop.f32.mrb[13].mxu1 }
 0x10f   :  { %v5618_v45 = vadd.f32 %v3904_v33, %v3903_v32  ;;  %v5620_v47 = vadd.f32 %v3928_v37, %v3927_v38  ;;  %v3906_v39 = vpop.f32.mrb[14].mxu0  ;;  %v3930_v41 = vpop.f32.mrb[14].mxu1 }
 0x110   :  { %v3907_v48 = vpop.f32.mrb[15].mxu0  ;;  %v3931_v57 = vpop.f32.mrb[15].mxu1 }
 0x111   :  { %v5628_v58 = vadd.f32 %v3907_v48, %v3906_v39  ;;  %v5630_v59 = vadd.f32 %v3931_v57, %v3930_v41  ;;  %v4724_v48 = vld [vmem:[%s6013_s0 + $0x1b0] ss:$8 sps:$4 sm:$0xff]  }
 0x112   :  { %2632 = vmatmul.mubr.bf16.gmra.mrb[120].mxu1 %v4705_v34  ;;  %2971 = vmatmul.mubr.bf16.gmra.mrb[120].mxu0 %v4706_v36 }
 0x113   :  { %2639 = vmatprep.mubr.bf16.mxu1 %v4707_v43  ;;  %2978 = vmatprep.mubr.bf16.mxu0 %v4709_v50 }
 0x115   :  { %v3949_v60 = vpop.f32.mrb[16].mxu1  ;;  %v4013_v2 = vpop.f32.mrb[16].mxu0 }
 0x116   :  { %v3950_v15 = vpop.f32.mrb[17].mxu1  ;;  %v4014_v18 = vpop.f32.mrb[17].mxu0 }
 0x117   :  { %v3951_v52 = vadd.f32 %v3950_v15, %v3949_v60  ;;  %v4015_v53 = vadd.f32 %v4014_v18, %v4013_v2  ;;  %v3952_v55 = vpop.f32.mrb[18].mxu1  ;;  %v4016_v62 = vpop.f32.mrb[18].mxu0 }
 0x118   :  { %v3953_v3 = vpop.f32.mrb[19].mxu1  ;;  %v4017_v6 = vpop.f32.mrb[19].mxu0 }
 0x119   :  { %v600_v13 = vadd.f32 %v3951_v52, %v5557_v4  ;;  %v3954_v14 = vadd.f32 %v3953_v3, %v3952_v55  ;;  %v4018_v21 = vadd.f32 %v4017_v6, %v4016_v62  ;;  %v4717_v4 = vld [vmem:[%s6013_s0 + $0x100] ss:$8 sps:$4 sm:$0xff]  }
 0x11a   :  { %2640 = vmatmul.mubr.bf16.gmra.mrb[124].mxu1 %v4711_v42  ;;  %2979 = vmatmul.mubr.bf16.gmra.mrb[124].mxu0 %v4712_v49 }
 0x11b   :  { %v5645_v28 = vadd.f32 %v4015_v53, %v600_v13  ;;  %v603_v22 = vadd.f32 %v3954_v14, %v5567_v54  ;;  %2647 = vmatprep.mubr.bf16.mxu1 %v4713_v63  ;;  %2986 = vmatprep.mubr.bf16.mxu0 %v4715_v0 }
 0x11d   :  { %v5648_v40 = vadd.f32 %v4018_v21, %v603_v22  ;;  %v3955_v27 = vpop.f32.mrb[20].mxu1  ;;  %v4019_v26 = vpop.f32.mrb[20].mxu0  ;;  %v4725_v22 = vld [vmem:[%s6013_s0 + $0x134] ss:$8 sps:$4 sm:$0xff]  }
 0x11e   :  { %v3956_v9 = vpop.f32.mrb[21].mxu1  ;;  %v4020_v16 = vpop.f32.mrb[21].mxu0 }
 0x11f   :  { %v3957_v19 = vadd.f32 %v3956_v9, %v3955_v27  ;;  %v4021_v24 = vadd.f32 %v4020_v16, %v4019_v26  ;;  %v3958_v29 = vpop.f32.mrb[22].mxu1  ;;  %v4022_v54 = vpop.f32.mrb[22].mxu0 }
 0x120   :  { %v3959_v20 = vpop.f32.mrb[23].mxu1  ;;  %v4023_v25 = vpop.f32.mrb[23].mxu0 }
 0x121   :  { %v608_v32 = vadd.f32 %v3957_v19, %v5578_v7  ;;  %v3960_v38 = vadd.f32 %v3959_v20, %v3958_v29  ;;  %v4024_v33 = vadd.f32 %v4023_v25, %v4022_v54  ;;  %v4723_v7 = vld [vmem:[%s6013_s0 + $0x110] ss:$8 sps:$4 sm:$0xff]  }
 0x122   :  { %2648 = vmatmul.mubr.bf16.gmra.mrb[128].mxu1 %v4717_v4  ;;  %2987 = vmatmul.mubr.bf16.gmra.mrb[128].mxu0 %v4718_v11 }
 0x123   :  { %v5663_v37 = vadd.f32 %v4021_v24, %v608_v32  ;;  %v611_v34 = vadd.f32 %v3960_v38, %v5588_v51  ;;  %2655 = vmatprep.mubr.bf16.mxu1 %v4719_v10  ;;  %2994 = vmatprep.mubr.bf16.mxu0 %v4721_v31 }
 0x125   :  { %v5666_v36 = vadd.f32 %v4024_v33, %v611_v34  ;;  %v3961_v39 = vpop.f32.mrb[24].mxu1  ;;  %v4025_v41 = vpop.f32.mrb[24].mxu0 }
 0x126   :  { %v3962_v43 = vpop.f32.mrb[25].mxu1  ;;  %v4026_v50 = vpop.f32.mrb[25].mxu0 }
 0x127   :  { %v3963_v57 = vadd.f32 %v3962_v43, %v3961_v39  ;;  %v4027_v60 = vadd.f32 %v4026_v50, %v4025_v41  ;;  %v3964_v2 = vpop.f32.mrb[26].mxu1  ;;  %v4028_v51 = vpop.f32.mrb[26].mxu0 }
 0x128   :  { %v3965_v15 = vpop.f32.mrb[27].mxu1  ;;  %v4029_v18 = vpop.f32.mrb[27].mxu0 }
 0x129   :  { %v616_v42 = vadd.f32 %v3963_v57, %v5598_v8  ;;  %v3966_v49 = vadd.f32 %v3965_v15, %v3964_v2  ;;  %v4030_v52 = vadd.f32 %v4029_v18, %v4028_v51 }
 0x12a   :  { %2656 = vmatmul.mubr.bf16.gmra.mrb[132].mxu1 %v4723_v7  ;;  %2995 = vmatmul.mubr.bf16.gmra.mrb[132].mxu0 %v4724_v48 }
 0x12b   :  { %v5675_v53 = vadd.f32 %v4027_v60, %v616_v42  ;;  %v619_v55 = vadd.f32 %v3966_v49, %v5608_v30  ;;  %2663 = vmatprep.mubr.bf16.mxu1 %v5404_v23  ;;  %3002 = vmatprep.mubr.bf16.mxu0 %v5541_v46  ;;  %v4727_v23 = vld [vmem:[%s6013_s0 + $0x1d4] ss:$8 sps:$4 sm:$0xff]  }
 0x12d   :  { %v5680_v62 = vadd.f32 %v4030_v52, %v619_v55  ;;  %v3967_v63 = vpop.f32.mrb[28].mxu1  ;;  %v4031_v0 = vpop.f32.mrb[28].mxu0 }
 0x12e   :  { %v3968_v3 = vpop.f32.mrb[29].mxu1  ;;  %v4032_v6 = vpop.f32.mrb[29].mxu0 }
 0x12f   :  { %v3969_v13 = vadd.f32 %v3968_v3, %v3967_v63  ;;  %v4033_v8 = vadd.f32 %v4032_v6, %v4031_v0  ;;  %v3970_v14 = vpop.f32.mrb[30].mxu1  ;;  %v4034_v21 = vpop.f32.mrb[30].mxu0 }
 0x130   :  { %v3971_v30 = vpop.f32.mrb[31].mxu1  ;;  %v4035_v46 = vpop.f32.mrb[31].mxu0 }
 0x131   :  { %v624_v27 = vadd.f32 %v3969_v13, %v5618_v45  ;;  %v3972_v26 = vadd.f32 %v3971_v30, %v3970_v14  ;;  %v4036_v9 = vadd.f32 %v4035_v46, %v4034_v21  ;;  %v4729_v45 = vld [vmem:[%s6013_s0 + $0x130] ss:$8 sps:$4 sm:$0xff]  }
 0x132   :  { %2664 = vmatmul.mubr.bf16.gmra.mrb[136].mxu1 %v5418_v44  ;;  %3003 = vmatmul.mubr.bf16.gmra.mrb[136].mxu0 %v5552_v1  ;;  %v4730_v44 = vld [vmem:[%s6013_s0 + $0x1d0] ss:$8 sps:$4 sm:$0xff]  }
 0x133   :  { %v5691_v16 = vadd.f32 %v4033_v8, %v624_v27  ;;  %v627_v4 = vadd.f32 %v3972_v26, %v5628_v58  ;;  %2671 = vmatprep.mubr.bf16.mxu1 %v4725_v22  ;;  %3010 = vmatprep.mubr.bf16.mxu0 %v4727_v23 }
 0x135   :  { %v5694_v11 = vadd.f32 %v4036_v9, %v627_v4  ;;  %v3973_v19 = vpop.f32.mrb[32].mxu1  ;;  %v4037_v24 = vpop.f32.mrb[32].mxu0 }
 0x136   :  { %v3974_v29 = vpop.f32.mrb[33].mxu1  ;;  %v4038_v54 = vpop.f32.mrb[33].mxu0 }
 0x137   :  { %v3975_v1 = vadd.f32 %v3974_v29, %v3973_v19  ;;  %v4039_v10 = vadd.f32 %v4038_v54, %v4037_v24  ;;  %v3976_v31 = vpop.f32.mrb[34].mxu1  ;;  %v4040_v58 = vpop.f32.mrb[34].mxu0 }
 0x138   :  { %v3977_v20 = vpop.f32.mrb[35].mxu1  ;;  %v4041_v25 = vpop.f32.mrb[35].mxu0 }
 0x139   :  { %v632_v32 = vadd.f32 %v3975_v1, %v5559_v5  ;;  %v3978_v38 = vadd.f32 %v3977_v20, %v3976_v31  ;;  %v4042_v33 = vadd.f32 %v4041_v25, %v4040_v58 }
 0x13a   :  { %2672 = vmatmul.mubr.bf16.gmra.mrb[140].mxu1 %v4729_v45  ;;  %3011 = vmatmul.mubr.bf16.gmra.mrb[140].mxu0 %v4730_v44 }
 0x13b   :  { %v5703_v34 = vadd.f32 %v4039_v10, %v632_v32  ;;  %v635_v39 = vadd.f32 %v3978_v38, %v5569_v61 }
 0x13d   :  { %v5706_v41 = vadd.f32 %v4042_v33, %v635_v39  ;;  %v3979_v43 = vpop.f32.mrb[36].mxu1  ;;  %v4043_v50 = vpop.f32.mrb[36].mxu0 }
 0x13e   :  { %v3980_v7 = vpop.f32.mrb[37].mxu1  ;;  %v4044_v48 = vpop.f32.mrb[37].mxu0 }
 0x13f   :  { %v3981_v57 = vadd.f32 %v3980_v7, %v3979_v43  ;;  %v4045_v60 = vadd.f32 %v4044_v48, %v4043_v50  ;;  %v3982_v2 = vpop.f32.mrb[38].mxu1  ;;  %v4046_v51 = vpop.f32.mrb[38].mxu0 }
 0x140   :  { %v3983_v15 = vpop.f32.mrb[39].mxu1  ;;  %v4047_v5 = vpop.f32.mrb[39].mxu0 }
 0x141   :  { %v640_v18 = vadd.f32 %v3981_v57, %v5580_v12  ;;  %v3984_v42 = vadd.f32 %v3983_v15, %v3982_v2  ;;  %v4048_v49 = vadd.f32 %v4047_v5, %v4046_v51 }
 0x143   :  { %v5709_v52 = vadd.f32 %v4045_v60, %v640_v18  ;;  %v643_v61 = vadd.f32 %v3984_v42, %v5590_v56 }
 0x145   :  { %v5712_v55 = vadd.f32 %v4048_v49, %v643_v61  ;;  %v3985_v63 = vpop.f32.mrb[40].mxu1  ;;  %v4049_v0 = vpop.f32.mrb[40].mxu0 }
 0x146   :  { %v3986_v3 = vpop.f32.mrb[41].mxu1  ;;  %v4050_v6 = vpop.f32.mrb[41].mxu0 }
 0x147   :  { %v3987_v13 = vadd.f32 %v3986_v3, %v3985_v63  ;;  %v4051_v8 = vadd.f32 %v4050_v6, %v4049_v0  ;;  %v3988_v14 = vpop.f32.mrb[42].mxu1  ;;  %v4052_v21 = vpop.f32.mrb[42].mxu0 }
 0x148   :  { %v3989_v22 = vpop.f32.mrb[43].mxu1  ;;  %v4053_v23 = vpop.f32.mrb[43].mxu0 }
 0x149   :  { %v648_v12 = vadd.f32 %v3987_v13, %v5600_v17  ;;  %v3990_v30 = vadd.f32 %v3989_v22, %v3988_v14  ;;  %v4054_v46 = vadd.f32 %v4053_v23, %v4052_v21 }
 0x14b   :  { %v5715_v27 = vadd.f32 %v4051_v8, %v648_v12  ;;  %v651_v56 = vadd.f32 %v3990_v30, %v5610_v35 }
 0x14d   :  { %v5718_v26 = vadd.f32 %v4054_v46, %v651_v56  ;;  %v3991_v9 = vpop.f32.mrb[44].mxu1  ;;  %v4055_v4 = vpop.f32.mrb[44].mxu0 }
 0x14e   :  { %v3992_v19 = vpop.f32.mrb[45].mxu1  ;;  %v4056_v24 = vpop.f32.mrb[45].mxu0 }
 0x14f   :  { %v3993_v29 = vadd.f32 %v3992_v19, %v3991_v9  ;;  %v4057_v54 = vadd.f32 %v4056_v24, %v4055_v4  ;;  %v3994_v45 = vpop.f32.mrb[46].mxu1  ;;  %v4058_v44 = vpop.f32.mrb[46].mxu0 }
 0x150   :  { %v3995_v1 = vpop.f32.mrb[47].mxu1  ;;  %v4059_v10 = vpop.f32.mrb[47].mxu0 }
 0x151   :  { %v656_v17 = vadd.f32 %v3993_v29, %v5620_v47  ;;  %v3996_v31 = vadd.f32 %v3995_v1, %v3994_v45  ;;  %v4060_v58 = vadd.f32 %v4059_v10, %v4058_v44 }
 0x153   :  { %v5721_v20 = vadd.f32 %v4057_v54, %v656_v17  ;;  %v659_v35 = vadd.f32 %v3996_v31, %v5630_v59 }
 0x155   :  { %v5724_v25 = vadd.f32 %v4060_v58, %v659_v35  ;;  %v4077_v32 = vpop.f32.mrb[48].mxu1  ;;  %v4141_v38 = vpop.f32.mrb[48].mxu0 }
 0x156   :  { %v4078_v33 = vpop.f32.mrb[49].mxu1  ;;  %v4142_v39 = vpop.f32.mrb[49].mxu0 }
 0x157   :  { %v4079_v43 = vadd.f32 %v4078_v33, %v4077_v32  ;;  %v4143_v50 = vadd.f32 %v4142_v39, %v4141_v38  ;;  %v4080_v7 = vpop.f32.mrb[50].mxu1  ;;  %v4144_v48 = vpop.f32.mrb[50].mxu0 }
 0x158   :  { %v4081_v57 = vpop.f32.mrb[51].mxu1  ;;  %v4145_v60 = vpop.f32.mrb[51].mxu0 }
 0x159   :  { %v1324_v47 = vadd.f32 %v4079_v43, %v5645_v28  ;;  %v4082_v2 = vadd.f32 %v4081_v57, %v4080_v7  ;;  %v4146_v51 = vadd.f32 %v4145_v60, %v4144_v48 }
 0x15b   :  { %v5727_v15 = vadd.f32 %v4143_v50, %v1324_v47  ;;  %v1325_v59 = vadd.f32 %v4082_v2, %v5648_v40 }
 0x15d   :  { %v5730_v5 = vadd.f32 %v4146_v51, %v1325_v59  ;;  %v4083_v18 = vpop.f32.mrb[52].mxu1  ;;  %v4147_v42 = vpop.f32.mrb[52].mxu0 }
 0x15e   :  { %v4084_v49 = vpop.f32.mrb[53].mxu1  ;;  %v4148_v61 = vpop.f32.mrb[53].mxu0 }
 0x15f   :  { %v4085_v63 = vadd.f32 %v4084_v49, %v4083_v18  ;;  %v4149_v0 = vadd.f32 %v4148_v61, %v4147_v42  ;;  %v4086_v3 = vpop.f32.mrb[54].mxu1  ;;  %v4150_v6 = vpop.f32.mrb[54].mxu0 }
 0x160   :  { %v4087_v13 = vpop.f32.mrb[55].mxu1  ;;  %v4151_v8 = vpop.f32.mrb[55].mxu0 }
 0x161   :  { %v1326_v28 = vadd.f32 %v4085_v63, %v5663_v37  ;;  %v4088_v14 = vadd.f32 %v4087_v13, %v4086_v3  ;;  %v4152_v21 = vadd.f32 %v4151_v8, %v4150_v6 }
 0x163   :  { %v5733_v22 = vadd.f32 %v4149_v0, %v1326_v28  ;;  %v1327_v40 = vadd.f32 %v4088_v14, %v5666_v36 }
 0x165   :  { %v5736_v23 = vadd.f32 %v4152_v21, %v1327_v40  ;;  %v4089_v12 = vpop.f32.mrb[56].mxu1  ;;  %v4153_v30 = vpop.f32.mrb[56].mxu0 }
 0x166   :  { %v4090_v46 = vpop.f32.mrb[57].mxu1  ;;  %v4154_v56 = vpop.f32.mrb[57].mxu0 }
 0x167   :  { %v4091_v9 = vadd.f32 %v4090_v46, %v4089_v12  ;;  %v4155_v4 = vadd.f32 %v4154_v56, %v4153_v30  ;;  %v4092_v19 = vpop.f32.mrb[58].mxu1  ;;  %v4156_v24 = vpop.f32.mrb[58].mxu0 }
 0x168   :  { %v4093_v29 = vpop.f32.mrb[59].mxu1  ;;  %v4157_v54 = vpop.f32.mrb[59].mxu0 }
 0x169   :  { %v1328_v37 = vadd.f32 %v4091_v9, %v5675_v53  ;;  %v4094_v45 = vadd.f32 %v4093_v29, %v4092_v19  ;;  %v4158_v44 = vadd.f32 %v4157_v54, %v4156_v24 }
 0x16b   :  { %v5739_v1 = vadd.f32 %v4155_v4, %v1328_v37  ;;  %v1329_v36 = vadd.f32 %v4094_v45, %v5680_v62 }
 0x16d   :  { %v5742_v10 = vadd.f32 %v4158_v44, %v1329_v36  ;;  %v4095_v17 = vpop.f32.mrb[60].mxu1  ;;  %v4159_v31 = vpop.f32.mrb[60].mxu0 }
 0x16e   :  { %v4096_v58 = vpop.f32.mrb[61].mxu1  ;;  %v4160_v35 = vpop.f32.mrb[61].mxu0 }
 0x16f   :  { %v4097_v32 = vadd.f32 %v4096_v58, %v4095_v17  ;;  %v4161_v38 = vadd.f32 %v4160_v35, %v4159_v31  ;;  %v4098_v33 = vpop.f32.mrb[62].mxu1  ;;  %v4162_v39 = vpop.f32.mrb[62].mxu0 }
 0x170   :  { %v4099_v43 = vpop.f32.mrb[63].mxu1  ;;  %v4163_v50 = vpop.f32.mrb[63].mxu0 }
 0x171   :  { %v1330_v53 = vadd.f32 %v4097_v32, %v5691_v16  ;;  %v4100_v7 = vadd.f32 %v4099_v43, %v4098_v33  ;;  %v4164_v48 = vadd.f32 %v4163_v50, %v4162_v39 }
 0x173   :  { %v5745_v57 = vadd.f32 %v4161_v38, %v1330_v53  ;;  %v1331_v62 = vadd.f32 %v4100_v7, %v5694_v11 }
 0x175   :  { %v5748_v60 = vadd.f32 %v4164_v48, %v1331_v62  ;;  %v4101_v47 = vpop.f32.mrb[64].mxu1  ;;  %v4165_v2 = vpop.f32.mrb[64].mxu0 }
 0x176   :  { %v4102_v51 = vpop.f32.mrb[65].mxu1  ;;  %v4166_v59 = vpop.f32.mrb[65].mxu0 }
 0x177   :  { %v4103_v18 = vadd.f32 %v4102_v51, %v4101_v47  ;;  %v4167_v42 = vadd.f32 %v4166_v59, %v4165_v2  ;;  %v4104_v49 = vpop.f32.mrb[66].mxu1  ;;  %v4168_v61 = vpop.f32.mrb[66].mxu0 }
 0x178   :  { %v4105_v63 = vpop.f32.mrb[67].mxu1  ;;  %v4169_v0 = vpop.f32.mrb[67].mxu0 }
 0x179   :  { %v1332_v16 = vadd.f32 %v4103_v18, %v5703_v34  ;;  %v4106_v3 = vadd.f32 %v4105_v63, %v4104_v49  ;;  %v4170_v6 = vadd.f32 %v4169_v0, %v4168_v61 }
 0x17b   :  { %v5751_v13 = vadd.f32 %v4167_v42, %v1332_v16  ;;  %v1333_v11 = vadd.f32 %v4106_v3, %v5706_v41 }
 0x17d   :  { %v5754_v8 = vadd.f32 %v4170_v6, %v1333_v11  ;;  %v4107_v28 = vpop.f32.mrb[68].mxu1  ;;  %v4171_v14 = vpop.f32.mrb[68].mxu0 }
 0x17e   :  { %v4108_v21 = vpop.f32.mrb[69].mxu1  ;;  %v4172_v40 = vpop.f32.mrb[69].mxu0 }
 0x17f   :  { %v4109_v12 = vadd.f32 %v4108_v21, %v4107_v28  ;;  %v4173_v30 = vadd.f32 %v4172_v40, %v4171_v14  ;;  %v4110_v46 = vpop.f32.mrb[70].mxu1  ;;  %v4174_v56 = vpop.f32.mrb[70].mxu0 }
 0x180   :  { %v4111_v9 = vpop.f32.mrb[71].mxu1  ;;  %v4175_v4 = vpop.f32.mrb[71].mxu0 }
 0x181   :  { %v1334_v34 = vadd.f32 %v4109_v12, %v5709_v52  ;;  %v4112_v19 = vadd.f32 %v4111_v9, %v4110_v46  ;;  %v4176_v24 = vadd.f32 %v4175_v4, %v4174_v56 }
 0x183   :  { %v5757_v29 = vadd.f32 %v4173_v30, %v1334_v34  ;;  %v1335_v41 = vadd.f32 %v4112_v19, %v5712_v55 }
 0x185   :  { %v5760_v54 = vadd.f32 %v4176_v24, %v1335_v41  ;;  %v4113_v37 = vpop.f32.mrb[72].mxu1  ;;  %v4177_v45 = vpop.f32.mrb[72].mxu0 }
 0x186   :  { %v4114_v44 = vpop.f32.mrb[73].mxu1  ;;  %v4178_v36 = vpop.f32.mrb[73].mxu0 }
 0x187   :  { %v4115_v17 = vadd.f32 %v4114_v44, %v4113_v37  ;;  %v4179_v31 = vadd.f32 %v4178_v36, %v4177_v45  ;;  %v4116_v58 = vpop.f32.mrb[74].mxu1  ;;  %v4180_v35 = vpop.f32.mrb[74].mxu0 }
 0x188   :  { %v4117_v32 = vpop.f32.mrb[75].mxu1  ;;  %v4181_v38 = vpop.f32.mrb[75].mxu0 }
 0x189   :  { %v1336_v52 = vadd.f32 %v4115_v17, %v5715_v27  ;;  %v4118_v33 = vadd.f32 %v4117_v32, %v4116_v58  ;;  %v4182_v39 = vadd.f32 %v4181_v38, %v4180_v35 }
 0x18b   :  { %v5763_v43 = vadd.f32 %v4179_v31, %v1336_v52  ;;  %v1337_v55 = vadd.f32 %v4118_v33, %v5718_v26 }
 0x18d   :  { %v5766_v50 = vadd.f32 %v4182_v39, %v1337_v55  ;;  %v4119_v53 = vpop.f32.mrb[76].mxu1  ;;  %v4183_v7 = vpop.f32.mrb[76].mxu0 }
 0x18e   :  { %v4120_v48 = vpop.f32.mrb[77].mxu1  ;;  %v4184_v62 = vpop.f32.mrb[77].mxu0 }
 0x18f   :  { %v4121_v47 = vadd.f32 %v4120_v48, %v4119_v53  ;;  %v4185_v2 = vadd.f32 %v4184_v62, %v4183_v7  ;;  %v4122_v51 = vpop.f32.mrb[78].mxu1  ;;  %v4186_v59 = vpop.f32.mrb[78].mxu0 }
 0x190   :  { %v4123_v18 = vpop.f32.mrb[79].mxu1  ;;  %v4187_v42 = vpop.f32.mrb[79].mxu0 }
 0x191   :  { %v1338_v27 = vadd.f32 %v4121_v47, %v5721_v20  ;;  %v4124_v49 = vadd.f32 %v4123_v18, %v4122_v51  ;;  %v4188_v61 = vadd.f32 %v4187_v42, %v4186_v59 }
 0x193   :  { %v5769_v63 = vadd.f32 %v4185_v2, %v1338_v27  ;;  %v1339_v26 = vadd.f32 %v4124_v49, %v5724_v25 }
 0x195   :  { %v5772_v0 = vadd.f32 %v4188_v61, %v1339_v26  ;;  %v4205_v16 = vpop.f32.mrb[80].mxu1  ;;  %v4269_v3 = vpop.f32.mrb[80].mxu0 }
 0x196   :  { %v4206_v6 = vpop.f32.mrb[81].mxu1  ;;  %v4270_v11 = vpop.f32.mrb[81].mxu0 }
 0x197   :  { %v4207_v28 = vadd.f32 %v4206_v6, %v4205_v16  ;;  %v4271_v14 = vadd.f32 %v4270_v11, %v4269_v3  ;;  %v4208_v21 = vpop.f32.mrb[82].mxu1  ;;  %v4272_v40 = vpop.f32.mrb[82].mxu0 }
 0x198   :  { %v4209_v12 = vpop.f32.mrb[83].mxu1  ;;  %v4273_v30 = vpop.f32.mrb[83].mxu0 }
 0x199   :  { %v2002_v20 = vadd.f32 %v4207_v28, %v5727_v15  ;;  %v4210_v46 = vadd.f32 %v4209_v12, %v4208_v21  ;;  %v4274_v56 = vadd.f32 %v4273_v30, %v4272_v40 }
 0x19b   :  { %v5775_v9 = vadd.f32 %v4271_v14, %v2002_v20  ;;  %v2003_v25 = vadd.f32 %v4210_v46, %v5730_v5 }
 0x19d   :  { %v5778_v4 = vadd.f32 %v4274_v56, %v2003_v25  ;;  %v4211_v34 = vpop.f32.mrb[84].mxu1  ;;  %v4275_v19 = vpop.f32.mrb[84].mxu0 }
 0x19e   :  { %v4212_v24 = vpop.f32.mrb[85].mxu1  ;;  %v4276_v41 = vpop.f32.mrb[85].mxu0 }
 0x19f   :  { %v4213_v37 = vadd.f32 %v4212_v24, %v4211_v34  ;;  %v4277_v45 = vadd.f32 %v4276_v41, %v4275_v19  ;;  %v4214_v44 = vpop.f32.mrb[86].mxu1  ;;  %v4278_v36 = vpop.f32.mrb[86].mxu0 }
 0x1a0   :  { %v4215_v17 = vpop.f32.mrb[87].mxu1  ;;  %v4279_v31 = vpop.f32.mrb[87].mxu0 }
 0x1a1   :  { %v2004_v15 = vadd.f32 %v4213_v37, %v5733_v22  ;;  %v4216_v58 = vadd.f32 %v4215_v17, %v4214_v44  ;;  %v4280_v35 = vadd.f32 %v4279_v31, %v4278_v36 }
 0x1a3   :  { %v5781_v32 = vadd.f32 %v4277_v45, %v2004_v15  ;;  %v2005_v5 = vadd.f32 %v4216_v58, %v5736_v23 }
 0x1a5   :  { %v5784_v38 = vadd.f32 %v4280_v35, %v2005_v5  ;;  %v4217_v52 = vpop.f32.mrb[88].mxu1  ;;  %v4281_v33 = vpop.f32.mrb[88].mxu0 }
 0x1a6   :  { %v4218_v39 = vpop.f32.mrb[89].mxu1  ;;  %v4282_v55 = vpop.f32.mrb[89].mxu0 }
 0x1a7   :  { %v4219_v53 = vadd.f32 %v4218_v39, %v4217_v52  ;;  %v4283_v7 = vadd.f32 %v4282_v55, %v4281_v33  ;;  %v4220_v48 = vpop.f32.mrb[90].mxu1  ;;  %v4284_v62 = vpop.f32.mrb[90].mxu0 }
 0x1a8   :  { %v4221_v47 = vpop.f32.mrb[91].mxu1  ;;  %v4285_v2 = vpop.f32.mrb[91].mxu0 }
 0x1a9   :  { %v2006_v22 = vadd.f32 %v4219_v53, %v5739_v1  ;;  %v4222_v51 = vadd.f32 %v4221_v47, %v4220_v48  ;;  %v4286_v59 = vadd.f32 %v4285_v2, %v4284_v62 }
 0x1ab   :  { %v5787_v18 = vadd.f32 %v4283_v7, %v2006_v22  ;;  %v2007_v23 = vadd.f32 %v4222_v51, %v5742_v10 }
 0x1ad   :  { %v5790_v42 = vadd.f32 %v4286_v59, %v2007_v23  ;;  %v4223_v27 = vpop.f32.mrb[92].mxu1  ;;  %v4287_v49 = vpop.f32.mrb[92].mxu0 }
 0x1ae   :  { %v4224_v61 = vpop.f32.mrb[93].mxu1  ;;  %v4288_v26 = vpop.f32.mrb[93].mxu0 }
 0x1af   :  { %v4225_v16 = vadd.f32 %v4224_v61, %v4223_v27  ;;  %v4289_v3 = vadd.f32 %v4288_v26, %v4287_v49  ;;  %v4226_v6 = vpop.f32.mrb[94].mxu1  ;;  %v4290_v11 = vpop.f32.mrb[94].mxu0 }
 0x1b0   :  { %v4227_v28 = vpop.f32.mrb[95].mxu1  ;;  %v4291_v14 = vpop.f32.mrb[95].mxu0 }
 0x1b1   :  { %v2008_v1 = vadd.f32 %v4225_v16, %v5745_v57  ;;  %v4228_v21 = vadd.f32 %v4227_v28, %v4226_v6  ;;  %v4292_v40 = vadd.f32 %v4291_v14, %v4290_v11 }
 0x1b3   :  { %v5793_v12 = vadd.f32 %v4289_v3, %v2008_v1  ;;  %v2009_v10 = vadd.f32 %v4228_v21, %v5748_v60 }
 0x1b5   :  { %v5796_v30 = vadd.f32 %v4292_v40, %v2009_v10  ;;  %v4229_v20 = vpop.f32.mrb[96].mxu1  ;;  %v4293_v46 = vpop.f32.mrb[96].mxu0 }
 0x1b6   :  { %v4230_v56 = vpop.f32.mrb[97].mxu1  ;;  %v4294_v25 = vpop.f32.mrb[97].mxu0 }
 0x1b7   :  { %v4231_v34 = vadd.f32 %v4230_v56, %v4229_v20  ;;  %v4295_v19 = vadd.f32 %v4294_v25, %v4293_v46  ;;  %v4232_v24 = vpop.f32.mrb[98].mxu1  ;;  %v4296_v41 = vpop.f32.mrb[98].mxu0 }
 0x1b8   :  { %v4233_v37 = vpop.f32.mrb[99].mxu1  ;;  %v4297_v45 = vpop.f32.mrb[99].mxu0 }
 0x1b9   :  { %v2010_v57 = vadd.f32 %v4231_v34, %v5751_v13  ;;  %v4234_v44 = vadd.f32 %v4233_v37, %v4232_v24  ;;  %v4298_v36 = vadd.f32 %v4297_v45, %v4296_v41 }
 0x1bb   :  { %v5799_v17 = vadd.f32 %v4295_v19, %v2010_v57  ;;  %v2011_v60 = vadd.f32 %v4234_v44, %v5754_v8 }
 0x1bd   :  { %v5802_v31 = vadd.f32 %v4298_v36, %v2011_v60  ;;  %v4235_v15 = vpop.f32.mrb[100].mxu1  ;;  %v4299_v58 = vpop.f32.mrb[100].mxu0 }
 0x1be   :  { %v4236_v35 = vpop.f32.mrb[101].mxu1  ;;  %v4300_v5 = vpop.f32.mrb[101].mxu0 }
 0x1bf   :  { %v4237_v52 = vadd.f32 %v4236_v35, %v4235_v15  ;;  %v4301_v33 = vadd.f32 %v4300_v5, %v4299_v58  ;;  %v4238_v39 = vpop.f32.mrb[102].mxu1  ;;  %v4302_v55 = vpop.f32.mrb[102].mxu0 }
 0x1c0   :  { %v4239_v53 = vpop.f32.mrb[103].mxu1  ;;  %v4303_v7 = vpop.f32.mrb[103].mxu0 }
 0x1c1   :  { %v2012_v13 = vadd.f32 %v4237_v52, %v5757_v29  ;;  %v4240_v48 = vadd.f32 %v4239_v53, %v4238_v39  ;;  %v4304_v62 = vadd.f32 %v4303_v7, %v4302_v55 }
 0x1c3   :  { %v5805_v47 = vadd.f32 %v4301_v33, %v2012_v13  ;;  %v2013_v8 = vadd.f32 %v4240_v48, %v5760_v54 }
 0x1c5   :  { %v5808_v2 = vadd.f32 %v4304_v62, %v2013_v8  ;;  %v4241_v22 = vpop.f32.mrb[104].mxu1  ;;  %v4305_v51 = vpop.f32.mrb[104].mxu0 }
 0x1c6   :  { %v4242_v59 = vpop.f32.mrb[105].mxu1  ;;  %v4306_v23 = vpop.f32.mrb[105].mxu0 }
 0x1c7   :  { %v4243_v27 = vadd.f32 %v4242_v59, %v4241_v22  ;;  %v4307_v49 = vadd.f32 %v4306_v23, %v4305_v51  ;;  %v4244_v61 = vpop.f32.mrb[106].mxu1  ;;  %v4308_v26 = vpop.f32.mrb[106].mxu0 }
 0x1c8   :  { %v4245_v16 = vpop.f32.mrb[107].mxu1  ;;  %v4309_v3 = vpop.f32.mrb[107].mxu0 }
 0x1c9   :  { %v2014_v29 = vadd.f32 %v4243_v27, %v5763_v43  ;;  %v4246_v6 = vadd.f32 %v4245_v16, %v4244_v61  ;;  %v4310_v11 = vadd.f32 %v4309_v3, %v4308_v26 }
 0x1cb   :  { %v5811_v28 = vadd.f32 %v4307_v49, %v2014_v29  ;;  %v2015_v54 = vadd.f32 %v4246_v6, %v5766_v50 }
 0x1cd   :  { %v5814_v14 = vadd.f32 %v4310_v11, %v2015_v54  ;;  %v4247_v1 = vpop.f32.mrb[108].mxu1  ;;  %v4311_v21 = vpop.f32.mrb[108].mxu0 }
 0x1ce   :  { %v4248_v40 = vpop.f32.mrb[109].mxu1  ;;  %v4312_v10 = vpop.f32.mrb[109].mxu0 }
 0x1cf   :  { %v4249_v20 = vadd.f32 %v4248_v40, %v4247_v1  ;;  %v4313_v46 = vadd.f32 %v4312_v10, %v4311_v21  ;;  %v4250_v56 = vpop.f32.mrb[110].mxu1  ;;  %v4314_v25 = vpop.f32.mrb[110].mxu0 }
 0x1d0   :  { %v4251_v34 = vpop.f32.mrb[111].mxu1  ;;  %v4315_v19 = vpop.f32.mrb[111].mxu0 }
 0x1d1   :  { %v2016_v43 = vadd.f32 %v4249_v20, %v5769_v63  ;;  %v4252_v24 = vadd.f32 %v4251_v34, %v4250_v56  ;;  %v4316_v41 = vadd.f32 %v4315_v19, %v4314_v25 }
 0x1d3   :  { %v5817_v37 = vadd.f32 %v4313_v46, %v2016_v43  ;;  %v2017_v50 = vadd.f32 %v4252_v24, %v5772_v0 }
 0x1d5   :  { %v5820_v45 = vadd.f32 %v4316_v41, %v2017_v50  ;;  %v4333_v57 = vpop.f32.mrb[112].mxu1  ;;  %v4397_v44 = vpop.f32.mrb[112].mxu0 }
 0x1d6   :  { %v4334_v36 = vpop.f32.mrb[113].mxu1  ;;  %v4398_v60 = vpop.f32.mrb[113].mxu0 }
 0x1d7   :  { %v4335_v15 = vadd.f32 %v4334_v36, %v4333_v57  ;;  %v4399_v58 = vadd.f32 %v4398_v60, %v4397_v44  ;;  %v4336_v35 = vpop.f32.mrb[114].mxu1  ;;  %v4400_v5 = vpop.f32.mrb[114].mxu0 }
 0x1d8   :  { %v4337_v52 = vpop.f32.mrb[115].mxu1  ;;  %v4401_v33 = vpop.f32.mrb[115].mxu0 }
 0x1d9   :  { %v2680_v63 = vadd.f32 %v4335_v15, %v5775_v9  ;;  %v4338_v39 = vadd.f32 %v4337_v52, %v4336_v35  ;;  %v4402_v55 = vadd.f32 %v4401_v33, %v4400_v5 }
 0x1db   :  { %v5823_v53 = vadd.f32 %v4399_v58, %v2680_v63  ;;  %v2681_v0 = vadd.f32 %v4338_v39, %v5778_v4 }
 0x1dd   :  { %v5826_v7 = vadd.f32 %v4402_v55, %v2681_v0  ;;  %v4339_v13 = vpop.f32.mrb[116].mxu1  ;;  %v4403_v48 = vpop.f32.mrb[116].mxu0 }
 0x1de   :  { %v4340_v62 = vpop.f32.mrb[117].mxu1  ;;  %v4404_v8 = vpop.f32.mrb[117].mxu0 }
 0x1df   :  { %v3035_v22 = vadd.f32 %v5826_v7, %v5823_v53  ;;  %v4341_v51 = vadd.f32 %v4340_v62, %v4339_v13  ;;  %v4405_v59 = vadd.f32 %v4404_v8, %v4403_v48  ;;  %v4342_v23 = vpop.f32.mrb[118].mxu1  ;;  %v4406_v27 = vpop.f32.mrb[118].mxu0 }
 0x1e0   :  { %v4343_v9 = vpop.f32.mrb[119].mxu1  ;;  %v4407_v49 = vpop.f32.mrb[119].mxu0 }
 0x1e1   :  { %v2682_v61 = vadd.f32 %v4341_v51, %v5781_v32  ;;  %v4344_v26 = vadd.f32 %v4343_v9, %v4342_v23  ;;  %v4408_v16 = vadd.f32 %v4407_v49, %v4406_v27 }
 0x1e3   :  { %v5831_v4 = vadd.f32 %v4405_v59, %v2682_v61  ;;  %v2683_v3 = vadd.f32 %v4344_v26, %v5784_v38 }
 0x1e5   :  { %v3036_v29 = vadd.f32 %v3035_v22, %v5831_v4  ;;  %v5835_v6 = vadd.f32 %v4408_v16, %v2683_v3  ;;  %v4345_v11 = vpop.f32.mrb[120].mxu1  ;;  %v4409_v54 = vpop.f32.mrb[120].mxu0 }
 0x1e6   :  { %v4346_v1 = vpop.f32.mrb[121].mxu1  ;;  %v4410_v21 = vpop.f32.mrb[121].mxu0 }
 0x1e7   :  { %v3037_v40 = vadd.f32 %v3036_v29, %v5835_v6  ;;  %v4347_v10 = vadd.f32 %v4346_v1, %v4345_v11  ;;  %v4411_v20 = vadd.f32 %v4410_v21, %v4409_v54  ;;  %v4348_v46 = vpop.f32.mrb[122].mxu1  ;;  %v4412_v32 = vpop.f32.mrb[122].mxu0 }
 0x1e8   :  { %v4349_v56 = vpop.f32.mrb[123].mxu1  ;;  %v4413_v25 = vpop.f32.mrb[123].mxu0 }
 0x1e9   :  { %v2684_v34 = vadd.f32 %v4347_v10, %v5787_v18  ;;  %v4350_v19 = vadd.f32 %v4349_v56, %v4348_v46  ;;  %v4414_v38 = vadd.f32 %v4413_v25, %v4412_v32 }
 0x1eb   :  { %v5839_v43 = vadd.f32 %v4411_v20, %v2684_v34  ;;  %v2685_v24 = vadd.f32 %v4350_v19, %v5790_v42 }
 0x1ed   :  { %v3038_v41 = vadd.f32 %v3037_v40, %v5839_v43  ;;  %v5843_v50 = vadd.f32 %v4414_v38, %v2685_v24  ;;  %v4351_v57 = vpop.f32.mrb[124].mxu1  ;;  %v4415_v44 = vpop.f32.mrb[124].mxu0 }
 0x1ee   :  { %v4352_v36 = vpop.f32.mrb[125].mxu1  ;;  %v4416_v60 = vpop.f32.mrb[125].mxu0 }
 0x1ef   :  { %v3039_v15 = vadd.f32 %v3038_v41, %v5843_v50  ;;  %v4353_v58 = vadd.f32 %v4352_v36, %v4351_v57  ;;  %v4417_v35 = vadd.f32 %v4416_v60, %v4415_v44  ;;  %v4354_v5 = vpop.f32.mrb[126].mxu1  ;;  %v4418_v18 = vpop.f32.mrb[126].mxu0 }
 0x1f0   :  { %v4355_v52 = vpop.f32.mrb[127].mxu1  ;;  %v4419_v33 = vpop.f32.mrb[127].mxu0 }
 0x1f1   :  { %v2686_v63 = vadd.f32 %v4353_v58, %v5793_v12  ;;  %v4356_v39 = vadd.f32 %v4355_v52, %v4354_v5  ;;  %v4420_v42 = vadd.f32 %v4419_v33, %v4418_v18 }
 0x1f3   :  { %v5847_v55 = vadd.f32 %v4417_v35, %v2686_v63  ;;  %v2687_v0 = vadd.f32 %v4356_v39, %v5796_v30 }
 0x1f5   :  { %v3040_v13 = vadd.f32 %v3039_v15, %v5847_v55  ;;  %v5851_v48 = vadd.f32 %v4420_v42, %v2687_v0  ;;  %v4357_v62 = vpop.f32.mrb[128].mxu1  ;;  %v4421_v8 = vpop.f32.mrb[128].mxu0 }
 0x1f6   :  { %v4358_v22 = vpop.f32.mrb[129].mxu1  ;;  %v4422_v51 = vpop.f32.mrb[129].mxu0 }
 0x1f7   :  { %v3041_v59 = vadd.f32 %v3040_v13, %v5851_v48  ;;  %v4359_v23 = vadd.f32 %v4358_v22, %v4357_v62  ;;  %v4423_v27 = vadd.f32 %v4422_v51, %v4421_v8  ;;  %v4360_v9 = vpop.f32.mrb[130].mxu1  ;;  %v4424_v12 = vpop.f32.mrb[130].mxu0 }
 0x1f8   :  { %v4361_v49 = vpop.f32.mrb[131].mxu1  ;;  %v4425_v61 = vpop.f32.mrb[131].mxu0 }
 0x1f9   :  { %v2688_v26 = vadd.f32 %v4359_v23, %v5799_v17  ;;  %v4362_v16 = vadd.f32 %v4361_v49, %v4360_v9  ;;  %v4426_v30 = vadd.f32 %v4425_v61, %v4424_v12 }
 0x1fb   :  { %v5855_v3 = vadd.f32 %v4423_v27, %v2688_v26  ;;  %v2689_v29 = vadd.f32 %v4362_v16, %v5802_v31 }
 0x1fd   :  { %v3042_v11 = vadd.f32 %v3041_v59, %v5855_v3  ;;  %v5859_v54 = vadd.f32 %v4426_v30, %v2689_v29  ;;  %v4363_v1 = vpop.f32.mrb[132].mxu1  ;;  %v4427_v21 = vpop.f32.mrb[132].mxu0 }
 0x1fe   :  { %v4364_v40 = vpop.f32.mrb[133].mxu1  ;;  %v4428_v10 = vpop.f32.mrb[133].mxu0 }
 0x1ff   :  { %v3043_v20 = vadd.f32 %v3042_v11, %v5859_v54  ;;  %v4365_v46 = vadd.f32 %v4364_v40, %v4363_v1  ;;  %v4429_v32 = vadd.f32 %v4428_v10, %v4427_v21  ;;  %v4366_v56 = vpop.f32.mrb[134].mxu1  ;;  %v4430_v17 = vpop.f32.mrb[134].mxu0 }
 0x200   :  { %v4367_v25 = vpop.f32.mrb[135].mxu1  ;;  %v4431_v34 = vpop.f32.mrb[135].mxu0 }
 0x201   :  { %v2690_v19 = vadd.f32 %v4365_v46, %v5805_v47  ;;  %v4368_v38 = vadd.f32 %v4367_v25, %v4366_v56  ;;  %v4432_v31 = vadd.f32 %v4431_v34, %v4430_v17 }
 0x203   :  { %v3029_v24 = vadd.f32 %v4429_v32, %v2690_v19  ;;  %v2691_v41 = vadd.f32 %v4368_v38, %v5808_v2 }
 0x205   :  { %v3044_v57 = vadd.f32 %v3043_v20, %v3029_v24  ;;  %v3030_v44 = vadd.f32 %v4432_v31, %v2691_v41  ;;  %v4369_v36 = vpop.f32.mrb[136].mxu1  ;;  %v4433_v60 = vpop.f32.mrb[136].mxu0 }
 0x206   :  { %v4370_v15 = vpop.f32.mrb[137].mxu1  ;;  %v4434_v58 = vpop.f32.mrb[137].mxu0 }
 0x207   :  { %v3045_v35 = vadd.f32 %v3044_v57, %v3030_v44  ;;  %v4371_v5 = vadd.f32 %v4370_v15, %v4369_v36  ;;  %v4435_v18 = vadd.f32 %v4434_v58, %v4433_v60  ;;  %v4372_v52 = vpop.f32.mrb[138].mxu1  ;;  %v4436_v33 = vpop.f32.mrb[138].mxu0 }
 0x208   :  { %v4373_v63 = vpop.f32.mrb[139].mxu1  ;;  %v4437_v39 = vpop.f32.mrb[139].mxu0 }
 0x209   :  { %v2692_v47 = vadd.f32 %v4371_v5, %v5811_v28  ;;  %v4374_v42 = vadd.f32 %v4373_v63, %v4372_v52  ;;  %v4438_v0 = vadd.f32 %v4437_v39, %v4436_v33 }
 0x20b   :  { %v3031_v13 = vadd.f32 %v4435_v18, %v2692_v47  ;;  %v2693_v2 = vadd.f32 %v4374_v42, %v5814_v14 }
 0x20d   :  { %v3046_v62 = vadd.f32 %v3045_v35, %v3031_v13  ;;  %v3032_v8 = vadd.f32 %v4438_v0, %v2693_v2  ;;  %v4375_v22 = vpop.f32.mrb[140].mxu1  ;;  %v4439_v51 = vpop.f32.mrb[140].mxu0 }
 0x20e   :  { %v4376_v59 = vpop.f32.mrb[141].mxu1  ;;  %v4440_v23 = vpop.f32.mrb[141].mxu0 }
 0x20f   :  { %v3047_v27 = vadd.f32 %v3046_v62, %v3032_v8  ;;  %v4377_v9 = vadd.f32 %v4376_v59, %v4375_v22  ;;  %v4441_v12 = vadd.f32 %v4440_v23, %v4439_v51  ;;  %v4378_v49 = vpop.f32.mrb[142].mxu1  ;;  %v4442_v61 = vpop.f32.mrb[142].mxu0 }
 0x210   :  { %v4379_v26 = vpop.f32.mrb[143].mxu1  ;;  %v4443_v16 = vpop.f32.mrb[143].mxu0 }
 0x211   :  { %v2694_v28 = vadd.f32 %v4377_v9, %v5817_v37  ;;  %v4380_v30 = vadd.f32 %v4379_v26, %v4378_v49  ;;  %v4444_v29 = vadd.f32 %v4443_v16, %v4442_v61 }
 0x213   :  { %v3033_v11 = vadd.f32 %v4441_v12, %v2694_v28  ;;  %v2695_v14 = vadd.f32 %v4380_v30, %v5820_v45 }
 0x215   :  { %v3048_v1 = vadd.f32 %v3047_v27, %v3033_v11  ;;  %v3034_v21 = vadd.f32 %v4444_v29, %v2695_v14 }
 0x217   :  { %v3049_v40 = vadd.f32 %v3048_v1, %v3034_v21 }
 0x219   :  { %v3050_v10 = vrot.slane %v3049_v40, 4 }
 0x21b   :  { %v3051_v20 = vadd.f32 %v3050_v10, %v3049_v40  ;;  %v3111_v10 = vld [vmem:[%s6014_s2] sm:$0x1] }
 0x21d   :  { %v3052_v46 = vrot.slane %v3051_v20, 2 }
 0x21f   :  { %v3053_v32 = vadd.f32 %v3052_v46, %v3051_v20 }
 0x221   :  { %v3054_v56 = vrot.slane %v3053_v32, 1 }
 0x223   :  { %v3055_v17 = vadd.f32 %v3054_v56, %v3053_v32 }
 0x225   :  { %v3056_v25 = vmul.f32 0.0078125, %v3055_v17 }
 0x227   :  { %v5869_v34 = vsub.f32 %v5823_v53, %v3056_v25  ;;  %v5872_v37 = vsub.f32 %v5826_v7, %v3056_v25  ;;  %v5875_v19 = vsub.f32 %v5831_v4, %v3056_v25  ;;  %v5878_v45 = vsub.f32 %v5835_v6, %v3056_v25 }
 0x228   :  { %v5881_v38 = vsub.f32 %v5839_v43, %v3056_v25  ;;  %v5884_v31 = vsub.f32 %v5843_v50, %v3056_v25  ;;  %v5887_v41 = vsub.f32 %v5847_v55, %v3056_v25  ;;  %v5890_v53 = vsub.f32 %v5851_v48, %v3056_v25 }
 0x229   :  { %v5893_v7 = vsub.f32 %v5855_v3, %v3056_v25  ;;  %v5896_v4 = vsub.f32 %v5859_v54, %v3056_v25  ;;  %v5898_v6 = vsub.f32 %v3029_v24, %v3056_v25  ;;  %v5900_v57 = vsub.f32 %v3030_v44, %v3056_v25 }
 0x22a   :  { %v5902_v43 = vsub.f32 %v3031_v13, %v3056_v25  ;;  %v5904_v50 = vsub.f32 %v3032_v8, %v3056_v25  ;;  %v5906_v36 = vsub.f32 %v3033_v11, %v3056_v25  ;;  %v5908_v55 = vsub.f32 %v3034_v21, %v3056_v25 }
 0x22b   :  { %v3073_v48 = vmul.f32 %v5869_v34, %v5869_v34  ;;  %v3074_v3 = vmul.f32 %v5872_v37, %v5872_v37  ;;  %v3075_v54 = vmul.f32 %v5875_v19, %v5875_v19  ;;  %v3076_v44 = vmul.f32 %v5878_v45, %v5878_v45 }
 0x22c   :  { %v3077_v15 = vmul.f32 %v5881_v38, %v5881_v38  ;;  %v3078_v35 = vmul.f32 %v5884_v31, %v5884_v31  ;;  %v3079_v18 = vmul.f32 %v5887_v41, %v5887_v41  ;;  %v3080_v33 = vmul.f32 %v5890_v53, %v5890_v53 }
 0x22d   :  { %v3089_v24 = vadd.f32 %v3074_v3, %v3073_v48  ;;  %v3081_v39 = vmul.f32 %v5893_v7, %v5893_v7  ;;  %v3082_v42 = vmul.f32 %v5896_v4, %v5896_v4  ;;  %v3083_v13 = vmul.f32 %v5898_v6, %v5898_v6 }
 0x22e   :  { %v3084_v62 = vmul.f32 %v5900_v57, %v5900_v57  ;;  %v3085_v22 = vmul.f32 %v5902_v43, %v5902_v43  ;;  %v3086_v59 = vmul.f32 %v5904_v50, %v5904_v50  ;;  %v3087_v27 = vmul.f32 %v5906_v36, %v5906_v36 }
 0x22f   :  { %v3090_v60 = vadd.f32 %v3089_v24, %v3075_v54  ;;  %v3088_v12 = vmul.f32 %v5908_v55, %v5908_v55  ;;  %v3116_v21 = vlaneseq }
 0x231   :  { %v3091_v58 = vadd.f32 %v3090_v60, %v3076_v44  ;;  %v3117_v40 = vshrl.u32 %v3116_v21, 7 }
 0x233   :  { %v3092_v5 = vadd.f32 %v3091_v58, %v3077_v15  ;;  %v3118_v20 = vsub.s32 0, %v3117_v40  ;;  %v3868_v15 = vld [vmem:[%s6015_s3] ss:$0 sm:$0xff] }
 0x235   :  { %v3093_v52 = vadd.f32 %v3092_v5, %v3078_v35 }
 0x237   :  { %v3094_v63 = vadd.f32 %v3093_v52, %v3079_v18 }
 0x239   :  { %v3095_v47 = vadd.f32 %v3094_v63, %v3080_v33 }
 0x23b   :  { %v3096_v0 = vadd.f32 %v3095_v47, %v3081_v39 }
 0x23d   :  { %v3097_v2 = vadd.f32 %v3096_v0, %v3082_v42 }
 0x23f   :  { %v3098_v8 = vadd.f32 %v3097_v2, %v3083_v13 }
 0x241   :  { %v3099_v51 = vadd.f32 %v3098_v8, %v3084_v62 }
 0x243   :  { %v3100_v23 = vadd.f32 %v3099_v51, %v3085_v22 }
 0x245   :  { %v3101_v9 = vadd.f32 %v3100_v23, %v3086_v59 }
 0x247   :  { %v3102_v49 = vadd.f32 %v3101_v9, %v3087_v27 }
 0x249   :  { %v3103_v61 = vadd.f32 %v3102_v49, %v3088_v12 }
 0x24b   :  { %v3104_v26 = vrot.slane %v3103_v61, 4 }
 0x24d   :  { %v3105_v16 = vadd.f32 %v3104_v26, %v3103_v61 }
 0x24f   :  { %v3106_v28 = vrot.slane %v3105_v16, 2 }
 0x251   :  { %v3107_v30 = vadd.f32 %v3106_v28, %v3105_v16 }
 0x253   :  { %v3108_v29 = vrot.slane %v3107_v30, 1 }
 0x255   :  { %v3109_v11 = vadd.f32 %v3108_v29, %v3107_v30 }
 0x257   :  { %v3110_v14 = vmul.f32 0.0078125, %v3109_v11 }
 0x259   :  { %v3112_v1 = vadd.f32 1e-05, %v3110_v14 }
 0x25b   :  { %4731 = vrsqrt.f32 %v3112_v1 }
 0x265   :  { %v4732_v46 = vpop.eup %4731 }
 0x266   :  { %v3114_v32 = vmul.f32 %v4732_v46, %v3111_v10 }
 0x268   :  { %v3119_v56 = vrot.slane %v3114_v32, %v3118_v20 }
 0x26a   :  { %v3121_v17 = vmul.f32 %v3119_v56, %v5869_v34  ;;  %v3122_v25 = vmul.f32 %v3119_v56, %v5872_v37  ;;  %v3123_v48 = vmul.f32 %v3119_v56, %v5875_v19  ;;  %v3124_v3 = vmul.f32 %v3119_v56, %v5878_v45 }
 0x26b   :  { %v3125_v54 = vmul.f32 %v3119_v56, %v5881_v38  ;;  %v3126_v24 = vmul.f32 %v3119_v56, %v5884_v31  ;;  %v3127_v44 = vmul.f32 %v3119_v56, %v5887_v41  ;;  %v3128_v60 = vmul.f32 %v3119_v56, %v5890_v53 }
 0x26c   :  { %v3129_v34 = vmul.f32 %v3119_v56, %v5893_v7  ;;  %v3130_v37 = vmul.f32 %v3119_v56, %v5896_v4  ;;  %v3131_v19 = vmul.f32 %v3119_v56, %v5898_v6  ;;  %v3132_v45 = vmul.f32 %v3119_v56, %v5900_v57 }
 0x26d   :  { %v3133_v38 = vmul.f32 %v3119_v56, %v5902_v43  ;;  %v3134_v31 = vmul.f32 %v3119_v56, %v5904_v50  ;;  %v3135_v41 = vmul.f32 %v3119_v56, %v5906_v36  ;;  %v3136_v53 = vmul.f32 %v3119_v56, %v5908_v55 }
 0x26e   :  { %v3144_v58 = vadd.f32 %v3868_v15, %v3121_v17  ;;  %v3145_v35 = vadd.f32 %v3868_v15, %v3122_v25  ;;  %v3146_v5 = vadd.f32 %v3868_v15, %v3123_v48  ;;  %v3147_v18 = vadd.f32 %v3868_v15, %v3124_v3 }
 0x26f   :  { %v3148_v52 = vadd.f32 %v3868_v15, %v3125_v54  ;;  %v3149_v7 = vadd.f32 %v3868_v15, %v3126_v24  ;;  %v3150_v33 = vadd.f32 %v3868_v15, %v3127_v44  ;;  %v3151_v4 = vadd.f32 %v3868_v15, %v3128_v60 }
 0x270   :  { %v3152_v63 = vadd.f32 %v3868_v15, %v3129_v34  ;;  %v3153_v6 = vadd.f32 %v3868_v15, %v3130_v37  ;;  %v3154_v39 = vadd.f32 %v3868_v15, %v3131_v19  ;;  %v3155_v57 = vadd.f32 %v3868_v15, %v3132_v45 }
 0x271   :  { %v3156_v47 = vadd.f32 %v3868_v15, %v3133_v38  ;;  %v3157_v43 = vadd.f32 %v3868_v15, %v3134_v31  ;;  %v3158_v42 = vadd.f32 %v3868_v15, %v3135_v41  ;;  %v3159_v50 = vadd.f32 %v3868_v15, %v3136_v53 }
 0x272   :  { %v3160_v0 = vmax.f32 %v3144_v58, 0.0  ;;  %v3161_v36 = vmax.f32 %v3145_v35, 0.0  ;;  %v3162_v13 = vmax.f32 %v3146_v5, 0.0  ;;  %v3163_v55 = vmax.f32 %v3147_v18, 0.0 }
 0x273   :  { %v3164_v2 = vmax.f32 %v3148_v52, 0.0  ;;  %v3165_v62 = vmax.f32 %v3149_v7, 0.0  ;;  %v3166_v8 = vmax.f32 %v3150_v33, 0.0  ;;  %v3167_v22 = vmax.f32 %v3151_v4, 0.0 }
 0x274   :  { %v3168_v51 = vmax.f32 %v3152_v63, 0.0  ;;  %v3169_v59 = vmax.f32 %v3153_v6, 0.0  ;;  %v3170_v23 = vmax.f32 %v3154_v39, 0.0  ;;  %v3171_v27 = vmax.f32 %v3155_v57, 0.0  ;;  %3176 = vst [vmem:[%s6016_s4] sm:$0xff] %v3160_v0  ;;  %3177 = vst [vmem:[%s6016_s4 + $0x8] sm:$0xff] %v3161_v36 }
 0x275   :  { %3178 = vst [vmem:[%s6016_s4 + $0x10] sm:$0xff] %v3162_v13  ;;  %3179 = vst [vmem:[%s6016_s4 + $0x18] sm:$0xff] %v3163_v55  ;;  %v3172_v9 = vmax.f32 %v3156_v47, 0.0  ;;  %v3173_v12 = vmax.f32 %v3157_v43, 0.0  ;;  %v3174_v49 = vmax.f32 %v3158_v42, 0.0  ;;  %v3175_v61 = vmax.f32 %v3159_v50, 0.0 }
 0x276   :  { %3180 = vst [vmem:[%s6016_s4 + $0x20] sm:$0xff] %v3164_v2  ;;  %3181 = vst [vmem:[%s6016_s4 + $0x28] sm:$0xff] %v3165_v62 }
 0x277   :  { %3182 = vst [vmem:[%s6016_s4 + $0x30] sm:$0xff] %v3166_v8  ;;  %3183 = vst [vmem:[%s6016_s4 + $0x38] sm:$0xff] %v3167_v22 }
 0x278   :  { %3184 = vst [vmem:[%s6016_s4 + $0x40] sm:$0xff] %v3168_v51  ;;  %3185 = vst [vmem:[%s6016_s4 + $0x48] sm:$0xff] %v3169_v59 }
 0x279   :  { %3186 = vst [vmem:[%s6016_s4 + $0x50] sm:$0xff] %v3170_v23  ;;  %3187 = vst [vmem:[%s6016_s4 + $0x58] sm:$0xff] %v3171_v27 }
 0x27a   :  { %3188 = vst [vmem:[%s6016_s4 + $0x60] sm:$0xff] %v3172_v9  ;;  %3189 = vst [vmem:[%s6016_s4 + $0x68] sm:$0xff] %v3173_v12 }
 0x27b   :  { %3190 = vst [vmem:[%s6016_s4 + $0x70] sm:$0xff] %v3174_v49  ;;  %3191 = vst [vmem:[%s6016_s4 + $0x78] sm:$0xff] %v3175_v61 }

// kernel: theta2_forward.2
= control target key start
LH: loop header
LB: loop body
LE: loop exit
PB: predicated region body
PF: predicated region fallthrough
CT: control target
= control target key end

     0   :  { %s14555_s15 = smov 0   ;;  %s14557_s16 = smov 0   ;;  %s17495_s0 = inlined_call_operand.vmem [shape: bf16[3,10,16,512], index: 0, kind: input, shape index: {}]   ;;  %s17496_s1 = inlined_call_operand.vmem [shape: bf16[9,512,256], index: 1, kind: input, shape index: {}]   ;;  %s17497_s2 = inlined_call_operand.vmem [shape: f32[1,256], index: 2, kind: input, shape index: {}]   ;;  %s17498_s3 = inlined_call_operand.vmem [shape: f32[1,256], index: 3, kind: input, shape index: {}]   ;;  %s17499_s4 = inlined_call_operand.vmem [shape: bf16[128,256], index: 4, kind: output, shape index: {}]  }
   0x1   :  { %s14559_s17 = smov 0  }
   0x2 LB: > { %s14571_s18 = sadd.s32 4294967295, %s14528_s17   ;;  %s14574_s19 = sadd.s32 1, %s14528_s17   ;;  %s14528_s17 = sphi %s14559_s17, %s17503_s17   ;;  %s14524_s16 = sphi %s14557_s16, %s17502_s16   ;;  %s14520_s15 = sphi %s14555_s15, %s17501_s15  }
   0x3   : > { %s39_s20 = ssub.s32 %s14528_s17, %s14574_s19  ;;  %s42_s21 = sadd.s32 1, %s14524_s16 }
   0x4   : > { %p40_p0 = scmp.eq.s32.totalorder %s39_s20, 0  ;;  %p49_p1 = scmp.ne.s32.totalorder %s14524_s16, %s14520_s15 }
   0x5   : > { %p50_p2 = scmp.eq.s32.totalorder %s14528_s17, 0  ;;  %p131_p3 = scmp.eq.s32.totalorder %s14571_s18, 1 }
   0x6   : > { %s14584_s22 = scalar_select %p40_p0, %s14524_s16, %s42_s21  }
   0x7   : > { %p51_p4 = por %p50_p2, %p49_p1  ;;  %p14586_p5 = por %p131_p3, %p49_p1 }
   0x8   : > { %p11216_p6 = scmp.ge.s32.totalorder %s14528_s17, 2 }
   0xa   : > { %156 = sbr.rel (%p11216_p6) target bundleno = 405 (0x195), region = 20 }
  0x11   : > { %159 = sbr.rel (!%p51_p4) target bundleno = 405 (0x195), region = 24  ;;  %s161_s24 = sand.u32 (%p51_p4), 1, %s14524_s16  }
  0x12   : > { %s11217_s25 = sshll.u32 (%p51_p4), %s14528_s17, 2  ;;  %s13800_s26 = smul.u32 (%p51_p4), 2304, %s161_s24 }
  0x13   : > { %s14596_s29 = scalar_lea.vmem (%p51_p4), %s17496_s1, %s11217_s25 }
  0x14   : > { %v181_v0 = vld [vmem:[%s14596_s29] sm:$0xf] (%p51_p4)  ;;  %v183_v1 = vld [vmem:[%s14596_s29 + $0x8] sm:$0xf] (%p51_p4)  ;;  %v185_v2 = vld [vmem:[%s14596_s29 + $0x10] sm:$0xf] (%p51_p4) }
  0x15   : > { %v187_v3 = vld [vmem:[%s14596_s29 + $0x18] sm:$0xf] (%p51_p4)  ;;  %v189_v4 = vld [vmem:[%s14596_s29 + $0x20] sm:$0xf] (%p51_p4)  ;;  %s14603_s30 = scalar_lea.vmem (%p51_p4), [#allocation2], %s13800_s26 }
  0x16   : > { %182 = vst [vmem:[%s14603_s30] sm:$0xf] (%p51_p4), %v181_v0  ;;  %184 = vst [vmem:[%s14603_s30 + $0x4] sm:$0xf] (%p51_p4), %v183_v1  ;;  %v191_v5 = vld [vmem:[%s14596_s29 + $0x28] sm:$0xf] (%p51_p4) }
  0x17   : > { %186 = vst [vmem:[%s14603_s30 + $0x8] sm:$0xf] (%p51_p4), %v185_v2  ;;  %188 = vst [vmem:[%s14603_s30 + $0xc] sm:$0xf] (%p51_p4), %v187_v3  ;;  %v193_v6 = vld [vmem:[%s14596_s29 + $0x30] sm:$0xf] (%p51_p4) }
  0x18   : > { %190 = vst [vmem:[%s14603_s30 + $0x10] sm:$0xf] %v189_v4  ;;  %v195_v7 = vld [vmem:[%s14596_s29 + $0x38] sm:$0xf]  ;;  %192 = vst [vmem:[%s14603_s30 + $0x14] sm:$0xf] %v191_v5 }
  0x19   : > { %194 = vst [vmem:[%s14603_s30 + $0x18] sm:$0xf] %v193_v6  ;;  %196 = vst [vmem:[%s14603_s30 + $0x1c] sm:$0xf] %v195_v7  ;;  %v197_v8 = vld [vmem:[%s14596_s29 + $0x40] sm:$0xf] }
  0x1a   : > { %v199_v9 = vld [vmem:[%s14596_s29 + $0x48] sm:$0xf]  ;;  %v201_v10 = vld [vmem:[%s14596_s29 + $0x50] sm:$0xf]  ;;  %198 = vst [vmem:[%s14603_s30 + $0x20] sm:$0xf] %v197_v8 }
  0x1b   : > { %200 = vst [vmem:[%s14603_s30 + $0x24] sm:$0xf] %v199_v9  ;;  %202 = vst [vmem:[%s14603_s30 + $0x28] sm:$0xf] %v201_v10  ;;  %v203_v11 = vld [vmem:[%s14596_s29 + $0x58] sm:$0xf] }
  0x1c   : > { %v205_v12 = vld [vmem:[%s14596_s29 + $0x60] sm:$0xf]  ;;  %v207_v13 = vld [vmem:[%s14596_s29 + $0x68] sm:$0xf]  ;;  %204 = vst [vmem:[%s14603_s30 + $0x2c] sm:$0xf] %v203_v11 }
  0x1d   : > { %206 = vst [vmem:[%s14603_s30 + $0x30] sm:$0xf] %v205_v12  ;;  %208 = vst [vmem:[%s14603_s30 + $0x34] sm:$0xf] %v207_v13  ;;  %v209_v14 = vld [vmem:[%s14596_s29 + $0x70] sm:$0xf] }
  0x1e   : > { %v211_v15 = vld [vmem:[%s14596_s29 + $0x78] sm:$0xf]  ;;  %v213_v16 = vld [vmem:[%s14596_s29 + $0x80] sm:$0xf]  ;;  %210 = vst [vmem:[%s14603_s30 + $0x38] sm:$0xf] %v209_v14 }
  0x1f   : > { %212 = vst [vmem:[%s14603_s30 + $0x3c] sm:$0xf] %v211_v15  ;;  %214 = vst [vmem:[%s14603_s30 + $0x40] sm:$0xf] %v213_v16  ;;  %v215_v17 = vld [vmem:[%s14596_s29 + $0x88] sm:$0xf] }
  0x20   : > { %v217_v18 = vld [vmem:[%s14596_s29 + $0x90] sm:$0xf]  ;;  %v219_v19 = vld [vmem:[%s14596_s29 + $0x98] sm:$0xf]  ;;  %216 = vst [vmem:[%s14603_s30 + $0x44] sm:$0xf] %v215_v17 }
  0x21   : > { %218 = vst [vmem:[%s14603_s30 + $0x48] sm:$0xf] %v217_v18  ;;  %220 = vst [vmem:[%s14603_s30 + $0x4c] sm:$0xf] %v219_v19  ;;  %v221_v20 = vld [vmem:[%s14596_s29 + $0xa0] sm:$0xf] }
  0x22   : > { %v223_v21 = vld [vmem:[%s14596_s29 + $0xa8] sm:$0xf]  ;;  %v225_v22 = vld [vmem:[%s14596_s29 + $0xb0] sm:$0xf]  ;;  %222 = vst [vmem:[%s14603_s30 + $0x50] sm:$0xf] %v221_v20 }
  0x23   : > { %224 = vst [vmem:[%s14603_s30 + $0x54] sm:$0xf] %v223_v21  ;;  %226 = vst [vmem:[%s14603_s30 + $0x58] sm:$0xf] %v225_v22  ;;  %v227_v23 = vld [vmem:[%s14596_s29 + $0xb8] sm:$0xf] }
  0x24   : > { %v229_v24 = vld [vmem:[%s14596_s29 + $0xc0] sm:$0xf]  ;;  %v231_v25 = vld [vmem:[%s14596_s29 + $0xc8] sm:$0xf]  ;;  %228 = vst [vmem:[%s14603_s30 + $0x5c] sm:$0xf] %v227_v23 }
  0x25   : > { %230 = vst [vmem:[%s14603_s30 + $0x60] sm:$0xf] %v229_v24  ;;  %232 = vst [vmem:[%s14603_s30 + $0x64] sm:$0xf] %v231_v25  ;;  %v233_v26 = vld [vmem:[%s14596_s29 + $0xd0] sm:$0xf] }
  0x26   : > { %v235_v27 = vld [vmem:[%s14596_s29 + $0xd8] sm:$0xf]  ;;  %v237_v28 = vld [vmem:[%s14596_s29 + $0xe0] sm:$0xf]  ;;  %234 = vst [vmem:[%s14603_s30 + $0x68] sm:$0xf] %v233_v26 }
  0x27   : > { %236 = vst [vmem:[%s14603_s30 + $0x6c] sm:$0xf] %v235_v27  ;;  %238 = vst [vmem:[%s14603_s30 + $0x70] sm:$0xf] %v237_v28  ;;  %v239_v29 = vld [vmem:[%s14596_s29 + $0xe8] sm:$0xf] }
  0x28   : > { %v241_v30 = vld [vmem:[%s14596_s29 + $0xf0] sm:$0xf]  ;;  %v243_v31 = vld [vmem:[%s14596_s29 + $0xf8] sm:$0xf]  ;;  %240 = vst [vmem:[%s14603_s30 + $0x74] sm:$0xf] %v239_v29 }
  0x29   : > { %242 = vst [vmem:[%s14603_s30 + $0x78] sm:$0xf] %v241_v30  ;;  %244 = vst [vmem:[%s14603_s30 + $0x7c] sm:$0xf] %v243_v31  ;;  %v245_v32 = vld [vmem:[%s14596_s29 + $0x100] sm:$0xf] }
  0x2a   : > { %v247_v33 = vld [vmem:[%s14596_s29 + $0x108] sm:$0xf]  ;;  %v249_v34 = vld [vmem:[%s14596_s29 + $0x110] sm:$0xf]  ;;  %246 = vst [vmem:[%s14603_s30 + $0x80] sm:$0xf] %v245_v32 }
  0x2b   : > { %248 = vst [vmem:[%s14603_s30 + $0x84] sm:$0xf] %v247_v33  ;;  %250 = vst [vmem:[%s14603_s30 + $0x88] sm:$0xf] %v249_v34  ;;  %v251_v35 = vld [vmem:[%s14596_s29 + $0x118] sm:$0xf] }
  0x2c   : > { %v253_v36 = vld [vmem:[%s14596_s29 + $0x120] sm:$0xf]  ;;  %v255_v37 = vld [vmem:[%s14596_s29 + $0x128] sm:$0xf]  ;;  %252 = vst [vmem:[%s14603_s30 + $0x8c] sm:$0xf] %v251_v35 }
  0x2d   : > { %254 = vst [vmem:[%s14603_s30 + $0x90] sm:$0xf] %v253_v36  ;;  %256 = vst [vmem:[%s14603_s30 + $0x94] sm:$0xf] %v255_v37  ;;  %v257_v38 = vld [vmem:[%s14596_s29 + $0x130] sm:$0xf] }
  0x2e   : > { %v259_v39 = vld [vmem:[%s14596_s29 + $0x138] sm:$0xf]  ;;  %v261_v40 = vld [vmem:[%s14596_s29 + $0x140] sm:$0xf]  ;;  %258 = vst [vmem:[%s14603_s30 + $0x98] sm:$0xf] %v257_v38 }
  0x2f   : > { %260 = vst [vmem:[%s14603_s30 + $0x9c] sm:$0xf] %v259_v39  ;;  %262 = vst [vmem:[%s14603_s30 + $0xa0] sm:$0xf] %v261_v40  ;;  %v263_v41 = vld [vmem:[%s14596_s29 + $0x148] sm:$0xf] }
  0x30   : > { %v265_v42 = vld [vmem:[%s14596_s29 + $0x150] sm:$0xf]  ;;  %v267_v43 = vld [vmem:[%s14596_s29 + $0x158] sm:$0xf]  ;;  %264 = vst [vmem:[%s14603_s30 + $0xa4] sm:$0xf] %v263_v41 }
  0x31   : > { %266 = vst [vmem:[%s14603_s30 + $0xa8] sm:$0xf] %v265_v42  ;;  %268 = vst [vmem:[%s14603_s30 + $0xac] sm:$0xf] %v267_v43  ;;  %v269_v44 = vld [vmem:[%s14596_s29 + $0x160] sm:$0xf] }
  0x32   : > { %v271_v45 = vld [vmem:[%s14596_s29 + $0x168] sm:$0xf]  ;;  %v273_v46 = vld [vmem:[%s14596_s29 + $0x170] sm:$0xf]  ;;  %270 = vst [vmem:[%s14603_s30 + $0xb0] sm:$0xf] %v269_v44 }
  0x33   : > { %272 = vst [vmem:[%s14603_s30 + $0xb4] sm:$0xf] %v271_v45  ;;  %274 = vst [vmem:[%s14603_s30 + $0xb8] sm:$0xf] %v273_v46  ;;  %v275_v47 = vld [vmem:[%s14596_s29 + $0x178] sm:$0xf] }
  0x34   : > { %v277_v48 = vld [vmem:[%s14596_s29 + $0x180] sm:$0xf]  ;;  %v279_v49 = vld [vmem:[%s14596_s29 + $0x188] sm:$0xf]  ;;  %276 = vst [vmem:[%s14603_s30 + $0xbc] sm:$0xf] %v275_v47 }
  0x35   : > { %278 = vst [vmem:[%s14603_s30 + $0xc0] sm:$0xf] %v277_v48  ;;  %280 = vst [vmem:[%s14603_s30 + $0xc4] sm:$0xf] %v279_v49  ;;  %v281_v50 = vld [vmem:[%s14596_s29 + $0x190] sm:$0xf] }
  0x36   : > { %v283_v51 = vld [vmem:[%s14596_s29 + $0x198] sm:$0xf]  ;;  %v285_v52 = vld [vmem:[%s14596_s29 + $0x1a0] sm:$0xf]  ;;  %282 = vst [vmem:[%s14603_s30 + $0xc8] sm:$0xf] %v281_v50 }
  0x37   : > { %284 = vst [vmem:[%s14603_s30 + $0xcc] sm:$0xf] %v283_v51  ;;  %286 = vst [vmem:[%s14603_s30 + $0xd0] sm:$0xf] %v285_v52  ;;  %v287_v53 = vld [vmem:[%s14596_s29 + $0x1a8] sm:$0xf] }
  0x38   : > { %v289_v54 = vld [vmem:[%s14596_s29 + $0x1b0] sm:$0xf]  ;;  %v291_v55 = vld [vmem:[%s14596_s29 + $0x1b8] sm:$0xf]  ;;  %288 = vst [vmem:[%s14603_s30 + $0xd4] sm:$0xf] %v287_v53 }
  0x39   : > { %290 = vst [vmem:[%s14603_s30 + $0xd8] sm:$0xf] %v289_v54  ;;  %292 = vst [vmem:[%s14603_s30 + $0xdc] sm:$0xf] %v291_v55  ;;  %v293_v56 = vld [vmem:[%s14596_s29 + $0x1c0] sm:$0xf] }
  0x3a   : > { %v295_v57 = vld [vmem:[%s14596_s29 + $0x1c8] sm:$0xf]  ;;  %v297_v58 = vld [vmem:[%s14596_s29 + $0x1d0] sm:$0xf]  ;;  %294 = vst [vmem:[%s14603_s30 + $0xe0] sm:$0xf] %v293_v56 }
  0x3b   : > { %296 = vst [vmem:[%s14603_s30 + $0xe4] sm:$0xf] %v295_v57  ;;  %298 = vst [vmem:[%s14603_s30 + $0xe8] sm:$0xf] %v297_v58  ;;  %v299_v59 = vld [vmem:[%s14596_s29 + $0x1d8] sm:$0xf] }
  0x3c   : > { %v301_v60 = vld [vmem:[%s14596_s29 + $0x1e0] sm:$0xf]  ;;  %v303_v61 = vld [vmem:[%s14596_s29 + $0x1e8] sm:$0xf]  ;;  %300 = vst [vmem:[%s14603_s30 + $0xec] sm:$0xf] %v299_v59 }
  0x3d   : > { %302 = vst [vmem:[%s14603_s30 + $0xf0] sm:$0xf] %v301_v60  ;;  %304 = vst [vmem:[%s14603_s30 + $0xf4] sm:$0xf] %v303_v61  ;;  %v305_v62 = vld [vmem:[%s14596_s29 + $0x1f0] sm:$0xf] }
  0x3e   : > { %v307_v63 = vld [vmem:[%s14596_s29 + $0x1f8] sm:$0xf]  ;;  %v309_v0 = vld [vmem:[%s14596_s29 + $0x200] sm:$0xf]  ;;  %306 = vst [vmem:[%s14603_s30 + $0xf8] sm:$0xf] %v305_v62 }
  0x3f   : > { %308 = vst [vmem:[%s14603_s30 + $0xfc] sm:$0xf] %v307_v63  ;;  %310 = vst [vmem:[%s14603_s30 + $0x100] sm:$0xf] %v309_v0  ;;  %v311_v1 = vld [vmem:[%s14596_s29 + $0x208] sm:$0xf] }
  0x40   : > { %v313_v2 = vld [vmem:[%s14596_s29 + $0x210] sm:$0xf]  ;;  %v315_v3 = vld [vmem:[%s14596_s29 + $0x218] sm:$0xf]  ;;  %312 = vst [vmem:[%s14603_s30 + $0x104] sm:$0xf] %v311_v1 }
  0x41   : > { %314 = vst [vmem:[%s14603_s30 + $0x108] sm:$0xf] %v313_v2  ;;  %316 = vst [vmem:[%s14603_s30 + $0x10c] sm:$0xf] %v315_v3  ;;  %v317_v4 = vld [vmem:[%s14596_s29 + $0x220] sm:$0xf] }
  0x42   : > { %v319_v5 = vld [vmem:[%s14596_s29 + $0x228] sm:$0xf]  ;;  %v321_v6 = vld [vmem:[%s14596_s29 + $0x230] sm:$0xf]  ;;  %318 = vst [vmem:[%s14603_s30 + $0x110] sm:$0xf] %v317_v4 }
  0x43   : > { %320 = vst [vmem:[%s14603_s30 + $0x114] sm:$0xf] %v319_v5  ;;  %322 = vst [vmem:[%s14603_s30 + $0x118] sm:$0xf] %v321_v6  ;;  %v323_v7 = vld [vmem:[%s14596_s29 + $0x238] sm:$0xf] }
  0x44   : > { %v325_v8 = vld [vmem:[%s14596_s29 + $0x240] sm:$0xf]  ;;  %v327_v9 = vld [vmem:[%s14596_s29 + $0x248] sm:$0xf]  ;;  %324 = vst [vmem:[%s14603_s30 + $0x11c] sm:$0xf] %v323_v7 }
  0x45   : > { %326 = vst [vmem:[%s14603_s30 + $0x120] sm:$0xf] %v325_v8  ;;  %328 = vst [vmem:[%s14603_s30 + $0x124] sm:$0xf] %v327_v9  ;;  %v329_v10 = vld [vmem:[%s14596_s29 + $0x250] sm:$0xf] }
  0x46   : > { %v331_v11 = vld [vmem:[%s14596_s29 + $0x258] sm:$0xf]  ;;  %v333_v12 = vld [vmem:[%s14596_s29 + $0x260] sm:$0xf]  ;;  %330 = vst [vmem:[%s14603_s30 + $0x128] sm:$0xf] %v329_v10 }
  0x47   : > { %332 = vst [vmem:[%s14603_s30 + $0x12c] sm:$0xf] %v331_v11  ;;  %334 = vst [vmem:[%s14603_s30 + $0x130] sm:$0xf] %v333_v12  ;;  %v335_v13 = vld [vmem:[%s14596_s29 + $0x268] sm:$0xf] }
  0x48   : > { %v337_v14 = vld [vmem:[%s14596_s29 + $0x270] sm:$0xf]  ;;  %v339_v15 = vld [vmem:[%s14596_s29 + $0x278] sm:$0xf]  ;;  %336 = vst [vmem:[%s14603_s30 + $0x134] sm:$0xf] %v335_v13 }
  0x49   : > { %338 = vst [vmem:[%s14603_s30 + $0x138] sm:$0xf] %v337_v14  ;;  %340 = vst [vmem:[%s14603_s30 + $0x13c] sm:$0xf] %v339_v15  ;;  %v341_v16 = vld [vmem:[%s14596_s29 + $0x280] sm:$0xf] }
  0x4a   : > { %v343_v17 = vld [vmem:[%s14596_s29 + $0x288] sm:$0xf]  ;;  %v345_v18 = vld [vmem:[%s14596_s29 + $0x290] sm:$0xf]  ;;  %342 = vst [vmem:[%s14603_s30 + $0x140] sm:$0xf] %v341_v16 }
  0x4b   : > { %344 = vst [vmem:[%s14603_s30 + $0x144] sm:$0xf] %v343_v17  ;;  %346 = vst [vmem:[%s14603_s30 + $0x148] sm:$0xf] %v345_v18  ;;  %v347_v19 = vld [vmem:[%s14596_s29 + $0x298] sm:$0xf] }
  0x4c   : > { %v349_v20 = vld [vmem:[%s14596_s29 + $0x2a0] sm:$0xf]  ;;  %v351_v21 = vld [vmem:[%s14596_s29 + $0x2a8] sm:$0xf]  ;;  %348 = vst [vmem:[%s14603_s30 + $0x14c] sm:$0xf] %v347_v19 }
  0x4d   : > { %350 = vst [vmem:[%s14603_s30 + $0x150] sm:$0xf] %v349_v20  ;;  %352 = vst [vmem:[%s14603_s30 + $0x154] sm:$0xf] %v351_v21  ;;  %v353_v22 = vld [vmem:[%s14596_s29 + $0x2b0] sm:$0xf] }
  0x4e   : > { %v355_v23 = vld [vmem:[%s14596_s29 + $0x2b8] sm:$0xf]  ;;  %v357_v24 = vld [vmem:[%s14596_s29 + $0x2c0] sm:$0xf]  ;;  %354 = vst [vmem:[%s14603_s30 + $0x158] sm:$0xf] %v353_v22 }
  0x4f   : > { %356 = vst [vmem:[%s14603_s30 + $0x15c] sm:$0xf] %v355_v23  ;;  %358 = vst [vmem:[%s14603_s30 + $0x160] sm:$0xf] %v357_v24  ;;  %v359_v25 = vld [vmem:[%s14596_s29 + $0x2c8] sm:$0xf] }
  0x50   : > { %v361_v26 = vld [vmem:[%s14596_s29 + $0x2d0] sm:$0xf]  ;;  %v363_v27 = vld [vmem:[%s14596_s29 + $0x2d8] sm:$0xf]  ;;  %360 = vst [vmem:[%s14603_s30 + $0x164] sm:$0xf] %v359_v25 }
  0x51   : > { %362 = vst [vmem:[%s14603_s30 + $0x168] sm:$0xf] %v361_v26  ;;  %364 = vst [vmem:[%s14603_s30 + $0x16c] sm:$0xf] %v363_v27  ;;  %v365_v28 = vld [vmem:[%s14596_s29 + $0x2e0] sm:$0xf] }
  0x52   : > { %v367_v29 = vld [vmem:[%s14596_s29 + $0x2e8] sm:$0xf]  ;;  %v369_v30 = vld [vmem:[%s14596_s29 + $0x2f0] sm:$0xf]  ;;  %366 = vst [vmem:[%s14603_s30 + $0x170] sm:$0xf] %v365_v28 }
  0x53   : > { %368 = vst [vmem:[%s14603_s30 + $0x174] sm:$0xf] %v367_v29  ;;  %370 = vst [vmem:[%s14603_s30 + $0x178] sm:$0xf] %v369_v30  ;;  %v371_v31 = vld [vmem:[%s14596_s29 + $0x2f8] sm:$0xf] }
  0x54   : > { %v373_v32 = vld [vmem:[%s14596_s29 + $0x300] sm:$0xf]  ;;  %v375_v33 = vld [vmem:[%s14596_s29 + $0x308] sm:$0xf]  ;;  %372 = vst [vmem:[%s14603_s30 + $0x17c] sm:$0xf] %v371_v31 }
  0x55   : > { %374 = vst [vmem:[%s14603_s30 + $0x180] sm:$0xf] %v373_v32  ;;  %376 = vst [vmem:[%s14603_s30 + $0x184] sm:$0xf] %v375_v33  ;;  %v377_v34 = vld [vmem:[%s14596_s29 + $0x310] sm:$0xf] }
  0x56   : > { %v379_v35 = vld [vmem:[%s14596_s29 + $0x318] sm:$0xf]  ;;  %v381_v36 = vld [vmem:[%s14596_s29 + $0x320] sm:$0xf]  ;;  %378 = vst [vmem:[%s14603_s30 + $0x188] sm:$0xf] %v377_v34 }
  0x57   : > { %380 = vst [vmem:[%s14603_s30 + $0x18c] sm:$0xf] %v379_v35  ;;  %382 = vst [vmem:[%s14603_s30 + $0x190] sm:$0xf] %v381_v36  ;;  %v383_v37 = vld [vmem:[%s14596_s29 + $0x328] sm:$0xf] }
  0x58   : > { %v385_v38 = vld [vmem:[%s14596_s29 + $0x330] sm:$0xf]  ;;  %v387_v39 = vld [vmem:[%s14596_s29 + $0x338] sm:$0xf]  ;;  %384 = vst [vmem:[%s14603_s30 + $0x194] sm:$0xf] %v383_v37 }
  0x59   : > { %386 = vst [vmem:[%s14603_s30 + $0x198] sm:$0xf] %v385_v38  ;;  %388 = vst [vmem:[%s14603_s30 + $0x19c] sm:$0xf] %v387_v39  ;;  %v389_v40 = vld [vmem:[%s14596_s29 + $0x340] sm:$0xf] }
  0x5a   : > { %v391_v41 = vld [vmem:[%s14596_s29 + $0x348] sm:$0xf]  ;;  %v393_v42 = vld [vmem:[%s14596_s29 + $0x350] sm:$0xf]  ;;  %390 = vst [vmem:[%s14603_s30 + $0x1a0] sm:$0xf] %v389_v40 }
  0x5b   : > { %392 = vst [vmem:[%s14603_s30 + $0x1a4] sm:$0xf] %v391_v41  ;;  %394 = vst [vmem:[%s14603_s30 + $0x1a8] sm:$0xf] %v393_v42  ;;  %v395_v43 = vld [vmem:[%s14596_s29 + $0x358] sm:$0xf] }
  0x5c   : > { %v397_v44 = vld [vmem:[%s14596_s29 + $0x360] sm:$0xf]  ;;  %v399_v45 = vld [vmem:[%s14596_s29 + $0x368] sm:$0xf]  ;;  %396 = vst [vmem:[%s14603_s30 + $0x1ac] sm:$0xf] %v395_v43 }
  0x5d   : > { %398 = vst [vmem:[%s14603_s30 + $0x1b0] sm:$0xf] %v397_v44  ;;  %400 = vst [vmem:[%s14603_s30 + $0x1b4] sm:$0xf] %v399_v45  ;;  %v401_v46 = vld [vmem:[%s14596_s29 + $0x370] sm:$0xf] }
  0x5e   : > { %v403_v47 = vld [vmem:[%s14596_s29 + $0x378] sm:$0xf]  ;;  %v405_v48 = vld [vmem:[%s14596_s29 + $0x380] sm:$0xf]  ;;  %402 = vst [vmem:[%s14603_s30 + $0x1b8] sm:$0xf] %v401_v46 }
  0x5f   : > { %404 = vst [vmem:[%s14603_s30 + $0x1bc] sm:$0xf] %v403_v47  ;;  %406 = vst [vmem:[%s14603_s30 + $0x1c0] sm:$0xf] %v405_v48  ;;  %v407_v49 = vld [vmem:[%s14596_s29 + $0x388] sm:$0xf] }
  0x60   : > { %v409_v50 = vld [vmem:[%s14596_s29 + $0x390] sm:$0xf]  ;;  %v411_v51 = vld [vmem:[%s14596_s29 + $0x398] sm:$0xf]  ;;  %408 = vst [vmem:[%s14603_s30 + $0x1c4] sm:$0xf] %v407_v49 }
  0x61   : > { %410 = vst [vmem:[%s14603_s30 + $0x1c8] sm:$0xf] %v409_v50  ;;  %412 = vst [vmem:[%s14603_s30 + $0x1cc] sm:$0xf] %v411_v51  ;;  %v413_v52 = vld [vmem:[%s14596_s29 + $0x3a0] sm:$0xf] }
  0x62   : > { %v415_v53 = vld [vmem:[%s14596_s29 + $0x3a8] sm:$0xf]  ;;  %v417_v54 = vld [vmem:[%s14596_s29 + $0x3b0] sm:$0xf]  ;;  %414 = vst [vmem:[%s14603_s30 + $0x1d0] sm:$0xf] %v413_v52 }
  0x63   : > { %416 = vst [vmem:[%s14603_s30 + $0x1d4] sm:$0xf] %v415_v53  ;;  %418 = vst [vmem:[%s14603_s30 + $0x1d8] sm:$0xf] %v417_v54  ;;  %v419_v55 = vld [vmem:[%s14596_s29 + $0x3b8] sm:$0xf] }
  0x64   : > { %v421_v56 = vld [vmem:[%s14596_s29 + $0x3c0] sm:$0xf]  ;;  %v423_v57 = vld [vmem:[%s14596_s29 + $0x3c8] sm:$0xf]  ;;  %420 = vst [vmem:[%s14603_s30 + $0x1dc] sm:$0xf] %v419_v55 }
  0x65   : > { %422 = vst [vmem:[%s14603_s30 + $0x1e0] sm:$0xf] %v421_v56  ;;  %424 = vst [vmem:[%s14603_s30 + $0x1e4] sm:$0xf] %v423_v57  ;;  %v425_v58 = vld [vmem:[%s14596_s29 + $0x3d0] sm:$0xf] }
  0x66   : > { %v427_v59 = vld [vmem:[%s14596_s29 + $0x3d8] sm:$0xf]  ;;  %v429_v60 = vld [vmem:[%s14596_s29 + $0x3e0] sm:$0xf]  ;;  %426 = vst [vmem:[%s14603_s30 + $0x1e8] sm:$0xf] %v425_v58 }
  0x67   : > { %428 = vst [vmem:[%s14603_s30 + $0x1ec] sm:$0xf] %v427_v59  ;;  %430 = vst [vmem:[%s14603_s30 + $0x1f0] sm:$0xf] %v429_v60  ;;  %v431_v61 = vld [vmem:[%s14596_s29 + $0x3e8] sm:$0xf] }
  0x68   : > { %v433_v62 = vld [vmem:[%s14596_s29 + $0x3f0] sm:$0xf]  ;;  %v435_v63 = vld [vmem:[%s14596_s29 + $0x3f8] sm:$0xf]  ;;  %432 = vst [vmem:[%s14603_s30 + $0x1f4] sm:$0xf] %v431_v61 }
  0x69   : > { %434 = vst [vmem:[%s14603_s30 + $0x1f8] sm:$0xf] %v433_v62  ;;  %436 = vst [vmem:[%s14603_s30 + $0x1fc] sm:$0xf] %v435_v63  ;;  %v437_v0 = vld [vmem:[%s14596_s29 + $0x400] sm:$0xf] }
  0x6a   : > { %v439_v1 = vld [vmem:[%s14596_s29 + $0x408] sm:$0xf]  ;;  %v441_v2 = vld [vmem:[%s14596_s29 + $0x410] sm:$0xf]  ;;  %438 = vst [vmem:[%s14603_s30 + $0x200] sm:$0xf] %v437_v0 }
  0x6b   : > { %440 = vst [vmem:[%s14603_s30 + $0x204] sm:$0xf] %v439_v1  ;;  %442 = vst [vmem:[%s14603_s30 + $0x208] sm:$0xf] %v441_v2  ;;  %v443_v3 = vld [vmem:[%s14596_s29 + $0x418] sm:$0xf] }
  0x6c   : > { %v445_v4 = vld [vmem:[%s14596_s29 + $0x420] sm:$0xf]  ;;  %v447_v5 = vld [vmem:[%s14596_s29 + $0x428] sm:$0xf]  ;;  %444 = vst [vmem:[%s14603_s30 + $0x20c] sm:$0xf] %v443_v3 }
  0x6d   : > { %446 = vst [vmem:[%s14603_s30 + $0x210] sm:$0xf] %v445_v4  ;;  %448 = vst [vmem:[%s14603_s30 + $0x214] sm:$0xf] %v447_v5  ;;  %v449_v6 = vld [vmem:[%s14596_s29 + $0x430] sm:$0xf] }
  0x6e   : > { %v451_v7 = vld [vmem:[%s14596_s29 + $0x438] sm:$0xf]  ;;  %v453_v8 = vld [vmem:[%s14596_s29 + $0x440] sm:$0xf]  ;;  %450 = vst [vmem:[%s14603_s30 + $0x218] sm:$0xf] %v449_v6 }
  0x6f   : > { %452 = vst [vmem:[%s14603_s30 + $0x21c] sm:$0xf] %v451_v7  ;;  %454 = vst [vmem:[%s14603_s30 + $0x220] sm:$0xf] %v453_v8  ;;  %v455_v9 = vld [vmem:[%s14596_s29 + $0x448] sm:$0xf] }
  0x70   : > { %v457_v10 = vld [vmem:[%s14596_s29 + $0x450] sm:$0xf]  ;;  %v459_v11 = vld [vmem:[%s14596_s29 + $0x458] sm:$0xf]  ;;  %456 = vst [vmem:[%s14603_s30 + $0x224] sm:$0xf] %v455_v9 }
  0x71   : > { %458 = vst [vmem:[%s14603_s30 + $0x228] sm:$0xf] %v457_v10  ;;  %460 = vst [vmem:[%s14603_s30 + $0x22c] sm:$0xf] %v459_v11  ;;  %v461_v12 = vld [vmem:[%s14596_s29 + $0x460] sm:$0xf] }
  0x72   : > { %v463_v13 = vld [vmem:[%s14596_s29 + $0x468] sm:$0xf]  ;;  %v465_v14 = vld [vmem:[%s14596_s29 + $0x470] sm:$0xf]  ;;  %462 = vst [vmem:[%s14603_s30 + $0x230] sm:$0xf] %v461_v12 }
  0x73   : > { %464 = vst [vmem:[%s14603_s30 + $0x234] sm:$0xf] %v463_v13  ;;  %466 = vst [vmem:[%s14603_s30 + $0x238] sm:$0xf] %v465_v14  ;;  %v467_v15 = vld [vmem:[%s14596_s29 + $0x478] sm:$0xf] }
  0x74   : > { %v469_v16 = vld [vmem:[%s14596_s29 + $0x480] sm:$0xf]  ;;  %v471_v17 = vld [vmem:[%s14596_s29 + $0x488] sm:$0xf]  ;;  %468 = vst [vmem:[%s14603_s30 + $0x23c] sm:$0xf] %v467_v15 }
  0x75   : > { %470 = vst [vmem:[%s14603_s30 + $0x240] sm:$0xf] %v469_v16  ;;  %472 = vst [vmem:[%s14603_s30 + $0x244] sm:$0xf] %v471_v17  ;;  %v473_v18 = vld [vmem:[%s14596_s29 + $0x490] sm:$0xf] }
  0x76   : > { %v475_v19 = vld [vmem:[%s14596_s29 + $0x498] sm:$0xf]  ;;  %v477_v20 = vld [vmem:[%s14596_s29 + $0x4a0] sm:$0xf]  ;;  %474 = vst [vmem:[%s14603_s30 + $0x248] sm:$0xf] %v473_v18 }
  0x77   : > { %476 = vst [vmem:[%s14603_s30 + $0x24c] sm:$0xf] %v475_v19  ;;  %478 = vst [vmem:[%s14603_s30 + $0x250] sm:$0xf] %v477_v20  ;;  %v479_v21 = vld [vmem:[%s14596_s29 + $0x4a8] sm:$0xf] }
  0x78   : > { %v481_v22 = vld [vmem:[%s14596_s29 + $0x4b0] sm:$0xf]  ;;  %v483_v23 = vld [vmem:[%s14596_s29 + $0x4b8] sm:$0xf]  ;;  %480 = vst [vmem:[%s14603_s30 + $0x254] sm:$0xf] %v479_v21 }
  0x79   : > { %482 = vst [vmem:[%s14603_s30 + $0x258] sm:$0xf] %v481_v22  ;;  %484 = vst [vmem:[%s14603_s30 + $0x25c] sm:$0xf] %v483_v23  ;;  %v485_v24 = vld [vmem:[%s14596_s29 + $0x4c0] sm:$0xf] }
  0x7a   : > { %v487_v25 = vld [vmem:[%s14596_s29 + $0x4c8] sm:$0xf]  ;;  %v489_v26 = vld [vmem:[%s14596_s29 + $0x4d0] sm:$0xf]  ;;  %486 = vst [vmem:[%s14603_s30 + $0x260] sm:$0xf] %v485_v24 }
  0x7b   : > { %488 = vst [vmem:[%s14603_s30 + $0x264] sm:$0xf] %v487_v25  ;;  %490 = vst [vmem:[%s14603_s30 + $0x268] sm:$0xf] %v489_v26  ;;  %v491_v27 = vld [vmem:[%s14596_s29 + $0x4d8] sm:$0xf] }
  0x7c   : > { %v493_v28 = vld [vmem:[%s14596_s29 + $0x4e0] sm:$0xf]  ;;  %v495_v29 = vld [vmem:[%s14596_s29 + $0x4e8] sm:$0xf]  ;;  %492 = vst [vmem:[%s14603_s30 + $0x26c] sm:$0xf] %v491_v27 }
  0x7d   : > { %494 = vst [vmem:[%s14603_s30 + $0x270] sm:$0xf] %v493_v28  ;;  %496 = vst [vmem:[%s14603_s30 + $0x274] sm:$0xf] %v495_v29  ;;  %v497_v30 = vld [vmem:[%s14596_s29 + $0x4f0] sm:$0xf] }
  0x7e   : > { %v499_v31 = vld [vmem:[%s14596_s29 + $0x4f8] sm:$0xf]  ;;  %v501_v32 = vld [vmem:[%s14596_s29 + $0x500] sm:$0xf]  ;;  %498 = vst [vmem:[%s14603_s30 + $0x278] sm:$0xf] %v497_v30 }
  0x7f   : > { %500 = vst [vmem:[%s14603_s30 + $0x27c] sm:$0xf] %v499_v31  ;;  %502 = vst [vmem:[%s14603_s30 + $0x280] sm:$0xf] %v501_v32  ;;  %v503_v33 = vld [vmem:[%s14596_s29 + $0x508] sm:$0xf] }
  0x80   : > { %v505_v34 = vld [vmem:[%s14596_s29 + $0x510] sm:$0xf]  ;;  %v507_v35 = vld [vmem:[%s14596_s29 + $0x518] sm:$0xf]  ;;  %504 = vst [vmem:[%s14603_s30 + $0x284] sm:$0xf] %v503_v33 }
  0x81   : > { %506 = vst [vmem:[%s14603_s30 + $0x288] sm:$0xf] %v505_v34  ;;  %508 = vst [vmem:[%s14603_s30 + $0x28c] sm:$0xf] %v507_v35  ;;  %v509_v36 = vld [vmem:[%s14596_s29 + $0x520] sm:$0xf] }
  0x82   : > { %v511_v37 = vld [vmem:[%s14596_s29 + $0x528] sm:$0xf]  ;;  %v513_v38 = vld [vmem:[%s14596_s29 + $0x530] sm:$0xf]  ;;  %510 = vst [vmem:[%s14603_s30 + $0x290] sm:$0xf] %v509_v36 }
  0x83   : > { %512 = vst [vmem:[%s14603_s30 + $0x294] sm:$0xf] %v511_v37  ;;  %514 = vst [vmem:[%s14603_s30 + $0x298] sm:$0xf] %v513_v38  ;;  %v515_v39 = vld [vmem:[%s14596_s29 + $0x538] sm:$0xf] }
  0x84   : > { %v517_v40 = vld [vmem:[%s14596_s29 + $0x540] sm:$0xf]  ;;  %v519_v41 = vld [vmem:[%s14596_s29 + $0x548] sm:$0xf]  ;;  %516 = vst [vmem:[%s14603_s30 + $0x29c] sm:$0xf] %v515_v39 }
  0x85   : > { %518 = vst [vmem:[%s14603_s30 + $0x2a0] sm:$0xf] %v517_v40  ;;  %520 = vst [vmem:[%s14603_s30 + $0x2a4] sm:$0xf] %v519_v41  ;;  %v521_v42 = vld [vmem:[%s14596_s29 + $0x550] sm:$0xf] }
  0x86   : > { %v523_v43 = vld [vmem:[%s14596_s29 + $0x558] sm:$0xf]  ;;  %v525_v44 = vld [vmem:[%s14596_s29 + $0x560] sm:$0xf]  ;;  %522 = vst [vmem:[%s14603_s30 + $0x2a8] sm:$0xf] %v521_v42 }
  0x87   : > { %524 = vst [vmem:[%s14603_s30 + $0x2ac] sm:$0xf] %v523_v43  ;;  %526 = vst [vmem:[%s14603_s30 + $0x2b0] sm:$0xf] %v525_v44  ;;  %v527_v45 = vld [vmem:[%s14596_s29 + $0x568] sm:$0xf] }
  0x88   : > { %v529_v46 = vld [vmem:[%s14596_s29 + $0x570] sm:$0xf]  ;;  %v531_v47 = vld [vmem:[%s14596_s29 + $0x578] sm:$0xf]  ;;  %528 = vst [vmem:[%s14603_s30 + $0x2b4] sm:$0xf] %v527_v45 }
  0x89   : > { %530 = vst [vmem:[%s14603_s30 + $0x2b8] sm:$0xf] %v529_v46  ;;  %532 = vst [vmem:[%s14603_s30 + $0x2bc] sm:$0xf] %v531_v47  ;;  %v533_v48 = vld [vmem:[%s14596_s29 + $0x580] sm:$0xf] }
  0x8a   : > { %v535_v49 = vld [vmem:[%s14596_s29 + $0x588] sm:$0xf]  ;;  %v537_v50 = vld [vmem:[%s14596_s29 + $0x590] sm:$0xf]  ;;  %534 = vst [vmem:[%s14603_s30 + $0x2c0] sm:$0xf] %v533_v48 }
  0x8b   : > { %536 = vst [vmem:[%s14603_s30 + $0x2c4] sm:$0xf] %v535_v49  ;;  %538 = vst [vmem:[%s14603_s30 + $0x2c8] sm:$0xf] %v537_v50  ;;  %v539_v51 = vld [vmem:[%s14596_s29 + $0x598] sm:$0xf] }
  0x8c   : > { %v541_v52 = vld [vmem:[%s14596_s29 + $0x5a0] sm:$0xf]  ;;  %v543_v53 = vld [vmem:[%s14596_s29 + $0x5a8] sm:$0xf]  ;;  %540 = vst [vmem:[%s14603_s30 + $0x2cc] sm:$0xf] %v539_v51 }
  0x8d   : > { %542 = vst [vmem:[%s14603_s30 + $0x2d0] sm:$0xf] %v541_v52  ;;  %544 = vst [vmem:[%s14603_s30 + $0x2d4] sm:$0xf] %v543_v53  ;;  %v545_v54 = vld [vmem:[%s14596_s29 + $0x5b0] sm:$0xf] }
  0x8e   : > { %v547_v55 = vld [vmem:[%s14596_s29 + $0x5b8] sm:$0xf]  ;;  %v549_v56 = vld [vmem:[%s14596_s29 + $0x5c0] sm:$0xf]  ;;  %546 = vst [vmem:[%s14603_s30 + $0x2d8] sm:$0xf] %v545_v54 }
  0x8f   : > { %548 = vst [vmem:[%s14603_s30 + $0x2dc] sm:$0xf] %v547_v55  ;;  %550 = vst [vmem:[%s14603_s30 + $0x2e0] sm:$0xf] %v549_v56  ;;  %v551_v57 = vld [vmem:[%s14596_s29 + $0x5c8] sm:$0xf] }
  0x90   : > { %v553_v58 = vld [vmem:[%s14596_s29 + $0x5d0] sm:$0xf]  ;;  %v555_v59 = vld [vmem:[%s14596_s29 + $0x5d8] sm:$0xf]  ;;  %552 = vst [vmem:[%s14603_s30 + $0x2e4] sm:$0xf] %v551_v57 }
  0x91   : > { %554 = vst [vmem:[%s14603_s30 + $0x2e8] sm:$0xf] %v553_v58  ;;  %556 = vst [vmem:[%s14603_s30 + $0x2ec] sm:$0xf] %v555_v59  ;;  %v557_v60 = vld [vmem:[%s14596_s29 + $0x5e0] sm:$0xf] }
  0x92   : > { %v559_v61 = vld [vmem:[%s14596_s29 + $0x5e8] sm:$0xf]  ;;  %v561_v62 = vld [vmem:[%s14596_s29 + $0x5f0] sm:$0xf]  ;;  %558 = vst [vmem:[%s14603_s30 + $0x2f0] sm:$0xf] %v557_v60 }
  0x93   : > { %560 = vst [vmem:[%s14603_s30 + $0x2f4] sm:$0xf] %v559_v61  ;;  %562 = vst [vmem:[%s14603_s30 + $0x2f8] sm:$0xf] %v561_v62  ;;  %v563_v63 = vld [vmem:[%s14596_s29 + $0x5f8] sm:$0xf] }
  0x94   : > { %v565_v0 = vld [vmem:[%s14596_s29 + $0x600] sm:$0xf]  ;;  %v567_v1 = vld [vmem:[%s14596_s29 + $0x608] sm:$0xf]  ;;  %564 = vst [vmem:[%s14603_s30 + $0x2fc] sm:$0xf] %v563_v63 }
  0x95   : > { %566 = vst [vmem:[%s14603_s30 + $0x300] sm:$0xf] %v565_v0  ;;  %568 = vst [vmem:[%s14603_s30 + $0x304] sm:$0xf] %v567_v1  ;;  %v569_v2 = vld [vmem:[%s14596_s29 + $0x610] sm:$0xf] }
  0x96   : > { %v571_v3 = vld [vmem:[%s14596_s29 + $0x618] sm:$0xf]  ;;  %v573_v4 = vld [vmem:[%s14596_s29 + $0x620] sm:$0xf]  ;;  %570 = vst [vmem:[%s14603_s30 + $0x308] sm:$0xf] %v569_v2 }
  0x97   : > { %572 = vst [vmem:[%s14603_s30 + $0x30c] sm:$0xf] %v571_v3  ;;  %574 = vst [vmem:[%s14603_s30 + $0x310] sm:$0xf] %v573_v4  ;;  %v575_v5 = vld [vmem:[%s14596_s29 + $0x628] sm:$0xf] }
  0x98   : > { %v577_v6 = vld [vmem:[%s14596_s29 + $0x630] sm:$0xf]  ;;  %v579_v7 = vld [vmem:[%s14596_s29 + $0x638] sm:$0xf]  ;;  %576 = vst [vmem:[%s14603_s30 + $0x314] sm:$0xf] %v575_v5 }
  0x99   : > { %578 = vst [vmem:[%s14603_s30 + $0x318] sm:$0xf] %v577_v6  ;;  %580 = vst [vmem:[%s14603_s30 + $0x31c] sm:$0xf] %v579_v7  ;;  %v581_v8 = vld [vmem:[%s14596_s29 + $0x640] sm:$0xf] }
  0x9a   : > { %v583_v9 = vld [vmem:[%s14596_s29 + $0x648] sm:$0xf]  ;;  %v585_v10 = vld [vmem:[%s14596_s29 + $0x650] sm:$0xf]  ;;  %582 = vst [vmem:[%s14603_s30 + $0x320] sm:$0xf] %v581_v8 }
  0x9b   : > { %584 = vst [vmem:[%s14603_s30 + $0x324] sm:$0xf] %v583_v9  ;;  %586 = vst [vmem:[%s14603_s30 + $0x328] sm:$0xf] %v585_v10  ;;  %v587_v11 = vld [vmem:[%s14596_s29 + $0x658] sm:$0xf] }
  0x9c   : > { %v589_v12 = vld [vmem:[%s14596_s29 + $0x660] sm:$0xf]  ;;  %v591_v13 = vld [vmem:[%s14596_s29 + $0x668] sm:$0xf]  ;;  %588 = vst [vmem:[%s14603_s30 + $0x32c] sm:$0xf] %v587_v11 }
  0x9d   : > { %590 = vst [vmem:[%s14603_s30 + $0x330] sm:$0xf] %v589_v12  ;;  %592 = vst [vmem:[%s14603_s30 + $0x334] sm:$0xf] %v591_v13  ;;  %v593_v14 = vld [vmem:[%s14596_s29 + $0x670] sm:$0xf] }
  0x9e   : > { %v595_v15 = vld [vmem:[%s14596_s29 + $0x678] sm:$0xf]  ;;  %v597_v16 = vld [vmem:[%s14596_s29 + $0x680] sm:$0xf]  ;;  %594 = vst [vmem:[%s14603_s30 + $0x338] sm:$0xf] %v593_v14 }
  0x9f   : > { %596 = vst [vmem:[%s14603_s30 + $0x33c] sm:$0xf] %v595_v15  ;;  %598 = vst [vmem:[%s14603_s30 + $0x340] sm:$0xf] %v597_v16  ;;  %v599_v17 = vld [vmem:[%s14596_s29 + $0x688] sm:$0xf] }
  0xa0   : > { %v601_v18 = vld [vmem:[%s14596_s29 + $0x690] sm:$0xf]  ;;  %v603_v19 = vld [vmem:[%s14596_s29 + $0x698] sm:$0xf]  ;;  %600 = vst [vmem:[%s14603_s30 + $0x344] sm:$0xf] %v599_v17 }
  0xa1   : > { %602 = vst [vmem:[%s14603_s30 + $0x348] sm:$0xf] %v601_v18  ;;  %604 = vst [vmem:[%s14603_s30 + $0x34c] sm:$0xf] %v603_v19  ;;  %v605_v20 = vld [vmem:[%s14596_s29 + $0x6a0] sm:$0xf] }
  0xa2   : > { %v607_v21 = vld [vmem:[%s14596_s29 + $0x6a8] sm:$0xf]  ;;  %v609_v22 = vld [vmem:[%s14596_s29 + $0x6b0] sm:$0xf]  ;;  %606 = vst [vmem:[%s14603_s30 + $0x350] sm:$0xf] %v605_v20 }
  0xa3   : > { %608 = vst [vmem:[%s14603_s30 + $0x354] sm:$0xf] %v607_v21  ;;  %610 = vst [vmem:[%s14603_s30 + $0x358] sm:$0xf] %v609_v22  ;;  %v611_v23 = vld [vmem:[%s14596_s29 + $0x6b8] sm:$0xf] }
  0xa4   : > { %v613_v24 = vld [vmem:[%s14596_s29 + $0x6c0] sm:$0xf]  ;;  %v615_v25 = vld [vmem:[%s14596_s29 + $0x6c8] sm:$0xf]  ;;  %612 = vst [vmem:[%s14603_s30 + $0x35c] sm:$0xf] %v611_v23 }
  0xa5   : > { %614 = vst [vmem:[%s14603_s30 + $0x360] sm:$0xf] %v613_v24  ;;  %616 = vst [vmem:[%s14603_s30 + $0x364] sm:$0xf] %v615_v25  ;;  %v617_v26 = vld [vmem:[%s14596_s29 + $0x6d0] sm:$0xf] }
  0xa6   : > { %v619_v27 = vld [vmem:[%s14596_s29 + $0x6d8] sm:$0xf]  ;;  %v621_v28 = vld [vmem:[%s14596_s29 + $0x6e0] sm:$0xf]  ;;  %618 = vst [vmem:[%s14603_s30 + $0x368] sm:$0xf] %v617_v26 }
  0xa7   : > { %620 = vst [vmem:[%s14603_s30 + $0x36c] sm:$0xf] %v619_v27  ;;  %622 = vst [vmem:[%s14603_s30 + $0x370] sm:$0xf] %v621_v28  ;;  %v623_v29 = vld [vmem:[%s14596_s29 + $0x6e8] sm:$0xf] }
  0xa8   : > { %v625_v30 = vld [vmem:[%s14596_s29 + $0x6f0] sm:$0xf]  ;;  %v627_v31 = vld [vmem:[%s14596_s29 + $0x6f8] sm:$0xf]  ;;  %624 = vst [vmem:[%s14603_s30 + $0x374] sm:$0xf] %v623_v29 }
  0xa9   : > { %626 = vst [vmem:[%s14603_s30 + $0x378] sm:$0xf] %v625_v30  ;;  %628 = vst [vmem:[%s14603_s30 + $0x37c] sm:$0xf] %v627_v31  ;;  %v629_v32 = vld [vmem:[%s14596_s29 + $0x700] sm:$0xf] }
  0xaa   : > { %v631_v33 = vld [vmem:[%s14596_s29 + $0x708] sm:$0xf]  ;;  %v633_v34 = vld [vmem:[%s14596_s29 + $0x710] sm:$0xf]  ;;  %630 = vst [vmem:[%s14603_s30 + $0x380] sm:$0xf] %v629_v32 }
  0xab   : > { %632 = vst [vmem:[%s14603_s30 + $0x384] sm:$0xf] %v631_v33  ;;  %634 = vst [vmem:[%s14603_s30 + $0x388] sm:$0xf] %v633_v34  ;;  %v635_v35 = vld [vmem:[%s14596_s29 + $0x718] sm:$0xf] }
  0xac   : > { %v637_v36 = vld [vmem:[%s14596_s29 + $0x720] sm:$0xf]  ;;  %v639_v37 = vld [vmem:[%s14596_s29 + $0x728] sm:$0xf]  ;;  %636 = vst [vmem:[%s14603_s30 + $0x38c] sm:$0xf] %v635_v35 }
  0xad   : > { %638 = vst [vmem:[%s14603_s30 + $0x390] sm:$0xf] %v637_v36  ;;  %640 = vst [vmem:[%s14603_s30 + $0x394] sm:$0xf] %v639_v37  ;;  %v641_v38 = vld [vmem:[%s14596_s29 + $0x730] sm:$0xf] }
  0xae   : > { %v643_v39 = vld [vmem:[%s14596_s29 + $0x738] sm:$0xf]  ;;  %v645_v40 = vld [vmem:[%s14596_s29 + $0x740] sm:$0xf]  ;;  %642 = vst [vmem:[%s14603_s30 + $0x398] sm:$0xf] %v641_v38 }
  0xaf   : > { %644 = vst [vmem:[%s14603_s30 + $0x39c] sm:$0xf] %v643_v39  ;;  %646 = vst [vmem:[%s14603_s30 + $0x3a0] sm:$0xf] %v645_v40  ;;  %v647_v41 = vld [vmem:[%s14596_s29 + $0x748] sm:$0xf] }
  0xb0   : > { %v649_v42 = vld [vmem:[%s14596_s29 + $0x750] sm:$0xf]  ;;  %v651_v43 = vld [vmem:[%s14596_s29 + $0x758] sm:$0xf]  ;;  %648 = vst [vmem:[%s14603_s30 + $0x3a4] sm:$0xf] %v647_v41 }
  0xb1   : > { %650 = vst [vmem:[%s14603_s30 + $0x3a8] sm:$0xf] %v649_v42  ;;  %652 = vst [vmem:[%s14603_s30 + $0x3ac] sm:$0xf] %v651_v43  ;;  %v653_v44 = vld [vmem:[%s14596_s29 + $0x760] sm:$0xf] }
  0xb2   : > { %v655_v45 = vld [vmem:[%s14596_s29 + $0x768] sm:$0xf]  ;;  %v657_v46 = vld [vmem:[%s14596_s29 + $0x770] sm:$0xf]  ;;  %654 = vst [vmem:[%s14603_s30 + $0x3b0] sm:$0xf] %v653_v44 }
  0xb3   : > { %656 = vst [vmem:[%s14603_s30 + $0x3b4] sm:$0xf] %v655_v45  ;;  %658 = vst [vmem:[%s14603_s30 + $0x3b8] sm:$0xf] %v657_v46  ;;  %v659_v47 = vld [vmem:[%s14596_s29 + $0x778] sm:$0xf] }
  0xb4   : > { %v661_v48 = vld [vmem:[%s14596_s29 + $0x780] sm:$0xf]  ;;  %v663_v49 = vld [vmem:[%s14596_s29 + $0x788] sm:$0xf]  ;;  %660 = vst [vmem:[%s14603_s30 + $0x3bc] sm:$0xf] %v659_v47 }
  0xb5   : > { %662 = vst [vmem:[%s14603_s30 + $0x3c0] sm:$0xf] %v661_v48  ;;  %664 = vst [vmem:[%s14603_s30 + $0x3c4] sm:$0xf] %v663_v49  ;;  %v665_v50 = vld [vmem:[%s14596_s29 + $0x790] sm:$0xf] }
  0xb6   : > { %v667_v51 = vld [vmem:[%s14596_s29 + $0x798] sm:$0xf]  ;;  %v669_v52 = vld [vmem:[%s14596_s29 + $0x7a0] sm:$0xf]  ;;  %666 = vst [vmem:[%s14603_s30 + $0x3c8] sm:$0xf] %v665_v50 }
  0xb7   : > { %668 = vst [vmem:[%s14603_s30 + $0x3cc] sm:$0xf] %v667_v51  ;;  %670 = vst [vmem:[%s14603_s30 + $0x3d0] sm:$0xf] %v669_v52  ;;  %v671_v53 = vld [vmem:[%s14596_s29 + $0x7a8] sm:$0xf] }
  0xb8   : > { %v673_v54 = vld [vmem:[%s14596_s29 + $0x7b0] sm:$0xf]  ;;  %v675_v55 = vld [vmem:[%s14596_s29 + $0x7b8] sm:$0xf]  ;;  %672 = vst [vmem:[%s14603_s30 + $0x3d4] sm:$0xf] %v671_v53 }
  0xb9   : > { %674 = vst [vmem:[%s14603_s30 + $0x3d8] sm:$0xf] %v673_v54  ;;  %676 = vst [vmem:[%s14603_s30 + $0x3dc] sm:$0xf] %v675_v55  ;;  %v677_v56 = vld [vmem:[%s14596_s29 + $0x7c0] sm:$0xf] }
  0xba   : > { %v679_v57 = vld [vmem:[%s14596_s29 + $0x7c8] sm:$0xf]  ;;  %v681_v58 = vld [vmem:[%s14596_s29 + $0x7d0] sm:$0xf]  ;;  %678 = vst [vmem:[%s14603_s30 + $0x3e0] sm:$0xf] %v677_v56 }
  0xbb   : > { %680 = vst [vmem:[%s14603_s30 + $0x3e4] sm:$0xf] %v679_v57  ;;  %682 = vst [vmem:[%s14603_s30 + $0x3e8] sm:$0xf] %v681_v58  ;;  %v683_v59 = vld [vmem:[%s14596_s29 + $0x7d8] sm:$0xf] }
  0xbc   : > { %v685_v60 = vld [vmem:[%s14596_s29 + $0x7e0] sm:$0xf]  ;;  %v687_v61 = vld [vmem:[%s14596_s29 + $0x7e8] sm:$0xf]  ;;  %684 = vst [vmem:[%s14603_s30 + $0x3ec] sm:$0xf] %v683_v59 }
  0xbd   : > { %686 = vst [vmem:[%s14603_s30 + $0x3f0] sm:$0xf] %v685_v60  ;;  %688 = vst [vmem:[%s14603_s30 + $0x3f4] sm:$0xf] %v687_v61  ;;  %v689_v62 = vld [vmem:[%s14596_s29 + $0x7f0] sm:$0xf] }
  0xbe   : > { %v691_v63 = vld [vmem:[%s14596_s29 + $0x7f8] sm:$0xf]  ;;  %v693_v0 = vld [vmem:[%s14596_s29 + $0x800] sm:$0xf]  ;;  %690 = vst [vmem:[%s14603_s30 + $0x3f8] sm:$0xf] %v689_v62 }
  0xbf   : > { %692 = vst [vmem:[%s14603_s30 + $0x3fc] sm:$0xf] %v691_v63  ;;  %694 = vst [vmem:[%s14603_s30 + $0x400] sm:$0xf] %v693_v0  ;;  %v695_v1 = vld [vmem:[%s14596_s29 + $0x808] sm:$0xf] }
  0xc0   : > { %v697_v2 = vld [vmem:[%s14596_s29 + $0x810] sm:$0xf]  ;;  %v699_v3 = vld [vmem:[%s14596_s29 + $0x818] sm:$0xf]  ;;  %696 = vst [vmem:[%s14603_s30 + $0x404] sm:$0xf] %v695_v1 }
  0xc1   : > { %698 = vst [vmem:[%s14603_s30 + $0x408] sm:$0xf] %v697_v2  ;;  %700 = vst [vmem:[%s14603_s30 + $0x40c] sm:$0xf] %v699_v3  ;;  %v701_v4 = vld [vmem:[%s14596_s29 + $0x820] sm:$0xf] }
  0xc2   : > { %v703_v5 = vld [vmem:[%s14596_s29 + $0x828] sm:$0xf]  ;;  %v705_v6 = vld [vmem:[%s14596_s29 + $0x830] sm:$0xf]  ;;  %702 = vst [vmem:[%s14603_s30 + $0x410] sm:$0xf] %v701_v4 }
  0xc3   : > { %704 = vst [vmem:[%s14603_s30 + $0x414] sm:$0xf] %v703_v5  ;;  %706 = vst [vmem:[%s14603_s30 + $0x418] sm:$0xf] %v705_v6  ;;  %v707_v7 = vld [vmem:[%s14596_s29 + $0x838] sm:$0xf] }
  0xc4   : > { %v709_v8 = vld [vmem:[%s14596_s29 + $0x840] sm:$0xf]  ;;  %v711_v9 = vld [vmem:[%s14596_s29 + $0x848] sm:$0xf]  ;;  %708 = vst [vmem:[%s14603_s30 + $0x41c] sm:$0xf] %v707_v7 }
  0xc5   : > { %710 = vst [vmem:[%s14603_s30 + $0x420] sm:$0xf] %v709_v8  ;;  %712 = vst [vmem:[%s14603_s30 + $0x424] sm:$0xf] %v711_v9  ;;  %v713_v10 = vld [vmem:[%s14596_s29 + $0x850] sm:$0xf] }
  0xc6   : > { %v715_v11 = vld [vmem:[%s14596_s29 + $0x858] sm:$0xf]  ;;  %v717_v12 = vld [vmem:[%s14596_s29 + $0x860] sm:$0xf]  ;;  %714 = vst [vmem:[%s14603_s30 + $0x428] sm:$0xf] %v713_v10 }
  0xc7   : > { %716 = vst [vmem:[%s14603_s30 + $0x42c] sm:$0xf] %v715_v11  ;;  %718 = vst [vmem:[%s14603_s30 + $0x430] sm:$0xf] %v717_v12  ;;  %v719_v13 = vld [vmem:[%s14596_s29 + $0x868] sm:$0xf] }
  0xc8   : > { %v721_v14 = vld [vmem:[%s14596_s29 + $0x870] sm:$0xf]  ;;  %v723_v15 = vld [vmem:[%s14596_s29 + $0x878] sm:$0xf]  ;;  %720 = vst [vmem:[%s14603_s30 + $0x434] sm:$0xf] %v719_v13 }
  0xc9   : > { %722 = vst [vmem:[%s14603_s30 + $0x438] sm:$0xf] %v721_v14  ;;  %724 = vst [vmem:[%s14603_s30 + $0x43c] sm:$0xf] %v723_v15  ;;  %v725_v16 = vld [vmem:[%s14596_s29 + $0x880] sm:$0xf] }
  0xca   : > { %v727_v17 = vld [vmem:[%s14596_s29 + $0x888] sm:$0xf]  ;;  %v729_v18 = vld [vmem:[%s14596_s29 + $0x890] sm:$0xf]  ;;  %726 = vst [vmem:[%s14603_s30 + $0x440] sm:$0xf] %v725_v16 }
  0xcb   : > { %728 = vst [vmem:[%s14603_s30 + $0x444] sm:$0xf] %v727_v17  ;;  %730 = vst [vmem:[%s14603_s30 + $0x448] sm:$0xf] %v729_v18  ;;  %v731_v19 = vld [vmem:[%s14596_s29 + $0x898] sm:$0xf] }
  0xcc   : > { %v733_v20 = vld [vmem:[%s14596_s29 + $0x8a0] sm:$0xf]  ;;  %v735_v21 = vld [vmem:[%s14596_s29 + $0x8a8] sm:$0xf]  ;;  %732 = vst [vmem:[%s14603_s30 + $0x44c] sm:$0xf] %v731_v19 }
  0xcd   : > { %734 = vst [vmem:[%s14603_s30 + $0x450] sm:$0xf] %v733_v20  ;;  %736 = vst [vmem:[%s14603_s30 + $0x454] sm:$0xf] %v735_v21  ;;  %v737_v22 = vld [vmem:[%s14596_s29 + $0x8b0] sm:$0xf] }
  0xce   : > { %v739_v23 = vld [vmem:[%s14596_s29 + $0x8b8] sm:$0xf]  ;;  %v741_v24 = vld [vmem:[%s14596_s29 + $0x8c0] sm:$0xf]  ;;  %738 = vst [vmem:[%s14603_s30 + $0x458] sm:$0xf] %v737_v22 }
  0xcf   : > { %740 = vst [vmem:[%s14603_s30 + $0x45c] sm:$0xf] %v739_v23  ;;  %742 = vst [vmem:[%s14603_s30 + $0x460] sm:$0xf] %v741_v24  ;;  %v743_v25 = vld [vmem:[%s14596_s29 + $0x8c8] sm:$0xf] }
  0xd0   : > { %v745_v26 = vld [vmem:[%s14596_s29 + $0x8d0] sm:$0xf]  ;;  %v747_v27 = vld [vmem:[%s14596_s29 + $0x8d8] sm:$0xf]  ;;  %744 = vst [vmem:[%s14603_s30 + $0x464] sm:$0xf] %v743_v25 }
  0xd1   : > { %746 = vst [vmem:[%s14603_s30 + $0x468] sm:$0xf] %v745_v26  ;;  %748 = vst [vmem:[%s14603_s30 + $0x46c] sm:$0xf] %v747_v27  ;;  %v749_v28 = vld [vmem:[%s14596_s29 + $0x8e0] sm:$0xf] }
  0xd2   : > { %v751_v29 = vld [vmem:[%s14596_s29 + $0x8e8] sm:$0xf]  ;;  %v753_v30 = vld [vmem:[%s14596_s29 + $0x8f0] sm:$0xf]  ;;  %750 = vst [vmem:[%s14603_s30 + $0x470] sm:$0xf] %v749_v28 }
  0xd3   : > { %752 = vst [vmem:[%s14603_s30 + $0x474] sm:$0xf] %v751_v29  ;;  %754 = vst [vmem:[%s14603_s30 + $0x478] sm:$0xf] %v753_v30  ;;  %v755_v31 = vld [vmem:[%s14596_s29 + $0x8f8] sm:$0xf] }
  0xd4   : > { %v757_v32 = vld [vmem:[%s14596_s29 + $0x900] sm:$0xf]  ;;  %v759_v33 = vld [vmem:[%s14596_s29 + $0x908] sm:$0xf]  ;;  %756 = vst [vmem:[%s14603_s30 + $0x47c] sm:$0xf] %v755_v31 }
  0xd5   : > { %758 = vst [vmem:[%s14603_s30 + $0x480] sm:$0xf] %v757_v32  ;;  %760 = vst [vmem:[%s14603_s30 + $0x484] sm:$0xf] %v759_v33  ;;  %v761_v34 = vld [vmem:[%s14596_s29 + $0x910] sm:$0xf] }
  0xd6   : > { %v763_v35 = vld [vmem:[%s14596_s29 + $0x918] sm:$0xf]  ;;  %v765_v36 = vld [vmem:[%s14596_s29 + $0x920] sm:$0xf]  ;;  %762 = vst [vmem:[%s14603_s30 + $0x488] sm:$0xf] %v761_v34 }
  0xd7   : > { %764 = vst [vmem:[%s14603_s30 + $0x48c] sm:$0xf] %v763_v35  ;;  %766 = vst [vmem:[%s14603_s30 + $0x490] sm:$0xf] %v765_v36  ;;  %v767_v37 = vld [vmem:[%s14596_s29 + $0x928] sm:$0xf] }
  0xd8   : > { %v769_v38 = vld [vmem:[%s14596_s29 + $0x930] sm:$0xf]  ;;  %v771_v39 = vld [vmem:[%s14596_s29 + $0x938] sm:$0xf]  ;;  %768 = vst [vmem:[%s14603_s30 + $0x494] sm:$0xf] %v767_v37 }
  0xd9   : > { %770 = vst [vmem:[%s14603_s30 + $0x498] sm:$0xf] %v769_v38  ;;  %772 = vst [vmem:[%s14603_s30 + $0x49c] sm:$0xf] %v771_v39  ;;  %v773_v40 = vld [vmem:[%s14596_s29 + $0x940] sm:$0xf] }
  0xda   : > { %v775_v41 = vld [vmem:[%s14596_s29 + $0x948] sm:$0xf]  ;;  %v777_v42 = vld [vmem:[%s14596_s29 + $0x950] sm:$0xf]  ;;  %774 = vst [vmem:[%s14603_s30 + $0x4a0] sm:$0xf] %v773_v40 }
  0xdb   : > { %776 = vst [vmem:[%s14603_s30 + $0x4a4] sm:$0xf] %v775_v41  ;;  %778 = vst [vmem:[%s14603_s30 + $0x4a8] sm:$0xf] %v777_v42  ;;  %v779_v43 = vld [vmem:[%s14596_s29 + $0x958] sm:$0xf] }
  0xdc   : > { %v781_v44 = vld [vmem:[%s14596_s29 + $0x960] sm:$0xf]  ;;  %v783_v45 = vld [vmem:[%s14596_s29 + $0x968] sm:$0xf]  ;;  %780 = vst [vmem:[%s14603_s30 + $0x4ac] sm:$0xf] %v779_v43 }
  0xdd   : > { %782 = vst [vmem:[%s14603_s30 + $0x4b0] sm:$0xf] %v781_v44  ;;  %784 = vst [vmem:[%s14603_s30 + $0x4b4] sm:$0xf] %v783_v45  ;;  %v785_v46 = vld [vmem:[%s14596_s29 + $0x970] sm:$0xf] }
  0xde   : > { %v787_v47 = vld [vmem:[%s14596_s29 + $0x978] sm:$0xf]  ;;  %v789_v48 = vld [vmem:[%s14596_s29 + $0x980] sm:$0xf]  ;;  %786 = vst [vmem:[%s14603_s30 + $0x4b8] sm:$0xf] %v785_v46 }
  0xdf   : > { %788 = vst [vmem:[%s14603_s30 + $0x4bc] sm:$0xf] %v787_v47  ;;  %790 = vst [vmem:[%s14603_s30 + $0x4c0] sm:$0xf] %v789_v48  ;;  %v791_v49 = vld [vmem:[%s14596_s29 + $0x988] sm:$0xf] }
  0xe0   : > { %v793_v50 = vld [vmem:[%s14596_s29 + $0x990] sm:$0xf]  ;;  %v795_v51 = vld [vmem:[%s14596_s29 + $0x998] sm:$0xf]  ;;  %792 = vst [vmem:[%s14603_s30 + $0x4c4] sm:$0xf] %v791_v49 }
  0xe1   : > { %794 = vst [vmem:[%s14603_s30 + $0x4c8] sm:$0xf] %v793_v50  ;;  %796 = vst [vmem:[%s14603_s30 + $0x4cc] sm:$0xf] %v795_v51  ;;  %v797_v52 = vld [vmem:[%s14596_s29 + $0x9a0] sm:$0xf] }
  0xe2   : > { %v799_v53 = vld [vmem:[%s14596_s29 + $0x9a8] sm:$0xf]  ;;  %v801_v54 = vld [vmem:[%s14596_s29 + $0x9b0] sm:$0xf]  ;;  %798 = vst [vmem:[%s14603_s30 + $0x4d0] sm:$0xf] %v797_v52 }
  0xe3   : > { %800 = vst [vmem:[%s14603_s30 + $0x4d4] sm:$0xf] %v799_v53  ;;  %802 = vst [vmem:[%s14603_s30 + $0x4d8] sm:$0xf] %v801_v54  ;;  %v803_v55 = vld [vmem:[%s14596_s29 + $0x9b8] sm:$0xf] }
  0xe4   : > { %v805_v56 = vld [vmem:[%s14596_s29 + $0x9c0] sm:$0xf]  ;;  %v807_v57 = vld [vmem:[%s14596_s29 + $0x9c8] sm:$0xf]  ;;  %804 = vst [vmem:[%s14603_s30 + $0x4dc] sm:$0xf] %v803_v55 }
  0xe5   : > { %806 = vst [vmem:[%s14603_s30 + $0x4e0] sm:$0xf] %v805_v56  ;;  %808 = vst [vmem:[%s14603_s30 + $0x4e4] sm:$0xf] %v807_v57  ;;  %v809_v58 = vld [vmem:[%s14596_s29 + $0x9d0] sm:$0xf] }
  0xe6   : > { %v811_v59 = vld [vmem:[%s14596_s29 + $0x9d8] sm:$0xf]  ;;  %v813_v60 = vld [vmem:[%s14596_s29 + $0x9e0] sm:$0xf]  ;;  %810 = vst [vmem:[%s14603_s30 + $0x4e8] sm:$0xf] %v809_v58 }
  0xe7   : > { %812 = vst [vmem:[%s14603_s30 + $0x4ec] sm:$0xf] %v811_v59  ;;  %814 = vst [vmem:[%s14603_s30 + $0x4f0] sm:$0xf] %v813_v60  ;;  %v815_v61 = vld [vmem:[%s14596_s29 + $0x9e8] sm:$0xf] }
  0xe8   : > { %v817_v62 = vld [vmem:[%s14596_s29 + $0x9f0] sm:$0xf]  ;;  %v819_v63 = vld [vmem:[%s14596_s29 + $0x9f8] sm:$0xf]  ;;  %816 = vst [vmem:[%s14603_s30 + $0x4f4] sm:$0xf] %v815_v61 }
  0xe9   : > { %818 = vst [vmem:[%s14603_s30 + $0x4f8] sm:$0xf] %v817_v62  ;;  %820 = vst [vmem:[%s14603_s30 + $0x4fc] sm:$0xf] %v819_v63  ;;  %v821_v0 = vld [vmem:[%s14596_s29 + $0xa00] sm:$0xf] }
  0xea   : > { %v823_v1 = vld [vmem:[%s14596_s29 + $0xa08] sm:$0xf]  ;;  %v825_v2 = vld [vmem:[%s14596_s29 + $0xa10] sm:$0xf]  ;;  %822 = vst [vmem:[%s14603_s30 + $0x500] sm:$0xf] %v821_v0 }
  0xeb   : > { %824 = vst [vmem:[%s14603_s30 + $0x504] sm:$0xf] %v823_v1  ;;  %826 = vst [vmem:[%s14603_s30 + $0x508] sm:$0xf] %v825_v2  ;;  %v827_v3 = vld [vmem:[%s14596_s29 + $0xa18] sm:$0xf] }
  0xec   : > { %v829_v4 = vld [vmem:[%s14596_s29 + $0xa20] sm:$0xf]  ;;  %v831_v5 = vld [vmem:[%s14596_s29 + $0xa28] sm:$0xf]  ;;  %828 = vst [vmem:[%s14603_s30 + $0x50c] sm:$0xf] %v827_v3 }
  0xed   : > { %830 = vst [vmem:[%s14603_s30 + $0x510] sm:$0xf] %v829_v4  ;;  %832 = vst [vmem:[%s14603_s30 + $0x514] sm:$0xf] %v831_v5  ;;  %v833_v6 = vld [vmem:[%s14596_s29 + $0xa30] sm:$0xf] }
  0xee   : > { %v835_v7 = vld [vmem:[%s14596_s29 + $0xa38] sm:$0xf]  ;;  %v837_v8 = vld [vmem:[%s14596_s29 + $0xa40] sm:$0xf]  ;;  %834 = vst [vmem:[%s14603_s30 + $0x518] sm:$0xf] %v833_v6 }
  0xef   : > { %836 = vst [vmem:[%s14603_s30 + $0x51c] sm:$0xf] %v835_v7  ;;  %838 = vst [vmem:[%s14603_s30 + $0x520] sm:$0xf] %v837_v8  ;;  %v839_v9 = vld [vmem:[%s14596_s29 + $0xa48] sm:$0xf] }
  0xf0   : > { %v841_v10 = vld [vmem:[%s14596_s29 + $0xa50] sm:$0xf]  ;;  %v843_v11 = vld [vmem:[%s14596_s29 + $0xa58] sm:$0xf]  ;;  %840 = vst [vmem:[%s14603_s30 + $0x524] sm:$0xf] %v839_v9 }
  0xf1   : > { %842 = vst [vmem:[%s14603_s30 + $0x528] sm:$0xf] %v841_v10  ;;  %844 = vst [vmem:[%s14603_s30 + $0x52c] sm:$0xf] %v843_v11  ;;  %v845_v12 = vld [vmem:[%s14596_s29 + $0xa60] sm:$0xf] }
  0xf2   : > { %v847_v13 = vld [vmem:[%s14596_s29 + $0xa68] sm:$0xf]  ;;  %v849_v14 = vld [vmem:[%s14596_s29 + $0xa70] sm:$0xf]  ;;  %846 = vst [vmem:[%s14603_s30 + $0x530] sm:$0xf] %v845_v12 }
  0xf3   : > { %848 = vst [vmem:[%s14603_s30 + $0x534] sm:$0xf] %v847_v13  ;;  %850 = vst [vmem:[%s14603_s30 + $0x538] sm:$0xf] %v849_v14  ;;  %v851_v15 = vld [vmem:[%s14596_s29 + $0xa78] sm:$0xf] }
  0xf4   : > { %v853_v16 = vld [vmem:[%s14596_s29 + $0xa80] sm:$0xf]  ;;  %v855_v17 = vld [vmem:[%s14596_s29 + $0xa88] sm:$0xf]  ;;  %852 = vst [vmem:[%s14603_s30 + $0x53c] sm:$0xf] %v851_v15 }
  0xf5   : > { %854 = vst [vmem:[%s14603_s30 + $0x540] sm:$0xf] %v853_v16  ;;  %856 = vst [vmem:[%s14603_s30 + $0x544] sm:$0xf] %v855_v17  ;;  %v857_v18 = vld [vmem:[%s14596_s29 + $0xa90] sm:$0xf] }
  0xf6   : > { %v859_v19 = vld [vmem:[%s14596_s29 + $0xa98] sm:$0xf]  ;;  %v861_v20 = vld [vmem:[%s14596_s29 + $0xaa0] sm:$0xf]  ;;  %858 = vst [vmem:[%s14603_s30 + $0x548] sm:$0xf] %v857_v18 }
  0xf7   : > { %860 = vst [vmem:[%s14603_s30 + $0x54c] sm:$0xf] %v859_v19  ;;  %862 = vst [vmem:[%s14603_s30 + $0x550] sm:$0xf] %v861_v20  ;;  %v863_v21 = vld [vmem:[%s14596_s29 + $0xaa8] sm:$0xf] }
  0xf8   : > { %v865_v22 = vld [vmem:[%s14596_s29 + $0xab0] sm:$0xf]  ;;  %v867_v23 = vld [vmem:[%s14596_s29 + $0xab8] sm:$0xf]  ;;  %864 = vst [vmem:[%s14603_s30 + $0x554] sm:$0xf] %v863_v21 }
  0xf9   : > { %866 = vst [vmem:[%s14603_s30 + $0x558] sm:$0xf] %v865_v22  ;;  %868 = vst [vmem:[%s14603_s30 + $0x55c] sm:$0xf] %v867_v23  ;;  %v869_v24 = vld [vmem:[%s14596_s29 + $0xac0] sm:$0xf] }
  0xfa   : > { %v871_v25 = vld [vmem:[%s14596_s29 + $0xac8] sm:$0xf]  ;;  %v873_v26 = vld [vmem:[%s14596_s29 + $0xad0] sm:$0xf]  ;;  %870 = vst [vmem:[%s14603_s30 + $0x560] sm:$0xf] %v869_v24 }
  0xfb   : > { %872 = vst [vmem:[%s14603_s30 + $0x564] sm:$0xf] %v871_v25  ;;  %874 = vst [vmem:[%s14603_s30 + $0x568] sm:$0xf] %v873_v26  ;;  %v875_v27 = vld [vmem:[%s14596_s29 + $0xad8] sm:$0xf] }
  0xfc   : > { %v877_v28 = vld [vmem:[%s14596_s29 + $0xae0] sm:$0xf]  ;;  %v879_v29 = vld [vmem:[%s14596_s29 + $0xae8] sm:$0xf]  ;;  %876 = vst [vmem:[%s14603_s30 + $0x56c] sm:$0xf] %v875_v27 }
  0xfd   : > { %878 = vst [vmem:[%s14603_s30 + $0x570] sm:$0xf] %v877_v28  ;;  %880 = vst [vmem:[%s14603_s30 + $0x574] sm:$0xf] %v879_v29  ;;  %v881_v30 = vld [vmem:[%s14596_s29 + $0xaf0] sm:$0xf] }
  0xfe   : > { %v883_v31 = vld [vmem:[%s14596_s29 + $0xaf8] sm:$0xf]  ;;  %v885_v32 = vld [vmem:[%s14596_s29 + $0xb00] sm:$0xf]  ;;  %882 = vst [vmem:[%s14603_s30 + $0x578] sm:$0xf] %v881_v30 }
  0xff   : > { %884 = vst [vmem:[%s14603_s30 + $0x57c] sm:$0xf] %v883_v31  ;;  %886 = vst [vmem:[%s14603_s30 + $0x580] sm:$0xf] %v885_v32  ;;  %v887_v33 = vld [vmem:[%s14596_s29 + $0xb08] sm:$0xf] }
 0x100   : > { %v889_v34 = vld [vmem:[%s14596_s29 + $0xb10] sm:$0xf]  ;;  %v891_v35 = vld [vmem:[%s14596_s29 + $0xb18] sm:$0xf]  ;;  %888 = vst [vmem:[%s14603_s30 + $0x584] sm:$0xf] %v887_v33 }
 0x101   : > { %890 = vst [vmem:[%s14603_s30 + $0x588] sm:$0xf] %v889_v34  ;;  %892 = vst [vmem:[%s14603_s30 + $0x58c] sm:$0xf] %v891_v35  ;;  %v893_v36 = vld [vmem:[%s14596_s29 + $0xb20] sm:$0xf] }
 0x102   : > { %v895_v37 = vld [vmem:[%s14596_s29 + $0xb28] sm:$0xf]  ;;  %v897_v38 = vld [vmem:[%s14596_s29 + $0xb30] sm:$0xf]  ;;  %894 = vst [vmem:[%s14603_s30 + $0x590] sm:$0xf] %v893_v36 }
 0x103   : > { %896 = vst [vmem:[%s14603_s30 + $0x594] sm:$0xf] %v895_v37  ;;  %898 = vst [vmem:[%s14603_s30 + $0x598] sm:$0xf] %v897_v38  ;;  %v899_v39 = vld [vmem:[%s14596_s29 + $0xb38] sm:$0xf] }
 0x104   : > { %v901_v40 = vld [vmem:[%s14596_s29 + $0xb40] sm:$0xf]  ;;  %v903_v41 = vld [vmem:[%s14596_s29 + $0xb48] sm:$0xf]  ;;  %900 = vst [vmem:[%s14603_s30 + $0x59c] sm:$0xf] %v899_v39 }
 0x105   : > { %902 = vst [vmem:[%s14603_s30 + $0x5a0] sm:$0xf] %v901_v40  ;;  %904 = vst [vmem:[%s14603_s30 + $0x5a4] sm:$0xf] %v903_v41  ;;  %v905_v42 = vld [vmem:[%s14596_s29 + $0xb50] sm:$0xf] }
 0x106   : > { %v907_v43 = vld [vmem:[%s14596_s29 + $0xb58] sm:$0xf]  ;;  %v909_v44 = vld [vmem:[%s14596_s29 + $0xb60] sm:$0xf]  ;;  %906 = vst [vmem:[%s14603_s30 + $0x5a8] sm:$0xf] %v905_v42 }
 0x107   : > { %908 = vst [vmem:[%s14603_s30 + $0x5ac] sm:$0xf] %v907_v43  ;;  %910 = vst [vmem:[%s14603_s30 + $0x5b0] sm:$0xf] %v909_v44  ;;  %v911_v45 = vld [vmem:[%s14596_s29 + $0xb68] sm:$0xf] }
 0x108   : > { %v913_v46 = vld [vmem:[%s14596_s29 + $0xb70] sm:$0xf]  ;;  %v915_v47 = vld [vmem:[%s14596_s29 + $0xb78] sm:$0xf]  ;;  %912 = vst [vmem:[%s14603_s30 + $0x5b4] sm:$0xf] %v911_v45 }
 0x109   : > { %914 = vst [vmem:[%s14603_s30 + $0x5b8] sm:$0xf] %v913_v46  ;;  %916 = vst [vmem:[%s14603_s30 + $0x5bc] sm:$0xf] %v915_v47  ;;  %v917_v48 = vld [vmem:[%s14596_s29 + $0xb80] sm:$0xf] }
 0x10a   : > { %v919_v49 = vld [vmem:[%s14596_s29 + $0xb88] sm:$0xf]  ;;  %v921_v50 = vld [vmem:[%s14596_s29 + $0xb90] sm:$0xf]  ;;  %918 = vst [vmem:[%s14603_s30 + $0x5c0] sm:$0xf] %v917_v48 }
 0x10b   : > { %920 = vst [vmem:[%s14603_s30 + $0x5c4] sm:$0xf] %v919_v49  ;;  %922 = vst [vmem:[%s14603_s30 + $0x5c8] sm:$0xf] %v921_v50  ;;  %v923_v51 = vld [vmem:[%s14596_s29 + $0xb98] sm:$0xf] }
 0x10c   : > { %v925_v52 = vld [vmem:[%s14596_s29 + $0xba0] sm:$0xf]  ;;  %v927_v53 = vld [vmem:[%s14596_s29 + $0xba8] sm:$0xf]  ;;  %924 = vst [vmem:[%s14603_s30 + $0x5cc] sm:$0xf] %v923_v51 }
 0x10d   : > { %926 = vst [vmem:[%s14603_s30 + $0x5d0] sm:$0xf] %v925_v52  ;;  %928 = vst [vmem:[%s14603_s30 + $0x5d4] sm:$0xf] %v927_v53  ;;  %v929_v54 = vld [vmem:[%s14596_s29 + $0xbb0] sm:$0xf] }
 0x10e   : > { %v931_v55 = vld [vmem:[%s14596_s29 + $0xbb8] sm:$0xf]  ;;  %v933_v56 = vld [vmem:[%s14596_s29 + $0xbc0] sm:$0xf]  ;;  %930 = vst [vmem:[%s14603_s30 + $0x5d8] sm:$0xf] %v929_v54 }
 0x10f   : > { %932 = vst [vmem:[%s14603_s30 + $0x5dc] sm:$0xf] %v931_v55  ;;  %934 = vst [vmem:[%s14603_s30 + $0x5e0] sm:$0xf] %v933_v56  ;;  %v935_v57 = vld [vmem:[%s14596_s29 + $0xbc8] sm:$0xf] }
 0x110   : > { %v937_v58 = vld [vmem:[%s14596_s29 + $0xbd0] sm:$0xf]  ;;  %v939_v59 = vld [vmem:[%s14596_s29 + $0xbd8] sm:$0xf]  ;;  %936 = vst [vmem:[%s14603_s30 + $0x5e4] sm:$0xf] %v935_v57 }
 0x111   : > { %938 = vst [vmem:[%s14603_s30 + $0x5e8] sm:$0xf] %v937_v58  ;;  %940 = vst [vmem:[%s14603_s30 + $0x5ec] sm:$0xf] %v939_v59  ;;  %v941_v60 = vld [vmem:[%s14596_s29 + $0xbe0] sm:$0xf] }
 0x112   : > { %v943_v61 = vld [vmem:[%s14596_s29 + $0xbe8] sm:$0xf]  ;;  %v945_v62 = vld [vmem:[%s14596_s29 + $0xbf0] sm:$0xf]  ;;  %942 = vst [vmem:[%s14603_s30 + $0x5f0] sm:$0xf] %v941_v60 }
 0x113   : > { %944 = vst [vmem:[%s14603_s30 + $0x5f4] sm:$0xf] %v943_v61  ;;  %946 = vst [vmem:[%s14603_s30 + $0x5f8] sm:$0xf] %v945_v62  ;;  %v947_v63 = vld [vmem:[%s14596_s29 + $0xbf8] sm:$0xf] }
 0x114   : > { %v949_v0 = vld [vmem:[%s14596_s29 + $0xc00] sm:$0xf]  ;;  %v951_v1 = vld [vmem:[%s14596_s29 + $0xc08] sm:$0xf]  ;;  %948 = vst [vmem:[%s14603_s30 + $0x5fc] sm:$0xf] %v947_v63 }
 0x115   : > { %950 = vst [vmem:[%s14603_s30 + $0x600] sm:$0xf] %v949_v0  ;;  %952 = vst [vmem:[%s14603_s30 + $0x604] sm:$0xf] %v951_v1  ;;  %v953_v2 = vld [vmem:[%s14596_s29 + $0xc10] sm:$0xf] }
 0x116   : > { %v955_v3 = vld [vmem:[%s14596_s29 + $0xc18] sm:$0xf]  ;;  %v957_v4 = vld [vmem:[%s14596_s29 + $0xc20] sm:$0xf]  ;;  %954 = vst [vmem:[%s14603_s30 + $0x608] sm:$0xf] %v953_v2 }
 0x117   : > { %956 = vst [vmem:[%s14603_s30 + $0x60c] sm:$0xf] %v955_v3  ;;  %958 = vst [vmem:[%s14603_s30 + $0x610] sm:$0xf] %v957_v4  ;;  %v959_v5 = vld [vmem:[%s14596_s29 + $0xc28] sm:$0xf] }
 0x118   : > { %v961_v6 = vld [vmem:[%s14596_s29 + $0xc30] sm:$0xf]  ;;  %v963_v7 = vld [vmem:[%s14596_s29 + $0xc38] sm:$0xf]  ;;  %960 = vst [vmem:[%s14603_s30 + $0x614] sm:$0xf] %v959_v5 }
 0x119   : > { %962 = vst [vmem:[%s14603_s30 + $0x618] sm:$0xf] %v961_v6  ;;  %964 = vst [vmem:[%s14603_s30 + $0x61c] sm:$0xf] %v963_v7  ;;  %v965_v8 = vld [vmem:[%s14596_s29 + $0xc40] sm:$0xf] }
 0x11a   : > { %v967_v9 = vld [vmem:[%s14596_s29 + $0xc48] sm:$0xf]  ;;  %v969_v10 = vld [vmem:[%s14596_s29 + $0xc50] sm:$0xf]  ;;  %966 = vst [vmem:[%s14603_s30 + $0x620] sm:$0xf] %v965_v8 }
 0x11b   : > { %968 = vst [vmem:[%s14603_s30 + $0x624] sm:$0xf] %v967_v9  ;;  %970 = vst [vmem:[%s14603_s30 + $0x628] sm:$0xf] %v969_v10  ;;  %v971_v11 = vld [vmem:[%s14596_s29 + $0xc58] sm:$0xf] }
 0x11c   : > { %v973_v12 = vld [vmem:[%s14596_s29 + $0xc60] sm:$0xf]  ;;  %v975_v13 = vld [vmem:[%s14596_s29 + $0xc68] sm:$0xf]  ;;  %972 = vst [vmem:[%s14603_s30 + $0x62c] sm:$0xf] %v971_v11 }
 0x11d   : > { %974 = vst [vmem:[%s14603_s30 + $0x630] sm:$0xf] %v973_v12  ;;  %976 = vst [vmem:[%s14603_s30 + $0x634] sm:$0xf] %v975_v13  ;;  %v977_v14 = vld [vmem:[%s14596_s29 + $0xc70] sm:$0xf] }
 0x11e   : > { %v979_v15 = vld [vmem:[%s14596_s29 + $0xc78] sm:$0xf]  ;;  %v981_v16 = vld [vmem:[%s14596_s29 + $0xc80] sm:$0xf]  ;;  %978 = vst [vmem:[%s14603_s30 + $0x638] sm:$0xf] %v977_v14 }
 0x11f   : > { %980 = vst [vmem:[%s14603_s30 + $0x63c] sm:$0xf] %v979_v15  ;;  %982 = vst [vmem:[%s14603_s30 + $0x640] sm:$0xf] %v981_v16  ;;  %v983_v17 = vld [vmem:[%s14596_s29 + $0xc88] sm:$0xf] }
 0x120   : > { %v985_v18 = vld [vmem:[%s14596_s29 + $0xc90] sm:$0xf]  ;;  %v987_v19 = vld [vmem:[%s14596_s29 + $0xc98] sm:$0xf]  ;;  %984 = vst [vmem:[%s14603_s30 + $0x644] sm:$0xf] %v983_v17 }
 0x121   : > { %986 = vst [vmem:[%s14603_s30 + $0x648] sm:$0xf] %v985_v18  ;;  %988 = vst [vmem:[%s14603_s30 + $0x64c] sm:$0xf] %v987_v19  ;;  %v989_v20 = vld [vmem:[%s14596_s29 + $0xca0] sm:$0xf] }
 0x122   : > { %v991_v21 = vld [vmem:[%s14596_s29 + $0xca8] sm:$0xf]  ;;  %v993_v22 = vld [vmem:[%s14596_s29 + $0xcb0] sm:$0xf]  ;;  %990 = vst [vmem:[%s14603_s30 + $0x650] sm:$0xf] %v989_v20 }
 0x123   : > { %992 = vst [vmem:[%s14603_s30 + $0x654] sm:$0xf] %v991_v21  ;;  %994 = vst [vmem:[%s14603_s30 + $0x658] sm:$0xf] %v993_v22  ;;  %v995_v23 = vld [vmem:[%s14596_s29 + $0xcb8] sm:$0xf] }
 0x124   : > { %v997_v24 = vld [vmem:[%s14596_s29 + $0xcc0] sm:$0xf]  ;;  %v999_v25 = vld [vmem:[%s14596_s29 + $0xcc8] sm:$0xf]  ;;  %996 = vst [vmem:[%s14603_s30 + $0x65c] sm:$0xf] %v995_v23 }
 0x125   : > { %998 = vst [vmem:[%s14603_s30 + $0x660] sm:$0xf] %v997_v24  ;;  %1000 = vst [vmem:[%s14603_s30 + $0x664] sm:$0xf] %v999_v25  ;;  %v1001_v26 = vld [vmem:[%s14596_s29 + $0xcd0] sm:$0xf] }
 0x126   : > { %v1003_v27 = vld [vmem:[%s14596_s29 + $0xcd8] sm:$0xf]  ;;  %v1005_v28 = vld [vmem:[%s14596_s29 + $0xce0] sm:$0xf]  ;;  %1002 = vst [vmem:[%s14603_s30 + $0x668] sm:$0xf] %v1001_v26 }
 0x127   : > { %1004 = vst [vmem:[%s14603_s30 + $0x66c] sm:$0xf] %v1003_v27  ;;  %1006 = vst [vmem:[%s14603_s30 + $0x670] sm:$0xf] %v1005_v28  ;;  %v1007_v29 = vld [vmem:[%s14596_s29 + $0xce8] sm:$0xf] }
 0x128   : > { %v1009_v30 = vld [vmem:[%s14596_s29 + $0xcf0] sm:$0xf]  ;;  %v1011_v31 = vld [vmem:[%s14596_s29 + $0xcf8] sm:$0xf]  ;;  %1008 = vst [vmem:[%s14603_s30 + $0x674] sm:$0xf] %v1007_v29 }
 0x129   : > { %1010 = vst [vmem:[%s14603_s30 + $0x678] sm:$0xf] %v1009_v30  ;;  %1012 = vst [vmem:[%s14603_s30 + $0x67c] sm:$0xf] %v1011_v31  ;;  %v1013_v32 = vld [vmem:[%s14596_s29 + $0xd00] sm:$0xf] }
 0x12a   : > { %v1015_v33 = vld [vmem:[%s14596_s29 + $0xd08] sm:$0xf]  ;;  %v1017_v34 = vld [vmem:[%s14596_s29 + $0xd10] sm:$0xf]  ;;  %1014 = vst [vmem:[%s14603_s30 + $0x680] sm:$0xf] %v1013_v32 }
 0x12b   : > { %1016 = vst [vmem:[%s14603_s30 + $0x684] sm:$0xf] %v1015_v33  ;;  %1018 = vst [vmem:[%s14603_s30 + $0x688] sm:$0xf] %v1017_v34  ;;  %v1019_v35 = vld [vmem:[%s14596_s29 + $0xd18] sm:$0xf] }
 0x12c   : > { %v1021_v36 = vld [vmem:[%s14596_s29 + $0xd20] sm:$0xf]  ;;  %v1023_v37 = vld [vmem:[%s14596_s29 + $0xd28] sm:$0xf]  ;;  %1020 = vst [vmem:[%s14603_s30 + $0x68c] sm:$0xf] %v1019_v35 }
 0x12d   : > { %1022 = vst [vmem:[%s14603_s30 + $0x690] sm:$0xf] %v1021_v36  ;;  %1024 = vst [vmem:[%s14603_s30 + $0x694] sm:$0xf] %v1023_v37  ;;  %v1025_v38 = vld [vmem:[%s14596_s29 + $0xd30] sm:$0xf] }
 0x12e   : > { %v1027_v39 = vld [vmem:[%s14596_s29 + $0xd38] sm:$0xf]  ;;  %v1029_v40 = vld [vmem:[%s14596_s29 + $0xd40] sm:$0xf]  ;;  %1026 = vst [vmem:[%s14603_s30 + $0x698] sm:$0xf] %v1025_v38 }
 0x12f   : > { %1028 = vst [vmem:[%s14603_s30 + $0x69c] sm:$0xf] %v1027_v39  ;;  %1030 = vst [vmem:[%s14603_s30 + $0x6a0] sm:$0xf] %v1029_v40  ;;  %v1031_v41 = vld [vmem:[%s14596_s29 + $0xd48] sm:$0xf] }
 0x130   : > { %v1033_v42 = vld [vmem:[%s14596_s29 + $0xd50] sm:$0xf]  ;;  %v1035_v43 = vld [vmem:[%s14596_s29 + $0xd58] sm:$0xf]  ;;  %1032 = vst [vmem:[%s14603_s30 + $0x6a4] sm:$0xf] %v1031_v41 }
 0x131   : > { %1034 = vst [vmem:[%s14603_s30 + $0x6a8] sm:$0xf] %v1033_v42  ;;  %1036 = vst [vmem:[%s14603_s30 + $0x6ac] sm:$0xf] %v1035_v43  ;;  %v1037_v44 = vld [vmem:[%s14596_s29 + $0xd60] sm:$0xf] }
 0x132   : > { %v1039_v45 = vld [vmem:[%s14596_s29 + $0xd68] sm:$0xf]  ;;  %v1041_v46 = vld [vmem:[%s14596_s29 + $0xd70] sm:$0xf]  ;;  %1038 = vst [vmem:[%s14603_s30 + $0x6b0] sm:$0xf] %v1037_v44 }
 0x133   : > { %1040 = vst [vmem:[%s14603_s30 + $0x6b4] sm:$0xf] %v1039_v45  ;;  %1042 = vst [vmem:[%s14603_s30 + $0x6b8] sm:$0xf] %v1041_v46  ;;  %v1043_v47 = vld [vmem:[%s14596_s29 + $0xd78] sm:$0xf] }
 0x134   : > { %v1045_v48 = vld [vmem:[%s14596_s29 + $0xd80] sm:$0xf]  ;;  %v1047_v49 = vld [vmem:[%s14596_s29 + $0xd88] sm:$0xf]  ;;  %1044 = vst [vmem:[%s14603_s30 + $0x6bc] sm:$0xf] %v1043_v47 }
 0x135   : > { %1046 = vst [vmem:[%s14603_s30 + $0x6c0] sm:$0xf] %v1045_v48  ;;  %1048 = vst [vmem:[%s14603_s30 + $0x6c4] sm:$0xf] %v1047_v49  ;;  %v1049_v50 = vld [vmem:[%s14596_s29 + $0xd90] sm:$0xf] }
 0x136   : > { %v1051_v51 = vld [vmem:[%s14596_s29 + $0xd98] sm:$0xf]  ;;  %v1053_v52 = vld [vmem:[%s14596_s29 + $0xda0] sm:$0xf]  ;;  %1050 = vst [vmem:[%s14603_s30 + $0x6c8] sm:$0xf] %v1049_v50 }
 0x137   : > { %1052 = vst [vmem:[%s14603_s30 + $0x6cc] sm:$0xf] %v1051_v51  ;;  %1054 = vst [vmem:[%s14603_s30 + $0x6d0] sm:$0xf] %v1053_v52  ;;  %v1055_v53 = vld [vmem:[%s14596_s29 + $0xda8] sm:$0xf] }
 0x138   : > { %v1057_v54 = vld [vmem:[%s14596_s29 + $0xdb0] sm:$0xf]  ;;  %v1059_v55 = vld [vmem:[%s14596_s29 + $0xdb8] sm:$0xf]  ;;  %1056 = vst [vmem:[%s14603_s30 + $0x6d4] sm:$0xf] %v1055_v53 }
 0x139   : > { %1058 = vst [vmem:[%s14603_s30 + $0x6d8] sm:$0xf] %v1057_v54  ;;  %1060 = vst [vmem:[%s14603_s30 + $0x6dc] sm:$0xf] %v1059_v55  ;;  %v1061_v56 = vld [vmem:[%s14596_s29 + $0xdc0] sm:$0xf] }
 0x13a   : > { %v1063_v57 = vld [vmem:[%s14596_s29 + $0xdc8] sm:$0xf]  ;;  %v1065_v58 = vld [vmem:[%s14596_s29 + $0xdd0] sm:$0xf]  ;;  %1062 = vst [vmem:[%s14603_s30 + $0x6e0] sm:$0xf] %v1061_v56 }
 0x13b   : > { %1064 = vst [vmem:[%s14603_s30 + $0x6e4] sm:$0xf] %v1063_v57  ;;  %1066 = vst [vmem:[%s14603_s30 + $0x6e8] sm:$0xf] %v1065_v58  ;;  %v1067_v59 = vld [vmem:[%s14596_s29 + $0xdd8] sm:$0xf] }
 0x13c   : > { %v1069_v60 = vld [vmem:[%s14596_s29 + $0xde0] sm:$0xf]  ;;  %v1071_v61 = vld [vmem:[%s14596_s29 + $0xde8] sm:$0xf]  ;;  %1068 = vst [vmem:[%s14603_s30 + $0x6ec] sm:$0xf] %v1067_v59 }
 0x13d   : > { %1070 = vst [vmem:[%s14603_s30 + $0x6f0] sm:$0xf] %v1069_v60  ;;  %1072 = vst [vmem:[%s14603_s30 + $0x6f4] sm:$0xf] %v1071_v61  ;;  %v1073_v62 = vld [vmem:[%s14596_s29 + $0xdf0] sm:$0xf] }
 0x13e   : > { %v1075_v63 = vld [vmem:[%s14596_s29 + $0xdf8] sm:$0xf]  ;;  %v1077_v0 = vld [vmem:[%s14596_s29 + $0xe00] sm:$0xf]  ;;  %1074 = vst [vmem:[%s14603_s30 + $0x6f8] sm:$0xf] %v1073_v62 }
 0x13f   : > { %1076 = vst [vmem:[%s14603_s30 + $0x6fc] sm:$0xf] %v1075_v63  ;;  %1078 = vst [vmem:[%s14603_s30 + $0x700] sm:$0xf] %v1077_v0  ;;  %v1079_v1 = vld [vmem:[%s14596_s29 + $0xe08] sm:$0xf] }
 0x140   : > { %v1081_v2 = vld [vmem:[%s14596_s29 + $0xe10] sm:$0xf]  ;;  %v1083_v3 = vld [vmem:[%s14596_s29 + $0xe18] sm:$0xf]  ;;  %1080 = vst [vmem:[%s14603_s30 + $0x704] sm:$0xf] %v1079_v1 }
 0x141   : > { %1082 = vst [vmem:[%s14603_s30 + $0x708] sm:$0xf] %v1081_v2  ;;  %1084 = vst [vmem:[%s14603_s30 + $0x70c] sm:$0xf] %v1083_v3  ;;  %v1085_v4 = vld [vmem:[%s14596_s29 + $0xe20] sm:$0xf] }
 0x142   : > { %v1087_v5 = vld [vmem:[%s14596_s29 + $0xe28] sm:$0xf]  ;;  %v1089_v6 = vld [vmem:[%s14596_s29 + $0xe30] sm:$0xf]  ;;  %1086 = vst [vmem:[%s14603_s30 + $0x710] sm:$0xf] %v1085_v4 }
 0x143   : > { %1088 = vst [vmem:[%s14603_s30 + $0x714] sm:$0xf] %v1087_v5  ;;  %1090 = vst [vmem:[%s14603_s30 + $0x718] sm:$0xf] %v1089_v6  ;;  %v1091_v7 = vld [vmem:[%s14596_s29 + $0xe38] sm:$0xf] }
 0x144   : > { %v1093_v8 = vld [vmem:[%s14596_s29 + $0xe40] sm:$0xf]  ;;  %v1095_v9 = vld [vmem:[%s14596_s29 + $0xe48] sm:$0xf]  ;;  %1092 = vst [vmem:[%s14603_s30 + $0x71c] sm:$0xf] %v1091_v7 }
 0x145   : > { %1094 = vst [vmem:[%s14603_s30 + $0x720] sm:$0xf] %v1093_v8  ;;  %1096 = vst [vmem:[%s14603_s30 + $0x724] sm:$0xf] %v1095_v9  ;;  %v1097_v10 = vld [vmem:[%s14596_s29 + $0xe50] sm:$0xf] }
 0x146   : > { %v1099_v11 = vld [vmem:[%s14596_s29 + $0xe58] sm:$0xf]  ;;  %v1101_v12 = vld [vmem:[%s14596_s29 + $0xe60] sm:$0xf]  ;;  %1098 = vst [vmem:[%s14603_s30 + $0x728] sm:$0xf] %v1097_v10 }
 0x147   : > { %1100 = vst [vmem:[%s14603_s30 + $0x72c] sm:$0xf] %v1099_v11  ;;  %1102 = vst [vmem:[%s14603_s30 + $0x730] sm:$0xf] %v1101_v12  ;;  %v1103_v13 = vld [vmem:[%s14596_s29 + $0xe68] sm:$0xf] }
 0x148   : > { %v1105_v14 = vld [vmem:[%s14596_s29 + $0xe70] sm:$0xf]  ;;  %v1107_v15 = vld [vmem:[%s14596_s29 + $0xe78] sm:$0xf]  ;;  %1104 = vst [vmem:[%s14603_s30 + $0x734] sm:$0xf] %v1103_v13 }
 0x149   : > { %1106 = vst [vmem:[%s14603_s30 + $0x738] sm:$0xf] %v1105_v14  ;;  %1108 = vst [vmem:[%s14603_s30 + $0x73c] sm:$0xf] %v1107_v15  ;;  %v1109_v16 = vld [vmem:[%s14596_s29 + $0xe80] sm:$0xf] }
 0x14a   : > { %v1111_v17 = vld [vmem:[%s14596_s29 + $0xe88] sm:$0xf]  ;;  %v1113_v18 = vld [vmem:[%s14596_s29 + $0xe90] sm:$0xf]  ;;  %1110 = vst [vmem:[%s14603_s30 + $0x740] sm:$0xf] %v1109_v16 }
 0x14b   : > { %1112 = vst [vmem:[%s14603_s30 + $0x744] sm:$0xf] %v1111_v17  ;;  %1114 = vst [vmem:[%s14603_s30 + $0x748] sm:$0xf] %v1113_v18  ;;  %v1115_v19 = vld [vmem:[%s14596_s29 + $0xe98] sm:$0xf] }
 0x14c   : > { %v1117_v20 = vld [vmem:[%s14596_s29 + $0xea0] sm:$0xf]  ;;  %v1119_v21 = vld [vmem:[%s14596_s29 + $0xea8] sm:$0xf]  ;;  %1116 = vst [vmem:[%s14603_s30 + $0x74c] sm:$0xf] %v1115_v19 }
 0x14d   : > { %1118 = vst [vmem:[%s14603_s30 + $0x750] sm:$0xf] %v1117_v20  ;;  %1120 = vst [vmem:[%s14603_s30 + $0x754] sm:$0xf] %v1119_v21  ;;  %v1121_v22 = vld [vmem:[%s14596_s29 + $0xeb0] sm:$0xf] }
 0x14e   : > { %v1123_v23 = vld [vmem:[%s14596_s29 + $0xeb8] sm:$0xf]  ;;  %v1125_v24 = vld [vmem:[%s14596_s29 + $0xec0] sm:$0xf]  ;;  %1122 = vst [vmem:[%s14603_s30 + $0x758] sm:$0xf] %v1121_v22 }
 0x14f   : > { %1124 = vst [vmem:[%s14603_s30 + $0x75c] sm:$0xf] %v1123_v23  ;;  %1126 = vst [vmem:[%s14603_s30 + $0x760] sm:$0xf] %v1125_v24  ;;  %v1127_v25 = vld [vmem:[%s14596_s29 + $0xec8] sm:$0xf] }
 0x150   : > { %v1129_v26 = vld [vmem:[%s14596_s29 + $0xed0] sm:$0xf]  ;;  %v1131_v27 = vld [vmem:[%s14596_s29 + $0xed8] sm:$0xf]  ;;  %1128 = vst [vmem:[%s14603_s30 + $0x764] sm:$0xf] %v1127_v25 }
 0x151   : > { %1130 = vst [vmem:[%s14603_s30 + $0x768] sm:$0xf] %v1129_v26  ;;  %1132 = vst [vmem:[%s14603_s30 + $0x76c] sm:$0xf] %v1131_v27  ;;  %v1133_v28 = vld [vmem:[%s14596_s29 + $0xee0] sm:$0xf] }
 0x152   : > { %v1135_v29 = vld [vmem:[%s14596_s29 + $0xee8] sm:$0xf]  ;;  %v1137_v30 = vld [vmem:[%s14596_s29 + $0xef0] sm:$0xf]  ;;  %1134 = vst [vmem:[%s14603_s30 + $0x770] sm:$0xf] %v1133_v28 }
 0x153   : > { %1136 = vst [vmem:[%s14603_s30 + $0x774] sm:$0xf] %v1135_v29  ;;  %1138 = vst [vmem:[%s14603_s30 + $0x778] sm:$0xf] %v1137_v30  ;;  %v1139_v31 = vld [vmem:[%s14596_s29 + $0xef8] sm:$0xf] }
 0x154   : > { %v1141_v32 = vld [vmem:[%s14596_s29 + $0xf00] sm:$0xf]  ;;  %v1143_v33 = vld [vmem:[%s14596_s29 + $0xf08] sm:$0xf]  ;;  %1140 = vst [vmem:[%s14603_s30 + $0x77c] sm:$0xf] %v1139_v31 }
 0x155   : > { %1142 = vst [vmem:[%s14603_s30 + $0x780] sm:$0xf] %v1141_v32  ;;  %1144 = vst [vmem:[%s14603_s30 + $0x784] sm:$0xf] %v1143_v33  ;;  %v1145_v34 = vld [vmem:[%s14596_s29 + $0xf10] sm:$0xf] }
 0x156   : > { %v1147_v35 = vld [vmem:[%s14596_s29 + $0xf18] sm:$0xf]  ;;  %v1149_v36 = vld [vmem:[%s14596_s29 + $0xf20] sm:$0xf]  ;;  %1146 = vst [vmem:[%s14603_s30 + $0x788] sm:$0xf] %v1145_v34 }
 0x157   : > { %1148 = vst [vmem:[%s14603_s30 + $0x78c] sm:$0xf] %v1147_v35  ;;  %1150 = vst [vmem:[%s14603_s30 + $0x790] sm:$0xf] %v1149_v36  ;;  %v1151_v37 = vld [vmem:[%s14596_s29 + $0xf28] sm:$0xf] }
 0x158   : > { %v1153_v38 = vld [vmem:[%s14596_s29 + $0xf30] sm:$0xf]  ;;  %v1155_v39 = vld [vmem:[%s14596_s29 + $0xf38] sm:$0xf]  ;;  %1152 = vst [vmem:[%s14603_s30 + $0x794] sm:$0xf] %v1151_v37 }
 0x159   : > { %1154 = vst [vmem:[%s14603_s30 + $0x798] sm:$0xf] %v1153_v38  ;;  %1156 = vst [vmem:[%s14603_s30 + $0x79c] sm:$0xf] %v1155_v39  ;;  %v1157_v40 = vld [vmem:[%s14596_s29 + $0xf40] sm:$0xf] }
 0x15a   : > { %v1159_v41 = vld [vmem:[%s14596_s29 + $0xf48] sm:$0xf]  ;;  %v1161_v42 = vld [vmem:[%s14596_s29 + $0xf50] sm:$0xf]  ;;  %1158 = vst [vmem:[%s14603_s30 + $0x7a0] sm:$0xf] %v1157_v40 }
 0x15b   : > { %1160 = vst [vmem:[%s14603_s30 + $0x7a4] sm:$0xf] %v1159_v41  ;;  %1162 = vst [vmem:[%s14603_s30 + $0x7a8] sm:$0xf] %v1161_v42  ;;  %v1163_v43 = vld [vmem:[%s14596_s29 + $0xf58] sm:$0xf] }
 0x15c   : > { %v1165_v44 = vld [vmem:[%s14596_s29 + $0xf60] sm:$0xf]  ;;  %v1167_v45 = vld [vmem:[%s14596_s29 + $0xf68] sm:$0xf]  ;;  %1164 = vst [vmem:[%s14603_s30 + $0x7ac] sm:$0xf] %v1163_v43 }
 0x15d   : > { %1166 = vst [vmem:[%s14603_s30 + $0x7b0] sm:$0xf] %v1165_v44  ;;  %1168 = vst [vmem:[%s14603_s30 + $0x7b4] sm:$0xf] %v1167_v45  ;;  %v1169_v46 = vld [vmem:[%s14596_s29 + $0xf70] sm:$0xf] }
 0x15e   : > { %v1171_v47 = vld [vmem:[%s14596_s29 + $0xf78] sm:$0xf]  ;;  %v1173_v48 = vld [vmem:[%s14596_s29 + $0xf80] sm:$0xf]  ;;  %1170 = vst [vmem:[%s14603_s30 + $0x7b8] sm:$0xf] %v1169_v46 }
 0x15f   : > { %1172 = vst [vmem:[%s14603_s30 + $0x7bc] sm:$0xf] %v1171_v47  ;;  %1174 = vst [vmem:[%s14603_s30 + $0x7c0] sm:$0xf] %v1173_v48  ;;  %v1175_v49 = vld [vmem:[%s14596_s29 + $0xf88] sm:$0xf] }
 0x160   : > { %v1177_v50 = vld [vmem:[%s14596_s29 + $0xf90] sm:$0xf]  ;;  %v1179_v51 = vld [vmem:[%s14596_s29 + $0xf98] sm:$0xf]  ;;  %1176 = vst [vmem:[%s14603_s30 + $0x7c4] sm:$0xf] %v1175_v49 }
 0x161   : > { %1178 = vst [vmem:[%s14603_s30 + $0x7c8] sm:$0xf] %v1177_v50  ;;  %1180 = vst [vmem:[%s14603_s30 + $0x7cc] sm:$0xf] %v1179_v51  ;;  %v1181_v52 = vld [vmem:[%s14596_s29 + $0xfa0] sm:$0xf] }
 0x162   : > { %v1183_v53 = vld [vmem:[%s14596_s29 + $0xfa8] sm:$0xf]  ;;  %v1185_v54 = vld [vmem:[%s14596_s29 + $0xfb0] sm:$0xf]  ;;  %1182 = vst [vmem:[%s14603_s30 + $0x7d0] sm:$0xf] %v1181_v52 }
 0x163   : > { %1184 = vst [vmem:[%s14603_s30 + $0x7d4] sm:$0xf] %v1183_v53  ;;  %1186 = vst [vmem:[%s14603_s30 + $0x7d8] sm:$0xf] %v1185_v54  ;;  %v1187_v55 = vld [vmem:[%s14596_s29 + $0xfb8] sm:$0xf] }
 0x164   : > { %v1189_v56 = vld [vmem:[%s14596_s29 + $0xfc0] sm:$0xf]  ;;  %v1191_v57 = vld [vmem:[%s14596_s29 + $0xfc8] sm:$0xf]  ;;  %1188 = vst [vmem:[%s14603_s30 + $0x7dc] sm:$0xf] %v1187_v55 }
 0x165   : > { %1190 = vst [vmem:[%s14603_s30 + $0x7e0] sm:$0xf] %v1189_v56  ;;  %1192 = vst [vmem:[%s14603_s30 + $0x7e4] sm:$0xf] %v1191_v57  ;;  %v1193_v58 = vld [vmem:[%s14596_s29 + $0xfd0] sm:$0xf] }
 0x166   : > { %v1195_v59 = vld [vmem:[%s14596_s29 + $0xfd8] sm:$0xf]  ;;  %v1197_v60 = vld [vmem:[%s14596_s29 + $0xfe0] sm:$0xf]  ;;  %1194 = vst [vmem:[%s14603_s30 + $0x7e8] sm:$0xf] %v1193_v58 }
 0x167   : > { %1196 = vst [vmem:[%s14603_s30 + $0x7ec] sm:$0xf] %v1195_v59  ;;  %1198 = vst [vmem:[%s14603_s30 + $0x7f0] sm:$0xf] %v1197_v60  ;;  %v1199_v61 = vld [vmem:[%s14596_s29 + $0xfe8] sm:$0xf] }
 0x168   : > { %v1201_v62 = vld [vmem:[%s14596_s29 + $0xff0] sm:$0xf]  ;;  %v1203_v63 = vld [vmem:[%s14596_s29 + $0xff8] sm:$0xf]  ;;  %1200 = vst [vmem:[%s14603_s30 + $0x7f4] sm:$0xf] %v1199_v61 }
 0x169   : > { %1202 = vst [vmem:[%s14603_s30 + $0x7f8] sm:$0xf] %v1201_v62  ;;  %1204 = vst [vmem:[%s14603_s30 + $0x7fc] sm:$0xf] %v1203_v63  ;;  %v1205_v0 = vld [vmem:[%s14596_s29 + $0x1000] sm:$0xf] }
 0x16a   : > { %v1207_v1 = vld [vmem:[%s14596_s29 + $0x1008] sm:$0xf]  ;;  %v1209_v2 = vld [vmem:[%s14596_s29 + $0x1010] sm:$0xf]  ;;  %1206 = vst [vmem:[%s14603_s30 + $0x800] sm:$0xf] %v1205_v0 }
 0x16b   : > { %1208 = vst [vmem:[%s14603_s30 + $0x804] sm:$0xf] %v1207_v1  ;;  %1210 = vst [vmem:[%s14603_s30 + $0x808] sm:$0xf] %v1209_v2  ;;  %v1211_v3 = vld [vmem:[%s14596_s29 + $0x1018] sm:$0xf] }
 0x16c   : > { %v1213_v4 = vld [vmem:[%s14596_s29 + $0x1020] sm:$0xf]  ;;  %v1215_v5 = vld [vmem:[%s14596_s29 + $0x1028] sm:$0xf]  ;;  %1212 = vst [vmem:[%s14603_s30 + $0x80c] sm:$0xf] %v1211_v3 }
 0x16d   : > { %1214 = vst [vmem:[%s14603_s30 + $0x810] sm:$0xf] %v1213_v4  ;;  %1216 = vst [vmem:[%s14603_s30 + $0x814] sm:$0xf] %v1215_v5  ;;  %v1217_v6 = vld [vmem:[%s14596_s29 + $0x1030] sm:$0xf] }
 0x16e   : > { %v1219_v7 = vld [vmem:[%s14596_s29 + $0x1038] sm:$0xf]  ;;  %v1221_v8 = vld [vmem:[%s14596_s29 + $0x1040] sm:$0xf]  ;;  %1218 = vst [vmem:[%s14603_s30 + $0x818] sm:$0xf] %v1217_v6 }
 0x16f   : > { %1220 = vst [vmem:[%s14603_s30 + $0x81c] sm:$0xf] %v1219_v7  ;;  %1222 = vst [vmem:[%s14603_s30 + $0x820] sm:$0xf] %v1221_v8  ;;  %v1223_v9 = vld [vmem:[%s14596_s29 + $0x1048] sm:$0xf] }
 0x170   : > { %v1225_v10 = vld [vmem:[%s14596_s29 + $0x1050] sm:$0xf]  ;;  %v1227_v11 = vld [vmem:[%s14596_s29 + $0x1058] sm:$0xf]  ;;  %1224 = vst [vmem:[%s14603_s30 + $0x824] sm:$0xf] %v1223_v9 }
 0x171   : > { %1226 = vst [vmem:[%s14603_s30 + $0x828] sm:$0xf] %v1225_v10  ;;  %1228 = vst [vmem:[%s14603_s30 + $0x82c] sm:$0xf] %v1227_v11  ;;  %v1229_v12 = vld [vmem:[%s14596_s29 + $0x1060] sm:$0xf] }
 0x172   : > { %v1231_v13 = vld [vmem:[%s14596_s29 + $0x1068] sm:$0xf]  ;;  %v1233_v14 = vld [vmem:[%s14596_s29 + $0x1070] sm:$0xf]  ;;  %1230 = vst [vmem:[%s14603_s30 + $0x830] sm:$0xf] %v1229_v12 }
 0x173   : > { %1232 = vst [vmem:[%s14603_s30 + $0x834] sm:$0xf] %v1231_v13  ;;  %1234 = vst [vmem:[%s14603_s30 + $0x838] sm:$0xf] %v1233_v14  ;;  %v1235_v15 = vld [vmem:[%s14596_s29 + $0x1078] sm:$0xf] }
 0x174   : > { %v1237_v16 = vld [vmem:[%s14596_s29 + $0x1080] sm:$0xf]  ;;  %v1239_v17 = vld [vmem:[%s14596_s29 + $0x1088] sm:$0xf]  ;;  %1236 = vst [vmem:[%s14603_s30 + $0x83c] sm:$0xf] %v1235_v15 }
 0x175   : > { %1238 = vst [vmem:[%s14603_s30 + $0x840] sm:$0xf] %v1237_v16  ;;  %1240 = vst [vmem:[%s14603_s30 + $0x844] sm:$0xf] %v1239_v17  ;;  %v1241_v18 = vld [vmem:[%s14596_s29 + $0x1090] sm:$0xf] }
 0x176   : > { %v1243_v19 = vld [vmem:[%s14596_s29 + $0x1098] sm:$0xf]  ;;  %v1245_v20 = vld [vmem:[%s14596_s29 + $0x10a0] sm:$0xf]  ;;  %1242 = vst [vmem:[%s14603_s30 + $0x848] sm:$0xf] %v1241_v18 }
 0x177   : > { %1244 = vst [vmem:[%s14603_s30 + $0x84c] sm:$0xf] %v1243_v19  ;;  %1246 = vst [vmem:[%s14603_s30 + $0x850] sm:$0xf] %v1245_v20  ;;  %v1247_v21 = vld [vmem:[%s14596_s29 + $0x10a8] sm:$0xf] }
 0x178   : > { %v1249_v22 = vld [vmem:[%s14596_s29 + $0x10b0] sm:$0xf]  ;;  %v1251_v23 = vld [vmem:[%s14596_s29 + $0x10b8] sm:$0xf]  ;;  %1248 = vst [vmem:[%s14603_s30 + $0x854] sm:$0xf] %v1247_v21 }
 0x179   : > { %1250 = vst [vmem:[%s14603_s30 + $0x858] sm:$0xf] %v1249_v22  ;;  %1252 = vst [vmem:[%s14603_s30 + $0x85c] sm:$0xf] %v1251_v23  ;;  %v1253_v24 = vld [vmem:[%s14596_s29 + $0x10c0] sm:$0xf] }
 0x17a   : > { %v1255_v25 = vld [vmem:[%s14596_s29 + $0x10c8] sm:$0xf]  ;;  %v1257_v26 = vld [vmem:[%s14596_s29 + $0x10d0] sm:$0xf]  ;;  %1254 = vst [vmem:[%s14603_s30 + $0x860] sm:$0xf] %v1253_v24 }
 0x17b   : > { %1256 = vst [vmem:[%s14603_s30 + $0x864] sm:$0xf] %v1255_v25  ;;  %1258 = vst [vmem:[%s14603_s30 + $0x868] sm:$0xf] %v1257_v26  ;;  %v1259_v27 = vld [vmem:[%s14596_s29 + $0x10d8] sm:$0xf] }
 0x17c   : > { %v1261_v28 = vld [vmem:[%s14596_s29 + $0x10e0] sm:$0xf]  ;;  %v1263_v29 = vld [vmem:[%s14596_s29 + $0x10e8] sm:$0xf]  ;;  %1260 = vst [vmem:[%s14603_s30 + $0x86c] sm:$0xf] %v1259_v27 }
 0x17d   : > { %1262 = vst [vmem:[%s14603_s30 + $0x870] sm:$0xf] %v1261_v28  ;;  %1264 = vst [vmem:[%s14603_s30 + $0x874] sm:$0xf] %v1263_v29  ;;  %v1265_v30 = vld [vmem:[%s14596_s29 + $0x10f0] sm:$0xf] }
 0x17e   : > { %v1267_v31 = vld [vmem:[%s14596_s29 + $0x10f8] sm:$0xf]  ;;  %v1269_v32 = vld [vmem:[%s14596_s29 + $0x1100] sm:$0xf]  ;;  %1266 = vst [vmem:[%s14603_s30 + $0x878] sm:$0xf] %v1265_v30 }
 0x17f   : > { %1268 = vst [vmem:[%s14603_s30 + $0x87c] sm:$0xf] %v1267_v31  ;;  %1270 = vst [vmem:[%s14603_s30 + $0x880] sm:$0xf] %v1269_v32  ;;  %v1271_v33 = vld [vmem:[%s14596_s29 + $0x1108] sm:$0xf] }
 0x180   : > { %v1273_v34 = vld [vmem:[%s14596_s29 + $0x1110] sm:$0xf]  ;;  %v1275_v35 = vld [vmem:[%s14596_s29 + $0x1118] sm:$0xf]  ;;  %1272 = vst [vmem:[%s14603_s30 + $0x884] sm:$0xf] %v1271_v33 }
 0x181   : > { %1274 = vst [vmem:[%s14603_s30 + $0x888] sm:$0xf] %v1273_v34  ;;  %1276 = vst [vmem:[%s14603_s30 + $0x88c] sm:$0xf] %v1275_v35  ;;  %v1277_v36 = vld [vmem:[%s14596_s29 + $0x1120] sm:$0xf] }
 0x182   : > { %v1279_v37 = vld [vmem:[%s14596_s29 + $0x1128] sm:$0xf]  ;;  %v1281_v38 = vld [vmem:[%s14596_s29 + $0x1130] sm:$0xf]  ;;  %1278 = vst [vmem:[%s14603_s30 + $0x890] sm:$0xf] %v1277_v36 }
 0x183   : > { %1280 = vst [vmem:[%s14603_s30 + $0x894] sm:$0xf] %v1279_v37  ;;  %1282 = vst [vmem:[%s14603_s30 + $0x898] sm:$0xf] %v1281_v38  ;;  %v1283_v39 = vld [vmem:[%s14596_s29 + $0x1138] sm:$0xf] }
 0x184   : > { %v1285_v40 = vld [vmem:[%s14596_s29 + $0x1140] sm:$0xf]  ;;  %v1287_v41 = vld [vmem:[%s14596_s29 + $0x1148] sm:$0xf]  ;;  %1284 = vst [vmem:[%s14603_s30 + $0x89c] sm:$0xf] %v1283_v39 }
 0x185   : > { %1286 = vst [vmem:[%s14603_s30 + $0x8a0] sm:$0xf] %v1285_v40  ;;  %1288 = vst [vmem:[%s14603_s30 + $0x8a4] sm:$0xf] %v1287_v41  ;;  %v1289_v42 = vld [vmem:[%s14596_s29 + $0x1150] sm:$0xf] }
 0x186   : > { %v1291_v43 = vld [vmem:[%s14596_s29 + $0x1158] sm:$0xf]  ;;  %v1293_v44 = vld [vmem:[%s14596_s29 + $0x1160] sm:$0xf]  ;;  %1290 = vst [vmem:[%s14603_s30 + $0x8a8] sm:$0xf] %v1289_v42 }
 0x187   : > { %1292 = vst [vmem:[%s14603_s30 + $0x8ac] sm:$0xf] %v1291_v43  ;;  %1294 = vst [vmem:[%s14603_s30 + $0x8b0] sm:$0xf] %v1293_v44  ;;  %v1295_v45 = vld [vmem:[%s14596_s29 + $0x1168] sm:$0xf] }
 0x188   : > { %v1297_v46 = vld [vmem:[%s14596_s29 + $0x1170] sm:$0xf]  ;;  %v1299_v47 = vld [vmem:[%s14596_s29 + $0x1178] sm:$0xf]  ;;  %1296 = vst [vmem:[%s14603_s30 + $0x8b4] sm:$0xf] %v1295_v45 }
 0x189   : > { %1298 = vst [vmem:[%s14603_s30 + $0x8b8] sm:$0xf] %v1297_v46  ;;  %1300 = vst [vmem:[%s14603_s30 + $0x8bc] sm:$0xf] %v1299_v47  ;;  %v1301_v48 = vld [vmem:[%s14596_s29 + $0x1180] sm:$0xf] }
 0x18a   : > { %v1303_v49 = vld [vmem:[%s14596_s29 + $0x1188] sm:$0xf]  ;;  %v1305_v50 = vld [vmem:[%s14596_s29 + $0x1190] sm:$0xf]  ;;  %1302 = vst [vmem:[%s14603_s30 + $0x8c0] sm:$0xf] %v1301_v48 }
 0x18b   : > { %1304 = vst [vmem:[%s14603_s30 + $0x8c4] sm:$0xf] %v1303_v49  ;;  %1306 = vst [vmem:[%s14603_s30 + $0x8c8] sm:$0xf] %v1305_v50  ;;  %v1307_v51 = vld [vmem:[%s14596_s29 + $0x1198] sm:$0xf] }
 0x18c   : > { %v1309_v52 = vld [vmem:[%s14596_s29 + $0x11a0] sm:$0xf]  ;;  %v1311_v53 = vld [vmem:[%s14596_s29 + $0x11a8] sm:$0xf]  ;;  %1308 = vst [vmem:[%s14603_s30 + $0x8cc] sm:$0xf] %v1307_v51 }
 0x18d   : > { %1310 = vst [vmem:[%s14603_s30 + $0x8d0] sm:$0xf] %v1309_v52  ;;  %1312 = vst [vmem:[%s14603_s30 + $0x8d4] sm:$0xf] %v1311_v53  ;;  %v1313_v54 = vld [vmem:[%s14596_s29 + $0x11b0] sm:$0xf] }
 0x18e   : > { %v1315_v55 = vld [vmem:[%s14596_s29 + $0x11b8] sm:$0xf]  ;;  %v1317_v56 = vld [vmem:[%s14596_s29 + $0x11c0] sm:$0xf]  ;;  %1314 = vst [vmem:[%s14603_s30 + $0x8d8] sm:$0xf] %v1313_v54 }
 0x18f   : > { %1316 = vst [vmem:[%s14603_s30 + $0x8dc] sm:$0xf] %v1315_v55  ;;  %1318 = vst [vmem:[%s14603_s30 + $0x8e0] sm:$0xf] %v1317_v56  ;;  %v1319_v57 = vld [vmem:[%s14596_s29 + $0x11c8] sm:$0xf] }
 0x190   : > { %v1321_v58 = vld [vmem:[%s14596_s29 + $0x11d0] sm:$0xf]  ;;  %v1323_v59 = vld [vmem:[%s14596_s29 + $0x11d8] sm:$0xf]  ;;  %1320 = vst [vmem:[%s14603_s30 + $0x8e4] sm:$0xf] %v1319_v57 }
 0x191   : > { %1322 = vst [vmem:[%s14603_s30 + $0x8e8] sm:$0xf] %v1321_v58  ;;  %1324 = vst [vmem:[%s14603_s30 + $0x8ec] sm:$0xf] %v1323_v59  ;;  %v1325_v60 = vld [vmem:[%s14596_s29 + $0x11e0] sm:$0xf] }
 0x192   : > { %v1327_v61 = vld [vmem:[%s14596_s29 + $0x11e8] sm:$0xf]  ;;  %v1329_v62 = vld [vmem:[%s14596_s29 + $0x11f0] sm:$0xf]  ;;  %1326 = vst [vmem:[%s14603_s30 + $0x8f0] sm:$0xf] %v1325_v60 }
 0x193   : > { %1328 = vst [vmem:[%s14603_s30 + $0x8f4] sm:$0xf] %v1327_v61  ;;  %1330 = vst [vmem:[%s14603_s30 + $0x8f8] sm:$0xf] %v1329_v62  ;;  %v1331_v63 = vld [vmem:[%s14596_s29 + $0x11f8] sm:$0xf] }
 0x194   : > { %1332 = vst [vmem:[%s14603_s30 + $0x8fc] sm:$0xf] %v1331_v63 }
 0x195 PF: > { %p11218_p7 = scmp.ge.s32.totalorder %s14528_s17, 1  ;;  %p4852_p8 = scmp.lt.s32.totalorder %s14528_s17, 3 }
 0x197   : > { %p4853_p9 = pnand %p11218_p7, %p4852_p8 }
 0x198   : > { %s4859_s5 = sand.u32 (!%p4853_p9), 1, %s14520_s15   ;;  %v13860_v0 = vld [vmem:[%s17495_s0 + $0x144] ss:$16 sps:$4 sm:$0xff] (!%p4853_p9)   ;;  %v13863_v1 = vld [vmem:[%s17495_s0 + $0x14c] ss:$16 sps:$4 sm:$0xff] (!%p4853_p9)   ;;  %p4889_p10 = scmp.lt.s32.totalorder (!%p4853_p9), %s14571_s18, 1 }
 0x199   : > { %4856 = sbr.rel (%p4853_p9) target bundleno = 1352 (0x548), region = 84  ;;  %5474 = vmatprep.mubr.bf16.mxu0 (!%p4853_p9), %v13860_v0  ;;  %5571 = vmatprep.mubr.bf16.mxu1 (!%p4853_p9), %v13863_v1  ;;  %v13858_v32 = vld [vmem:[%s17495_s0 + $0x140] ss:$16 sps:$4 sm:$0xff] (!%p4853_p9)   ;;  %v13861_v34 = vld [vmem:[%s17495_s0 + $0x148] ss:$16 sps:$4 sm:$0xff] (!%p4853_p9)   ;;  %s11219_s7 = sshll.u32 (!%p4853_p9), %s4859_s5, 6 }
 0x19a   : > { %s13801_s6 = smul.u32 (!%p4853_p9), 2304, %s4859_s5  ;;  %v13868_v36 = vld [vmem:[%s17495_s0 + $0x164] ss:$16 sps:$4 sm:$0xff] (!%p4853_p9)   ;;  %v13870_v41 = vld [vmem:[%s17495_s0 + $0x16c] ss:$16 sps:$4 sm:$0xff] (!%p4853_p9)   ;;  %s17453_s15 = scalar_lea.vmem (!%p4853_p9), [#allocation3], %s11219_s7 }
 0x19b   : > { %v13872_v42 = vld [vmem:[%s17495_s0 + $0x160] ss:$16 sps:$4 sm:$0xff] (!%p4853_p9)   ;;  %v13873_v43 = vld [vmem:[%s17495_s0 + $0x168] ss:$16 sps:$4 sm:$0xff] (!%p4853_p9)   ;;  %v13878_v48 = vld [vmem:[%s17495_s0 + $0x184] ss:$16 sps:$4 sm:$0xff] (!%p4853_p9)  }
 0x19c   : > { %s15763_s11 = scalar_lea.vmem (!%p4853_p9), [#allocation2], %s13801_s6  ;;  %v13880_v49 = vld [vmem:[%s17495_s0 + $0x18c] ss:$16 sps:$4 sm:$0xff] (!%p4853_p9)   ;;  %v13882_v51 = vld [vmem:[%s17495_s0 + $0x180] ss:$16 sps:$4 sm:$0xff] (!%p4853_p9)  }
 0x19d   : > { %v13826_v2 = vld [vmem:[%s15763_s11 + $0x140] sm:$0xff] (!%p4853_p9)   ;;  %v13830_v6 = vld [vmem:[%s15763_s11 + $0x148] sm:$0xff] (!%p4853_p9)   ;;  %v13834_v10 = vld [vmem:[%s15763_s11 + $0x150] sm:$0xff] (!%p4853_p9)  }
 0x19e   : > { %v13827_v3 = vld [vmem:[%s15763_s11 + $0x1c0] sm:$0xff] (!%p4853_p9)   ;;  %12648 = vmatprep.subr.bf16.mxu0 (!%p4853_p9), %v13826_v2  ;;  %v13831_v7 = vld [vmem:[%s15763_s11 + $0x1c8] sm:$0xff] (!%p4853_p9)   ;;  %v13835_v11 = vld [vmem:[%s15763_s11 + $0x1d0] sm:$0xff] (!%p4853_p9)  }
 0x19f   : > { %v13828_v4 = vld [vmem:[%s15763_s11 + $0x100] sm:$0xff] (!%p4853_p9)   ;;  %12712 = vmatprep.subr.bf16.mxu1 (!%p4853_p9), %v13827_v3  ;;  %v13832_v8 = vld [vmem:[%s15763_s11 + $0x108] sm:$0xff] (!%p4853_p9)   ;;  %v13836_v12 = vld [vmem:[%s15763_s11 + $0x110] sm:$0xff] (!%p4853_p9)  }
 0x1a0   : > { %v13829_v5 = vld [vmem:[%s15763_s11 + $0x180] sm:$0xff]   ;;  %12649 = vmatpush3.bf16.msra.mxu0 %v13828_v4  ;;  %v13833_v9 = vld [vmem:[%s15763_s11 + $0x188] sm:$0xff]   ;;  %v13837_v13 = vld [vmem:[%s15763_s11 + $0x190] sm:$0xff]   ;;  %s4890_s25 = scalar_select %p4889_p10, %s14571_s18, 1 }
 0x1a1   : > { %12713 = vmatpush3.bf16.msra.mxu1 %v13829_v5  ;;  %12650 = vmatprep.subr.bf16.mxu0 %v13830_v6  ;;  %v13838_v14 = vld [vmem:[%s15763_s11 + $0x158] sm:$0xff]   ;;  %v13842_v18 = vld [vmem:[%s15763_s11 + $0x160] sm:$0xff]   ;;  %v13846_v22 = vld [vmem:[%s15763_s11 + $0x168] sm:$0xff]   ;;  %s12582_s5 = sshll.u32 (%p14586_p5), %s14571_s18, 2 }
 0x1a2   : > { %12714 = vmatprep.subr.bf16.mxu1 %v13831_v7  ;;  %v13839_v15 = vld [vmem:[%s15763_s11 + $0x1d8] sm:$0xff]   ;;  %v13843_v19 = vld [vmem:[%s15763_s11 + $0x1e0] sm:$0xff]   ;;  %v13847_v23 = vld [vmem:[%s15763_s11 + $0x1e8] sm:$0xff]   ;;  %s4891_s28 = scalar_lea.vmem %s17497_s2, %s4890_s25  ;;  %s4894_s6 = scalar_lea.vmem %s17498_s3, %s4890_s25 }
 0x1a3   : > { %v13840_v16 = vld [vmem:[%s15763_s11 + $0x118] sm:$0xff]   ;;  %v13844_v20 = vld [vmem:[%s15763_s11 + $0x120] sm:$0xff]   ;;  %v13848_v24 = vld [vmem:[%s15763_s11 + $0x128] sm:$0xff]   ;;  %s11031_s9 = scalar_lea.vmem (%p14586_p5), %s17499_s4, %s12582_s5 }
 0x1a4   : > { %12651 = vmatpush3.bf16.msra.mxu0 %v13832_v8  ;;  %v13841_v17 = vld [vmem:[%s15763_s11 + $0x198] sm:$0xff]   ;;  %v13845_v21 = vld [vmem:[%s15763_s11 + $0x1a0] sm:$0xff]   ;;  %v13849_v25 = vld [vmem:[%s15763_s11 + $0x1a8] sm:$0xff]  }
 0x1a5   : > { %12715 = vmatpush3.bf16.msra.mxu1 %v13833_v9  ;;  %12652 = vmatprep.subr.bf16.mxu0 %v13834_v10  ;;  %v13850_v26 = vld [vmem:[%s15763_s11 + $0x170] sm:$0xff]   ;;  %v13854_v30 = vld [vmem:[%s15763_s11 + $0x178] sm:$0xff]   ;;  %v13864_v37 = vld [vmem:[%s15763_s11 + $0x40] sm:$0xff]  }
 0x1a6   : > { %12716 = vmatprep.subr.bf16.mxu1 %v13835_v11  ;;  %v13851_v27 = vld [vmem:[%s15763_s11 + $0x1f0] sm:$0xff]   ;;  %v13855_v31 = vld [vmem:[%s15763_s11 + $0x1f8] sm:$0xff]   ;;  %v13865_v38 = vld [vmem:[%s15763_s11 + $0xc0] sm:$0xff]  }
 0x1a7   : > { %v13852_v28 = vld [vmem:[%s15763_s11 + $0x130] sm:$0xff]   ;;  %v13856_v33 = vld [vmem:[%s15763_s11 + $0x138] sm:$0xff]   ;;  %v13866_v39 = vld [vmem:[%s15763_s11] sm:$0xff]  }
 0x1a8   : > { %12653 = vmatpush3.bf16.msra.mxu0 %v13836_v12  ;;  %v13853_v29 = vld [vmem:[%s15763_s11 + $0x1b0] sm:$0xff]   ;;  %v13857_v35 = vld [vmem:[%s15763_s11 + $0x1b8] sm:$0xff]   ;;  %v13867_v40 = vld [vmem:[%s15763_s11 + $0x80] sm:$0xff]  }
 0x1a9   : > { %12717 = vmatpush3.bf16.msra.mxu1 %v13837_v13  ;;  %12654 = vmatprep.subr.bf16.mxu0 %v13838_v14  ;;  %v13874_v44 = vld [vmem:[%s15763_s11 + $0x48] sm:$0xff]   ;;  %v13884_v50 = vld [vmem:[%s15763_s11 + $0x50] sm:$0xff]   ;;  %v13894_v58 = vld [vmem:[%s15763_s11 + $0x58] sm:$0xff]  }
 0x1aa   : > { %12718 = vmatprep.subr.bf16.mxu1 %v13839_v15  ;;  %v13875_v45 = vld [vmem:[%s15763_s11 + $0xc8] sm:$0xff]   ;;  %v13885_v52 = vld [vmem:[%s15763_s11 + $0xd0] sm:$0xff]   ;;  %v13895_v59 = vld [vmem:[%s15763_s11 + $0xd8] sm:$0xff]  }
 0x1ab   : > { %v13876_v46 = vld [vmem:[%s15763_s11 + $0x8] sm:$0xff]   ;;  %v13886_v54 = vld [vmem:[%s15763_s11 + $0x10] sm:$0xff]   ;;  %v13896_v60 = vld [vmem:[%s15763_s11 + $0x18] sm:$0xff]  }
 0x1ac   : > { %12655 = vmatpush3.bf16.msra.mxu0 %v13840_v16  ;;  %v13877_v47 = vld [vmem:[%s15763_s11 + $0x88] sm:$0xff]   ;;  %v13887_v55 = vld [vmem:[%s15763_s11 + $0x90] sm:$0xff]   ;;  %v13897_v61 = vld [vmem:[%s15763_s11 + $0x98] sm:$0xff]  }
 0x1ad   : > { %12719 = vmatpush3.bf16.msra.mxu1 %v13841_v17  ;;  %12656 = vmatprep.subr.bf16.mxu0 %v13842_v18  ;;  %v13883_v53 = vld [vmem:[%s17495_s0 + $0x188] ss:$16 sps:$4 sm:$0xff]   ;;  %v13888_v56 = vld [vmem:[%s17495_s0 + $0x1a4] ss:$16 sps:$4 sm:$0xff]   ;;  %v13890_v57 = vld [vmem:[%s17495_s0 + $0x1ac] ss:$16 sps:$4 sm:$0xff]  }
 0x1ae   : > { %12720 = vmatprep.subr.bf16.mxu1 %v13843_v19  ;;  %v13892_v62 = vld [vmem:[%s17495_s0 + $0x1a0] ss:$16 sps:$4 sm:$0xff]   ;;  %v13893_v63 = vld [vmem:[%s17495_s0 + $0x1a8] ss:$16 sps:$4 sm:$0xff]   ;;  %v13898_v0 = vld [vmem:[%s17495_s0 + $0x1c4] ss:$16 sps:$4 sm:$0xff]  }
 0x1af   : > { %v13900_v1 = vld [vmem:[%s17495_s0 + $0x1cc] ss:$16 sps:$4 sm:$0xff]   ;;  %v13904_v2 = vld [vmem:[%s15763_s11 + $0x60] sm:$0xff]   ;;  %v13903_v7 = vld [vmem:[%s17495_s0 + $0x1c8] ss:$16 sps:$4 sm:$0xff]  }
 0x1b0   : > { %12657 = vmatpush3.bf16.msra.mxu0 %v13844_v20  ;;  %v13905_v3 = vld [vmem:[%s15763_s11 + $0xe0] sm:$0xff]   ;;  %v13910_v9 = vld [vmem:[%s17495_s0 + $0x1ec] ss:$16 sps:$4 sm:$0xff]   ;;  %v13913_v15 = vld [vmem:[%s17495_s0 + $0x1e8] ss:$16 sps:$4 sm:$0xff]  }
 0x1b1   : > { %12721 = vmatpush3.bf16.msra.mxu1 %v13845_v21  ;;  %12658 = vmatprep.subr.bf16.mxu0 %v13846_v22  ;;  %v13906_v4 = vld [vmem:[%s15763_s11 + $0x20] sm:$0xff]   ;;  %v13914_v10 = vld [vmem:[%s15763_s11 + $0x68] sm:$0xff]   ;;  %v13924_v18 = vld [vmem:[%s15763_s11 + $0x70] sm:$0xff]  }
 0x1b2   : > { %12722 = vmatprep.subr.bf16.mxu1 %v13847_v23  ;;  %v13907_v5 = vld [vmem:[%s15763_s11 + $0xa0] sm:$0xff]   ;;  %v13915_v11 = vld [vmem:[%s15763_s11 + $0xe8] sm:$0xff]   ;;  %v13925_v19 = vld [vmem:[%s15763_s11 + $0xf0] sm:$0xff]  }
 0x1b3   : > { %v13902_v6 = vld [vmem:[%s17495_s0 + $0x1c0] ss:$16 sps:$4 sm:$0xff]   ;;  %v13908_v8 = vld [vmem:[%s17495_s0 + $0x1e4] ss:$16 sps:$4 sm:$0xff]   ;;  %v13916_v12 = vld [vmem:[%s15763_s11 + $0x28] sm:$0xff]  }
 0x1b4   : > { %12659 = vmatpush3.bf16.msra.mxu0 %v13848_v24  ;;  %v13917_v13 = vld [vmem:[%s15763_s11 + $0xa8] sm:$0xff]   ;;  %v13912_v14 = vld [vmem:[%s17495_s0 + $0x1e0] ss:$16 sps:$4 sm:$0xff]   ;;  %v13918_v16 = vld [vmem:[%s17495_s0 + $0x204] ss:$16 sps:$4 sm:$0xff]  }
 0x1b5   : > { %12723 = vmatpush3.bf16.msra.mxu1 %v13849_v25  ;;  %12660 = vmatprep.subr.bf16.mxu0 %v13850_v26  ;;  %v13920_v17 = vld [vmem:[%s17495_s0 + $0x20c] ss:$16 sps:$4 sm:$0xff]   ;;  %v13926_v20 = vld [vmem:[%s15763_s11 + $0x30] sm:$0xff]   ;;  %v13923_v23 = vld [vmem:[%s17495_s0 + $0x208] ss:$16 sps:$4 sm:$0xff]  }
 0x1b6   : > { %12724 = vmatprep.subr.bf16.mxu1 %v13851_v27  ;;  %v13927_v21 = vld [vmem:[%s15763_s11 + $0xb0] sm:$0xff]   ;;  %v13934_v25 = vld [vmem:[%s15763_s11 + $0x78] sm:$0xff]  }
 0x1b7   : > { %v13922_v22 = vld [vmem:[%s17495_s0 + $0x200] ss:$16 sps:$4 sm:$0xff]   ;;  %v13928_v24 = vld [vmem:[%s17495_s0 + $0x224] ss:$16 sps:$4 sm:$0xff]   ;;  %v13930_v26 = vld [vmem:[%s17495_s0 + $0x22c] ss:$16 sps:$4 sm:$0xff]  }
 0x1b8   : > { %12661 = vmatpush3.bf16.msra.mxu0 %v13852_v28  ;;  %v13935_v27 = vld [vmem:[%s15763_s11 + $0xf8] sm:$0xff]  }
 0x1b9   : > { %12725 = vmatpush3.bf16.msra.mxu1 %v13853_v29  ;;  %12662 = vmatprep.subr.bf16.mxu0 %v13854_v30  ;;  %v13936_v28 = vld [vmem:[%s15763_s11 + $0x38] sm:$0xff]   ;;  %v13944_v30 = vld [vmem:[%s15763_s11 + $0x240] sm:$0xff]  }
 0x1ba   : > { %12726 = vmatprep.subr.bf16.mxu1 %v13855_v31  ;;  %v13937_v29 = vld [vmem:[%s15763_s11 + $0xb8] sm:$0xff]   ;;  %v13945_v31 = vld [vmem:[%s15763_s11 + $0x2c0] sm:$0xff]  }
 0x1bc   : > { %12663 = vmatpush3.bf16.msra.mxu0 %v13856_v33  ;;  %v13933_v33 = vld [vmem:[%s17495_s0 + $0x228] ss:$16 sps:$4 sm:$0xff]  }
 0x1bd   : > { %12727 = vmatpush3.bf16.msra.mxu1 %v13857_v35  ;;  %12776 = vmatprep.subr.bf16.mxu0 %v13864_v37  ;;  %v13943_v35 = vld [vmem:[%s17495_s0 + $0xc] ss:$16 sps:$4 sm:$0xff]   ;;  %v13941_v37 = vld [vmem:[%s17495_s0 + $0x8] ss:$16 sps:$4 sm:$0xff]  }
 0x1be   : > { %12840 = vmatprep.subr.bf16.mxu1 %v13865_v38  ;;  %v13946_v38 = vld [vmem:[%s15763_s11 + $0x200] sm:$0xff]  }
 0x1bf   : > { %5475 = vmatmul.mubr.bf16.vlgmr.msra.gmra.mrb[0].mxu0 %v13858_v32  ;;  %v13932_v32 = vld [vmem:[%s17495_s0 + $0x220] ss:$16 sps:$4 sm:$0xff]  }
 0x1c0   : > { %5572 = vmatmul.mubr.bf16.vlgmr.msra.gmra.mrb[0].mxu1 %v13861_v34  ;;  %12777 = vmatpush3.bf16.msra.mxu0 %v13866_v39  ;;  %v13940_v34 = vld [vmem:[%s17495_s0 + $0x4] ss:$16 sps:$4 sm:$0xff]  }
 0x1c1   : > { %12841 = vmatpush3.bf16.msra.mxu1 %v13867_v40  ;;  %5482 = vmatprep.mubr.bf16.mxu0 %v13868_v36  ;;  %v13938_v36 = vld [vmem:[%s17495_s0] ss:$16 sps:$4 sm:$0xff]   ;;  %v15938_v40 = vld [vmem:[%s17495_s0 + $0x24] ss:$16 sps:$4 sm:$0xff]  }
 0x1c2   : > { %5579 = vmatprep.mubr.bf16.mxu1 %v13870_v41  ;;  %12778 = vmatprep.subr.bf16.mxu0 %v13874_v44  ;;  %v13947_v39 = vld [vmem:[%s15763_s11 + $0x280] sm:$0xff]   ;;  %v15943_v41 = vld [vmem:[%s17495_s0 + $0x2c] ss:$16 sps:$4 sm:$0xff]  }
 0x1c3   : > { %12842 = vmatprep.subr.bf16.mxu1 %v13875_v45  ;;  %v13956_v44 = vld [vmem:[%s15763_s11 + $0x208] sm:$0xff]  }
 0x1c4   : > { %12779 = vmatpush3.bf16.msra.mxu0 %v13876_v46  ;;  %v13957_v45 = vld [vmem:[%s15763_s11 + $0x288] sm:$0xff]   ;;  %v15953_v46 = vld [vmem:[%s17495_s0 + $0x20] ss:$16 sps:$4 sm:$0xff]  }
 0x1c5   : > { %12843 = vmatpush3.bf16.msra.mxu1 %v13877_v47  ;;  %12780 = vmatprep.subr.bf16.mxu0 %v13884_v50  ;;  %v13964_v47 = vld [vmem:[%s15763_s11 + $0x250] sm:$0xff]  }
 0x1c6   : > { %12844 = vmatprep.subr.bf16.mxu1 %v13885_v52  ;;  %v15966_v50 = vld [vmem:[%s17495_s0 + $0x44] ss:$16 sps:$4 sm:$0xff]  }
 0x1c7   : > { %5483 = vmatmul.mubr.bf16.gmra.mrb[4].mxu0 %v13872_v42  ;;  %v13954_v42 = vld [vmem:[%s15763_s11 + $0x248] sm:$0xff]   ;;  %v13966_v52 = vld [vmem:[%s15763_s11 + $0x210] sm:$0xff]  }
 0x1c8   : > { %5580 = vmatmul.mubr.bf16.gmra.mrb[4].mxu1 %v13873_v43  ;;  %5490 = vmatprep.mubr.bf16.mxu0 %v13878_v48  ;;  %v13955_v43 = vld [vmem:[%s15763_s11 + $0x2c8] sm:$0xff]   ;;  %v13965_v48 = vld [vmem:[%s15763_s11 + $0x2d0] sm:$0xff]  }
 0x1c9   : > { %5587 = vmatprep.mubr.bf16.mxu1 %v13880_v49  ;;  %12781 = vmatpush3.bf16.msra.mxu0 %v13886_v54  ;;  %v15961_v49 = vld [vmem:[%s17495_s0 + $0x28] ss:$16 sps:$4 sm:$0xff]  }
 0x1ca   : > { %12845 = vmatpush3.bf16.msra.mxu1 %v13887_v55  ;;  %12782 = vmatprep.subr.bf16.mxu0 %v13894_v58  ;;  %v13974_v54 = vld [vmem:[%s15763_s11 + $0x258] sm:$0xff]  }
 0x1cb   : > { %12846 = vmatprep.subr.bf16.mxu1 %v13895_v59  ;;  %v13975_v55 = vld [vmem:[%s15763_s11 + $0x2d8] sm:$0xff]   ;;  %v15995_v59 = vld [vmem:[%s17495_s0 + $0x64] ss:$16 sps:$4 sm:$0xff]  }
 0x1cc   : > { %v15990_v58 = vld [vmem:[%s17495_s0 + $0x48] ss:$16 sps:$4 sm:$0xff]  }
 0x1cd   : > { %12783 = vmatpush3.bf16.msra.mxu0 %v13896_v60  ;;  %v13977_v60 = vld [vmem:[%s15763_s11 + $0x298] sm:$0xff]  }
 0x1ce   : > { %12847 = vmatpush3.bf16.msra.mxu1 %v13897_v61  ;;  %12784 = vmatprep.subr.bf16.mxu0 %v13904_v2  ;;  %v16001_v61 = vld [vmem:[%s17495_s0 + $0x6c] ss:$16 sps:$4 sm:$0xff]   ;;  %v16014_v2 = vld [vmem:[%s17495_s0 + $0x60] ss:$16 sps:$4 sm:$0xff]  }
 0x1cf   : > { %5491 = vmatmul.mubr.bf16.gmra.mrb[8].mxu0 %v13882_v51  ;;  %12848 = vmatprep.subr.bf16.mxu1 %v13905_v3  ;;  %v15971_v51 = vld [vmem:[%s17495_s0 + $0x4c] ss:$16 sps:$4 sm:$0xff]   ;;  %v16019_v3 = vld [vmem:[%s17495_s0 + $0x68] ss:$16 sps:$4 sm:$0xff]  }
 0x1d0   : > { %5588 = vmatmul.mubr.bf16.gmra.mrb[8].mxu1 %v13883_v53  ;;  %5498 = vmatprep.mubr.bf16.mxu0 %v13888_v56  ;;  %v13967_v53 = vld [vmem:[%s15763_s11 + $0x290] sm:$0xff]  }
 0x1d1   : > { %5595 = vmatprep.mubr.bf16.mxu1 %v13890_v57  ;;  %12785 = vmatpush3.bf16.msra.mxu0 %v13906_v4  ;;  %v15984_v56 = vld [vmem:[%s17495_s0 + $0x40] ss:$16 sps:$4 sm:$0xff]   ;;  %v13976_v57 = vld [vmem:[%s15763_s11 + $0x218] sm:$0xff]   ;;  %v16024_v4 = vld [vmem:[%s17495_s0 + $0x84] ss:$16 sps:$4 sm:$0xff]  }
 0x1d2   : > { %12849 = vmatpush3.bf16.msra.mxu1 %v13907_v5  ;;  %12786 = vmatprep.subr.bf16.mxu0 %v13914_v10  ;;  %v13994_v5 = vld [vmem:[%s15763_s11 + $0x268] sm:$0xff]   ;;  %v14004_v10 = vld [vmem:[%s15763_s11 + $0x270] sm:$0xff]  }
 0x1d3   : > { %12850 = vmatprep.subr.bf16.mxu1 %v13915_v11  ;;  %v16043_v11 = vld [vmem:[%s17495_s0 + $0x80] ss:$16 sps:$4 sm:$0xff]  }
 0x1d5   : > { %12787 = vmatpush3.bf16.msra.mxu0 %v13916_v12  ;;  %v14005_v12 = vld [vmem:[%s15763_s11 + $0x2f0] sm:$0xff]  }
 0x1d6   : > { %12851 = vmatpush3.bf16.msra.mxu1 %v13917_v13  ;;  %12788 = vmatprep.subr.bf16.mxu0 %v13924_v18  ;;  %v16049_v13 = vld [vmem:[%s17495_s0 + $0x88] ss:$16 sps:$4 sm:$0xff]  }
 0x1d7   : > { %5499 = vmatmul.mubr.bf16.gmra.mrb[12].mxu0 %v13892_v62  ;;  %12852 = vmatprep.subr.bf16.mxu1 %v13925_v19  ;;  %v13984_v62 = vld [vmem:[%s15763_s11 + $0x260] sm:$0xff]   ;;  %v14014_v18 = vld [vmem:[%s15763_s11 + $0x278] sm:$0xff]  }
 0x1d8   : > { %5596 = vmatmul.mubr.bf16.gmra.mrb[12].mxu1 %v13893_v63  ;;  %5506 = vmatprep.mubr.bf16.mxu0 %v13898_v0  ;;  %v13985_v63 = vld [vmem:[%s15763_s11 + $0x2e0] sm:$0xff]   ;;  %v14015_v19 = vld [vmem:[%s15763_s11 + $0x2f8] sm:$0xff]  }
 0x1d9   : > { %5603 = vmatprep.mubr.bf16.mxu1 %v13900_v1  ;;  %12789 = vmatpush3.bf16.msra.mxu0 %v13926_v20  ;;  %v13986_v0 = vld [vmem:[%s15763_s11 + $0x220] sm:$0xff]   ;;  %v14016_v20 = vld [vmem:[%s15763_s11 + $0x238] sm:$0xff]  }
 0x1da   : > { %12853 = vmatpush3.bf16.msra.mxu1 %v13927_v21  ;;  %12790 = vmatprep.subr.bf16.mxu0 %v13934_v25  ;;  %v13987_v1 = vld [vmem:[%s15763_s11 + $0x2a0] sm:$0xff]   ;;  %v14017_v21 = vld [vmem:[%s15763_s11 + $0x2b8] sm:$0xff]  }
 0x1db   : > { %12854 = vmatprep.subr.bf16.mxu1 %v13935_v27  ;;  %v16089_v25 = vld [vmem:[%s17495_s0 + $0xcc] ss:$16 sps:$4 sm:$0xff]   ;;  %v14025_v27 = vld [vmem:[%s15763_s11 + $0x3c0] sm:$0xff]  }
 0x1dd   : > { %12791 = vmatpush3.bf16.msra.mxu0 %v13936_v28  ;;  %v16100_v28 = vld [vmem:[%s17495_s0 + $0xc0] ss:$16 sps:$4 sm:$0xff]  }
 0x1de   : > { %12855 = vmatpush3.bf16.msra.mxu1 %v13937_v29  ;;  %12904 = vmatprep.subr.bf16.mxu0 %v13944_v30  ;;  %v16105_v29 = vld [vmem:[%s17495_s0 + $0xc8] ss:$16 sps:$4 sm:$0xff]   ;;  %v16110_v30 = vld [vmem:[%s17495_s0 + $0xe4] ss:$16 sps:$4 sm:$0xff]  }
 0x1df   : > { %5507 = vmatmul.mubr.bf16.gmra.mrb[16].mxu0 %v13902_v6  ;;  %12968 = vmatprep.subr.bf16.mxu1 %v13945_v31  ;;  %v16030_v6 = vld [vmem:[%s17495_s0 + $0x8c] ss:$16 sps:$4 sm:$0xff]  }
 0x1e0   : > { %5604 = vmatmul.mubr.bf16.gmra.mrb[16].mxu1 %v13903_v7  ;;  %5514 = vmatprep.mubr.bf16.mxu0 %v13908_v8  ;;  %v13995_v7 = vld [vmem:[%s15763_s11 + $0x2e8] sm:$0xff]  }
 0x1e1   : > { %5611 = vmatprep.mubr.bf16.mxu1 %v13910_v9  ;;  %v13996_v8 = vld [vmem:[%s15763_s11 + $0x228] sm:$0xff]  }
 0x1e2   : > { %v13997_v9 = vld [vmem:[%s15763_s11 + $0x2a8] sm:$0xff]  }
 0x1e3   : > { %v16115_v31 = vld [vmem:[%s17495_s0 + $0xec] ss:$16 sps:$4 sm:$0xff]  }
 0x1e7   : > { %5515 = vmatmul.mubr.bf16.gmra.mrb[20].mxu0 %v13912_v14  ;;  %v14006_v14 = vld [vmem:[%s15763_s11 + $0x230] sm:$0xff]  }
 0x1e8   : > { %5612 = vmatmul.mubr.bf16.gmra.mrb[20].mxu1 %v13913_v15  ;;  %5522 = vmatprep.mubr.bf16.mxu0 %v13918_v16  ;;  %v14007_v15 = vld [vmem:[%s15763_s11 + $0x2b0] sm:$0xff]  }
 0x1e9   : > { %5619 = vmatprep.mubr.bf16.mxu1 %v13920_v17  ;;  %v16056_v16 = vld [vmem:[%s17495_s0 + $0xa4] ss:$16 sps:$4 sm:$0xff]   ;;  %v16061_v17 = vld [vmem:[%s17495_s0 + $0xac] ss:$16 sps:$4 sm:$0xff]  }
 0x1ef   : > { %5523 = vmatmul.mubr.bf16.gmra.mrb[24].mxu0 %v13922_v22  ;;  %v16074_v22 = vld [vmem:[%s17495_s0 + $0xa0] ss:$16 sps:$4 sm:$0xff]  }
 0x1f0   : > { %5620 = vmatmul.mubr.bf16.gmra.mrb[24].mxu1 %v13923_v23  ;;  %5530 = vmatprep.mubr.bf16.mxu0 %v13928_v24  ;;  %v16079_v23 = vld [vmem:[%s17495_s0 + $0xa8] ss:$16 sps:$4 sm:$0xff]   ;;  %v16084_v24 = vld [vmem:[%s17495_s0 + $0xc4] ss:$16 sps:$4 sm:$0xff]  }
 0x1f1   : > { %5627 = vmatprep.mubr.bf16.mxu1 %v13930_v26  ;;  %v14024_v26 = vld [vmem:[%s15763_s11 + $0x340] sm:$0xff]  }
 0x1f7   : > { %5531 = vmatmul.mubr.bf16.gmra.mrb[28].mxu0 %v13932_v32  ;;  %v16124_v32 = vld [vmem:[%s17495_s0 + $0xe0] ss:$16 sps:$4 sm:$0xff]  }
 0x1f8   : > { %5628 = vmatmul.mubr.bf16.gmra.mrb[28].mxu1 %v13933_v33  ;;  %6020 = vmatprep.mubr.bf16.mxu0 %v13940_v34  ;;  %v16129_v33 = vld [vmem:[%s17495_s0 + $0xe8] ss:$16 sps:$4 sm:$0xff]   ;;  %v14020_v34 = vld [vmem:[%s17495_s0 + $0x284] ss:$16 sps:$4 sm:$0xff]  }
 0x1f9   : > { %6117 = vmatprep.mubr.bf16.mxu1 %v13943_v35  ;;  %v14023_v35 = vld [vmem:[%s17495_s0 + $0x28c] ss:$16 sps:$4 sm:$0xff]  }
 0x1ff   : > { %6021 = vmatmul.mubr.bf16.vlgmr.msra.gmra.mrb[32].mxu0 %v13938_v36  ;;  %v14018_v36 = vld [vmem:[%s17495_s0 + $0x280] ss:$16 sps:$4 sm:$0xff]  }
 0x200   : > { %6118 = vmatmul.mubr.bf16.vlgmr.msra.gmra.mrb[32].mxu1 %v13941_v37  ;;  %12905 = vmatpush3.bf16.msra.mxu0 %v13946_v38  ;;  %v14021_v37 = vld [vmem:[%s17495_s0 + $0x288] ss:$16 sps:$4 sm:$0xff]   ;;  %v14026_v38 = vld [vmem:[%s15763_s11 + $0x300] sm:$0xff]  }
 0x201   : > { %12969 = vmatpush3.bf16.msra.mxu1 %v13947_v39  ;;  %6028 = vmatprep.mubr.bf16.mxu0 %v15938_v40  ;;  %v14027_v39 = vld [vmem:[%s15763_s11 + $0x380] sm:$0xff]  }
 0x202   : > { %6125 = vmatprep.mubr.bf16.mxu1 %v15943_v41  ;;  %12906 = vmatprep.subr.bf16.mxu0 %v13954_v42  ;;  %v14028_v42 = vld [vmem:[%s17495_s0 + $0x2a4] ss:$16 sps:$4 sm:$0xff]  }
 0x203   : > { %12970 = vmatprep.subr.bf16.mxu1 %v13955_v43  ;;  %v14030_v43 = vld [vmem:[%s17495_s0 + $0x2ac] ss:$16 sps:$4 sm:$0xff]  }
 0x204   : > { %12907 = vmatpush3.bf16.msra.mxu0 %v13956_v44  ;;  %v14034_v44 = vld [vmem:[%s15763_s11 + $0x348] sm:$0xff]  }
 0x205   : > { %12971 = vmatpush3.bf16.msra.mxu1 %v13957_v45  ;;  %12908 = vmatprep.subr.bf16.mxu0 %v13964_v47  ;;  %v14035_v45 = vld [vmem:[%s15763_s11 + $0x3c8] sm:$0xff]  }
 0x206   : > { %12972 = vmatprep.subr.bf16.mxu1 %v13965_v48  ;;  %v14036_v47 = vld [vmem:[%s15763_s11 + $0x308] sm:$0xff]  }
 0x207   : > { %6029 = vmatmul.mubr.bf16.gmra.mrb[36].mxu0 %v15953_v46  ;;  %v14037_v48 = vld [vmem:[%s15763_s11 + $0x388] sm:$0xff]  }
 0x208   : > { %6126 = vmatmul.mubr.bf16.gmra.mrb[36].mxu1 %v15961_v49  ;;  %6036 = vmatprep.mubr.bf16.mxu0 %v15966_v50 }
 0x209   : > { %6133 = vmatprep.mubr.bf16.mxu1 %v15971_v51  ;;  %12909 = vmatpush3.bf16.msra.mxu0 %v13966_v52  ;;  %v14032_v52 = vld [vmem:[%s17495_s0 + $0x2a0] ss:$16 sps:$4 sm:$0xff]  }
 0x20a   : > { %12973 = vmatpush3.bf16.msra.mxu1 %v13967_v53  ;;  %12910 = vmatprep.subr.bf16.mxu0 %v13974_v54  ;;  %v14044_v53 = vld [vmem:[%s15763_s11 + $0x350] sm:$0xff]   ;;  %v14033_v54 = vld [vmem:[%s17495_s0 + $0x2a8] ss:$16 sps:$4 sm:$0xff]  }
 0x20b   : > { %12974 = vmatprep.subr.bf16.mxu1 %v13975_v55  ;;  %v14045_v55 = vld [vmem:[%s15763_s11 + $0x3d0] sm:$0xff]  }
 0x20d   : > { %12911 = vmatpush3.bf16.msra.mxu0 %v13976_v57  ;;  %v14038_v57 = vld [vmem:[%s17495_s0 + $0x2c4] ss:$16 sps:$4 sm:$0xff]  }
 0x20e   : > { %12975 = vmatpush3.bf16.msra.mxu1 %v13977_v60  ;;  %12912 = vmatprep.subr.bf16.mxu0 %v13984_v62  ;;  %v14040_v60 = vld [vmem:[%s17495_s0 + $0x2cc] ss:$16 sps:$4 sm:$0xff]   ;;  %v14046_v62 = vld [vmem:[%s15763_s11 + $0x310] sm:$0xff]  }
 0x20f   : > { %6037 = vmatmul.mubr.bf16.gmra.mrb[40].mxu0 %v15984_v56  ;;  %12976 = vmatprep.subr.bf16.mxu1 %v13985_v63  ;;  %v14047_v63 = vld [vmem:[%s15763_s11 + $0x390] sm:$0xff]  }
 0x210   : > { %6134 = vmatmul.mubr.bf16.gmra.mrb[40].mxu1 %v15990_v58  ;;  %6044 = vmatprep.mubr.bf16.mxu0 %v15995_v59 }
 0x211   : > { %6141 = vmatprep.mubr.bf16.mxu1 %v16001_v61  ;;  %12913 = vmatpush3.bf16.msra.mxu0 %v13986_v0  ;;  %v14054_v0 = vld [vmem:[%s15763_s11 + $0x358] sm:$0xff]  }
 0x212   : > { %12977 = vmatpush3.bf16.msra.mxu1 %v13987_v1  ;;  %12914 = vmatprep.subr.bf16.mxu0 %v13994_v5  ;;  %v14055_v1 = vld [vmem:[%s15763_s11 + $0x3d8] sm:$0xff]  }
 0x213   : > { %12978 = vmatprep.subr.bf16.mxu1 %v13995_v7  ;;  %v14056_v5 = vld [vmem:[%s15763_s11 + $0x318] sm:$0xff]   ;;  %v14042_v7 = vld [vmem:[%s17495_s0 + $0x2c0] ss:$16 sps:$4 sm:$0xff]  }
 0x215   : > { %12915 = vmatpush3.bf16.msra.mxu0 %v13996_v8  ;;  %v14057_v8 = vld [vmem:[%s15763_s11 + $0x398] sm:$0xff]  }
 0x216   : > { %12979 = vmatpush3.bf16.msra.mxu1 %v13997_v9  ;;  %12916 = vmatprep.subr.bf16.mxu0 %v14004_v10  ;;  %v14043_v9 = vld [vmem:[%s17495_s0 + $0x2c8] ss:$16 sps:$4 sm:$0xff]   ;;  %v14048_v10 = vld [vmem:[%s17495_s0 + $0x2e4] ss:$16 sps:$4 sm:$0xff]  }
 0x217   : > { %6045 = vmatmul.mubr.bf16.gmra.mrb[44].mxu0 %v16014_v2  ;;  %12980 = vmatprep.subr.bf16.mxu1 %v14005_v12  ;;  %v14064_v12 = vld [vmem:[%s15763_s11 + $0x360] sm:$0xff]  }
 0x218   : > { %6142 = vmatmul.mubr.bf16.gmra.mrb[44].mxu1 %v16019_v3  ;;  %6052 = vmatprep.mubr.bf16.mxu0 %v16024_v4 }
 0x219   : > { %6149 = vmatprep.mubr.bf16.mxu1 %v16030_v6  ;;  %12917 = vmatpush3.bf16.msra.mxu0 %v14006_v14  ;;  %v14065_v14 = vld [vmem:[%s15763_s11 + $0x3e0] sm:$0xff]  }
 0x21a   : > { %12981 = vmatpush3.bf16.msra.mxu1 %v14007_v15  ;;  %12918 = vmatprep.subr.bf16.mxu0 %v14014_v18  ;;  %v14050_v15 = vld [vmem:[%s17495_s0 + $0x2ec] ss:$16 sps:$4 sm:$0xff]   ;;  %v14066_v18 = vld [vmem:[%s15763_s11 + $0x320] sm:$0xff]  }
 0x21b   : > { %12982 = vmatprep.subr.bf16.mxu1 %v14015_v19  ;;  %v14067_v19 = vld [vmem:[%s15763_s11 + $0x3a0] sm:$0xff]  }
 0x21d   : > { %12919 = vmatpush3.bf16.msra.mxu0 %v14016_v20  ;;  %v14074_v20 = vld [vmem:[%s15763_s11 + $0x368] sm:$0xff]  }
 0x21e   : > { %12983 = vmatpush3.bf16.msra.mxu1 %v14017_v21  ;;  %13032 = vmatprep.subr.bf16.mxu0 %v14024_v26  ;;  %v14075_v21 = vld [vmem:[%s15763_s11 + $0x3e8] sm:$0xff]  }
 0x21f   : > { %6053 = vmatmul.mubr.bf16.gmra.mrb[48].mxu0 %v16043_v11  ;;  %13096 = vmatprep.subr.bf16.mxu1 %v14025_v27  ;;  %v14076_v26 = vld [vmem:[%s15763_s11 + $0x328] sm:$0xff]   ;;  %v14052_v27 = vld [vmem:[%s17495_s0 + $0x2e0] ss:$16 sps:$4 sm:$0xff]  }
 0x220   : > { %6150 = vmatmul.mubr.bf16.gmra.mrb[48].mxu1 %v16049_v13  ;;  %6060 = vmatprep.mubr.bf16.mxu0 %v16056_v16 }
 0x221   : > { %6157 = vmatprep.mubr.bf16.mxu1 %v16061_v17 }
 0x227   : > { %6061 = vmatmul.mubr.bf16.gmra.mrb[52].mxu0 %v16074_v22 }
 0x228   : > { %6158 = vmatmul.mubr.bf16.gmra.mrb[52].mxu1 %v16079_v23  ;;  %6068 = vmatprep.mubr.bf16.mxu0 %v16084_v24 }
 0x229   : > { %6165 = vmatprep.mubr.bf16.mxu1 %v16089_v25 }
 0x22f   : > { %6069 = vmatmul.mubr.bf16.gmra.mrb[56].mxu0 %v16100_v28 }
 0x230   : > { %6166 = vmatmul.mubr.bf16.gmra.mrb[56].mxu1 %v16105_v29  ;;  %6076 = vmatprep.mubr.bf16.mxu0 %v16110_v30 }
 0x231   : > { %6173 = vmatprep.mubr.bf16.mxu1 %v16115_v31 }
 0x237   : > { %6077 = vmatmul.mubr.bf16.gmra.mrb[60].mxu0 %v16124_v32 }
 0x238   : > { %6174 = vmatmul.mubr.bf16.gmra.mrb[60].mxu1 %v16129_v33  ;;  %6664 = vmatprep.mubr.bf16.mxu0 %v14020_v34  ;;  %v14077_v34 = vld [vmem:[%s15763_s11 + $0x3a8] sm:$0xff]  }
 0x239   : > { %6761 = vmatprep.mubr.bf16.mxu1 %v14023_v35  ;;  %v14053_v35 = vld [vmem:[%s17495_s0 + $0x2e8] ss:$16 sps:$4 sm:$0xff]  }
 0x23f   : > { %6665 = vmatmul.mubr.bf16.vlgmr.msra.gmra.mrb[64].mxu0 %v14018_v36  ;;  %v14084_v36 = vld [vmem:[%s15763_s11 + $0x370] sm:$0xff]  }
 0x240   : > { %6762 = vmatmul.mubr.bf16.vlgmr.msra.gmra.mrb[64].mxu1 %v14021_v37  ;;  %13033 = vmatpush3.bf16.msra.mxu0 %v14026_v38  ;;  %v14058_v37 = vld [vmem:[%s17495_s0 + $0x304] ss:$16 sps:$4 sm:$0xff]   ;;  %v14060_v38 = vld [vmem:[%s17495_s0 + $0x30c] ss:$16 sps:$4 sm:$0xff]  }
 0x241   : > { %13097 = vmatpush3.bf16.msra.mxu1 %v14027_v39  ;;  %6672 = vmatprep.mubr.bf16.mxu0 %v14028_v42  ;;  %v14085_v39 = vld [vmem:[%s15763_s11 + $0x3f0] sm:$0xff]  }
 0x242   : > { %6769 = vmatprep.mubr.bf16.mxu1 %v14030_v43  ;;  %13034 = vmatprep.subr.bf16.mxu0 %v14034_v44  ;;  %v14086_v42 = vld [vmem:[%s15763_s11 + $0x330] sm:$0xff]   ;;  %v14094_v44 = vld [vmem:[%s15763_s11 + $0x378] sm:$0xff]  }
 0x243   : > { %13098 = vmatprep.subr.bf16.mxu1 %v14035_v45  ;;  %v14087_v43 = vld [vmem:[%s15763_s11 + $0x3b0] sm:$0xff]   ;;  %v14095_v45 = vld [vmem:[%s15763_s11 + $0x3f8] sm:$0xff]  }
 0x244   : > { %13035 = vmatpush3.bf16.msra.mxu0 %v14036_v47  ;;  %v14096_v47 = vld [vmem:[%s15763_s11 + $0x338] sm:$0xff]  }
 0x245   : > { %13099 = vmatpush3.bf16.msra.mxu1 %v14037_v48  ;;  %13036 = vmatprep.subr.bf16.mxu0 %v14044_v53  ;;  %v14062_v48 = vld [vmem:[%s17495_s0 + $0x300] ss:$16 sps:$4 sm:$0xff]   ;;  %v14063_v53 = vld [vmem:[%s17495_s0 + $0x308] ss:$16 sps:$4 sm:$0xff]  }
 0x246   : > { %13100 = vmatprep.subr.bf16.mxu1 %v14045_v55  ;;  %v14099_v55 = vld [vmem:[%s15763_s11 + $0x4c0] sm:$0xff]  }
 0x247   : > { %6673 = vmatmul.mubr.bf16.gmra.mrb[68].mxu0 %v14032_v52  ;;  %v14097_v52 = vld [vmem:[%s15763_s11 + $0x3b8] sm:$0xff]  }
 0x248   : > { %6770 = vmatmul.mubr.bf16.gmra.mrb[68].mxu1 %v14033_v54  ;;  %6680 = vmatprep.mubr.bf16.mxu0 %v14038_v57  ;;  %v14098_v54 = vld [vmem:[%s15763_s11 + $0x440] sm:$0xff]  }
 0x249   : > { %6777 = vmatprep.mubr.bf16.mxu1 %v14040_v60  ;;  %13037 = vmatpush3.bf16.msra.mxu0 %v14046_v62  ;;  %v14068_v57 = vld [vmem:[%s17495_s0 + $0x324] ss:$16 sps:$4 sm:$0xff]   ;;  %v14070_v60 = vld [vmem:[%s17495_s0 + $0x32c] ss:$16 sps:$4 sm:$0xff]   ;;  %v14072_v62 = vld [vmem:[%s17495_s0 + $0x320] ss:$16 sps:$4 sm:$0xff]  }
 0x24a   : > { %13101 = vmatpush3.bf16.msra.mxu1 %v14047_v63  ;;  %13038 = vmatprep.subr.bf16.mxu0 %v14054_v0  ;;  %v14073_v63 = vld [vmem:[%s17495_s0 + $0x328] ss:$16 sps:$4 sm:$0xff]   ;;  %v14078_v0 = vld [vmem:[%s17495_s0 + $0x344] ss:$16 sps:$4 sm:$0xff]  }
 0x24b   : > { %13102 = vmatprep.subr.bf16.mxu1 %v14055_v1  ;;  %v14080_v1 = vld [vmem:[%s17495_s0 + $0x34c] ss:$16 sps:$4 sm:$0xff]  }
 0x24d   : > { %13039 = vmatpush3.bf16.msra.mxu0 %v14056_v5  ;;  %v14082_v5 = vld [vmem:[%s17495_s0 + $0x340] ss:$16 sps:$4 sm:$0xff]  }
 0x24e   : > { %13103 = vmatpush3.bf16.msra.mxu1 %v14057_v8  ;;  %13040 = vmatprep.subr.bf16.mxu0 %v14064_v12  ;;  %v14088_v8 = vld [vmem:[%s17495_s0 + $0x364] ss:$16 sps:$4 sm:$0xff]   ;;  %v14093_v12 = vld [vmem:[%s17495_s0 + $0x368] ss:$16 sps:$4 sm:$0xff]  }
 0x24f   : > { %6681 = vmatmul.mubr.bf16.gmra.mrb[72].mxu0 %v14042_v7  ;;  %13104 = vmatprep.subr.bf16.mxu1 %v14065_v14  ;;  %v14083_v7 = vld [vmem:[%s17495_s0 + $0x348] ss:$16 sps:$4 sm:$0xff]   ;;  %v14100_v14 = vld [vmem:[%s15763_s11 + $0x400] sm:$0xff]  }
 0x250   : > { %6778 = vmatmul.mubr.bf16.gmra.mrb[72].mxu1 %v14043_v9  ;;  %6688 = vmatprep.mubr.bf16.mxu0 %v14048_v10  ;;  %v14090_v9 = vld [vmem:[%s17495_s0 + $0x36c] ss:$16 sps:$4 sm:$0xff]   ;;  %v14092_v10 = vld [vmem:[%s17495_s0 + $0x360] ss:$16 sps:$4 sm:$0xff]  }
 0x251   : > { %6785 = vmatprep.mubr.bf16.mxu1 %v14050_v15  ;;  %13041 = vmatpush3.bf16.msra.mxu0 %v14066_v18  ;;  %v14101_v15 = vld [vmem:[%s15763_s11 + $0x480] sm:$0xff]   ;;  %v14102_v18 = vld [vmem:[%s15763_s11 + $0x448] sm:$0xff]  }
 0x252   : > { %13105 = vmatpush3.bf16.msra.mxu1 %v14067_v19  ;;  %13042 = vmatprep.subr.bf16.mxu0 %v14074_v20  ;;  %v14103_v19 = vld [vmem:[%s15763_s11 + $0x4c8] sm:$0xff]  }
 0x253   : > { %13106 = vmatprep.subr.bf16.mxu1 %v14075_v21  ;;  %v14104_v20 = vld [vmem:[%s15763_s11 + $0x408] sm:$0xff]  }
 0x254   : > { %v14105_v21 = vld [vmem:[%s15763_s11 + $0x488] sm:$0xff]  }
 0x255   : > { %13043 = vmatpush3.bf16.msra.mxu0 %v14076_v26  ;;  %v14110_v26 = vld [vmem:[%s15763_s11 + $0x458] sm:$0xff]  }
 0x256   : > { %13107 = vmatpush3.bf16.msra.mxu1 %v14077_v34  ;;  %13044 = vmatprep.subr.bf16.mxu0 %v14084_v36  ;;  %v14114_v34 = vld [vmem:[%s15763_s11 + $0x460] sm:$0xff]  }
 0x257   : > { %6689 = vmatmul.mubr.bf16.gmra.mrb[76].mxu0 %v14052_v27  ;;  %13108 = vmatprep.subr.bf16.mxu1 %v14085_v39  ;;  %v14113_v27 = vld [vmem:[%s15763_s11 + $0x498] sm:$0xff]   ;;  %v14117_v36 = vld [vmem:[%s15763_s11 + $0x4a0] sm:$0xff]   ;;  %v14122_v39 = vld [vmem:[%s15763_s11 + $0x470] sm:$0xff]  }
 0x258   : > { %6786 = vmatmul.mubr.bf16.gmra.mrb[76].mxu1 %v14053_v35  ;;  %6696 = vmatprep.mubr.bf16.mxu0 %v14058_v37  ;;  %v14115_v35 = vld [vmem:[%s15763_s11 + $0x4e0] sm:$0xff]   ;;  %v14121_v37 = vld [vmem:[%s15763_s11 + $0x4a8] sm:$0xff]  }
 0x259   : > { %6793 = vmatprep.mubr.bf16.mxu1 %v14060_v38  ;;  %13045 = vmatpush3.bf16.msra.mxu0 %v14086_v42 }
 0x25a   : > { %13109 = vmatpush3.bf16.msra.mxu1 %v14087_v43  ;;  %13046 = vmatprep.subr.bf16.mxu0 %v14094_v44  ;;  %v14123_v43 = vld [vmem:[%s15763_s11 + $0x4f0] sm:$0xff]  }
 0x25b   : > { %13110 = vmatprep.subr.bf16.mxu1 %v14095_v45  ;;  %v14124_v44 = vld [vmem:[%s15763_s11 + $0x430] sm:$0xff]  }
 0x25d   : > { %13047 = vmatpush3.bf16.msra.mxu0 %v14096_v47 }
 0x25e   : > { %13111 = vmatpush3.bf16.msra.mxu1 %v14097_v52  ;;  %13160 = vmatprep.subr.bf16.mxu0 %v14098_v54  ;;  %v14125_v52 = vld [vmem:[%s15763_s11 + $0x4b0] sm:$0xff]  }
 0x25f   : > { %6697 = vmatmul.mubr.bf16.gmra.mrb[80].mxu0 %v14062_v48  ;;  %13224 = vmatprep.subr.bf16.mxu1 %v14099_v55  ;;  %v14132_v55 = vld [vmem:[%s15763_s11 + $0x478] sm:$0xff]  }
 0x260   : > { %6794 = vmatmul.mubr.bf16.gmra.mrb[80].mxu1 %v14063_v53  ;;  %6704 = vmatprep.mubr.bf16.mxu0 %v14068_v57 }
 0x261   : > { %6801 = vmatprep.mubr.bf16.mxu1 %v14070_v60  ;;  %v14133_v60 = vld [vmem:[%s15763_s11 + $0x4f8] sm:$0xff]  }
 0x267   : > { %6705 = vmatmul.mubr.bf16.gmra.mrb[84].mxu0 %v14072_v62 }
 0x268   : > { %6802 = vmatmul.mubr.bf16.gmra.mrb[84].mxu1 %v14073_v63  ;;  %6712 = vmatprep.mubr.bf16.mxu0 %v14078_v0  ;;  %v14134_v63 = vld [vmem:[%s15763_s11 + $0x438] sm:$0xff]  }
 0x269   : > { %6809 = vmatprep.mubr.bf16.mxu1 %v14080_v1  ;;  %v14135_v0 = vld [vmem:[%s15763_s11 + $0x4b8] sm:$0xff]  }
 0x26f   : > { %6713 = vmatmul.mubr.bf16.gmra.mrb[88].mxu0 %v14082_v5 }
 0x270   : > { %6810 = vmatmul.mubr.bf16.gmra.mrb[88].mxu1 %v14083_v7  ;;  %6720 = vmatprep.mubr.bf16.mxu0 %v14088_v8 }
 0x271   : > { %6817 = vmatprep.mubr.bf16.mxu1 %v14090_v9  ;;  %v14143_v9 = vld [vmem:[%s15763_s11 + $0x5c0] sm:$0xff]  }
 0x277   : > { %6721 = vmatmul.mubr.bf16.gmra.mrb[92].mxu0 %v14092_v10 }
 0x278   : > { %6818 = vmatmul.mubr.bf16.gmra.mrb[92].mxu1 %v14093_v12  ;;  %7324 = vmatprep.mubr.bf16.mxu0 %v15938_v40  ;;  %v14106_v40 = vld [vmem:[%s15763_s11 + $0x450] sm:$0xff]  }
 0x279   : > { %7421 = vmatprep.mubr.bf16.mxu1 %v15943_v41  ;;  %v14107_v41 = vld [vmem:[%s15763_s11 + $0x4d0] sm:$0xff]  }
 0x27f   : > { %7325 = vmatmul.mubr.bf16.vlgmr.msra.gmra.mrb[96].mxu0 %v15953_v46  ;;  %v14108_v46 = vld [vmem:[%s15763_s11 + $0x410] sm:$0xff]  }
 0x280   : > { %7422 = vmatmul.mubr.bf16.vlgmr.msra.gmra.mrb[96].mxu1 %v15961_v49  ;;  %13161 = vmatpush3.bf16.msra.mxu0 %v14100_v14  ;;  %v14109_v49 = vld [vmem:[%s15763_s11 + $0x490] sm:$0xff]  }
 0x281   : > { %13225 = vmatpush3.bf16.msra.mxu1 %v14101_v15  ;;  %7332 = vmatprep.mubr.bf16.mxu0 %v15966_v50  ;;  %v14111_v50 = vld [vmem:[%s15763_s11 + $0x4d8] sm:$0xff]  }
 0x282   : > { %7429 = vmatprep.mubr.bf16.mxu1 %v15971_v51  ;;  %13162 = vmatprep.subr.bf16.mxu0 %v14102_v18  ;;  %v14112_v51 = vld [vmem:[%s15763_s11 + $0x418] sm:$0xff]  }
 0x283   : > { %13226 = vmatprep.subr.bf16.mxu1 %v14103_v19 }
 0x284   : > { %13163 = vmatpush3.bf16.msra.mxu0 %v14104_v20 }
 0x285   : > { %13227 = vmatpush3.bf16.msra.mxu1 %v14105_v21  ;;  %13164 = vmatprep.subr.bf16.mxu0 %v14106_v40 }
 0x286   : > { %13228 = vmatprep.subr.bf16.mxu1 %v14107_v41 }
 0x287   : > { %7333 = vmatmul.mubr.bf16.gmra.mrb[100].mxu0 %v15984_v56  ;;  %v14116_v56 = vld [vmem:[%s15763_s11 + $0x420] sm:$0xff]  }
 0x288   : > { %7430 = vmatmul.mubr.bf16.gmra.mrb[100].mxu1 %v15990_v58  ;;  %7340 = vmatprep.mubr.bf16.mxu0 %v15995_v59  ;;  %v14118_v58 = vld [vmem:[%s15763_s11 + $0x468] sm:$0xff]  }
 0x289   : > { %7437 = vmatprep.mubr.bf16.mxu1 %v16001_v61  ;;  %13165 = vmatpush3.bf16.msra.mxu0 %v14108_v46  ;;  %v14119_v59 = vld [vmem:[%s15763_s11 + $0x4e8] sm:$0xff]  }
 0x28a   : > { %13229 = vmatpush3.bf16.msra.mxu1 %v14109_v49  ;;  %13166 = vmatprep.subr.bf16.mxu0 %v14110_v26  ;;  %v14120_v61 = vld [vmem:[%s15763_s11 + $0x428] sm:$0xff]  }
 0x28b   : > { %13230 = vmatprep.subr.bf16.mxu1 %v14111_v50 }
 0x28d   : > { %13167 = vmatpush3.bf16.msra.mxu0 %v14112_v51 }
 0x28e   : > { %13231 = vmatpush3.bf16.msra.mxu1 %v14113_v27  ;;  %13168 = vmatprep.subr.bf16.mxu0 %v14114_v34 }
 0x28f   : > { %7341 = vmatmul.mubr.bf16.gmra.mrb[104].mxu0 %v16014_v2  ;;  %13232 = vmatprep.subr.bf16.mxu1 %v14115_v35 }
 0x290   : > { %7438 = vmatmul.mubr.bf16.gmra.mrb[104].mxu1 %v16019_v3  ;;  %7348 = vmatprep.mubr.bf16.mxu0 %v16024_v4 }
 0x291   : > { %7445 = vmatprep.mubr.bf16.mxu1 %v16030_v6  ;;  %13169 = vmatpush3.bf16.msra.mxu0 %v14116_v56 }
 0x292   : > { %v12664_v38 = vpop.f32.mrb[0].mxu0  ;;  %13233 = vmatpush3.bf16.msra.mxu1 %v14117_v36  ;;  %13170 = vmatprep.subr.bf16.mxu0 %v14118_v58 }
 0x293   : > { %v12728_v42 = vpop.f32.mrb[0].mxu1  ;;  %v12665_v2 = vpop.f32.mrb[1].mxu0  ;;  %13234 = vmatprep.subr.bf16.mxu1 %v14119_v59 }
 0x294   : > { %v12666_v45 = vadd.f32 %v12665_v2, %v12664_v38  ;;  %v12729_v3 = vpop.f32.mrb[1].mxu1  ;;  %v12667_v4 = vpop.f32.mrb[2].mxu0 }
 0x295   : > { %v12730_v47 = vadd.f32 %v12729_v3, %v12728_v42  ;;  %v12731_v48 = vpop.f32.mrb[2].mxu1  ;;  %v12668_v6 = vpop.f32.mrb[3].mxu0  ;;  %13171 = vmatpush3.bf16.msra.mxu0 %v14120_v61  ;;  %v14130_v3 = vld [vmem:[%s17495_s0 + $0x100] ss:$16 sps:$4 sm:$0xff]  }
 0x296   : > { %v12669_v53 = vadd.f32 %v12668_v6, %v12667_v4  ;;  %v12732_v54 = vpop.f32.mrb[3].mxu1  ;;  %13235 = vmatpush3.bf16.msra.mxu1 %v14121_v37  ;;  %13172 = vmatprep.subr.bf16.mxu0 %v14122_v39  ;;  %v14131_v4 = vld [vmem:[%s17495_s0 + $0x108] ss:$16 sps:$4 sm:$0xff]  }
 0x297   : > { %v12733_v57 = vadd.f32 %v12732_v54, %v12731_v48  ;;  %7349 = vmatmul.mubr.bf16.gmra.mrb[108].mxu0 %v16043_v11  ;;  %13236 = vmatprep.subr.bf16.mxu1 %v14123_v43  ;;  %v16304_v62 = vadd.f32 %v12730_v47, %v12666_v45  ;;  %v14142_v11 = vld [vmem:[%s15763_s11 + $0x540] sm:$0xff]  }
 0x298   : > { %7446 = vmatmul.mubr.bf16.gmra.mrb[108].mxu1 %v16049_v13  ;;  %7356 = vmatprep.mubr.bf16.mxu0 %v16056_v16 }
 0x299   : > { %7453 = vmatprep.mubr.bf16.mxu1 %v16061_v17  ;;  %13173 = vmatpush3.bf16.msra.mxu0 %v14124_v44  ;;  %v16311_v1 = vadd.f32 %v12733_v57, %v12669_v53  ;;  %v14141_v53 = vld [vmem:[%s17495_s0 + $0x16c] ss:$16 sps:$4 sm:$0xff]  }
 0x29a   : > { %v12670_v5 = vpop.f32.mrb[4].mxu0  ;;  %13237 = vmatpush3.bf16.msra.mxu1 %v14125_v52  ;;  %13174 = vmatprep.subr.bf16.mxu0 %v14132_v55 }
 0x29b   : > { %v12734_v7 = vpop.f32.mrb[4].mxu1  ;;  %v12671_v8 = vpop.f32.mrb[5].mxu0  ;;  %13238 = vmatprep.subr.bf16.mxu1 %v14133_v60 }
 0x29c   : > { %v12672_v10 = vadd.f32 %v12671_v8, %v12670_v5  ;;  %v12735_v12 = vpop.f32.mrb[5].mxu1  ;;  %v12673_v13 = vpop.f32.mrb[6].mxu0 }
 0x29d   : > { %v12736_v14 = vadd.f32 %v12735_v12, %v12734_v7  ;;  %v12737_v16 = vpop.f32.mrb[6].mxu1  ;;  %v12674_v15 = vpop.f32.mrb[7].mxu0  ;;  %13175 = vmatpush3.bf16.msra.mxu0 %v14134_v63 }
 0x29e   : > { %v12675_v17 = vadd.f32 %v12674_v15, %v12673_v13  ;;  %v12738_v18 = vpop.f32.mrb[7].mxu1  ;;  %13239 = vmatpush3.bf16.msra.mxu1 %v14135_v0  ;;  %13288 = vmatprep.subr.bf16.mxu0 %v14142_v11  ;;  %v14136_v11 = vld [vmem:[%s17495_s0 + $0x160] ss:$16 sps:$4 sm:$0xff]  }
 0x29f   : > { %v12739_v19 = vadd.f32 %v12738_v18, %v12737_v16  ;;  %7357 = vmatmul.mubr.bf16.gmra.mrb[112].mxu0 %v16074_v22  ;;  %13352 = vmatprep.subr.bf16.mxu1 %v14143_v9  ;;  %v16316_v20 = vadd.f32 %v12736_v14, %v12672_v10  ;;  %v14139_v9 = vld [vmem:[%s17495_s0 + $0x168] ss:$16 sps:$4 sm:$0xff]   ;;  %v14144_v10 = vld [vmem:[%s15763_s11 + $0x500] sm:$0xff]  }
 0x2a0   : > { %7454 = vmatmul.mubr.bf16.gmra.mrb[112].mxu1 %v16079_v23  ;;  %7364 = vmatprep.mubr.bf16.mxu0 %v16084_v24  ;;  %v14146_v14 = vld [vmem:[%s17495_s0 + $0x184] ss:$16 sps:$4 sm:$0xff]  }
 0x2a1   : > { %7461 = vmatprep.mubr.bf16.mxu1 %v16089_v25  ;;  %v16321_v21 = vadd.f32 %v12739_v19, %v12675_v17  ;;  %v14145_v18 = vld [vmem:[%s15763_s11 + $0x580] sm:$0xff]   ;;  %v14148_v19 = vld [vmem:[%s17495_s0 + $0x18c] ss:$16 sps:$4 sm:$0xff]  }
 0x2a2   : > { %v12676_v40 = vpop.f32.mrb[8].mxu0 }
 0x2a3   : > { %v12740_v41 = vpop.f32.mrb[8].mxu1  ;;  %v12677_v46 = vpop.f32.mrb[9].mxu0 }
 0x2a4   : > { %v12678_v49 = vadd.f32 %v12677_v46, %v12676_v40  ;;  %v12741_v26 = vpop.f32.mrb[9].mxu1  ;;  %v12679_v50 = vpop.f32.mrb[10].mxu0  ;;  %v14152_v40 = vld [vmem:[%s15763_s11 + $0x548] sm:$0xff]  }
 0x2a5   : > { %v12742_v51 = vadd.f32 %v12741_v26, %v12740_v41  ;;  %v12743_v27 = vpop.f32.mrb[10].mxu1  ;;  %v12680_v22 = vpop.f32.mrb[11].mxu0 }
 0x2a6   : > { %v12681_v34 = vadd.f32 %v12680_v22, %v12679_v50  ;;  %v12744_v35 = vpop.f32.mrb[11].mxu1  ;;  %v14154_v22 = vld [vmem:[%s15763_s11 + $0x508] sm:$0xff]  }
 0x2a7   : > { %v12745_v56 = vadd.f32 %v12744_v35, %v12743_v27  ;;  %7365 = vmatmul.mubr.bf16.gmra.mrb[116].mxu0 %v16100_v28  ;;  %v16324_v23 = vadd.f32 %v12742_v51, %v12678_v49  ;;  %v14126_v28 = vld [vmem:[%s17495_s0 + $0x104] ss:$16 sps:$4 sm:$0xff]   ;;  %v14153_v51 = vld [vmem:[%s15763_s11 + $0x5c8] sm:$0xff]  }
 0x2a8   : > { %7462 = vmatmul.mubr.bf16.gmra.mrb[116].mxu1 %v16105_v29  ;;  %7372 = vmatprep.mubr.bf16.mxu0 %v16110_v30  ;;  %v14128_v29 = vld [vmem:[%s17495_s0 + $0x10c] ss:$16 sps:$4 sm:$0xff]  }
 0x2a9   : > { %7469 = vmatprep.mubr.bf16.mxu1 %v16115_v31  ;;  %v16329_v24 = vadd.f32 %v12745_v56, %v12681_v34  ;;  %v14155_v35 = vld [vmem:[%s15763_s11 + $0x588] sm:$0xff]   ;;  %v14150_v56 = vld [vmem:[%s17495_s0 + $0x180] ss:$16 sps:$4 sm:$0xff]  }
 0x2aa   : > { %v12682_v25 = vpop.f32.mrb[12].mxu0 }
 0x2ab   : > { %v12746_v36 = vpop.f32.mrb[12].mxu1  ;;  %v12683_v58 = vpop.f32.mrb[13].mxu0 }
 0x2ac   : > { %v12684_v59 = vadd.f32 %v12683_v58, %v12682_v25  ;;  %v12747_v61 = vpop.f32.mrb[13].mxu1  ;;  %v12685_v37 = vpop.f32.mrb[14].mxu0  ;;  %v14162_v25 = vld [vmem:[%s15763_s11 + $0x550] sm:$0xff]  }
 0x2ad   : > { %v12748_v38 = vadd.f32 %v12747_v61, %v12746_v36  ;;  %v12749_v30 = vpop.f32.mrb[14].mxu1  ;;  %v12686_v39 = vpop.f32.mrb[15].mxu0  ;;  %v14156_v61 = vld [vmem:[%s17495_s0 + $0x1a4] ss:$16 sps:$4 sm:$0xff]  }
 0x2ae   : > { %v12687_v31 = vadd.f32 %v12686_v39, %v12685_v37  ;;  %v12750_v42 = vpop.f32.mrb[15].mxu1  ;;  %v14163_v37 = vld [vmem:[%s15763_s11 + $0x5d0] sm:$0xff]  }
 0x2af   : > { %v12751_v2 = vadd.f32 %v12750_v42, %v12749_v30  ;;  %7373 = vmatmul.mubr.bf16.gmra.mrb[120].mxu0 %v16124_v32  ;;  %v16338_v43 = vadd.f32 %v12748_v38, %v12684_v59  ;;  %v14138_v32 = vld [vmem:[%s17495_s0 + $0x164] ss:$16 sps:$4 sm:$0xff]   ;;  %v14151_v59 = vld [vmem:[%s17495_s0 + $0x188] ss:$16 sps:$4 sm:$0xff]   ;;  %v14158_v38 = vld [vmem:[%s17495_s0 + $0x1ac] ss:$16 sps:$4 sm:$0xff]  }
 0x2b0   : > { %7470 = vmatmul.mubr.bf16.gmra.mrb[120].mxu1 %v16129_v33  ;;  %7380 = vmatprep.mubr.bf16.mxu0 %v14126_v28  ;;  %v14164_v30 = vld [vmem:[%s15763_s11 + $0x510] sm:$0xff]  }
 0x2b1   : > { %7477 = vmatprep.mubr.bf16.mxu1 %v14128_v29  ;;  %v16341_v44 = vadd.f32 %v12751_v2, %v12687_v31 }
 0x2b2   : > { %v12688_v45 = vpop.f32.mrb[16].mxu0 }
 0x2b3   : > { %v12752_v47 = vpop.f32.mrb[16].mxu1  ;;  %v12689_v48 = vpop.f32.mrb[17].mxu0 }
 0x2b4   : > { %v12690_v33 = vadd.f32 %v12689_v48, %v12688_v45  ;;  %v12753_v6 = vpop.f32.mrb[17].mxu1  ;;  %v12691_v52 = vpop.f32.mrb[18].mxu0 }
 0x2b5   : > { %v12754_v54 = vadd.f32 %v12753_v6, %v12752_v47  ;;  %v12755_v55 = vpop.f32.mrb[18].mxu1  ;;  %v12692_v57 = vpop.f32.mrb[19].mxu0  ;;  %v14172_v47 = vld [vmem:[%s15763_s11 + $0x558] sm:$0xff]  }
 0x2b6   : > { %v12693_v60 = vadd.f32 %v12692_v57, %v12691_v52  ;;  %v12756_v63 = vpop.f32.mrb[19].mxu1  ;;  %v14182_v57 = vld [vmem:[%s15763_s11 + $0x560] sm:$0xff]  }
 0x2b7   : > { %v12757_v0 = vadd.f32 %v12756_v63, %v12755_v55  ;;  %7381 = vmatmul.mubr.bf16.gmra.mrb[124].mxu0 %v14130_v3  ;;  %v16355_v5 = vadd.f32 %v12754_v54, %v12690_v33  ;;  %v14173_v33 = vld [vmem:[%s15763_s11 + $0x5d8] sm:$0xff]  }
 0x2b8   : > { %7478 = vmatmul.mubr.bf16.gmra.mrb[124].mxu1 %v14131_v4  ;;  %7984 = vmatprep.mubr.bf16.mxu0 %v14138_v32  ;;  %v14165_v4 = vld [vmem:[%s15763_s11 + $0x590] sm:$0xff]   ;;  %v14174_v54 = vld [vmem:[%s15763_s11 + $0x518] sm:$0xff]  }
 0x2b9   : > { %8081 = vmatprep.mubr.bf16.mxu1 %v14141_v53  ;;  %v16360_v7 = vadd.f32 %v12757_v0, %v12693_v60  ;;  %v14160_v53 = vld [vmem:[%s17495_s0 + $0x1a0] ss:$16 sps:$4 sm:$0xff]   ;;  %v14175_v55 = vld [vmem:[%s15763_s11 + $0x598] sm:$0xff]  }
 0x2ba   : > { %v12694_v8 = vpop.f32.mrb[20].mxu0  ;;  %v14161_v0 = vld [vmem:[%s17495_s0 + $0x1a8] ss:$16 sps:$4 sm:$0xff]  }
 0x2bb   : > { %v12758_v12 = vpop.f32.mrb[20].mxu1  ;;  %v12695_v13 = vpop.f32.mrb[21].mxu0 }
 0x2bc   : > { %v12696_v16 = vadd.f32 %v12695_v13, %v12694_v8  ;;  %v12759_v15 = vpop.f32.mrb[21].mxu1  ;;  %v12697_v17 = vpop.f32.mrb[22].mxu0  ;;  %v14183_v8 = vld [vmem:[%s15763_s11 + $0x5e0] sm:$0xff]  }
 0x2bd   : > { %v12760_v41 = vadd.f32 %v12759_v15, %v12758_v12  ;;  %v12761_v46 = vpop.f32.mrb[22].mxu1  ;;  %v12698_v49 = vpop.f32.mrb[23].mxu0  ;;  %v14168_v12 = vld [vmem:[%s17495_s0 + $0x1cc] ss:$16 sps:$4 sm:$0xff]   ;;  %v14184_v15 = vld [vmem:[%s15763_s11 + $0x520] sm:$0xff]  }
 0x2be   : > { %v12699_v26 = vadd.f32 %v12698_v49, %v12697_v17  ;;  %v12762_v50 = vpop.f32.mrb[23].mxu1  ;;  %v14185_v17 = vld [vmem:[%s15763_s11 + $0x5a0] sm:$0xff]   ;;  %v14192_v49 = vld [vmem:[%s15763_s11 + $0x568] sm:$0xff]  }
 0x2bf   : > { %v12763_v27 = vadd.f32 %v12762_v50, %v12761_v46  ;;  %7985 = vmatmul.mubr.bf16.vlgmr.msra.gmra.mrb[128].mxu0 %v14136_v11  ;;  %v16376_v34 = vadd.f32 %v12760_v41, %v12696_v16  ;;  %v14166_v11 = vld [vmem:[%s17495_s0 + $0x1c4] ss:$16 sps:$4 sm:$0xff]   ;;  %v14193_v50 = vld [vmem:[%s15763_s11 + $0x5e8] sm:$0xff]  }
 0x2c0   : > { %8082 = vmatmul.mubr.bf16.vlgmr.msra.gmra.mrb[128].mxu1 %v14139_v9  ;;  %13289 = vmatpush3.bf16.msra.mxu0 %v14144_v10 }
 0x2c1   : > { %13353 = vmatpush3.bf16.msra.mxu1 %v14145_v18  ;;  %7992 = vmatprep.mubr.bf16.mxu0 %v14146_v14  ;;  %v16383_v36 = vadd.f32 %v12763_v27, %v12699_v26  ;;  %v14194_v27 = vld [vmem:[%s15763_s11 + $0x528] sm:$0xff]  }
 0x2c2   : > { %v12700_v58 = vpop.f32.mrb[24].mxu0  ;;  %8089 = vmatprep.mubr.bf16.mxu1 %v14148_v19  ;;  %13290 = vmatprep.subr.bf16.mxu0 %v14152_v40 }
 0x2c3   : > { %v12764_v28 = vpop.f32.mrb[24].mxu1  ;;  %v12701_v29 = vpop.f32.mrb[25].mxu0  ;;  %13354 = vmatprep.subr.bf16.mxu1 %v14153_v51 }
 0x2c4   : > { %v12702_v39 = vadd.f32 %v12701_v29, %v12700_v58  ;;  %v12765_v31 = vpop.f32.mrb[25].mxu1  ;;  %v12703_v42 = vpop.f32.mrb[26].mxu0  ;;  %13291 = vmatpush3.bf16.msra.mxu0 %v14154_v22  ;;  %v14170_v22 = vld [vmem:[%s17495_s0 + $0x1c0] ss:$16 sps:$4 sm:$0xff]   ;;  %v14171_v58 = vld [vmem:[%s17495_s0 + $0x1c8] ss:$16 sps:$4 sm:$0xff]  }
 0x2c5   : > { %v12766_v2 = vadd.f32 %v12765_v31, %v12764_v28  ;;  %v12767_v45 = vpop.f32.mrb[26].mxu1  ;;  %v12704_v3 = vpop.f32.mrb[27].mxu0  ;;  %13355 = vmatpush3.bf16.msra.mxu1 %v14155_v35  ;;  %13292 = vmatprep.subr.bf16.mxu0 %v14162_v25  ;;  %v14195_v35 = vld [vmem:[%s15763_s11 + $0x5a8] sm:$0xff]  }
 0x2c6   : > { %v12705_v48 = vadd.f32 %v12704_v3, %v12703_v42  ;;  %v12768_v32 = vpop.f32.mrb[27].mxu1  ;;  %13356 = vmatprep.subr.bf16.mxu1 %v14163_v37  ;;  %v14178_v29 = vld [vmem:[%s17495_s0 + $0x1ec] ss:$16 sps:$4 sm:$0xff]  }
 0x2c7   : > { %v12769_v6 = vadd.f32 %v12768_v32, %v12767_v45  ;;  %7993 = vmatmul.mubr.bf16.gmra.mrb[132].mxu0 %v14150_v56  ;;  %v16399_v52 = vadd.f32 %v12766_v2, %v12702_v39 }
 0x2c8   : > { %8090 = vmatmul.mubr.bf16.gmra.mrb[132].mxu1 %v14151_v59  ;;  %8000 = vmatprep.mubr.bf16.mxu0 %v14156_v61  ;;  %v14176_v59 = vld [vmem:[%s17495_s0 + $0x1e4] ss:$16 sps:$4 sm:$0xff]  }
 0x2c9   : > { %8097 = vmatprep.mubr.bf16.mxu1 %v14158_v38  ;;  %13293 = vmatpush3.bf16.msra.mxu0 %v14164_v30  ;;  %v16407_v60 = vadd.f32 %v12769_v6, %v12705_v48  ;;  %v14202_v61 = vld [vmem:[%s15763_s11 + $0x570] sm:$0xff]  }
 0x2ca   : > { %v12706_v63 = vpop.f32.mrb[28].mxu0  ;;  %13357 = vmatpush3.bf16.msra.mxu1 %v14165_v4  ;;  %13294 = vmatprep.subr.bf16.mxu0 %v14172_v47  ;;  %v14203_v38 = vld [vmem:[%s15763_s11 + $0x5f0] sm:$0xff]  }
 0x2cb   : > { %v12770_v9 = vpop.f32.mrb[28].mxu1  ;;  %v12707_v10 = vpop.f32.mrb[29].mxu0  ;;  %13358 = vmatprep.subr.bf16.mxu1 %v14173_v33  ;;  %v14204_v30 = vld [vmem:[%s15763_s11 + $0x530] sm:$0xff]   ;;  %v14212_v33 = vld [vmem:[%s15763_s11 + $0x578] sm:$0xff]  }
 0x2cc   : > { %v12708_v13 = vadd.f32 %v12707_v10, %v12706_v63  ;;  %v12771_v14 = vpop.f32.mrb[29].mxu1  ;;  %v12709_v16 = vpop.f32.mrb[30].mxu0  ;;  %v14205_v4 = vld [vmem:[%s15763_s11 + $0x5b0] sm:$0xff]   ;;  %v14215_v63 = vld [vmem:[%s15763_s11 + $0x5b8] sm:$0xff]  }
 0x2cd   : > { %v12772_v18 = vadd.f32 %v12771_v14, %v12770_v9  ;;  %v12773_v19 = vpop.f32.mrb[30].mxu1  ;;  %v12710_v40 = vpop.f32.mrb[31].mxu0  ;;  %13295 = vmatpush3.bf16.msra.mxu0 %v14174_v54  ;;  %v14222_v9 = vld [vmem:[%s15763_s11 + $0x640] sm:$0xff]  }
 0x2ce   : > { %v12711_v41 = vadd.f32 %v12710_v40, %v12709_v16  ;;  %v12774_v46 = vpop.f32.mrb[31].mxu1  ;;  %13359 = vmatpush3.bf16.msra.mxu1 %v14175_v55  ;;  %13296 = vmatprep.subr.bf16.mxu0 %v14182_v57  ;;  %v14214_v57 = vld [vmem:[%s15763_s11 + $0x538] sm:$0xff]  }
 0x2cf   : > { %v12775_v26 = vadd.f32 %v12774_v46, %v12773_v19  ;;  %8001 = vmatmul.mubr.bf16.gmra.mrb[136].mxu0 %v14160_v53  ;;  %13360 = vmatprep.subr.bf16.mxu1 %v14183_v8  ;;  %v16423_v51 = vadd.f32 %v12772_v18, %v12708_v13  ;;  %v14213_v53 = vld [vmem:[%s15763_s11 + $0x5f8] sm:$0xff]   ;;  %v14223_v13 = vld [vmem:[%s15763_s11 + $0x6c0] sm:$0xff]  }
 0x2d0   : > { %8098 = vmatmul.mubr.bf16.gmra.mrb[136].mxu1 %v14161_v0  ;;  %8008 = vmatprep.mubr.bf16.mxu0 %v14166_v11  ;;  %v14181_v8 = vld [vmem:[%s17495_s0 + $0x1e8] ss:$16 sps:$4 sm:$0xff]   ;;  %v14188_v40 = vld [vmem:[%s17495_s0 + $0x20c] ss:$16 sps:$4 sm:$0xff]  }
 0x2d1   : > { %8105 = vmatprep.mubr.bf16.mxu1 %v14168_v12  ;;  %13297 = vmatpush3.bf16.msra.mxu0 %v14184_v15  ;;  %v16430_v56 = vadd.f32 %v12775_v26, %v12711_v41 }
 0x2d2   : > { %v12792_v25 = vpop.f32.mrb[32].mxu0  ;;  %13361 = vmatpush3.bf16.msra.mxu1 %v14185_v17  ;;  %13298 = vmatprep.subr.bf16.mxu0 %v14192_v49 }
 0x2d3   : > { %v12856_v37 = vpop.f32.mrb[32].mxu1  ;;  %v12793_v28 = vpop.f32.mrb[33].mxu0  ;;  %13362 = vmatprep.subr.bf16.mxu1 %v14193_v50 }
 0x2d4   : > { %v12794_v39 = vadd.f32 %v12793_v28, %v12792_v25  ;;  %v12857_v31 = vpop.f32.mrb[33].mxu1  ;;  %v12795_v42 = vpop.f32.mrb[34].mxu0 }
 0x2d5   : > { %v12858_v2 = vadd.f32 %v12857_v31, %v12856_v37  ;;  %v12859_v45 = vpop.f32.mrb[34].mxu1  ;;  %v12796_v3 = vpop.f32.mrb[35].mxu0  ;;  %13299 = vmatpush3.bf16.msra.mxu0 %v14194_v27 }
 0x2d6   : > { %v6023_v47 = vadd.f32 %v12794_v39, %v16304_v62  ;;  %v12797_v48 = vadd.f32 %v12796_v3, %v12795_v42  ;;  %v12860_v32 = vpop.f32.mrb[35].mxu1  ;;  %13363 = vmatpush3.bf16.msra.mxu1 %v14195_v35  ;;  %13300 = vmatprep.subr.bf16.mxu0 %v14202_v61  ;;  %v14180_v62 = vld [vmem:[%s17495_s0 + $0x1e0] ss:$16 sps:$4 sm:$0xff]   ;;  %v14198_v39 = vld [vmem:[%s17495_s0 + $0x22c] ss:$16 sps:$4 sm:$0xff]  }
 0x2d7   : > { %v12861_v6 = vadd.f32 %v12860_v32, %v12859_v45  ;;  %8009 = vmatmul.mubr.bf16.gmra.mrb[140].mxu0 %v14170_v22  ;;  %13364 = vmatprep.subr.bf16.mxu1 %v14203_v38  ;;  %v14190_v22 = vld [vmem:[%s17495_s0 + $0x200] ss:$16 sps:$4 sm:$0xff]  }
 0x2d8   : > { %v16448_v54 = vadd.f32 %v12858_v2, %v6023_v47  ;;  %v6026_v55 = vadd.f32 %v12797_v48, %v16311_v1  ;;  %8106 = vmatmul.mubr.bf16.gmra.mrb[140].mxu1 %v14171_v58  ;;  %8016 = vmatprep.mubr.bf16.mxu0 %v14176_v59  ;;  %v14186_v1 = vld [vmem:[%s17495_s0 + $0x204] ss:$16 sps:$4 sm:$0xff]   ;;  %v14191_v59 = vld [vmem:[%s17495_s0 + $0x208] ss:$16 sps:$4 sm:$0xff]   ;;  %v14200_v32 = vld [vmem:[%s17495_s0 + $0x220] ss:$16 sps:$4 sm:$0xff]  }
 0x2d9   : > { %8113 = vmatprep.mubr.bf16.mxu1 %v14178_v29  ;;  %13301 = vmatpush3.bf16.msra.mxu0 %v14204_v30 }
 0x2da   : > { %v16456_v0 = vadd.f32 %v12861_v6, %v6026_v55  ;;  %v12798_v11 = vpop.f32.mrb[36].mxu0  ;;  %13365 = vmatpush3.bf16.msra.mxu1 %v14205_v4  ;;  %13302 = vmatprep.subr.bf16.mxu0 %v14212_v33  ;;  %v14201_v6 = vld [vmem:[%s17495_s0 + $0x228] ss:$16 sps:$4 sm:$0xff]  }
 0x2db   : > { %v12862_v10 = vpop.f32.mrb[36].mxu1  ;;  %v12799_v12 = vpop.f32.mrb[37].mxu0  ;;  %13366 = vmatprep.subr.bf16.mxu1 %v14213_v53 }
 0x2dc   : > { %v12800_v14 = vadd.f32 %v12799_v12, %v12798_v11  ;;  %v12863_v16 = vpop.f32.mrb[37].mxu1  ;;  %v12801_v15 = vpop.f32.mrb[38].mxu0 }
 0x2dd   : > { %v12864_v17 = vadd.f32 %v12863_v16, %v12862_v10  ;;  %v12865_v18 = vpop.f32.mrb[38].mxu1  ;;  %v12802_v19 = vpop.f32.mrb[39].mxu0  ;;  %13303 = vmatpush3.bf16.msra.mxu0 %v14214_v57 }
 0x2de   : > { %v6031_v41 = vadd.f32 %v12800_v14, %v16316_v20  ;;  %v12803_v46 = vadd.f32 %v12802_v19, %v12801_v15  ;;  %v12866_v49 = vpop.f32.mrb[39].mxu1  ;;  %13367 = vmatpush3.bf16.msra.mxu1 %v14215_v63  ;;  %13416 = vmatprep.subr.bf16.mxu0 %v14222_v9  ;;  %v14211_v19 = vld [vmem:[%s17495_s0 + $0x248] ss:$16 sps:$4 sm:$0xff]  }
 0x2df   : > { %v12867_v26 = vadd.f32 %v12866_v49, %v12865_v18  ;;  %8017 = vmatmul.mubr.bf16.gmra.mrb[144].mxu0 %v14180_v62  ;;  %13480 = vmatprep.subr.bf16.mxu1 %v14223_v13  ;;  %v14208_v62 = vld [vmem:[%s17495_s0 + $0x24c] ss:$16 sps:$4 sm:$0xff]  }
 0x2e0   : > { %v16470_v50 = vadd.f32 %v12864_v17, %v6031_v41  ;;  %v6034_v27 = vadd.f32 %v12803_v46, %v16321_v21  ;;  %8114 = vmatmul.mubr.bf16.gmra.mrb[144].mxu1 %v14181_v8  ;;  %8024 = vmatprep.mubr.bf16.mxu0 %v14186_v1  ;;  %v14196_v21 = vld [vmem:[%s17495_s0 + $0x224] ss:$16 sps:$4 sm:$0xff]  }
 0x2e1   : > { %8121 = vmatprep.mubr.bf16.mxu1 %v14188_v40 }
 0x2e2   : > { %v16476_v35 = vadd.f32 %v12867_v26, %v6034_v27  ;;  %v12804_v20 = vpop.f32.mrb[40].mxu0 }
 0x2e3   : > { %v12868_v25 = vpop.f32.mrb[40].mxu1  ;;  %v12805_v58 = vpop.f32.mrb[41].mxu0 }
 0x2e4   : > { %v12806_v61 = vadd.f32 %v12805_v58, %v12804_v20  ;;  %v12869_v37 = vpop.f32.mrb[41].mxu1  ;;  %v12807_v28 = vpop.f32.mrb[42].mxu0 }
 0x2e5   : > { %v12870_v29 = vadd.f32 %v12869_v37, %v12868_v25  ;;  %v12871_v38 = vpop.f32.mrb[42].mxu1  ;;  %v12808_v30 = vpop.f32.mrb[43].mxu0 }
 0x2e6   : > { %v6039_v31 = vadd.f32 %v12806_v61, %v16324_v23  ;;  %v12809_v42 = vadd.f32 %v12808_v30, %v12807_v28  ;;  %v12872_v2 = vpop.f32.mrb[43].mxu1  ;;  %v14216_v28 = vld [vmem:[%s17495_s0 + $0x2a0] ss:$16 sps:$4 sm:$0xff]  }
 0x2e7   : > { %v12873_v45 = vadd.f32 %v12872_v2, %v12871_v38  ;;  %8025 = vmatmul.mubr.bf16.gmra.mrb[148].mxu0 %v14190_v22  ;;  %v14221_v22 = vld [vmem:[%s17495_s0 + $0x2ac] ss:$16 sps:$4 sm:$0xff]   ;;  %v14224_v38 = vld [vmem:[%s15763_s11 + $0x600] sm:$0xff]  }
 0x2e8   : > { %v16488_v3 = vadd.f32 %v12870_v29, %v6039_v31  ;;  %v6042_v4 = vadd.f32 %v12809_v42, %v16329_v24  ;;  %8122 = vmatmul.mubr.bf16.gmra.mrb[148].mxu1 %v14191_v59  ;;  %8032 = vmatprep.mubr.bf16.mxu0 %v14196_v21  ;;  %v14206_v24 = vld [vmem:[%s17495_s0 + $0x244] ss:$16 sps:$4 sm:$0xff]   ;;  %v14219_v29 = vld [vmem:[%s17495_s0 + $0x2a8] ss:$16 sps:$4 sm:$0xff]  }
 0x2e9   : > { %8129 = vmatprep.mubr.bf16.mxu1 %v14198_v39 }
 0x2ea   : > { %v16491_v47 = vadd.f32 %v12873_v45, %v6042_v4  ;;  %v12810_v48 = vpop.f32.mrb[44].mxu0  ;;  %v14225_v45 = vld [vmem:[%s15763_s11 + $0x680] sm:$0xff]   ;;  %v14228_v4 = vld [vmem:[%s17495_s0 + $0x2cc] ss:$16 sps:$4 sm:$0xff]  }
 0x2eb   : > { %v12874_v33 = vpop.f32.mrb[44].mxu1  ;;  %v12811_v23 = vpop.f32.mrb[45].mxu0 }
 0x2ec   : > { %v12812_v53 = vadd.f32 %v12811_v23, %v12810_v48  ;;  %v12875_v55 = vpop.f32.mrb[45].mxu1  ;;  %v12813_v57 = vpop.f32.mrb[46].mxu0  ;;  %v14232_v48 = vld [vmem:[%s15763_s11 + $0x648] sm:$0xff]  }
 0x2ed   : > { %v12876_v63 = vadd.f32 %v12875_v55, %v12874_v33  ;;  %v12877_v11 = vpop.f32.mrb[46].mxu1  ;;  %v12814_v8 = vpop.f32.mrb[47].mxu0 }
 0x2ee   : > { %v6047_v1 = vadd.f32 %v12812_v53, %v16338_v43  ;;  %v12815_v9 = vadd.f32 %v12814_v8, %v12813_v57  ;;  %v12878_v10 = vpop.f32.mrb[47].mxu1  ;;  %v14210_v43 = vld [vmem:[%s17495_s0 + $0x240] ss:$16 sps:$4 sm:$0xff]   ;;  %v14233_v57 = vld [vmem:[%s15763_s11 + $0x6c8] sm:$0xff]  }
 0x2ef   : > { %v12879_v12 = vadd.f32 %v12878_v10, %v12877_v11  ;;  %8033 = vmatmul.mubr.bf16.gmra.mrb[152].mxu0 %v14200_v32  ;;  %v14235_v8 = vld [vmem:[%s15763_s11 + $0x688] sm:$0xff]  }
 0x2f0   : > { %v16506_v13 = vadd.f32 %v12876_v63, %v6047_v1  ;;  %v6050_v14 = vadd.f32 %v12815_v9, %v16341_v44  ;;  %8130 = vmatmul.mubr.bf16.gmra.mrb[152].mxu1 %v14201_v6  ;;  %8040 = vmatprep.mubr.bf16.mxu0 %v14206_v24  ;;  %v14218_v44 = vld [vmem:[%s17495_s0 + $0x2a4] ss:$16 sps:$4 sm:$0xff]  }
 0x2f1   : > { %8137 = vmatprep.mubr.bf16.mxu1 %v14208_v62  ;;  %v14234_v62 = vld [vmem:[%s15763_s11 + $0x608] sm:$0xff]   ;;  %v14242_v1 = vld [vmem:[%s15763_s11 + $0x650] sm:$0xff]  }
 0x2f2   : > { %v16509_v16 = vadd.f32 %v12879_v12, %v6050_v14  ;;  %v12816_v15 = vpop.f32.mrb[48].mxu0  ;;  %v14231_v12 = vld [vmem:[%s17495_s0 + $0x2c8] ss:$16 sps:$4 sm:$0xff]   ;;  %v14243_v14 = vld [vmem:[%s15763_s11 + $0x6d0] sm:$0xff]  }
 0x2f3   : > { %v12880_v17 = vpop.f32.mrb[48].mxu1  ;;  %v12817_v18 = vpop.f32.mrb[49].mxu0 }
 0x2f4   : > { %v12818_v40 = vadd.f32 %v12817_v18, %v12816_v15  ;;  %v12881_v41 = vpop.f32.mrb[49].mxu1  ;;  %v12819_v46 = vpop.f32.mrb[50].mxu0  ;;  %v14238_v18 = vld [vmem:[%s17495_s0 + $0x2ec] ss:$16 sps:$4 sm:$0xff]  }
 0x2f5   : > { %v12882_v49 = vadd.f32 %v12881_v41, %v12880_v17  ;;  %v12883_v26 = vpop.f32.mrb[50].mxu1  ;;  %v12820_v27 = vpop.f32.mrb[51].mxu0 }
 0x2f6   : > { %v6055_v20 = vadd.f32 %v12818_v40, %v16355_v5  ;;  %v12821_v25 = vadd.f32 %v12820_v27, %v12819_v46  ;;  %v12884_v58 = vpop.f32.mrb[51].mxu1  ;;  %v14252_v27 = vld [vmem:[%s15763_s11 + $0x658] sm:$0xff]  }
 0x2f7   : > { %v12885_v59 = vadd.f32 %v12884_v58, %v12883_v26  ;;  %8041 = vmatmul.mubr.bf16.gmra.mrb[156].mxu0 %v14210_v43  ;;  %v14244_v43 = vld [vmem:[%s15763_s11 + $0x610] sm:$0xff]   ;;  %v14253_v58 = vld [vmem:[%s15763_s11 + $0x6d8] sm:$0xff]  }
 0x2f8   : > { %v16524_v61 = vadd.f32 %v12882_v49, %v6055_v20  ;;  %v6058_v37 = vadd.f32 %v12821_v25, %v16360_v7  ;;  %8138 = vmatmul.mubr.bf16.gmra.mrb[156].mxu1 %v14211_v19  ;;  %8644 = vmatprep.mubr.bf16.mxu0 %v14218_v44  ;;  %v14226_v7 = vld [vmem:[%s17495_s0 + $0x2c4] ss:$16 sps:$4 sm:$0xff]  }
 0x2f9   : > { %8741 = vmatprep.mubr.bf16.mxu1 %v14221_v22  ;;  %v14245_v26 = vld [vmem:[%s15763_s11 + $0x690] sm:$0xff]  }
 0x2fa   : > { %v16530_v21 = vadd.f32 %v12885_v59, %v6058_v37  ;;  %v12822_v5 = vpop.f32.mrb[52].mxu0 }
 0x2fb   : > { %v12886_v30 = vpop.f32.mrb[52].mxu1  ;;  %v12823_v39 = vpop.f32.mrb[53].mxu0 }
 0x2fc   : > { %v12824_v31 = vadd.f32 %v12823_v39, %v12822_v5  ;;  %v12887_v42 = vpop.f32.mrb[53].mxu1  ;;  %v12825_v2 = vpop.f32.mrb[54].mxu0  ;;  %v14240_v5 = vld [vmem:[%s17495_s0 + $0x2e0] ss:$16 sps:$4 sm:$0xff]  }
 0x2fd   : > { %v12888_v32 = vadd.f32 %v12887_v42, %v12886_v30  ;;  %v12889_v33 = vpop.f32.mrb[54].mxu1  ;;  %v12826_v23 = vpop.f32.mrb[55].mxu0 }
 0x2fe   : > { %v6063_v6 = vadd.f32 %v12824_v31, %v16376_v34  ;;  %v12827_v53 = vadd.f32 %v12826_v23, %v12825_v2  ;;  %v12890_v55 = vpop.f32.mrb[55].mxu1  ;;  %v14230_v34 = vld [vmem:[%s17495_s0 + $0x2c0] ss:$16 sps:$4 sm:$0xff]  }
 0x2ff   : > { %v12891_v24 = vadd.f32 %v12890_v55, %v12889_v33  ;;  %8645 = vmatmul.mubr.bf16.vlgmr.msra.gmra.mrb[160].mxu0 %v14216_v28  ;;  %v14263_v31 = vld [vmem:[%s15763_s11 + $0x6e0] sm:$0xff]  }
 0x300   : > { %v16547_v63 = vadd.f32 %v12888_v32, %v6063_v6  ;;  %v6066_v11 = vadd.f32 %v12827_v53, %v16383_v36  ;;  %8742 = vmatmul.mubr.bf16.vlgmr.msra.gmra.mrb[160].mxu1 %v14219_v29  ;;  %13417 = vmatpush3.bf16.msra.mxu0 %v14224_v38  ;;  %v14236_v36 = vld [vmem:[%s17495_s0 + $0x2e4] ss:$16 sps:$4 sm:$0xff]   ;;  %v14255_v29 = vld [vmem:[%s15763_s11 + $0x698] sm:$0xff]  }
 0x301   : > { %13481 = vmatpush3.bf16.msra.mxu1 %v14225_v45  ;;  %8652 = vmatprep.mubr.bf16.mxu0 %v14226_v7  ;;  %v14262_v38 = vld [vmem:[%s15763_s11 + $0x660] sm:$0xff]   ;;  %v14248_v45 = vld [vmem:[%s17495_s0 + $0x30c] ss:$16 sps:$4 sm:$0xff]  }
 0x302   : > { %v16555_v9 = vadd.f32 %v12891_v24, %v6066_v11  ;;  %v12828_v10 = vpop.f32.mrb[56].mxu0  ;;  %8749 = vmatprep.mubr.bf16.mxu1 %v14228_v4  ;;  %13418 = vmatprep.subr.bf16.mxu0 %v14232_v48  ;;  %v14246_v7 = vld [vmem:[%s17495_s0 + $0x304] ss:$16 sps:$4 sm:$0xff]   ;;  %v14272_v11 = vld [vmem:[%s15763_s11 + $0x668] sm:$0xff]  }
 0x303   : > { %v12892_v15 = vpop.f32.mrb[56].mxu1  ;;  %v12829_v17 = vpop.f32.mrb[57].mxu0  ;;  %13482 = vmatprep.subr.bf16.mxu1 %v14233_v57  ;;  %v14264_v33 = vld [vmem:[%s15763_s11 + $0x620] sm:$0xff]  }
 0x304   : > { %v12830_v19 = vadd.f32 %v12829_v17, %v12828_v10  ;;  %v12893_v40 = vpop.f32.mrb[57].mxu1  ;;  %v12831_v41 = vpop.f32.mrb[58].mxu0  ;;  %13419 = vmatpush3.bf16.msra.mxu0 %v14234_v62  ;;  %v14265_v23 = vld [vmem:[%s15763_s11 + $0x6a0] sm:$0xff]   ;;  %v14251_v17 = vld [vmem:[%s17495_s0 + $0x308] ss:$16 sps:$4 sm:$0xff]  }
 0x305   : > { %v12894_v46 = vadd.f32 %v12893_v40, %v12892_v15  ;;  %v12895_v44 = vpop.f32.mrb[58].mxu1  ;;  %v12832_v49 = vpop.f32.mrb[59].mxu0  ;;  %13483 = vmatpush3.bf16.msra.mxu1 %v14235_v8  ;;  %13420 = vmatprep.subr.bf16.mxu0 %v14242_v1  ;;  %v14258_v40 = vld [vmem:[%s17495_s0 + $0x32c] ss:$16 sps:$4 sm:$0xff]  }
 0x306   : > { %v6071_v22 = vadd.f32 %v12830_v19, %v16399_v52  ;;  %v12833_v20 = vadd.f32 %v12832_v49, %v12831_v41  ;;  %v12896_v25 = vpop.f32.mrb[59].mxu1  ;;  %13484 = vmatprep.subr.bf16.mxu1 %v14243_v14  ;;  %v14254_v52 = vld [vmem:[%s15763_s11 + $0x618] sm:$0xff]   ;;  %v14283_v41 = vld [vmem:[%s15763_s11 + $0x6f0] sm:$0xff]  }
 0x307   : > { %v12897_v59 = vadd.f32 %v12896_v25, %v12895_v44  ;;  %8653 = vmatmul.mubr.bf16.gmra.mrb[164].mxu0 %v14230_v34  ;;  %v14273_v34 = vld [vmem:[%s15763_s11 + $0x6e8] sm:$0xff]   ;;  %v14285_v25 = vld [vmem:[%s15763_s11 + $0x6b0] sm:$0xff]  }
 0x308   : > { %v16572_v37 = vadd.f32 %v12894_v46, %v6071_v22  ;;  %v6074_v28 = vadd.f32 %v12833_v20, %v16407_v60  ;;  %8750 = vmatmul.mubr.bf16.gmra.mrb[164].mxu1 %v14231_v12  ;;  %8660 = vmatprep.mubr.bf16.mxu0 %v14236_v36  ;;  %v14241_v60 = vld [vmem:[%s17495_s0 + $0x2e8] ss:$16 sps:$4 sm:$0xff]   ;;  %v14284_v46 = vld [vmem:[%s15763_s11 + $0x630] sm:$0xff]  }
 0x309   : > { %8757 = vmatprep.mubr.bf16.mxu1 %v14238_v18  ;;  %13421 = vmatpush3.bf16.msra.mxu0 %v14244_v43  ;;  %v14274_v12 = vld [vmem:[%s15763_s11 + $0x628] sm:$0xff]   ;;  %v14282_v18 = vld [vmem:[%s15763_s11 + $0x670] sm:$0xff]  }
 0x30a   : > { %v16581_v30 = vadd.f32 %v12897_v59, %v6074_v28  ;;  %v12834_v39 = vpop.f32.mrb[60].mxu0  ;;  %13485 = vmatpush3.bf16.msra.mxu1 %v14245_v26  ;;  %13422 = vmatprep.subr.bf16.mxu0 %v14252_v27  ;;  %v14275_v36 = vld [vmem:[%s15763_s11 + $0x6a8] sm:$0xff]   ;;  %v14292_v28 = vld [vmem:[%s15763_s11 + $0x678] sm:$0xff]  }
 0x30b   : > { %v12898_v42 = vpop.f32.mrb[60].mxu1  ;;  %v12835_v2 = vpop.f32.mrb[61].mxu0  ;;  %13486 = vmatprep.subr.bf16.mxu1 %v14253_v58 }
 0x30c   : > { %v12836_v4 = vadd.f32 %v12835_v2, %v12834_v39  ;;  %v12899_v48 = vpop.f32.mrb[61].mxu1  ;;  %v12837_v32 = vpop.f32.mrb[62].mxu0  ;;  %v14261_v2 = vld [vmem:[%s17495_s0 + $0x328] ss:$16 sps:$4 sm:$0xff]  }
 0x30d   : > { %v12900_v6 = vadd.f32 %v12899_v48, %v12898_v42  ;;  %v12901_v53 = vpop.f32.mrb[62].mxu1  ;;  %v12838_v55 = vpop.f32.mrb[63].mxu0  ;;  %13423 = vmatpush3.bf16.msra.mxu0 %v14254_v52 }
 0x30e   : > { %v6079_v57 = vadd.f32 %v12836_v4, %v16423_v51  ;;  %v12839_v24 = vadd.f32 %v12838_v55, %v12837_v32  ;;  %v12902_v62 = vpop.f32.mrb[63].mxu1  ;;  %13487 = vmatpush3.bf16.msra.mxu1 %v14255_v29  ;;  %13424 = vmatprep.subr.bf16.mxu0 %v14262_v38  ;;  %v14250_v51 = vld [vmem:[%s17495_s0 + $0x300] ss:$16 sps:$4 sm:$0xff]   ;;  %v14293_v29 = vld [vmem:[%s15763_s11 + $0x6f8] sm:$0xff]  }
 0x30f   : > { %v12903_v8 = vadd.f32 %v12902_v62, %v12901_v53  ;;  %8661 = vmatmul.mubr.bf16.gmra.mrb[168].mxu0 %v14240_v5  ;;  %13488 = vmatprep.subr.bf16.mxu1 %v14263_v31  ;;  %v14294_v38 = vld [vmem:[%s15763_s11 + $0x638] sm:$0xff]  }
 0x310   : > { %v16598_v1 = vadd.f32 %v12900_v6, %v6079_v57  ;;  %v6082_v10 = vadd.f32 %v12839_v24, %v16430_v56  ;;  %8758 = vmatmul.mubr.bf16.gmra.mrb[168].mxu1 %v14241_v60  ;;  %8668 = vmatprep.mubr.bf16.mxu0 %v14246_v7  ;;  %v14256_v56 = vld [vmem:[%s17495_s0 + $0x324] ss:$16 sps:$4 sm:$0xff]   ;;  %v14260_v7 = vld [vmem:[%s17495_s0 + $0x320] ss:$16 sps:$4 sm:$0xff]   ;;  %v14295_v31 = vld [vmem:[%s15763_s11 + $0x6b8] sm:$0xff]  }
 0x311   : > { %8765 = vmatprep.mubr.bf16.mxu1 %v14248_v45  ;;  %13425 = vmatpush3.bf16.msra.mxu0 %v14264_v33  ;;  %v14266_v45 = vld [vmem:[%s17495_s0 + $0x344] ss:$16 sps:$4 sm:$0xff]   ;;  %v14268_v62 = vld [vmem:[%s17495_s0 + $0x34c] ss:$16 sps:$4 sm:$0xff]  }
 0x312   : > { %v16606_v14 = vadd.f32 %v12903_v8, %v6082_v10  ;;  %v12920_v15 = vpop.f32.mrb[64].mxu0  ;;  %13489 = vmatpush3.bf16.msra.mxu1 %v14265_v23  ;;  %13426 = vmatprep.subr.bf16.mxu0 %v14272_v11  ;;  %v14303_v33 = vld [vmem:[%s15763_s11 + $0x7c0] sm:$0xff]  }
 0x313   : > { %v12984_v43 = vpop.f32.mrb[64].mxu1  ;;  %v12921_v19 = vpop.f32.mrb[65].mxu0  ;;  %13490 = vmatprep.subr.bf16.mxu1 %v14273_v34 }
 0x314   : > { %v12922_v44 = vadd.f32 %v12921_v19, %v12920_v15  ;;  %v12985_v49 = vpop.f32.mrb[65].mxu1  ;;  %v12923_v26 = vpop.f32.mrb[66].mxu0 }
 0x315   : > { %v12986_v27 = vadd.f32 %v12985_v49, %v12984_v43  ;;  %v12987_v22 = vpop.f32.mrb[66].mxu1  ;;  %v12924_v20 = vpop.f32.mrb[67].mxu0  ;;  %13427 = vmatpush3.bf16.msra.mxu0 %v14274_v12 }
 0x316   : > { %v12925_v58 = vadd.f32 %v12924_v20, %v12923_v26  ;;  %v12988_v59 = vpop.f32.mrb[67].mxu1  ;;  %13491 = vmatpush3.bf16.msra.mxu1 %v14275_v36  ;;  %13428 = vmatprep.subr.bf16.mxu0 %v14282_v18  ;;  %v14271_v18 = vld [vmem:[%s17495_s0 + $0x348] ss:$16 sps:$4 sm:$0xff]  }
 0x317   : > { %v6764_v5 = vadd.f32 %v12986_v27, %v12922_v44  ;;  %v12989_v52 = vadd.f32 %v12988_v59, %v12987_v22  ;;  %8669 = vmatmul.mubr.bf16.gmra.mrb[172].mxu0 %v14250_v51  ;;  %13492 = vmatprep.subr.bf16.mxu1 %v14283_v41  ;;  %v14270_v51 = vld [vmem:[%s17495_s0 + $0x340] ss:$16 sps:$4 sm:$0xff]  }
 0x318   : > { %8766 = vmatmul.mubr.bf16.gmra.mrb[172].mxu1 %v14251_v17  ;;  %8676 = vmatprep.mubr.bf16.mxu0 %v14256_v56  ;;  %v14280_v59 = vld [vmem:[%s17495_s0 + $0x360] ss:$16 sps:$4 sm:$0xff]  }
 0x319   : > { %v16625_v39 = vadd.f32 %v6764_v5, %v16448_v54  ;;  %v6767_v60 = vadd.f32 %v12989_v52, %v12925_v58  ;;  %8773 = vmatprep.mubr.bf16.mxu1 %v14258_v40  ;;  %13429 = vmatpush3.bf16.msra.mxu0 %v14284_v46  ;;  %v14302_v54 = vld [vmem:[%s15763_s11 + $0x740] sm:$0xff]  }
 0x31a   : > { %v12926_v42 = vpop.f32.mrb[68].mxu0  ;;  %13493 = vmatpush3.bf16.msra.mxu1 %v14285_v25  ;;  %13430 = vmatprep.subr.bf16.mxu0 %v14292_v28  ;;  %v14276_v40 = vld [vmem:[%s17495_s0 + $0x364] ss:$16 sps:$4 sm:$0xff]  }
 0x31b   : > { %v16639_v4 = vadd.f32 %v6767_v60, %v16456_v0  ;;  %v12990_v48 = vpop.f32.mrb[68].mxu1  ;;  %v12927_v32 = vpop.f32.mrb[69].mxu0  ;;  %13494 = vmatprep.subr.bf16.mxu1 %v14293_v29  ;;  %v14281_v29 = vld [vmem:[%s17495_s0 + $0x368] ss:$16 sps:$4 sm:$0xff]  }
 0x31c   : > { %v12928_v23 = vadd.f32 %v12927_v32, %v12926_v42  ;;  %v12991_v6 = vpop.f32.mrb[69].mxu1  ;;  %v12929_v53 = vpop.f32.mrb[70].mxu0 }
 0x31d   : > { %v12992_v55 = vadd.f32 %v12991_v6, %v12990_v48  ;;  %v12993_v57 = vpop.f32.mrb[70].mxu1  ;;  %v12930_v24 = vpop.f32.mrb[71].mxu0  ;;  %13431 = vmatpush3.bf16.msra.mxu0 %v14294_v38 }
 0x31e   : > { %v12931_v11 = vadd.f32 %v12930_v24, %v12929_v53  ;;  %v12994_v8 = vpop.f32.mrb[71].mxu1  ;;  %13495 = vmatpush3.bf16.msra.mxu1 %v14295_v31  ;;  %13544 = vmatprep.subr.bf16.mxu0 %v14302_v54  ;;  %v14288_v31 = vld [vmem:[%s17495_s0 + $0x38c] ss:$16 sps:$4 sm:$0xff]   ;;  %v14290_v24 = vld [vmem:[%s17495_s0 + $0x380] ss:$16 sps:$4 sm:$0xff]  }
 0x31f   : > { %v6772_v0 = vadd.f32 %v12992_v55, %v12928_v23  ;;  %v12995_v34 = vadd.f32 %v12994_v8, %v12993_v57  ;;  %8677 = vmatmul.mubr.bf16.gmra.mrb[176].mxu0 %v14260_v7  ;;  %13608 = vmatprep.subr.bf16.mxu1 %v14303_v33  ;;  %v14286_v7 = vld [vmem:[%s17495_s0 + $0x384] ss:$16 sps:$4 sm:$0xff]  }
 0x320   : > { %8774 = vmatmul.mubr.bf16.gmra.mrb[176].mxu1 %v14261_v2  ;;  %8684 = vmatprep.mubr.bf16.mxu0 %v14266_v45 }
 0x321   : > { %v16646_v10 = vadd.f32 %v6772_v0, %v16470_v50  ;;  %v6775_v12 = vadd.f32 %v12995_v34, %v12931_v11  ;;  %8781 = vmatprep.mubr.bf16.mxu1 %v14268_v62  ;;  %v14291_v62 = vld [vmem:[%s17495_s0 + $0x388] ss:$16 sps:$4 sm:$0xff]   ;;  %v14298_v0 = vld [vmem:[%s17495_s0 + $0x44] ss:$16 sps:$4 sm:$0xff]  }
 0x322   : > { %v12932_v36 = vpop.f32.mrb[72].mxu0 }
 0x323   : > { %v16652_v15 = vadd.f32 %v6775_v12, %v16476_v35  ;;  %v12996_v17 = vpop.f32.mrb[72].mxu1  ;;  %v12933_v56 = vpop.f32.mrb[73].mxu0  ;;  %v14278_v35 = vld [vmem:[%s17495_s0 + $0x36c] ss:$16 sps:$4 sm:$0xff]  }
 0x324   : > { %v12934_v43 = vadd.f32 %v12933_v56, %v12932_v36  ;;  %v12997_v19 = vpop.f32.mrb[73].mxu1  ;;  %v12935_v50 = vpop.f32.mrb[74].mxu0 }
 0x325   : > { %v12998_v41 = vadd.f32 %v12997_v19, %v12996_v17  ;;  %v12999_v46 = vpop.f32.mrb[74].mxu1  ;;  %v12936_v44 = vpop.f32.mrb[75].mxu0 }
 0x326   : > { %v12937_v49 = vadd.f32 %v12936_v44, %v12935_v50  ;;  %v13000_v26 = vpop.f32.mrb[75].mxu1  ;;  %v14296_v50 = vld [vmem:[%s17495_s0 + $0x40] ss:$16 sps:$4 sm:$0xff]  }
 0x327   : > { %v6780_v27 = vadd.f32 %v12998_v41, %v12934_v43  ;;  %v13001_v22 = vadd.f32 %v13000_v26, %v12999_v46  ;;  %8685 = vmatmul.mubr.bf16.gmra.mrb[180].mxu0 %v14270_v51  ;;  %v14301_v51 = vld [vmem:[%s17495_s0 + $0x4c] ss:$16 sps:$4 sm:$0xff]   ;;  %v14299_v41 = vld [vmem:[%s17495_s0 + $0x48] ss:$16 sps:$4 sm:$0xff]   ;;  %v14304_v46 = vld [vmem:[%s15763_s11 + $0x700] sm:$0xff]  }
 0x328   : > { %8782 = vmatmul.mubr.bf16.gmra.mrb[180].mxu1 %v14271_v18  ;;  %8692 = vmatprep.mubr.bf16.mxu0 %v14276_v40 }
 0x329   : > { %v16664_v20 = vadd.f32 %v6780_v27, %v16488_v3  ;;  %v6783_v25 = vadd.f32 %v13001_v22, %v12937_v49  ;;  %8789 = vmatprep.mubr.bf16.mxu1 %v14278_v35  ;;  %v14306_v49 = vld [vmem:[%s17495_s0 + $0x64] ss:$16 sps:$4 sm:$0xff]  }
 0x32a   : > { %v12938_v58 = vpop.f32.mrb[76].mxu0 }
 0x32b   : > { %v16670_v28 = vadd.f32 %v6783_v25, %v16491_v47  ;;  %v13002_v5 = vpop.f32.mrb[76].mxu1  ;;  %v12939_v52 = vpop.f32.mrb[77].mxu0  ;;  %v14305_v25 = vld [vmem:[%s15763_s11 + $0x780] sm:$0xff]  }
 0x32c   : > { %v12940_v38 = vadd.f32 %v12939_v52, %v12938_v58  ;;  %v13003_v60 = vpop.f32.mrb[77].mxu1  ;;  %v12941_v3 = vpop.f32.mrb[78].mxu0  ;;  %v14308_v58 = vld [vmem:[%s17495_s0 + $0x6c] ss:$16 sps:$4 sm:$0xff]  }
 0x32d   : > { %v13004_v42 = vadd.f32 %v13003_v60, %v13002_v5  ;;  %v13005_v47 = vpop.f32.mrb[78].mxu1  ;;  %v12942_v2 = vpop.f32.mrb[79].mxu0  ;;  %v14313_v60 = vld [vmem:[%s15763_s11 + $0x7c8] sm:$0xff]  }
 0x32e   : > { %v12943_v45 = vadd.f32 %v12942_v2, %v12941_v3  ;;  %v13006_v54 = vpop.f32.mrb[79].mxu1 }
 0x32f   : > { %v6788_v48 = vadd.f32 %v13004_v42, %v12940_v38  ;;  %v13007_v32 = vadd.f32 %v13006_v54, %v13005_v47  ;;  %8693 = vmatmul.mubr.bf16.gmra.mrb[184].mxu0 %v14280_v59  ;;  %v14312_v59 = vld [vmem:[%s15763_s11 + $0x748] sm:$0xff]   ;;  %v14322_v54 = vld [vmem:[%s15763_s11 + $0x750] sm:$0xff]  }
 0x330   : > { %8790 = vmatmul.mubr.bf16.gmra.mrb[184].mxu1 %v14281_v29  ;;  %8700 = vmatprep.mubr.bf16.mxu0 %v14286_v7  ;;  %v14315_v42 = vld [vmem:[%s15763_s11 + $0x788] sm:$0xff]  }
 0x331   : > { %v16682_v33 = vadd.f32 %v6788_v48, %v16506_v13  ;;  %v6791_v23 = vadd.f32 %v13007_v32, %v12943_v45  ;;  %8797 = vmatprep.mubr.bf16.mxu1 %v14288_v31  ;;  %v14314_v31 = vld [vmem:[%s15763_s11 + $0x708] sm:$0xff]   ;;  %v14310_v45 = vld [vmem:[%s17495_s0 + $0x60] ss:$16 sps:$4 sm:$0xff]  }
 0x332   : > { %v12944_v6 = vpop.f32.mrb[80].mxu0  ;;  %v14311_v32 = vld [vmem:[%s17495_s0 + $0x68] ss:$16 sps:$4 sm:$0xff]  }
 0x333   : > { %v16685_v53 = vadd.f32 %v6791_v23, %v16509_v16  ;;  %v13008_v55 = vpop.f32.mrb[80].mxu1  ;;  %v12945_v57 = vpop.f32.mrb[81].mxu0  ;;  %v14323_v23 = vld [vmem:[%s15763_s11 + $0x7d0] sm:$0xff]  }
 0x334   : > { %v12946_v11 = vadd.f32 %v12945_v57, %v12944_v6  ;;  %v13009_v8 = vpop.f32.mrb[81].mxu1  ;;  %v12947_v13 = vpop.f32.mrb[82].mxu0 }
 0x335   : > { %v13010_v34 = vadd.f32 %v13009_v8, %v13008_v55  ;;  %v13011_v16 = vpop.f32.mrb[82].mxu1  ;;  %v12948_v12 = vpop.f32.mrb[83].mxu0 }
 0x336   : > { %v12949_v36 = vadd.f32 %v12948_v12, %v12947_v13  ;;  %v13012_v17 = vpop.f32.mrb[83].mxu1  ;;  %v14332_v12 = vld [vmem:[%s15763_s11 + $0x758] sm:$0xff]  }
 0x337   : > { %v6796_v56 = vadd.f32 %v13010_v34, %v12946_v11  ;;  %v13013_v18 = vadd.f32 %v13012_v17, %v13011_v16  ;;  %8701 = vmatmul.mubr.bf16.gmra.mrb[188].mxu0 %v14290_v24  ;;  %v14318_v24 = vld [vmem:[%s17495_s0 + $0x8c] ss:$16 sps:$4 sm:$0xff]  }
 0x338   : > { %8798 = vmatmul.mubr.bf16.gmra.mrb[188].mxu1 %v14291_v62  ;;  %9304 = vmatprep.mubr.bf16.mxu0 %v14298_v0  ;;  %v14324_v62 = vld [vmem:[%s15763_s11 + $0x710] sm:$0xff]   ;;  %v14333_v17 = vld [vmem:[%s15763_s11 + $0x7d8] sm:$0xff]  }
 0x339   : > { %v16700_v43 = vadd.f32 %v6796_v56, %v16524_v61  ;;  %v6799_v19 = vadd.f32 %v13013_v18, %v12949_v36  ;;  %9401 = vmatprep.mubr.bf16.mxu1 %v14301_v51 }
 0x33a   : > { %v12950_v40 = vpop.f32.mrb[84].mxu0 }
 0x33b   : > { %v16710_v44 = vadd.f32 %v6799_v19, %v16530_v21  ;;  %v13014_v35 = vpop.f32.mrb[84].mxu1  ;;  %v12951_v61 = vpop.f32.mrb[85].mxu0 }
 0x33c   : > { %v12952_v26 = vadd.f32 %v12951_v61, %v12950_v40  ;;  %v13015_v27 = vpop.f32.mrb[85].mxu1  ;;  %v12953_v22 = vpop.f32.mrb[86].mxu0  ;;  %v14320_v40 = vld [vmem:[%s17495_s0 + $0x80] ss:$16 sps:$4 sm:$0xff]  }
 0x33d   : > { %v13016_v5 = vadd.f32 %v13015_v27, %v13014_v35  ;;  %v13017_v21 = vpop.f32.mrb[86].mxu1  ;;  %v12954_v52 = vpop.f32.mrb[87].mxu0  ;;  %v14342_v35 = vld [vmem:[%s15763_s11 + $0x760] sm:$0xff]  }
 0x33e   : > { %v12955_v29 = vadd.f32 %v12954_v52, %v12953_v22  ;;  %v13018_v38 = vpop.f32.mrb[87].mxu1  ;;  %v14344_v52 = vld [vmem:[%s15763_s11 + $0x720] sm:$0xff]  }
 0x33f   : > { %v6804_v3 = vadd.f32 %v13016_v5, %v12952_v26  ;;  %v13019_v7 = vadd.f32 %v13018_v38, %v13017_v21  ;;  %9305 = vmatmul.mubr.bf16.vlgmr.msra.gmra.mrb[192].mxu0 %v14296_v50  ;;  %v14343_v26 = vld [vmem:[%s15763_s11 + $0x7e0] sm:$0xff]  }
 0x340   : > { %9402 = vmatmul.mubr.bf16.vlgmr.msra.gmra.mrb[192].mxu1 %v14299_v41  ;;  %13545 = vmatpush3.bf16.msra.mxu0 %v14304_v46  ;;  %v14334_v41 = vld [vmem:[%s15763_s11 + $0x718] sm:$0xff]  }
 0x341   : > { %v16724_v47 = vadd.f32 %v6804_v3, %v16547_v63  ;;  %v6807_v2 = vadd.f32 %v13019_v7, %v12955_v29  ;;  %13609 = vmatpush3.bf16.msra.mxu1 %v14305_v25  ;;  %9312 = vmatprep.mubr.bf16.mxu0 %v14306_v49  ;;  %v14316_v63 = vld [vmem:[%s17495_s0 + $0x84] ss:$16 sps:$4 sm:$0xff]   ;;  %v14335_v46 = vld [vmem:[%s15763_s11 + $0x798] sm:$0xff]  }
 0x342   : > { %v12956_v48 = vpop.f32.mrb[88].mxu0  ;;  %9409 = vmatprep.mubr.bf16.mxu1 %v14308_v58  ;;  %13546 = vmatprep.subr.bf16.mxu0 %v14312_v59  ;;  %v14321_v49 = vld [vmem:[%s17495_s0 + $0x88] ss:$16 sps:$4 sm:$0xff]   ;;  %v14328_v58 = vld [vmem:[%s17495_s0 + $0xac] ss:$16 sps:$4 sm:$0xff]   ;;  %v14345_v29 = vld [vmem:[%s15763_s11 + $0x7a0] sm:$0xff]  }
 0x343   : > { %v16738_v6 = vadd.f32 %v6807_v2, %v16555_v9  ;;  %v13020_v55 = vpop.f32.mrb[88].mxu1  ;;  %v12957_v57 = vpop.f32.mrb[89].mxu0  ;;  %13610 = vmatprep.subr.bf16.mxu1 %v14313_v60  ;;  %v14325_v9 = vld [vmem:[%s15763_s11 + $0x790] sm:$0xff]  }
 0x344   : > { %v12958_v11 = vadd.f32 %v12957_v57, %v12956_v48  ;;  %v13021_v8 = vpop.f32.mrb[89].mxu1  ;;  %v12959_v13 = vpop.f32.mrb[90].mxu0  ;;  %13547 = vmatpush3.bf16.msra.mxu0 %v14314_v31  ;;  %v14352_v31 = vld [vmem:[%s15763_s11 + $0x768] sm:$0xff]  }
 0x345   : > { %v13022_v0 = vadd.f32 %v13021_v8, %v13020_v55  ;;  %v13023_v34 = vpop.f32.mrb[90].mxu1  ;;  %v12960_v16 = vpop.f32.mrb[91].mxu0  ;;  %13611 = vmatpush3.bf16.msra.mxu1 %v14315_v42  ;;  %13548 = vmatprep.subr.bf16.mxu0 %v14322_v54  ;;  %v14354_v54 = vld [vmem:[%s15763_s11 + $0x728] sm:$0xff]  }
 0x346   : > { %v12961_v51 = vadd.f32 %v12960_v16, %v12959_v13  ;;  %v13024_v36 = vpop.f32.mrb[91].mxu1  ;;  %13612 = vmatprep.subr.bf16.mxu1 %v14323_v23  ;;  %v14355_v23 = vld [vmem:[%s15763_s11 + $0x7a8] sm:$0xff]  }
 0x347   : > { %v6812_v56 = vadd.f32 %v13022_v0, %v12958_v11  ;;  %v13025_v18 = vadd.f32 %v13024_v36, %v13023_v34  ;;  %9313 = vmatmul.mubr.bf16.gmra.mrb[196].mxu0 %v14310_v45  ;;  %v14353_v45 = vld [vmem:[%s15763_s11 + $0x7e8] sm:$0xff]   ;;  %v14363_v0 = vld [vmem:[%s15763_s11 + $0x7f0] sm:$0xff]  }
 0x348   : > { %9410 = vmatmul.mubr.bf16.gmra.mrb[196].mxu1 %v14311_v32  ;;  %9320 = vmatprep.mubr.bf16.mxu0 %v14316_v63  ;;  %v14330_v63 = vld [vmem:[%s17495_s0 + $0xa0] ss:$16 sps:$4 sm:$0xff]   ;;  %v14331_v57 = vld [vmem:[%s17495_s0 + $0xa8] ss:$16 sps:$4 sm:$0xff]   ;;  %v14338_v13 = vld [vmem:[%s17495_s0 + $0xcc] ss:$16 sps:$4 sm:$0xff]  }
 0x349   : > { %v16748_v19 = vadd.f32 %v6812_v56, %v16572_v37  ;;  %v6815_v50 = vadd.f32 %v13025_v18, %v12961_v51  ;;  %9417 = vmatprep.mubr.bf16.mxu1 %v14318_v24  ;;  %13549 = vmatpush3.bf16.msra.mxu0 %v14324_v62  ;;  %v14326_v37 = vld [vmem:[%s17495_s0 + $0xa4] ss:$16 sps:$4 sm:$0xff]  }
 0x34a   : > { %v12962_v61 = vpop.f32.mrb[92].mxu0  ;;  %13613 = vmatpush3.bf16.msra.mxu1 %v14325_v9  ;;  %13550 = vmatprep.subr.bf16.mxu0 %v14332_v12  ;;  %v14362_v24 = vld [vmem:[%s15763_s11 + $0x770] sm:$0xff]  }
 0x34b   : > { %v16764_v27 = vadd.f32 %v6815_v50, %v16581_v30  ;;  %v13026_v22 = vpop.f32.mrb[92].mxu1  ;;  %v12963_v25 = vpop.f32.mrb[93].mxu0  ;;  %13614 = vmatprep.subr.bf16.mxu1 %v14333_v17  ;;  %v14364_v34 = vld [vmem:[%s15763_s11 + $0x730] sm:$0xff]   ;;  %v14372_v50 = vld [vmem:[%s15763_s11 + $0x778] sm:$0xff]  }
 0x34c   : > { %v12964_v59 = vadd.f32 %v12963_v25, %v12962_v61  ;;  %v13027_v5 = vpop.f32.mrb[93].mxu1  ;;  %v12965_v21 = vpop.f32.mrb[94].mxu0  ;;  %v14341_v25 = vld [vmem:[%s17495_s0 + $0xc8] ss:$16 sps:$4 sm:$0xff]  }
 0x34d   : > { %v13028_v38 = vadd.f32 %v13027_v5, %v13026_v22  ;;  %v13029_v60 = vpop.f32.mrb[94].mxu1  ;;  %v12966_v3 = vpop.f32.mrb[95].mxu0  ;;  %13551 = vmatpush3.bf16.msra.mxu0 %v14334_v41 }
 0x34e   : > { %v12967_v30 = vadd.f32 %v12966_v3, %v12965_v21  ;;  %v13030_v7 = vpop.f32.mrb[95].mxu1  ;;  %13615 = vmatpush3.bf16.msra.mxu1 %v14335_v46  ;;  %13552 = vmatprep.subr.bf16.mxu0 %v14342_v35  ;;  %v14373_v46 = vld [vmem:[%s15763_s11 + $0x7f8] sm:$0xff]  }
 0x34f   : > { %v6820_v42 = vadd.f32 %v13028_v38, %v12964_v59  ;;  %v13031_v2 = vadd.f32 %v13030_v7, %v13029_v60  ;;  %9321 = vmatmul.mubr.bf16.gmra.mrb[200].mxu0 %v14320_v40  ;;  %13616 = vmatprep.subr.bf16.mxu1 %v14343_v26  ;;  %v14374_v35 = vld [vmem:[%s15763_s11 + $0x738] sm:$0xff]  }
 0x350   : > { %9418 = vmatmul.mubr.bf16.gmra.mrb[200].mxu1 %v14321_v49  ;;  %9328 = vmatprep.mubr.bf16.mxu0 %v14326_v37  ;;  %v14340_v37 = vld [vmem:[%s17495_s0 + $0xc0] ss:$16 sps:$4 sm:$0xff]   ;;  %v14375_v26 = vld [vmem:[%s15763_s11 + $0x7b8] sm:$0xff]  }
 0x351   : > { %v16775_v48 = vadd.f32 %v6820_v42, %v16598_v1  ;;  %v6823_v32 = vadd.f32 %v13031_v2, %v12967_v30  ;;  %9425 = vmatprep.mubr.bf16.mxu1 %v14328_v58  ;;  %13553 = vmatpush3.bf16.msra.mxu0 %v14344_v52  ;;  %v14336_v1 = vld [vmem:[%s17495_s0 + $0xc4] ss:$16 sps:$4 sm:$0xff]  }
 0x352   : > { %v13048_v55 = vpop.f32.mrb[96].mxu0  ;;  %13617 = vmatpush3.bf16.msra.mxu1 %v14345_v29  ;;  %13554 = vmatprep.subr.bf16.mxu0 %v14352_v31  ;;  %v14346_v58 = vld [vmem:[%s17495_s0 + $0xe4] ss:$16 sps:$4 sm:$0xff]   ;;  %v14348_v31 = vld [vmem:[%s17495_s0 + $0xec] ss:$16 sps:$4 sm:$0xff]  }
 0x353   : > { %v16789_v62 = vadd.f32 %v6823_v32, %v16606_v14  ;;  %v13112_v11 = vpop.f32.mrb[96].mxu1  ;;  %v13049_v8 = vpop.f32.mrb[97].mxu0  ;;  %13618 = vmatprep.subr.bf16.mxu1 %v14353_v45  ;;  %v14365_v14 = vld [vmem:[%s15763_s11 + $0x7b0] sm:$0xff]   ;;  %v14383_v52 = vld [vmem:[%s15763_s11 + $0x8c0] sm:$0xff]  }
 0x354   : > { %v13050_v16 = vadd.f32 %v13049_v8, %v13048_v55  ;;  %v13113_v9 = vpop.f32.mrb[97].mxu1  ;;  %v13051_v12 = vpop.f32.mrb[98].mxu0 }
 0x355   : > { %v13114_v51 = vadd.f32 %v13113_v9, %v13112_v11  ;;  %v13115_v36 = vpop.f32.mrb[98].mxu1  ;;  %v13052_v17 = vpop.f32.mrb[99].mxu0  ;;  %13555 = vmatpush3.bf16.msra.mxu0 %v14354_v54 }
 0x356   : > { %v13053_v56 = vadd.f32 %v13052_v17, %v13051_v12  ;;  %v13116_v18 = vpop.f32.mrb[99].mxu1  ;;  %13619 = vmatpush3.bf16.msra.mxu1 %v14355_v23  ;;  %13556 = vmatprep.subr.bf16.mxu0 %v14362_v24 }
 0x357   : > { %v7424_v40 = vadd.f32 %v13114_v51, %v13050_v16  ;;  %v13117_v41 = vadd.f32 %v13116_v18, %v13115_v36  ;;  %9329 = vmatmul.mubr.bf16.gmra.mrb[204].mxu0 %v14330_v63  ;;  %13620 = vmatprep.subr.bf16.mxu1 %v14363_v0  ;;  %v14358_v16 = vld [vmem:[%s17495_s0 + $0x10c] ss:$16 sps:$4 sm:$0xff]  }
 0x358   : > { %9426 = vmatmul.mubr.bf16.gmra.mrb[204].mxu1 %v14331_v57  ;;  %9336 = vmatprep.mubr.bf16.mxu0 %v14336_v1  ;;  %v14350_v1 = vld [vmem:[%s17495_s0 + $0xe0] ss:$16 sps:$4 sm:$0xff]  }
 0x359   : > { %v16801_v61 = vadd.f32 %v7424_v40, %v16625_v39  ;;  %v7427_v49 = vadd.f32 %v13117_v41, %v13053_v56  ;;  %9433 = vmatprep.mubr.bf16.mxu1 %v14338_v13  ;;  %13557 = vmatpush3.bf16.msra.mxu0 %v14364_v34  ;;  %v14382_v39 = vld [vmem:[%s15763_s11 + $0x840] sm:$0xff]  }
 0x35a   : > { %v13054_v22 = vpop.f32.mrb[100].mxu0  ;;  %13621 = vmatpush3.bf16.msra.mxu1 %v14365_v14  ;;  %13558 = vmatprep.subr.bf16.mxu0 %v14372_v50  ;;  %v14356_v13 = vld [vmem:[%s17495_s0 + $0x104] ss:$16 sps:$4 sm:$0xff]   ;;  %v14360_v41 = vld [vmem:[%s17495_s0 + $0x100] ss:$16 sps:$4 sm:$0xff]  }
 0x35b   : > { %v16815_v59 = vadd.f32 %v7427_v49, %v16639_v4  ;;  %v13118_v5 = vpop.f32.mrb[100].mxu1  ;;  %v13055_v21 = vpop.f32.mrb[101].mxu0  ;;  %13622 = vmatprep.subr.bf16.mxu1 %v14373_v46  ;;  %v14361_v46 = vld [vmem:[%s17495_s0 + $0x108] ss:$16 sps:$4 sm:$0xff]  }
 0x35c   : > { %v13056_v29 = vadd.f32 %v13055_v21, %v13054_v22  ;;  %v13119_v38 = vpop.f32.mrb[101].mxu1  ;;  %v13057_v60 = vpop.f32.mrb[102].mxu0 }
 0x35d   : > { %v13120_v3 = vadd.f32 %v13119_v38, %v13118_v5  ;;  %v13121_v30 = vpop.f32.mrb[102].mxu1  ;;  %v13058_v7 = vpop.f32.mrb[103].mxu0  ;;  %13559 = vmatpush3.bf16.msra.mxu0 %v14374_v35 }
 0x35e   : > { %v13059_v42 = vadd.f32 %v13058_v7, %v13057_v60  ;;  %v13122_v2 = vpop.f32.mrb[103].mxu1  ;;  %13623 = vmatpush3.bf16.msra.mxu1 %v14375_v26  ;;  %13672 = vmatprep.subr.bf16.mxu0 %v14382_v39  ;;  %v14370_v7 = vld [vmem:[%s17495_s0 + $0x120] ss:$16 sps:$4 sm:$0xff]  }
 0x35f   : > { %v7432_v4 = vadd.f32 %v13120_v3, %v13056_v29  ;;  %v13123_v45 = vadd.f32 %v13122_v2, %v13121_v30  ;;  %9337 = vmatmul.mubr.bf16.gmra.mrb[208].mxu0 %v14340_v37  ;;  %13736 = vmatprep.subr.bf16.mxu1 %v14383_v52  ;;  %v14366_v37 = vld [vmem:[%s17495_s0 + $0x124] ss:$16 sps:$4 sm:$0xff]  }
 0x360   : > { %9434 = vmatmul.mubr.bf16.gmra.mrb[208].mxu1 %v14341_v25  ;;  %9344 = vmatprep.mubr.bf16.mxu0 %v14346_v58  ;;  %v14368_v25 = vld [vmem:[%s17495_s0 + $0x12c] ss:$16 sps:$4 sm:$0xff]  }
 0x361   : > { %v16822_v54 = vadd.f32 %v7432_v4, %v16646_v10  ;;  %v7435_v32 = vadd.f32 %v13123_v45, %v13059_v42  ;;  %9441 = vmatprep.mubr.bf16.mxu1 %v14348_v31  ;;  %v14351_v10 = vld [vmem:[%s17495_s0 + $0xe8] ss:$16 sps:$4 sm:$0xff]   ;;  %v14378_v4 = vld [vmem:[%s17495_s0 + $0x184] ss:$16 sps:$4 sm:$0xff]  }
 0x362   : > { %v13060_v63 = vpop.f32.mrb[104].mxu0 }
 0x363   : > { %v16825_v23 = vadd.f32 %v7435_v32, %v16652_v15  ;;  %v13124_v55 = vpop.f32.mrb[104].mxu1  ;;  %v13061_v57 = vpop.f32.mrb[105].mxu0 }
 0x364   : > { %v13062_v24 = vadd.f32 %v13061_v57, %v13060_v63  ;;  %v13125_v11 = vpop.f32.mrb[105].mxu1  ;;  %v13063_v8 = vpop.f32.mrb[106].mxu0  ;;  %v14381_v63 = vld [vmem:[%s17495_s0 + $0x18c] ss:$16 sps:$4 sm:$0xff]  }
 0x365   : > { %v13126_v0 = vadd.f32 %v13125_v11, %v13124_v55  ;;  %v13127_v15 = vpop.f32.mrb[106].mxu1  ;;  %v13064_v34 = vpop.f32.mrb[107].mxu0 }
 0x366   : > { %v13065_v9 = vadd.f32 %v13064_v34, %v13063_v8  ;;  %v13128_v12 = vpop.f32.mrb[107].mxu1  ;;  %v14376_v34 = vld [vmem:[%s17495_s0 + $0x180] ss:$16 sps:$4 sm:$0xff]  }
 0x367   : > { %v7440_v51 = vadd.f32 %v13126_v0, %v13062_v24  ;;  %v13129_v36 = vadd.f32 %v13128_v12, %v13127_v15  ;;  %9345 = vmatmul.mubr.bf16.gmra.mrb[212].mxu0 %v14350_v1 }
 0x368   : > { %9442 = vmatmul.mubr.bf16.gmra.mrb[212].mxu1 %v14351_v10  ;;  %9352 = vmatprep.mubr.bf16.mxu0 %v14356_v13 }
 0x369   : > { %v16840_v17 = vadd.f32 %v7440_v51, %v16664_v20  ;;  %v7443_v14 = vadd.f32 %v13129_v36, %v13065_v9  ;;  %9449 = vmatprep.mubr.bf16.mxu1 %v14358_v16  ;;  %v14384_v51 = vld [vmem:[%s15763_s11 + $0x800] sm:$0xff]  }
 0x36a   : > { %v13066_v56 = vpop.f32.mrb[108].mxu0 }
 0x36b   : > { %v16843_v18 = vadd.f32 %v7443_v14, %v16670_v28  ;;  %v13130_v50 = vpop.f32.mrb[108].mxu1  ;;  %v13067_v40 = vpop.f32.mrb[109].mxu0 }
 0x36c   : > { %v13068_v35 = vadd.f32 %v13067_v40, %v13066_v56  ;;  %v13131_v49 = vpop.f32.mrb[109].mxu1  ;;  %v13069_v20 = vpop.f32.mrb[110].mxu0  ;;  %v14385_v56 = vld [vmem:[%s15763_s11 + $0x880] sm:$0xff]  }
 0x36d   : > { %v13132_v26 = vadd.f32 %v13131_v49, %v13130_v50  ;;  %v13133_v28 = vpop.f32.mrb[110].mxu1  ;;  %v13070_v22 = vpop.f32.mrb[111].mxu0  ;;  %v14386_v50 = vld [vmem:[%s17495_s0 + $0x1a4] ss:$16 sps:$4 sm:$0xff]  }
 0x36e   : > { %v13071_v58 = vadd.f32 %v13070_v22, %v13069_v20  ;;  %v13134_v39 = vpop.f32.mrb[111].mxu1 }
 0x36f   : > { %v7448_v5 = vadd.f32 %v13132_v26, %v13068_v35  ;;  %v13135_v21 = vadd.f32 %v13134_v39, %v13133_v28  ;;  %9353 = vmatmul.mubr.bf16.gmra.mrb[216].mxu0 %v14360_v41  ;;  %v14392_v35 = vld [vmem:[%s15763_s11 + $0x848] sm:$0xff]  }
 0x370   : > { %9450 = vmatmul.mubr.bf16.gmra.mrb[216].mxu1 %v14361_v46  ;;  %9360 = vmatprep.mubr.bf16.mxu0 %v14366_v37  ;;  %v14388_v46 = vld [vmem:[%s17495_s0 + $0x1ac] ss:$16 sps:$4 sm:$0xff]  }
 0x371   : > { %v16858_v52 = vadd.f32 %v7448_v5, %v16682_v33  ;;  %v7451_v29 = vadd.f32 %v13135_v21, %v13071_v58  ;;  %9457 = vmatprep.mubr.bf16.mxu1 %v14368_v25  ;;  %v14371_v33 = vld [vmem:[%s17495_s0 + $0x128] ss:$16 sps:$4 sm:$0xff]   ;;  %v14402_v58 = vld [vmem:[%s15763_s11 + $0x850] sm:$0xff]  }
 0x372   : > { %v13072_v38 = vpop.f32.mrb[112].mxu0  ;;  %v14393_v37 = vld [vmem:[%s15763_s11 + $0x8c8] sm:$0xff]   ;;  %v14403_v5 = vld [vmem:[%s15763_s11 + $0x8d0] sm:$0xff]  }
 0x373   : > { %v16861_v60 = vadd.f32 %v7451_v29, %v16685_v53  ;;  %v13136_v3 = vpop.f32.mrb[112].mxu1  ;;  %v13073_v30 = vpop.f32.mrb[113].mxu0  ;;  %v14394_v26 = vld [vmem:[%s15763_s11 + $0x808] sm:$0xff]  }
 0x374   : > { %v13074_v31 = vadd.f32 %v13073_v30, %v13072_v38  ;;  %v13137_v42 = vpop.f32.mrb[113].mxu1  ;;  %v13075_v2 = vpop.f32.mrb[114].mxu0  ;;  %v14395_v25 = vld [vmem:[%s15763_s11 + $0x888] sm:$0xff]  }
 0x375   : > { %v13138_v45 = vadd.f32 %v13137_v42, %v13136_v3  ;;  %v13139_v53 = vpop.f32.mrb[114].mxu1  ;;  %v13076_v32 = vpop.f32.mrb[115].mxu0 }
 0x376   : > { %v13077_v55 = vadd.f32 %v13076_v32, %v13075_v2  ;;  %v13140_v57 = vpop.f32.mrb[115].mxu1 }
 0x377   : > { %v7456_v1 = vadd.f32 %v13138_v45, %v13074_v31  ;;  %v13141_v24 = vadd.f32 %v13140_v57, %v13139_v53  ;;  %9361 = vmatmul.mubr.bf16.gmra.mrb[220].mxu0 %v14370_v7  ;;  %v14391_v31 = vld [vmem:[%s17495_s0 + $0x1a8] ss:$16 sps:$4 sm:$0xff]   ;;  %v14404_v45 = vld [vmem:[%s15763_s11 + $0x810] sm:$0xff]  }
 0x378   : > { %9458 = vmatmul.mubr.bf16.gmra.mrb[220].mxu1 %v14371_v33  ;;  %9964 = vmatprep.mubr.bf16.mxu0 %v14378_v4  ;;  %v14398_v4 = vld [vmem:[%s17495_s0 + $0x1cc] ss:$16 sps:$4 sm:$0xff]  }
 0x379   : > { %v16876_v11 = vadd.f32 %v7456_v1, %v16700_v43  ;;  %v7459_v8 = vadd.f32 %v13141_v24, %v13077_v55  ;;  %10061 = vmatprep.mubr.bf16.mxu1 %v14381_v63  ;;  %v14379_v43 = vld [vmem:[%s17495_s0 + $0x188] ss:$16 sps:$4 sm:$0xff]   ;;  %v14405_v63 = vld [vmem:[%s15763_s11 + $0x890] sm:$0xff]  }
 0x37a   : > { %v13078_v10 = vpop.f32.mrb[116].mxu0  ;;  %v14412_v55 = vld [vmem:[%s15763_s11 + $0x858] sm:$0xff]  }
 0x37b   : > { %v16879_v13 = vadd.f32 %v7459_v8, %v16710_v44  ;;  %v13142_v0 = vpop.f32.mrb[116].mxu1  ;;  %v13079_v15 = vpop.f32.mrb[117].mxu0  ;;  %v14413_v24 = vld [vmem:[%s15763_s11 + $0x8d8] sm:$0xff]  }
 0x37c   : > { %v13080_v16 = vadd.f32 %v13079_v15, %v13078_v10  ;;  %v13143_v9 = vpop.f32.mrb[117].mxu1  ;;  %v13081_v12 = vpop.f32.mrb[118].mxu0 }
 0x37d   : > { %v13144_v36 = vadd.f32 %v13143_v9, %v13142_v0  ;;  %v13145_v44 = vpop.f32.mrb[118].mxu1  ;;  %v13082_v14 = vpop.f32.mrb[119].mxu0  ;;  %v14414_v0 = vld [vmem:[%s15763_s11 + $0x818] sm:$0xff]  }
 0x37e   : > { %v13083_v40 = vadd.f32 %v13082_v14, %v13081_v12  ;;  %v13146_v41 = vpop.f32.mrb[119].mxu1 }
 0x37f   : > { %v7464_v49 = vadd.f32 %v13144_v36, %v13080_v16  ;;  %v13147_v20 = vadd.f32 %v13146_v41, %v13145_v44  ;;  %9965 = vmatmul.mubr.bf16.vlgmr.msra.gmra.mrb[224].mxu0 %v14376_v34  ;;  %v14415_v34 = vld [vmem:[%s15763_s11 + $0x898] sm:$0xff]   ;;  %v14422_v16 = vld [vmem:[%s15763_s11 + $0x860] sm:$0xff]  }
 0x380   : > { %10062 = vmatmul.mubr.bf16.vlgmr.msra.gmra.mrb[224].mxu1 %v14379_v43  ;;  %13673 = vmatpush3.bf16.msra.mxu0 %v14384_v51  ;;  %v14423_v51 = vld [vmem:[%s15763_s11 + $0x8e0] sm:$0xff]  }
 0x381   : > { %v16899_v28 = vadd.f32 %v7464_v49, %v16724_v47  ;;  %v7467_v22 = vadd.f32 %v13147_v20, %v13083_v40  ;;  %13737 = vmatpush3.bf16.msra.mxu1 %v14385_v56  ;;  %9972 = vmatprep.mubr.bf16.mxu0 %v14386_v50  ;;  %v14390_v47 = vld [vmem:[%s17495_s0 + $0x1a0] ss:$16 sps:$4 sm:$0xff]   ;;  %v14401_v56 = vld [vmem:[%s17495_s0 + $0x1c8] ss:$16 sps:$4 sm:$0xff]  }
 0x382   : > { %v13084_v39 = vpop.f32.mrb[120].mxu0  ;;  %10069 = vmatprep.mubr.bf16.mxu1 %v14388_v46  ;;  %13674 = vmatprep.subr.bf16.mxu0 %v14392_v35  ;;  %v14408_v46 = vld [vmem:[%s17495_s0 + $0x1ec] ss:$16 sps:$4 sm:$0xff]   ;;  %v14424_v35 = vld [vmem:[%s15763_s11 + $0x820] sm:$0xff]  }
 0x383   : > { %v16905_v21 = vadd.f32 %v7467_v22, %v16738_v6  ;;  %v13148_v29 = vpop.f32.mrb[120].mxu1  ;;  %v13085_v38 = vpop.f32.mrb[121].mxu0  ;;  %13738 = vmatprep.subr.bf16.mxu1 %v14393_v37  ;;  %v14396_v6 = vld [vmem:[%s17495_s0 + $0x1c4] ss:$16 sps:$4 sm:$0xff]  }
 0x384   : > { %v13086_v3 = vadd.f32 %v13085_v38, %v13084_v39  ;;  %v13149_v30 = vpop.f32.mrb[121].mxu1  ;;  %v13087_v7 = vpop.f32.mrb[122].mxu0  ;;  %13675 = vmatpush3.bf16.msra.mxu0 %v14394_v26  ;;  %v14425_v37 = vld [vmem:[%s15763_s11 + $0x8a0] sm:$0xff]   ;;  %v14432_v26 = vld [vmem:[%s15763_s11 + $0x868] sm:$0xff]  }
 0x385   : > { %v13150_v42 = vadd.f32 %v13149_v30, %v13148_v29  ;;  %v13151_v2 = vpop.f32.mrb[122].mxu1  ;;  %v13088_v33 = vpop.f32.mrb[123].mxu0  ;;  %13739 = vmatpush3.bf16.msra.mxu1 %v14395_v25  ;;  %13676 = vmatprep.subr.bf16.mxu0 %v14402_v58  ;;  %v14433_v58 = vld [vmem:[%s15763_s11 + $0x8e8] sm:$0xff]  }
 0x386   : > { %v13089_v53 = vadd.f32 %v13088_v33, %v13087_v7  ;;  %v13152_v32 = vpop.f32.mrb[123].mxu1  ;;  %13740 = vmatprep.subr.bf16.mxu1 %v14403_v5  ;;  %v14434_v29 = vld [vmem:[%s15763_s11 + $0x828] sm:$0xff]  }
 0x387   : > { %v7472_v57 = vadd.f32 %v13150_v42, %v13086_v3  ;;  %v13153_v1 = vadd.f32 %v13152_v32, %v13151_v2  ;;  %9973 = vmatmul.mubr.bf16.gmra.mrb[228].mxu0 %v14390_v47  ;;  %v14435_v47 = vld [vmem:[%s15763_s11 + $0x8a8] sm:$0xff]   ;;  %v14442_v3 = vld [vmem:[%s15763_s11 + $0x870] sm:$0xff]  }
 0x388   : > { %10070 = vmatmul.mubr.bf16.gmra.mrb[228].mxu1 %v14391_v31  ;;  %9980 = vmatprep.mubr.bf16.mxu0 %v14396_v6  ;;  %v14443_v6 = vld [vmem:[%s15763_s11 + $0x8f0] sm:$0xff]  }
 0x389   : > { %v16924_v8 = vadd.f32 %v7472_v57, %v16748_v19  ;;  %v7475_v10 = vadd.f32 %v13153_v1, %v13089_v53  ;;  %10077 = vmatprep.mubr.bf16.mxu1 %v14398_v4  ;;  %13677 = vmatpush3.bf16.msra.mxu0 %v14404_v45  ;;  %v14400_v19 = vld [vmem:[%s17495_s0 + $0x1c0] ss:$16 sps:$4 sm:$0xff]   ;;  %v14411_v4 = vld [vmem:[%s17495_s0 + $0x1e8] ss:$16 sps:$4 sm:$0xff]  }
 0x38a   : > { %v13090_v15 = vpop.f32.mrb[124].mxu0  ;;  %13741 = vmatpush3.bf16.msra.mxu1 %v14405_v63  ;;  %13678 = vmatprep.subr.bf16.mxu0 %v14412_v55  ;;  %v14418_v63 = vld [vmem:[%s17495_s0 + $0x20c] ss:$16 sps:$4 sm:$0xff]   ;;  %v14444_v55 = vld [vmem:[%s15763_s11 + $0x830] sm:$0xff]  }
 0x38b   : > { %v16930_v9 = vadd.f32 %v7475_v10, %v16764_v27  ;;  %v13154_v12 = vpop.f32.mrb[124].mxu1  ;;  %v13091_v43 = vpop.f32.mrb[125].mxu0  ;;  %13742 = vmatprep.subr.bf16.mxu1 %v14413_v24  ;;  %v14406_v27 = vld [vmem:[%s17495_s0 + $0x1e4] ss:$16 sps:$4 sm:$0xff]   ;;  %v14452_v10 = vld [vmem:[%s15763_s11 + $0x878] sm:$0xff]  }
 0x38c   : > { %v13092_v36 = vadd.f32 %v13091_v43, %v13090_v15  ;;  %v13155_v44 = vpop.f32.mrb[125].mxu1  ;;  %v13093_v14 = vpop.f32.mrb[126].mxu0  ;;  %v14445_v24 = vld [vmem:[%s15763_s11 + $0x8b0] sm:$0xff]   ;;  %v14454_v43 = vld [vmem:[%s15763_s11 + $0x838] sm:$0xff]  }
 0x38d   : > { %v13156_v50 = vadd.f32 %v13155_v44, %v13154_v12  ;;  %v13157_v40 = vpop.f32.mrb[126].mxu1  ;;  %v13094_v41 = vpop.f32.mrb[127].mxu0  ;;  %13679 = vmatpush3.bf16.msra.mxu0 %v14414_v0 }
 0x38e   : > { %v13095_v49 = vadd.f32 %v13094_v41, %v13093_v14  ;;  %v13158_v20 = vpop.f32.mrb[127].mxu1  ;;  %13743 = vmatpush3.bf16.msra.mxu1 %v14415_v34  ;;  %13680 = vmatprep.subr.bf16.mxu0 %v14422_v16  ;;  %v14453_v34 = vld [vmem:[%s15763_s11 + $0x8f8] sm:$0xff]   ;;  %v14426_v41 = vld [vmem:[%s17495_s0 + $0x224] ss:$16 sps:$4 sm:$0xff]  }
 0x38f   : > { %v7480_v22 = vadd.f32 %v13156_v50, %v13092_v36  ;;  %v13159_v25 = vadd.f32 %v13158_v20, %v13157_v40  ;;  %9981 = vmatmul.mubr.bf16.gmra.mrb[232].mxu0 %v14400_v19  ;;  %13744 = vmatprep.subr.bf16.mxu1 %v14423_v51  ;;  %v14455_v51 = vld [vmem:[%s15763_s11 + $0x8b8] sm:$0xff]  }
 0x390   : > { %10078 = vmatmul.mubr.bf16.gmra.mrb[232].mxu1 %v14401_v56  ;;  %9988 = vmatprep.mubr.bf16.mxu0 %v14406_v27  ;;  %v14420_v56 = vld [vmem:[%s17495_s0 + $0x200] ss:$16 sps:$4 sm:$0xff]   ;;  %v14421_v40 = vld [vmem:[%s17495_s0 + $0x208] ss:$16 sps:$4 sm:$0xff]  }
 0x391   : > { %v16950_v39 = vadd.f32 %v7480_v22, %v16775_v48  ;;  %v7483_v5 = vadd.f32 %v13159_v25, %v13095_v49  ;;  %10085 = vmatprep.mubr.bf16.mxu1 %v14408_v46  ;;  %13681 = vmatpush3.bf16.msra.mxu0 %v14424_v35  ;;  %v14410_v48 = vld [vmem:[%s17495_s0 + $0x1e0] ss:$16 sps:$4 sm:$0xff]   ;;  %v14428_v49 = vld [vmem:[%s17495_s0 + $0x22c] ss:$16 sps:$4 sm:$0xff]  }
 0x392   : > { %v13176_v38 = vpop.f32.mrb[128].mxu0  ;;  %13745 = vmatpush3.bf16.msra.mxu1 %v14425_v37  ;;  %13682 = vmatprep.subr.bf16.mxu0 %v14432_v26 }
 0x393   : > { %v16956_v30 = vadd.f32 %v7483_v5, %v16789_v62  ;;  %v13240_v7 = vpop.f32.mrb[128].mxu1  ;;  %v13177_v31 = vpop.f32.mrb[129].mxu0  ;;  %13746 = vmatprep.subr.bf16.mxu1 %v14433_v58  ;;  %v14416_v62 = vld [vmem:[%s17495_s0 + $0x204] ss:$16 sps:$4 sm:$0xff]  }
 0x394   : > { %v13178_v42 = vadd.f32 %v13177_v31, %v13176_v38  ;;  %v13241_v2 = vpop.f32.mrb[129].mxu1  ;;  %v13179_v33 = vpop.f32.mrb[130].mxu0 }
 0x395   : > { %v13242_v45 = vadd.f32 %v13241_v2, %v13240_v7  ;;  %v13243_v53 = vpop.f32.mrb[130].mxu1  ;;  %v13180_v32 = vpop.f32.mrb[131].mxu0  ;;  %13683 = vmatpush3.bf16.msra.mxu0 %v14434_v29 }
 0x396   : > { %v13181_v57 = vadd.f32 %v13180_v32, %v13179_v33  ;;  %v13244_v1 = vpop.f32.mrb[131].mxu1  ;;  %13747 = vmatpush3.bf16.msra.mxu1 %v14435_v47  ;;  %13684 = vmatprep.subr.bf16.mxu0 %v14442_v3  ;;  %v14430_v3 = vld [vmem:[%s17495_s0 + $0x220] ss:$16 sps:$4 sm:$0xff]   ;;  %v14438_v33 = vld [vmem:[%s17495_s0 + $0x24c] ss:$16 sps:$4 sm:$0xff]  }
 0x397   : > { %v8084_v0 = vadd.f32 %v13242_v45, %v13178_v42  ;;  %v13245_v15 = vadd.f32 %v13244_v1, %v13243_v53  ;;  %9989 = vmatmul.mubr.bf16.gmra.mrb[236].mxu0 %v14410_v48  ;;  %13748 = vmatprep.subr.bf16.mxu1 %v14443_v6  ;;  %v14436_v6 = vld [vmem:[%s17495_s0 + $0x244] ss:$16 sps:$4 sm:$0xff]  }
 0x398   : > { %10086 = vmatmul.mubr.bf16.gmra.mrb[236].mxu1 %v14411_v4  ;;  %9996 = vmatprep.mubr.bf16.mxu0 %v14416_v62 }
 0x399   : > { %v16976_v16 = vadd.f32 %v8084_v0, %v16801_v61  ;;  %v8087_v12 = vadd.f32 %v13245_v15, %v13181_v57  ;;  %10093 = vmatprep.mubr.bf16.mxu1 %v14418_v63  ;;  %13685 = vmatpush3.bf16.msra.mxu0 %v14444_v55 }
 0x39a   : > { %v13182_v19 = vpop.f32.mrb[132].mxu0  ;;  %13749 = vmatpush3.bf16.msra.mxu1 %v14445_v24  ;;  %13686 = vmatprep.subr.bf16.mxu0 %v14452_v10  ;;  %v14440_v10 = vld [vmem:[%s17495_s0 + $0x240] ss:$16 sps:$4 sm:$0xff]  }
 0x39b   : > { %v16981_v36 = vadd.f32 %v8087_v12, %v16815_v59  ;;  %v13246_v44 = vpop.f32.mrb[132].mxu1  ;;  %v13183_v14 = vpop.f32.mrb[133].mxu0  ;;  %13750 = vmatprep.subr.bf16.mxu1 %v14453_v34  ;;  %v14446_v12 = vld [vmem:[%s17495_s0 + $0x264] ss:$16 sps:$4 sm:$0xff]  }
 0x39c   : > { %v13184_v61 = vadd.f32 %v13183_v14, %v13182_v19  ;;  %v13247_v27 = vpop.f32.mrb[133].mxu1  ;;  %v13185_v50 = vpop.f32.mrb[134].mxu0 }
 0x39d   : > { %v13248_v59 = vadd.f32 %v13247_v27, %v13246_v44  ;;  %v13249_v46 = vpop.f32.mrb[134].mxu1  ;;  %v13186_v35 = vpop.f32.mrb[135].mxu0  ;;  %13687 = vmatpush3.bf16.msra.mxu0 %v14454_v43 }
 0x39e   : > { %v13187_v20 = vadd.f32 %v13186_v35, %v13185_v50  ;;  %v13250_v37 = vpop.f32.mrb[135].mxu1  ;;  %13751 = vmatpush3.bf16.msra.mxu1 %v14455_v51  ;;  %v14448_v51 = vld [vmem:[%s17495_s0 + $0x26c] ss:$16 sps:$4 sm:$0xff]   ;;  %v14450_v35 = vld [vmem:[%s17495_s0 + $0x260] ss:$16 sps:$4 sm:$0xff]  }
 0x39f   : > { %v8092_v26 = vadd.f32 %v13248_v59, %v13184_v61  ;;  %v13251_v22 = vadd.f32 %v13250_v37, %v13249_v46  ;;  %9997 = vmatmul.mubr.bf16.gmra.mrb[240].mxu0 %v14420_v56 }
 0x3a0   : > { %10094 = vmatmul.mubr.bf16.gmra.mrb[240].mxu1 %v14421_v40  ;;  %10004 = vmatprep.mubr.bf16.mxu0 %v14426_v41 }
 0x3a1   : > { %v16996_v25 = vadd.f32 %v8092_v26, %v16822_v54  ;;  %v8095_v58 = vadd.f32 %v13251_v22, %v13187_v20  ;;  %10101 = vmatprep.mubr.bf16.mxu1 %v14428_v49  ;;  %v14431_v54 = vld [vmem:[%s17495_s0 + $0x228] ss:$16 sps:$4 sm:$0xff]   ;;  %v14458_v26 = vld [vmem:[%s17495_s0 + $0x2c4] ss:$16 sps:$4 sm:$0xff]  }
 0x3a2   : > { %v13188_v5 = vpop.f32.mrb[136].mxu0 }
 0x3a3   : > { %v16999_v29 = vadd.f32 %v8095_v58, %v16825_v23  ;;  %v13252_v38 = vpop.f32.mrb[136].mxu1  ;;  %v13189_v47 = vpop.f32.mrb[137].mxu0 }
 0x3a4   : > { %v13190_v7 = vadd.f32 %v13189_v47, %v13188_v5  ;;  %v13253_v31 = vpop.f32.mrb[137].mxu1  ;;  %v13191_v48 = vpop.f32.mrb[138].mxu0  ;;  %v14461_v5 = vld [vmem:[%s17495_s0 + $0x2cc] ss:$16 sps:$4 sm:$0xff]  }
 0x3a5   : > { %v13254_v42 = vadd.f32 %v13253_v31, %v13252_v38  ;;  %v13255_v23 = vpop.f32.mrb[138].mxu1  ;;  %v13192_v2 = vpop.f32.mrb[139].mxu0 }
 0x3a6   : > { %v13193_v4 = vadd.f32 %v13192_v2, %v13191_v48  ;;  %v13256_v62 = vpop.f32.mrb[139].mxu1  ;;  %v14456_v2 = vld [vmem:[%s17495_s0 + $0x2c0] ss:$16 sps:$4 sm:$0xff]  }
 0x3a7   : > { %v8100_v45 = vadd.f32 %v13254_v42, %v13190_v7  ;;  %v13257_v53 = vadd.f32 %v13256_v62, %v13255_v23  ;;  %10005 = vmatmul.mubr.bf16.gmra.mrb[244].mxu0 %v14430_v3 }
 0x3a8   : > { %10102 = vmatmul.mubr.bf16.gmra.mrb[244].mxu1 %v14431_v54  ;;  %10012 = vmatprep.mubr.bf16.mxu0 %v14436_v6 }
 0x3a9   : > { %v17014_v32 = vadd.f32 %v8100_v45, %v16840_v17  ;;  %v8103_v63 = vadd.f32 %v13257_v53, %v13193_v4  ;;  %10109 = vmatprep.mubr.bf16.mxu1 %v14438_v33  ;;  %v14441_v17 = vld [vmem:[%s17495_s0 + $0x248] ss:$16 sps:$4 sm:$0xff]   ;;  %v14464_v45 = vld [vmem:[%s17495_s0 + $0x2e4] ss:$16 sps:$4 sm:$0xff]  }
 0x3aa   : > { %v13194_v55 = vpop.f32.mrb[140].mxu0 }
 0x3ab   : > { %v17017_v57 = vadd.f32 %v8103_v63, %v16843_v18  ;;  %v13258_v1 = vpop.f32.mrb[140].mxu1  ;;  %v13195_v24 = vpop.f32.mrb[141].mxu0 }
 0x3ac   : > { %v13196_v0 = vadd.f32 %v13195_v24, %v13194_v55  ;;  %v13259_v15 = vpop.f32.mrb[141].mxu1  ;;  %v13197_v34 = vpop.f32.mrb[142].mxu0  ;;  %v14467_v55 = vld [vmem:[%s17495_s0 + $0x2ec] ss:$16 sps:$4 sm:$0xff]  }
 0x3ad   : > { %v13260_v43 = vadd.f32 %v13259_v15, %v13258_v1  ;;  %v13261_v18 = vpop.f32.mrb[142].mxu1  ;;  %v13198_v19 = vpop.f32.mrb[143].mxu0 }
 0x3ae   : > { %v13199_v44 = vadd.f32 %v13198_v19, %v13197_v34  ;;  %v13262_v14 = vpop.f32.mrb[143].mxu1  ;;  %v14462_v19 = vld [vmem:[%s17495_s0 + $0x2e0] ss:$16 sps:$4 sm:$0xff]  }
 0x3af   : > { %v8108_v56 = vadd.f32 %v13260_v43, %v13196_v0  ;;  %v13263_v61 = vadd.f32 %v13262_v14, %v13261_v18  ;;  %10013 = vmatmul.mubr.bf16.gmra.mrb[248].mxu0 %v14440_v10 }
 0x3b0   : > { %10110 = vmatmul.mubr.bf16.gmra.mrb[248].mxu1 %v14441_v17  ;;  %10020 = vmatprep.mubr.bf16.mxu0 %v14446_v12 }
 0x3b1   : > { %v17032_v27 = vadd.f32 %v8108_v56, %v16858_v52  ;;  %v8111_v50 = vadd.f32 %v13263_v61, %v13199_v44  ;;  %10117 = vmatprep.mubr.bf16.mxu1 %v14448_v51  ;;  %v14451_v52 = vld [vmem:[%s17495_s0 + $0x268] ss:$16 sps:$4 sm:$0xff]   ;;  %v14470_v56 = vld [vmem:[%s17495_s0 + $0x304] ss:$16 sps:$4 sm:$0xff]  }
 0x3b2   : > { %v13200_v40 = vpop.f32.mrb[144].mxu0 }
 0x3b3   : > { %v17035_v41 = vadd.f32 %v8111_v50, %v16861_v60  ;;  %v13264_v59 = vpop.f32.mrb[144].mxu1  ;;  %v13201_v46 = vpop.f32.mrb[145].mxu0 }
 0x3b4   : > { %v13202_v49 = vadd.f32 %v13201_v46, %v13200_v40  ;;  %v13265_v20 = vpop.f32.mrb[145].mxu1  ;;  %v13203_v37 = vpop.f32.mrb[146].mxu0  ;;  %v14473_v40 = vld [vmem:[%s17495_s0 + $0x30c] ss:$16 sps:$4 sm:$0xff]  }
 0x3b5   : > { %v13266_v22 = vadd.f32 %v13265_v20, %v13264_v59  ;;  %v13267_v60 = vpop.f32.mrb[146].mxu1  ;;  %v13204_v58 = vpop.f32.mrb[147].mxu0 }
 0x3b6   : > { %v13205_v38 = vadd.f32 %v13204_v58, %v13203_v37  ;;  %v13268_v47 = vpop.f32.mrb[147].mxu1  ;;  %v14468_v58 = vld [vmem:[%s17495_s0 + $0x300] ss:$16 sps:$4 sm:$0xff]  }
 0x3b7   : > { %v8116_v3 = vadd.f32 %v13266_v22, %v13202_v49  ;;  %v13269_v7 = vadd.f32 %v13268_v47, %v13267_v60  ;;  %10021 = vmatmul.mubr.bf16.gmra.mrb[252].mxu0 %v14450_v35 }
 0x3b8   : > { %10118 = vmatmul.mubr.bf16.gmra.mrb[252].mxu1 %v14451_v52  ;;  %10624 = vmatprep.mubr.bf16.mxu0 %v14458_v26 }
 0x3b9   : > { %v17050_v31 = vadd.f32 %v8116_v3, %v16876_v11  ;;  %v8119_v48 = vadd.f32 %v13269_v7, %v13205_v38  ;;  %10721 = vmatprep.mubr.bf16.mxu1 %v14461_v5  ;;  %v14459_v11 = vld [vmem:[%s17495_s0 + $0x2c8] ss:$16 sps:$4 sm:$0xff]   ;;  %v14476_v3 = vld [vmem:[%s17495_s0 + $0x324] ss:$16 sps:$4 sm:$0xff]  }
 0x3ba   : > { %v13206_v54 = vpop.f32.mrb[148].mxu0 }
 0x3bb   : > { %v17053_v6 = vadd.f32 %v8119_v48, %v16879_v13  ;;  %v13270_v42 = vpop.f32.mrb[148].mxu1  ;;  %v13207_v23 = vpop.f32.mrb[149].mxu0 }
 0x3bc   : > { %v13208_v33 = vadd.f32 %v13207_v23, %v13206_v54  ;;  %v13271_v4 = vpop.f32.mrb[149].mxu1  ;;  %v13209_v62 = vpop.f32.mrb[150].mxu0  ;;  %v14479_v54 = vld [vmem:[%s17495_s0 + $0x32c] ss:$16 sps:$4 sm:$0xff]  }
 0x3bd   : > { %v13272_v53 = vadd.f32 %v13271_v4, %v13270_v42  ;;  %v13273_v13 = vpop.f32.mrb[150].mxu1  ;;  %v13210_v63 = vpop.f32.mrb[151].mxu0 }
 0x3be   : > { %v13211_v1 = vadd.f32 %v13210_v63, %v13209_v62  ;;  %v13274_v24 = vpop.f32.mrb[151].mxu1  ;;  %v14474_v63 = vld [vmem:[%s17495_s0 + $0x320] ss:$16 sps:$4 sm:$0xff]  }
 0x3bf   : > { %v8124_v10 = vadd.f32 %v13272_v53, %v13208_v33  ;;  %v13275_v0 = vadd.f32 %v13274_v24, %v13273_v13  ;;  %10625 = vmatmul.mubr.bf16.vlgmr.msra.gmra.mrb[0].mxu0 %v14456_v2 }
 0x3c0   : > { %10722 = vmatmul.mubr.bf16.vlgmr.msra.gmra.mrb[0].mxu1 %v14459_v11  ;;  %10632 = vmatprep.mubr.bf16.mxu0 %v14464_v45 }
 0x3c1   : > { %v17068_v15 = vadd.f32 %v8124_v10, %v16899_v28  ;;  %v8127_v34 = vadd.f32 %v13275_v0, %v13211_v1  ;;  %10729 = vmatprep.mubr.bf16.mxu1 %v14467_v55  ;;  %v14465_v28 = vld [vmem:[%s17495_s0 + $0x2e8] ss:$16 sps:$4 sm:$0xff]   ;;  %v14482_v10 = vld [vmem:[%s17495_s0 + $0x344] ss:$16 sps:$4 sm:$0xff]  }
 0x3c2   : > { %v13212_v17 = vpop.f32.mrb[152].mxu0 }
 0x3c3   : > { %v17071_v12 = vadd.f32 %v8127_v34, %v16905_v21  ;;  %v13276_v43 = vpop.f32.mrb[152].mxu1  ;;  %v13213_v18 = vpop.f32.mrb[153].mxu0 }
 0x3c4   : > { %v13214_v51 = vadd.f32 %v13213_v18, %v13212_v17  ;;  %v13277_v44 = vpop.f32.mrb[153].mxu1  ;;  %v13215_v14 = vpop.f32.mrb[154].mxu0  ;;  %v14485_v17 = vld [vmem:[%s17495_s0 + $0x34c] ss:$16 sps:$4 sm:$0xff]  }
 0x3c5   : > { %v13278_v61 = vadd.f32 %v13277_v44, %v13276_v43  ;;  %v13279_v21 = vpop.f32.mrb[154].mxu1  ;;  %v13216_v50 = vpop.f32.mrb[155].mxu0 }
 0x3c6   : > { %v13217_v59 = vadd.f32 %v13216_v50, %v13215_v14  ;;  %v13280_v46 = vpop.f32.mrb[155].mxu1  ;;  %v14480_v50 = vld [vmem:[%s17495_s0 + $0x340] ss:$16 sps:$4 sm:$0xff]  }
 0x3c7   : > { %v8132_v35 = vadd.f32 %v13278_v61, %v13214_v51  ;;  %v13281_v49 = vadd.f32 %v13280_v46, %v13279_v21  ;;  %10633 = vmatmul.mubr.bf16.gmra.mrb[4].mxu0 %v14462_v19 }
 0x3c8   : > { %10730 = vmatmul.mubr.bf16.gmra.mrb[4].mxu1 %v14465_v28  ;;  %10640 = vmatprep.mubr.bf16.mxu0 %v14470_v56 }
 0x3c9   : > { %v17086_v20 = vadd.f32 %v8132_v35, %v16924_v8  ;;  %v8135_v37 = vadd.f32 %v13281_v49, %v13217_v59  ;;  %10737 = vmatprep.mubr.bf16.mxu1 %v14473_v40  ;;  %v14471_v8 = vld [vmem:[%s17495_s0 + $0x308] ss:$16 sps:$4 sm:$0xff]   ;;  %v14488_v35 = vld [vmem:[%s17495_s0 + $0x364] ss:$16 sps:$4 sm:$0xff]  }
 0x3ca   : > { %v13218_v52 = vpop.f32.mrb[156].mxu0 }
 0x3cb   : > { %v17089_v26 = vadd.f32 %v8135_v37, %v16930_v9  ;;  %v13282_v22 = vpop.f32.mrb[156].mxu1  ;;  %v13219_v60 = vpop.f32.mrb[157].mxu0 }
 0x3cc   : > { %v13220_v5 = vadd.f32 %v13219_v60, %v13218_v52  ;;  %v13283_v38 = vpop.f32.mrb[157].mxu1  ;;  %v13221_v47 = vpop.f32.mrb[158].mxu0  ;;  %v14491_v52 = vld [vmem:[%s17495_s0 + $0x36c] ss:$16 sps:$4 sm:$0xff]  }
 0x3cd   : > { %v13284_v7 = vadd.f32 %v13283_v38, %v13282_v22  ;;  %v13285_v9 = vpop.f32.mrb[158].mxu1  ;;  %v13222_v48 = vpop.f32.mrb[159].mxu0 }
 0x3ce   : > { %v13223_v42 = vadd.f32 %v13222_v48, %v13221_v47  ;;  %v13286_v23 = vpop.f32.mrb[159].mxu1  ;;  %v14486_v48 = vld [vmem:[%s17495_s0 + $0x360] ss:$16 sps:$4 sm:$0xff]  }
 0x3cf   : > { %v8140_v2 = vadd.f32 %v13284_v7, %v13220_v5  ;;  %v13287_v33 = vadd.f32 %v13286_v23, %v13285_v9  ;;  %10641 = vmatmul.mubr.bf16.gmra.mrb[8].mxu0 %v14468_v58 }
 0x3d0   : > { %10738 = vmatmul.mubr.bf16.gmra.mrb[8].mxu1 %v14471_v8  ;;  %10648 = vmatprep.mubr.bf16.mxu0 %v14476_v3 }
 0x3d1   : > { %v17104_v4 = vadd.f32 %v8140_v2, %v16950_v39  ;;  %v8143_v62 = vadd.f32 %v13287_v33, %v13223_v42  ;;  %10745 = vmatprep.mubr.bf16.mxu1 %v14479_v54  ;;  %v14477_v39 = vld [vmem:[%s17495_s0 + $0x328] ss:$16 sps:$4 sm:$0xff]   ;;  %v14494_v2 = vld [vmem:[%s17495_s0 + $0x384] ss:$16 sps:$4 sm:$0xff]  }
 0x3d2   : > { %v13304_v11 = vpop.f32.mrb[160].mxu0 }
 0x3d3   : > { %v17107_v45 = vadd.f32 %v8143_v62, %v16956_v30  ;;  %v13368_v53 = vpop.f32.mrb[160].mxu1  ;;  %v13305_v13 = vpop.f32.mrb[161].mxu0 }
 0x3d4   : > { %v13306_v55 = vadd.f32 %v13305_v13, %v13304_v11  ;;  %v13369_v1 = vpop.f32.mrb[161].mxu1  ;;  %v13307_v24 = vpop.f32.mrb[162].mxu0  ;;  %v14497_v11 = vld [vmem:[%s17495_s0 + $0x38c] ss:$16 sps:$4 sm:$0xff]  }
 0x3d5   : > { %v13370_v0 = vadd.f32 %v13369_v1, %v13368_v53  ;;  %v13371_v30 = vpop.f32.mrb[162].mxu1  ;;  %v13308_v34 = vpop.f32.mrb[163].mxu0 }
 0x3d6   : > { %v13309_v43 = vadd.f32 %v13308_v34, %v13307_v24  ;;  %v13372_v18 = vpop.f32.mrb[163].mxu1  ;;  %v14492_v34 = vld [vmem:[%s17495_s0 + $0x380] ss:$16 sps:$4 sm:$0xff]  }
 0x3d7   : > { %v8744_v19 = vadd.f32 %v13370_v0, %v13306_v55  ;;  %v13373_v51 = vadd.f32 %v13372_v18, %v13371_v30  ;;  %10649 = vmatmul.mubr.bf16.gmra.mrb[12].mxu0 %v14474_v63 }
 0x3d8   : > { %10746 = vmatmul.mubr.bf16.gmra.mrb[12].mxu1 %v14477_v39  ;;  %10656 = vmatprep.mubr.bf16.mxu0 %v14482_v10 }
 0x3d9   : > { %v17122_v44 = vadd.f32 %v8744_v19, %v16976_v16  ;;  %v8747_v14 = vadd.f32 %v13373_v51, %v13309_v43  ;;  %10753 = vmatprep.mubr.bf16.mxu1 %v14485_v17  ;;  %v14483_v16 = vld [vmem:[%s17495_s0 + $0x348] ss:$16 sps:$4 sm:$0xff]   ;;  %v14500_v19 = vld [vmem:[%s17495_s0 + $0x3a4] ss:$16 sps:$4 sm:$0xff]  }
 0x3da   : > { %v13310_v28 = vpop.f32.mrb[164].mxu0 }
 0x3db   : > { %v17125_v56 = vadd.f32 %v8747_v14, %v16981_v36  ;;  %v13374_v61 = vpop.f32.mrb[164].mxu1  ;;  %v13311_v21 = vpop.f32.mrb[165].mxu0 }
 0x3dc   : > { %v13312_v40 = vadd.f32 %v13311_v21, %v13310_v28  ;;  %v13375_v59 = vpop.f32.mrb[165].mxu1  ;;  %v13313_v46 = vpop.f32.mrb[166].mxu0  ;;  %v14503_v28 = vld [vmem:[%s17495_s0 + $0x3ac] ss:$16 sps:$4 sm:$0xff]  }
 0x3dd   : > { %v13376_v49 = vadd.f32 %v13375_v59, %v13374_v61  ;;  %v13377_v36 = vpop.f32.mrb[166].mxu1  ;;  %v13314_v37 = vpop.f32.mrb[167].mxu0 }
 0x3de   : > { %v13315_v22 = vadd.f32 %v13314_v37, %v13313_v46  ;;  %v13378_v60 = vpop.f32.mrb[167].mxu1  ;;  %v14498_v37 = vld [vmem:[%s17495_s0 + $0x3a0] ss:$16 sps:$4 sm:$0xff]  }
 0x3df   : > { %v8752_v58 = vadd.f32 %v13376_v49, %v13312_v40  ;;  %v13379_v5 = vadd.f32 %v13378_v60, %v13377_v36  ;;  %10657 = vmatmul.mubr.bf16.gmra.mrb[16].mxu0 %v14480_v50 }
 0x3e0   : > { %10754 = vmatmul.mubr.bf16.gmra.mrb[16].mxu1 %v14483_v16  ;;  %10664 = vmatprep.mubr.bf16.mxu0 %v14488_v35 }
 0x3e1   : > { %v17140_v38 = vadd.f32 %v8752_v58, %v16996_v25  ;;  %v8755_v47 = vadd.f32 %v13379_v5, %v13315_v22  ;;  %10761 = vmatprep.mubr.bf16.mxu1 %v14491_v52  ;;  %v14489_v25 = vld [vmem:[%s17495_s0 + $0x368] ss:$16 sps:$4 sm:$0xff]  }
 0x3e2   : > { %v13316_v8 = vpop.f32.mrb[168].mxu0 }
 0x3e3   : > { %v17143_v3 = vadd.f32 %v8755_v47, %v16999_v29  ;;  %v13380_v7 = vpop.f32.mrb[168].mxu1  ;;  %v13317_v9 = vpop.f32.mrb[169].mxu0 }
 0x3e4   : > { %v13318_v54 = vadd.f32 %v13317_v9, %v13316_v8  ;;  %v13381_v42 = vpop.f32.mrb[169].mxu1  ;;  %v13319_v23 = vpop.f32.mrb[170].mxu0 }
 0x3e5   : > { %v13382_v33 = vadd.f32 %v13381_v42, %v13380_v7  ;;  %v13383_v29 = vpop.f32.mrb[170].mxu1  ;;  %v13320_v62 = vpop.f32.mrb[171].mxu0 }
 0x3e6   : > { %v13321_v53 = vadd.f32 %v13320_v62, %v13319_v23  ;;  %v13384_v13 = vpop.f32.mrb[171].mxu1 }
 0x3e7   : > { %v8760_v63 = vadd.f32 %v13382_v33, %v13318_v54  ;;  %v13385_v55 = vadd.f32 %v13384_v13, %v13383_v29  ;;  %10665 = vmatmul.mubr.bf16.gmra.mrb[20].mxu0 %v14486_v48 }
 0x3e8   : > { %10762 = vmatmul.mubr.bf16.gmra.mrb[20].mxu1 %v14489_v25  ;;  %10672 = vmatprep.mubr.bf16.mxu0 %v14494_v2 }
 0x3e9   : > { %v17158_v1 = vadd.f32 %v8760_v63, %v17014_v32  ;;  %v8763_v24 = vadd.f32 %v13385_v55, %v13321_v53  ;;  %10769 = vmatprep.mubr.bf16.mxu1 %v14497_v11  ;;  %v14495_v32 = vld [vmem:[%s17495_s0 + $0x388] ss:$16 sps:$4 sm:$0xff]  }
 0x3ea   : > { %v13322_v39 = vpop.f32.mrb[172].mxu0 }
 0x3eb   : > { %v17161_v10 = vadd.f32 %v8763_v24, %v17017_v57  ;;  %v13386_v0 = vpop.f32.mrb[172].mxu1  ;;  %v13323_v30 = vpop.f32.mrb[173].mxu0 }
 0x3ec   : > { %v13324_v17 = vadd.f32 %v13323_v30, %v13322_v39  ;;  %v13387_v43 = vpop.f32.mrb[173].mxu1  ;;  %v13325_v18 = vpop.f32.mrb[174].mxu0 }
 0x3ed   : > { %v13388_v51 = vadd.f32 %v13387_v43, %v13386_v0  ;;  %v13389_v57 = vpop.f32.mrb[174].mxu1  ;;  %v13326_v14 = vpop.f32.mrb[175].mxu0 }
 0x3ee   : > { %v13327_v61 = vadd.f32 %v13326_v14, %v13325_v18  ;;  %v13390_v21 = vpop.f32.mrb[175].mxu1 }
 0x3ef   : > { %v8768_v50 = vadd.f32 %v13388_v51, %v13324_v17  ;;  %v13391_v40 = vadd.f32 %v13390_v21, %v13389_v57  ;;  %10673 = vmatmul.mubr.bf16.gmra.mrb[24].mxu0 %v14492_v34 }
 0x3f0   : > { %10770 = vmatmul.mubr.bf16.gmra.mrb[24].mxu1 %v14495_v32  ;;  %10680 = vmatprep.mubr.bf16.mxu0 %v14500_v19 }
 0x3f1   : > { %v17176_v59 = vadd.f32 %v8768_v50, %v17032_v27  ;;  %v8771_v46 = vadd.f32 %v13391_v40, %v13327_v61  ;;  %10777 = vmatprep.mubr.bf16.mxu1 %v14503_v28  ;;  %v14501_v27 = vld [vmem:[%s17495_s0 + $0x3a8] ss:$16 sps:$4 sm:$0xff]  }
 0x3f2   : > { %v13328_v16 = vpop.f32.mrb[176].mxu0 }
 0x3f3   : > { %v17179_v35 = vadd.f32 %v8771_v46, %v17035_v41  ;;  %v13392_v49 = vpop.f32.mrb[176].mxu1  ;;  %v13329_v36 = vpop.f32.mrb[177].mxu0 }
 0x3f4   : > { %v13330_v52 = vadd.f32 %v13329_v36, %v13328_v16  ;;  %v13393_v22 = vpop.f32.mrb[177].mxu1  ;;  %v13331_v60 = vpop.f32.mrb[178].mxu0 }
 0x3f5   : > { %v13394_v58 = vadd.f32 %v13393_v22, %v13392_v49  ;;  %v13395_v5 = vpop.f32.mrb[178].mxu1  ;;  %v13332_v47 = vpop.f32.mrb[179].mxu0 }
 0x3f6   : > { %v13333_v8 = vadd.f32 %v13332_v47, %v13331_v60  ;;  %v13396_v7 = vpop.f32.mrb[179].mxu1 }
 0x3f7   : > { %v8776_v41 = vadd.f32 %v13394_v58, %v13330_v52  ;;  %v13397_v9 = vadd.f32 %v13396_v7, %v13395_v5  ;;  %10681 = vmatmul.mubr.bf16.gmra.mrb[28].mxu0 %v14498_v37 }
 0x3f8   : > { %10778 = vmatmul.mubr.bf16.gmra.mrb[28].mxu1 %v14501_v27 }
 0x3f9   : > { %v17188_v48 = vadd.f32 %v8776_v41, %v17050_v31  ;;  %v8779_v54 = vadd.f32 %v13397_v9, %v13333_v8 }
 0x3fa   : > { %v13334_v42 = vpop.f32.mrb[180].mxu0 }
 0x3fb   : > { %v17191_v23 = vadd.f32 %v8779_v54, %v17053_v6  ;;  %v13398_v25 = vpop.f32.mrb[180].mxu1  ;;  %v13335_v2 = vpop.f32.mrb[181].mxu0 }
 0x3fc   : > { %v13336_v33 = vadd.f32 %v13335_v2, %v13334_v42  ;;  %v13399_v29 = vpop.f32.mrb[181].mxu1  ;;  %v13337_v62 = vpop.f32.mrb[182].mxu0 }
 0x3fd   : > { %v13400_v11 = vadd.f32 %v13399_v29, %v13398_v25  ;;  %v13401_v53 = vpop.f32.mrb[182].mxu1  ;;  %v13338_v13 = vpop.f32.mrb[183].mxu0 }
 0x3fe   : > { %v13339_v63 = vadd.f32 %v13338_v13, %v13337_v62  ;;  %v13402_v55 = vpop.f32.mrb[183].mxu1 }
 0x3ff   : > { %v8784_v24 = vadd.f32 %v13400_v11, %v13336_v33  ;;  %v13403_v39 = vadd.f32 %v13402_v55, %v13401_v53 }
 0x401   : > { %v17194_v31 = vadd.f32 %v8784_v24, %v17068_v15  ;;  %v8787_v0 = vadd.f32 %v13403_v39, %v13339_v63 }
 0x402   : > { %v13340_v30 = vpop.f32.mrb[184].mxu0 }
 0x403   : > { %v17197_v6 = vadd.f32 %v8787_v0, %v17071_v12  ;;  %v13404_v34 = vpop.f32.mrb[184].mxu1  ;;  %v13341_v17 = vpop.f32.mrb[185].mxu0 }
 0x404   : > { %v13342_v43 = vadd.f32 %v13341_v17, %v13340_v30  ;;  %v13405_v18 = vpop.f32.mrb[185].mxu1  ;;  %v13343_v32 = vpop.f32.mrb[186].mxu0 }
 0x405   : > { %v13406_v19 = vadd.f32 %v13405_v18, %v13404_v34  ;;  %v13407_v51 = vpop.f32.mrb[186].mxu1  ;;  %v13344_v57 = vpop.f32.mrb[187].mxu0 }
 0x406   : > { %v13345_v14 = vadd.f32 %v13344_v57, %v13343_v32  ;;  %v13408_v28 = vpop.f32.mrb[187].mxu1 }
 0x407   : > { %v8792_v61 = vadd.f32 %v13406_v19, %v13342_v43  ;;  %v13409_v21 = vadd.f32 %v13408_v28, %v13407_v51 }
 0x409   : > { %v17200_v15 = vadd.f32 %v8792_v61, %v17086_v20  ;;  %v8795_v50 = vadd.f32 %v13409_v21, %v13345_v14 }
 0x40a   : > { %v13346_v40 = vpop.f32.mrb[188].mxu0 }
 0x40b   : > { %v17203_v12 = vadd.f32 %v8795_v50, %v17089_v26  ;;  %v13410_v46 = vpop.f32.mrb[188].mxu1  ;;  %v13347_v16 = vpop.f32.mrb[189].mxu0 }
 0x40c   : > { %v13348_v49 = vadd.f32 %v13347_v16, %v13346_v40  ;;  %v13411_v36 = vpop.f32.mrb[189].mxu1  ;;  %v13349_v37 = vpop.f32.mrb[190].mxu0 }
 0x40d   : > { %v13412_v52 = vadd.f32 %v13411_v36, %v13410_v46  ;;  %v13413_v22 = vpop.f32.mrb[190].mxu1  ;;  %v13350_v60 = vpop.f32.mrb[191].mxu0 }
 0x40e   : > { %v13351_v27 = vadd.f32 %v13350_v60, %v13349_v37  ;;  %v13414_v58 = vpop.f32.mrb[191].mxu1 }
 0x40f   : > { %v8800_v5 = vadd.f32 %v13412_v52, %v13348_v49  ;;  %v13415_v47 = vadd.f32 %v13414_v58, %v13413_v22 }
 0x411   : > { %v17206_v20 = vadd.f32 %v8800_v5, %v17104_v4  ;;  %v8803_v8 = vadd.f32 %v13415_v47, %v13351_v27 }
 0x412   : > { %v13432_v7 = vpop.f32.mrb[192].mxu0 }
 0x413   : > { %v17209_v26 = vadd.f32 %v8803_v8, %v17107_v45  ;;  %v13496_v41 = vpop.f32.mrb[192].mxu1  ;;  %v13433_v9 = vpop.f32.mrb[193].mxu0 }
 0x414   : > { %v13434_v54 = vadd.f32 %v13433_v9, %v13432_v7  ;;  %v13497_v42 = vpop.f32.mrb[193].mxu1  ;;  %v13435_v25 = vpop.f32.mrb[194].mxu0 }
 0x415   : > { %v13498_v2 = vadd.f32 %v13497_v42, %v13496_v41  ;;  %v13499_v33 = vpop.f32.mrb[194].mxu1  ;;  %v13436_v29 = vpop.f32.mrb[195].mxu0 }
 0x416   : > { %v13437_v62 = vadd.f32 %v13436_v29, %v13435_v25  ;;  %v13500_v11 = vpop.f32.mrb[195].mxu1 }
 0x417   : > { %v9404_v53 = vadd.f32 %v13498_v2, %v13434_v54  ;;  %v13501_v13 = vadd.f32 %v13500_v11, %v13499_v33 }
 0x419   : > { %v17212_v4 = vadd.f32 %v9404_v53, %v17122_v44  ;;  %v9407_v63 = vadd.f32 %v13501_v13, %v13437_v62 }
 0x41a   : > { %v13438_v55 = vpop.f32.mrb[196].mxu0 }
 0x41b   : > { %v17215_v45 = vadd.f32 %v9407_v63, %v17125_v56  ;;  %v13502_v24 = vpop.f32.mrb[196].mxu1  ;;  %v13439_v39 = vpop.f32.mrb[197].mxu0 }
 0x41c   : > { %v13440_v0 = vadd.f32 %v13439_v39, %v13438_v55  ;;  %v13503_v30 = vpop.f32.mrb[197].mxu1  ;;  %v13441_v34 = vpop.f32.mrb[198].mxu0 }
 0x41d   : > { %v13504_v17 = vadd.f32 %v13503_v30, %v13502_v24  ;;  %v13505_v43 = vpop.f32.mrb[198].mxu1  ;;  %v13442_v18 = vpop.f32.mrb[199].mxu0 }
 0x41e   : > { %v13443_v32 = vadd.f32 %v13442_v18, %v13441_v34  ;;  %v13506_v19 = vpop.f32.mrb[199].mxu1 }
 0x41f   : > { %v9412_v51 = vadd.f32 %v13504_v17, %v13440_v0  ;;  %v13507_v57 = vadd.f32 %v13506_v19, %v13505_v43 }
 0x421   : > { %v17218_v44 = vadd.f32 %v9412_v51, %v17140_v38  ;;  %v9415_v14 = vadd.f32 %v13507_v57, %v13443_v32 }
 0x422   : > { %v13444_v28 = vpop.f32.mrb[200].mxu0 }
 0x423   : > { %v17221_v56 = vadd.f32 %v9415_v14, %v17143_v3  ;;  %v13508_v61 = vpop.f32.mrb[200].mxu1  ;;  %v13445_v21 = vpop.f32.mrb[201].mxu0 }
 0x424   : > { %v13446_v50 = vadd.f32 %v13445_v21, %v13444_v28  ;;  %v13509_v40 = vpop.f32.mrb[201].mxu1  ;;  %v13447_v46 = vpop.f32.mrb[202].mxu0 }
 0x425   : > { %v13510_v16 = vadd.f32 %v13509_v40, %v13508_v61  ;;  %v13511_v49 = vpop.f32.mrb[202].mxu1  ;;  %v13448_v36 = vpop.f32.mrb[203].mxu0 }
 0x426   : > { %v13449_v37 = vadd.f32 %v13448_v36, %v13447_v46  ;;  %v13512_v52 = vpop.f32.mrb[203].mxu1 }
 0x427   : > { %v9420_v22 = vadd.f32 %v13510_v16, %v13446_v50  ;;  %v13513_v60 = vadd.f32 %v13512_v52, %v13511_v49 }
 0x429   : > { %v17224_v38 = vadd.f32 %v9420_v22, %v17158_v1  ;;  %v9423_v27 = vadd.f32 %v13513_v60, %v13449_v37 }
 0x42a   : > { %v13450_v58 = vpop.f32.mrb[204].mxu0 }
 0x42b   : > { %v17227_v3 = vadd.f32 %v9423_v27, %v17161_v10  ;;  %v13514_v5 = vpop.f32.mrb[204].mxu1  ;;  %v13451_v47 = vpop.f32.mrb[205].mxu0 }
 0x42c   : > { %v13452_v8 = vadd.f32 %v13451_v47, %v13450_v58  ;;  %v13515_v7 = vpop.f32.mrb[205].mxu1  ;;  %v13453_v41 = vpop.f32.mrb[206].mxu0 }
 0x42d   : > { %v13516_v9 = vadd.f32 %v13515_v7, %v13514_v5  ;;  %v13517_v54 = vpop.f32.mrb[206].mxu1  ;;  %v13454_v42 = vpop.f32.mrb[207].mxu0 }
 0x42e   : > { %v13455_v25 = vadd.f32 %v13454_v42, %v13453_v41  ;;  %v13518_v2 = vpop.f32.mrb[207].mxu1 }
 0x42f   : > { %v9428_v33 = vadd.f32 %v13516_v9, %v13452_v8  ;;  %v13519_v29 = vadd.f32 %v13518_v2, %v13517_v54 }
 0x431   : > { %v17230_v1 = vadd.f32 %v9428_v33, %v17176_v59  ;;  %v9431_v62 = vadd.f32 %v13519_v29, %v13455_v25 }
 0x432   : > { %v13456_v11 = vpop.f32.mrb[208].mxu0 }
 0x433   : > { %v17233_v10 = vadd.f32 %v9431_v62, %v17179_v35  ;;  %v13520_v53 = vpop.f32.mrb[208].mxu1  ;;  %v13457_v13 = vpop.f32.mrb[209].mxu0 }
 0x434   : > { %v13458_v63 = vadd.f32 %v13457_v13, %v13456_v11  ;;  %v13521_v55 = vpop.f32.mrb[209].mxu1  ;;  %v13459_v24 = vpop.f32.mrb[210].mxu0 }
 0x435   : > { %v13522_v39 = vadd.f32 %v13521_v55, %v13520_v53  ;;  %v13523_v0 = vpop.f32.mrb[210].mxu1  ;;  %v13460_v30 = vpop.f32.mrb[211].mxu0 }
 0x436   : > { %v13461_v34 = vadd.f32 %v13460_v30, %v13459_v24  ;;  %v13524_v17 = vpop.f32.mrb[211].mxu1 }
 0x437   : > { %v9436_v43 = vadd.f32 %v13522_v39, %v13458_v63  ;;  %v13525_v18 = vadd.f32 %v13524_v17, %v13523_v0 }
 0x439   : > { %v17236_v59 = vadd.f32 %v9436_v43, %v17188_v48  ;;  %v9439_v32 = vadd.f32 %v13525_v18, %v13461_v34 }
 0x43a   : > { %v13462_v19 = vpop.f32.mrb[212].mxu0 }
 0x43b   : > { %v17239_v35 = vadd.f32 %v9439_v32, %v17191_v23  ;;  %v13526_v51 = vpop.f32.mrb[212].mxu1  ;;  %v13463_v57 = vpop.f32.mrb[213].mxu0 }
 0x43c   : > { %v13464_v14 = vadd.f32 %v13463_v57, %v13462_v19  ;;  %v13527_v28 = vpop.f32.mrb[213].mxu1  ;;  %v13465_v61 = vpop.f32.mrb[214].mxu0 }
 0x43d   : > { %v13528_v21 = vadd.f32 %v13527_v28, %v13526_v51  ;;  %v13529_v50 = vpop.f32.mrb[214].mxu1  ;;  %v13466_v40 = vpop.f32.mrb[215].mxu0 }
 0x43e   : > { %v13467_v46 = vadd.f32 %v13466_v40, %v13465_v61  ;;  %v13530_v16 = vpop.f32.mrb[215].mxu1 }
 0x43f   : > { %v9444_v49 = vadd.f32 %v13528_v21, %v13464_v14  ;;  %v13531_v36 = vadd.f32 %v13530_v16, %v13529_v50 }
 0x441   : > { %v17242_v48 = vadd.f32 %v9444_v49, %v17194_v31  ;;  %v9447_v37 = vadd.f32 %v13531_v36, %v13467_v46 }
 0x442   : > { %v13468_v52 = vpop.f32.mrb[216].mxu0 }
 0x443   : > { %v17245_v23 = vadd.f32 %v9447_v37, %v17197_v6  ;;  %v13532_v22 = vpop.f32.mrb[216].mxu1  ;;  %v13469_v60 = vpop.f32.mrb[217].mxu0 }
 0x444   : > { %v13470_v27 = vadd.f32 %v13469_v60, %v13468_v52  ;;  %v13533_v58 = vpop.f32.mrb[217].mxu1  ;;  %v13471_v5 = vpop.f32.mrb[218].mxu0 }
 0x445   : > { %v13534_v47 = vadd.f32 %v13533_v58, %v13532_v22  ;;  %v13535_v8 = vpop.f32.mrb[218].mxu1  ;;  %v13472_v7 = vpop.f32.mrb[219].mxu0 }
 0x446   : > { %v13473_v41 = vadd.f32 %v13472_v7, %v13471_v5  ;;  %v13536_v9 = vpop.f32.mrb[219].mxu1 }
 0x447   : > { %v9452_v54 = vadd.f32 %v13534_v47, %v13470_v27  ;;  %v13537_v42 = vadd.f32 %v13536_v9, %v13535_v8 }
 0x449   : > { %v17248_v31 = vadd.f32 %v9452_v54, %v17200_v15  ;;  %v9455_v25 = vadd.f32 %v13537_v42, %v13473_v41 }
 0x44a   : > { %v13474_v2 = vpop.f32.mrb[220].mxu0 }
 0x44b   : > { %v17251_v6 = vadd.f32 %v9455_v25, %v17203_v12  ;;  %v13538_v33 = vpop.f32.mrb[220].mxu1  ;;  %v13475_v29 = vpop.f32.mrb[221].mxu0 }
 0x44c   : > { %v13476_v62 = vadd.f32 %v13475_v29, %v13474_v2  ;;  %v13539_v11 = vpop.f32.mrb[221].mxu1  ;;  %v13477_v53 = vpop.f32.mrb[222].mxu0 }
 0x44d   : > { %v13540_v13 = vadd.f32 %v13539_v11, %v13538_v33  ;;  %v13541_v63 = vpop.f32.mrb[222].mxu1  ;;  %v13478_v55 = vpop.f32.mrb[223].mxu0 }
 0x44e   : > { %v13479_v24 = vadd.f32 %v13478_v55, %v13477_v53  ;;  %v13542_v39 = vpop.f32.mrb[223].mxu1 }
 0x44f   : > { %v9460_v0 = vadd.f32 %v13540_v13, %v13476_v62  ;;  %v13543_v30 = vadd.f32 %v13542_v39, %v13541_v63 }
 0x451   : > { %v17254_v15 = vadd.f32 %v9460_v0, %v17206_v20  ;;  %v9463_v34 = vadd.f32 %v13543_v30, %v13479_v24 }
 0x452   : > { %v13560_v17 = vpop.f32.mrb[224].mxu0 }
 0x453   : > { %v17257_v12 = vadd.f32 %v9463_v34, %v17209_v26  ;;  %v13624_v43 = vpop.f32.mrb[224].mxu1  ;;  %v13561_v18 = vpop.f32.mrb[225].mxu0 }
 0x454   : > { %v13562_v32 = vadd.f32 %v13561_v18, %v13560_v17  ;;  %v13625_v19 = vpop.f32.mrb[225].mxu1  ;;  %v13563_v51 = vpop.f32.mrb[226].mxu0 }
 0x455   : > { %v13626_v57 = vadd.f32 %v13625_v19, %v13624_v43  ;;  %v13627_v14 = vpop.f32.mrb[226].mxu1  ;;  %v13564_v28 = vpop.f32.mrb[227].mxu0 }
 0x456   : > { %v13565_v61 = vadd.f32 %v13564_v28, %v13563_v51  ;;  %v13628_v21 = vpop.f32.mrb[227].mxu1 }
 0x457   : > { %v10064_v50 = vadd.f32 %v13626_v57, %v13562_v32  ;;  %v13629_v40 = vadd.f32 %v13628_v21, %v13627_v14 }
 0x459   : > { %v17260_v20 = vadd.f32 %v10064_v50, %v17212_v4  ;;  %v10067_v46 = vadd.f32 %v13629_v40, %v13565_v61 }
 0x45a   : > { %v13566_v16 = vpop.f32.mrb[228].mxu0 }
 0x45b   : > { %v17263_v26 = vadd.f32 %v10067_v46, %v17215_v45  ;;  %v13630_v49 = vpop.f32.mrb[228].mxu1  ;;  %v13567_v36 = vpop.f32.mrb[229].mxu0 }
 0x45c   : > { %v13568_v37 = vadd.f32 %v13567_v36, %v13566_v16  ;;  %v13631_v52 = vpop.f32.mrb[229].mxu1  ;;  %v13569_v22 = vpop.f32.mrb[230].mxu0 }
 0x45d   : > { %v13632_v60 = vadd.f32 %v13631_v52, %v13630_v49  ;;  %v13633_v27 = vpop.f32.mrb[230].mxu1  ;;  %v13570_v58 = vpop.f32.mrb[231].mxu0 }
 0x45e   : > { %v13571_v5 = vadd.f32 %v13570_v58, %v13569_v22  ;;  %v13634_v47 = vpop.f32.mrb[231].mxu1 }
 0x45f   : > { %v10072_v8 = vadd.f32 %v13632_v60, %v13568_v37  ;;  %v13635_v7 = vadd.f32 %v13634_v47, %v13633_v27 }
 0x461   : > { %v17266_v4 = vadd.f32 %v10072_v8, %v17218_v44  ;;  %v10075_v41 = vadd.f32 %v13635_v7, %v13571_v5 }
 0x462   : > { %v13572_v9 = vpop.f32.mrb[232].mxu0 }
 0x463   : > { %v17269_v45 = vadd.f32 %v10075_v41, %v17221_v56  ;;  %v13636_v54 = vpop.f32.mrb[232].mxu1  ;;  %v13573_v42 = vpop.f32.mrb[233].mxu0 }
 0x464   : > { %v13574_v25 = vadd.f32 %v13573_v42, %v13572_v9  ;;  %v13637_v2 = vpop.f32.mrb[233].mxu1  ;;  %v13575_v33 = vpop.f32.mrb[234].mxu0 }
 0x465   : > { %v13638_v29 = vadd.f32 %v13637_v2, %v13636_v54  ;;  %v13639_v62 = vpop.f32.mrb[234].mxu1  ;;  %v13576_v11 = vpop.f32.mrb[235].mxu0 }
 0x466   : > { %v13577_v53 = vadd.f32 %v13576_v11, %v13575_v33  ;;  %v13640_v13 = vpop.f32.mrb[235].mxu1 }
 0x467   : > { %v10080_v63 = vadd.f32 %v13638_v29, %v13574_v25  ;;  %v13641_v55 = vadd.f32 %v13640_v13, %v13639_v62 }
 0x469   : > { %v17272_v44 = vadd.f32 %v10080_v63, %v17224_v38  ;;  %v10083_v24 = vadd.f32 %v13641_v55, %v13577_v53 }
 0x46a   : > { %v13578_v39 = vpop.f32.mrb[236].mxu0 }
 0x46b   : > { %v17275_v56 = vadd.f32 %v10083_v24, %v17227_v3  ;;  %v13642_v0 = vpop.f32.mrb[236].mxu1  ;;  %v13579_v30 = vpop.f32.mrb[237].mxu0 }
 0x46c   : > { %v13580_v34 = vadd.f32 %v13579_v30, %v13578_v39  ;;  %v13643_v17 = vpop.f32.mrb[237].mxu1  ;;  %v13581_v43 = vpop.f32.mrb[238].mxu0 }
 0x46d   : > { %v13644_v18 = vadd.f32 %v13643_v17, %v13642_v0  ;;  %v13645_v32 = vpop.f32.mrb[238].mxu1  ;;  %v13582_v19 = vpop.f32.mrb[239].mxu0 }
 0x46e   : > { %v13583_v51 = vadd.f32 %v13582_v19, %v13581_v43  ;;  %v13646_v57 = vpop.f32.mrb[239].mxu1 }
 0x46f   : > { %v10088_v14 = vadd.f32 %v13644_v18, %v13580_v34  ;;  %v13647_v28 = vadd.f32 %v13646_v57, %v13645_v32 }
 0x471   : > { %v17278_v38 = vadd.f32 %v10088_v14, %v17230_v1  ;;  %v10091_v61 = vadd.f32 %v13647_v28, %v13583_v51 }
 0x472   : > { %v13584_v21 = vpop.f32.mrb[240].mxu0 }
 0x473   : > { %v17281_v3 = vadd.f32 %v10091_v61, %v17233_v10  ;;  %v13648_v50 = vpop.f32.mrb[240].mxu1  ;;  %v13585_v40 = vpop.f32.mrb[241].mxu0 }
 0x474   : > { %v13586_v46 = vadd.f32 %v13585_v40, %v13584_v21  ;;  %v13649_v16 = vpop.f32.mrb[241].mxu1  ;;  %v13587_v49 = vpop.f32.mrb[242].mxu0 }
 0x475   : > { %v13650_v36 = vadd.f32 %v13649_v16, %v13648_v50  ;;  %v13651_v37 = vpop.f32.mrb[242].mxu1  ;;  %v13588_v52 = vpop.f32.mrb[243].mxu0 }
 0x476   : > { %v13589_v22 = vadd.f32 %v13588_v52, %v13587_v49  ;;  %v13652_v60 = vpop.f32.mrb[243].mxu1 }
 0x477   : > { %v10096_v27 = vadd.f32 %v13650_v36, %v13586_v46  ;;  %v13653_v58 = vadd.f32 %v13652_v60, %v13651_v37 }
 0x479   : > { %v17284_v1 = vadd.f32 %v10096_v27, %v17236_v59  ;;  %v10099_v5 = vadd.f32 %v13653_v58, %v13589_v22 }
 0x47a   : > { %v13590_v47 = vpop.f32.mrb[244].mxu0 }
 0x47b   : > { %v17287_v10 = vadd.f32 %v10099_v5, %v17239_v35  ;;  %v13654_v8 = vpop.f32.mrb[244].mxu1  ;;  %v13591_v7 = vpop.f32.mrb[245].mxu0 }
 0x47c   : > { %v13592_v41 = vadd.f32 %v13591_v7, %v13590_v47  ;;  %v13655_v9 = vpop.f32.mrb[245].mxu1  ;;  %v13593_v54 = vpop.f32.mrb[246].mxu0 }
 0x47d   : > { %v13656_v42 = vadd.f32 %v13655_v9, %v13654_v8  ;;  %v13657_v25 = vpop.f32.mrb[246].mxu1  ;;  %v13594_v2 = vpop.f32.mrb[247].mxu0 }
 0x47e   : > { %v13595_v33 = vadd.f32 %v13594_v2, %v13593_v54  ;;  %v13658_v29 = vpop.f32.mrb[247].mxu1 }
 0x47f   : > { %v10104_v62 = vadd.f32 %v13656_v42, %v13592_v41  ;;  %v13659_v11 = vadd.f32 %v13658_v29, %v13657_v25 }
 0x481   : > { %v17290_v59 = vadd.f32 %v10104_v62, %v17242_v48  ;;  %v10107_v53 = vadd.f32 %v13659_v11, %v13595_v33 }
 0x482   : > { %v13596_v13 = vpop.f32.mrb[248].mxu0 }
 0x483   : > { %v17293_v35 = vadd.f32 %v10107_v53, %v17245_v23  ;;  %v13660_v63 = vpop.f32.mrb[248].mxu1  ;;  %v13597_v55 = vpop.f32.mrb[249].mxu0 }
 0x484   : > { %v13598_v24 = vadd.f32 %v13597_v55, %v13596_v13  ;;  %v13661_v39 = vpop.f32.mrb[249].mxu1  ;;  %v13599_v0 = vpop.f32.mrb[250].mxu0 }
 0x485   : > { %v13662_v30 = vadd.f32 %v13661_v39, %v13660_v63  ;;  %v13663_v34 = vpop.f32.mrb[250].mxu1  ;;  %v13600_v17 = vpop.f32.mrb[251].mxu0 }
 0x486   : > { %v13601_v43 = vadd.f32 %v13600_v17, %v13599_v0  ;;  %v13664_v18 = vpop.f32.mrb[251].mxu1 }
 0x487   : > { %v10112_v32 = vadd.f32 %v13662_v30, %v13598_v24  ;;  %v13665_v19 = vadd.f32 %v13664_v18, %v13663_v34 }
 0x489   : > { %v17296_v48 = vadd.f32 %v10112_v32, %v17248_v31  ;;  %v10115_v51 = vadd.f32 %v13665_v19, %v13601_v43 }
 0x48a   : > { %v13602_v57 = vpop.f32.mrb[252].mxu0 }
 0x48b   : > { %v17299_v23 = vadd.f32 %v10115_v51, %v17251_v6  ;;  %v13666_v14 = vpop.f32.mrb[252].mxu1  ;;  %v13603_v28 = vpop.f32.mrb[253].mxu0 }
 0x48c   : > { %v13604_v61 = vadd.f32 %v13603_v28, %v13602_v57  ;;  %v13667_v21 = vpop.f32.mrb[253].mxu1  ;;  %v13605_v50 = vpop.f32.mrb[254].mxu0 }
 0x48d   : > { %v13668_v40 = vadd.f32 %v13667_v21, %v13666_v14  ;;  %v13669_v46 = vpop.f32.mrb[254].mxu1  ;;  %v13606_v16 = vpop.f32.mrb[255].mxu0 }
 0x48e   : > { %v13607_v49 = vadd.f32 %v13606_v16, %v13605_v50  ;;  %v13670_v36 = vpop.f32.mrb[255].mxu1 }
 0x48f   : > { %v10120_v37 = vadd.f32 %v13668_v40, %v13604_v61  ;;  %v13671_v52 = vadd.f32 %v13670_v36, %v13669_v46 }
 0x491   : > { %v17302_v31 = vadd.f32 %v10120_v37, %v17254_v15  ;;  %v10123_v22 = vadd.f32 %v13671_v52, %v13607_v49 }
 0x492   : > { %v13688_v60 = vpop.f32.mrb[0].mxu0 }
 0x493   : > { %v17305_v6 = vadd.f32 %v10123_v22, %v17257_v12  ;;  %v13752_v27 = vpop.f32.mrb[0].mxu1  ;;  %v13689_v58 = vpop.f32.mrb[1].mxu0 }
 0x494   : > { %v13690_v5 = vadd.f32 %v13689_v58, %v13688_v60  ;;  %v13753_v47 = vpop.f32.mrb[1].mxu1  ;;  %v13691_v8 = vpop.f32.mrb[2].mxu0 }
 0x495   : > { %v13754_v7 = vadd.f32 %v13753_v47, %v13752_v27  ;;  %v13755_v41 = vpop.f32.mrb[2].mxu1  ;;  %v13692_v9 = vpop.f32.mrb[3].mxu0 }
 0x496   : > { %v13693_v54 = vadd.f32 %v13692_v9, %v13691_v8  ;;  %v13756_v42 = vpop.f32.mrb[3].mxu1 }
 0x497   : > { %v10724_v25 = vadd.f32 %v13754_v7, %v13690_v5  ;;  %v13757_v2 = vadd.f32 %v13756_v42, %v13755_v41 }
 0x499   : > { %v17308_v15 = vadd.f32 %v10724_v25, %v17260_v20  ;;  %v10727_v33 = vadd.f32 %v13757_v2, %v13693_v54 }
 0x49a   : > { %v13694_v29 = vpop.f32.mrb[4].mxu0 }
 0x49b   : > { %v17311_v12 = vadd.f32 %v10727_v33, %v17263_v26  ;;  %v13758_v62 = vpop.f32.mrb[4].mxu1  ;;  %v13695_v11 = vpop.f32.mrb[5].mxu0 }
 0x49c   : > { %v13696_v53 = vadd.f32 %v13695_v11, %v13694_v29  ;;  %v13759_v13 = vpop.f32.mrb[5].mxu1  ;;  %v13697_v63 = vpop.f32.mrb[6].mxu0 }
 0x49d   : > { %v10802_v55 = vadd.f32 %v17311_v12, %v17308_v15  ;;  %v13760_v24 = vadd.f32 %v13759_v13, %v13758_v62  ;;  %v13761_v39 = vpop.f32.mrb[6].mxu1  ;;  %v13698_v0 = vpop.f32.mrb[7].mxu0 }
 0x49e   : > { %v13699_v30 = vadd.f32 %v13698_v0, %v13697_v63  ;;  %v13762_v34 = vpop.f32.mrb[7].mxu1 }
 0x49f   : > { %v10732_v20 = vadd.f32 %v13760_v24, %v13696_v53  ;;  %v13763_v17 = vadd.f32 %v13762_v34, %v13761_v39 }
 0x4a1   : > { %v17316_v43 = vadd.f32 %v10732_v20, %v17266_v4  ;;  %v10735_v26 = vadd.f32 %v13763_v17, %v13699_v30 }
 0x4a2   : > { %v13700_v18 = vpop.f32.mrb[8].mxu0 }
 0x4a3   : > { %v10803_v32 = vadd.f32 %v10802_v55, %v17316_v43  ;;  %v17320_v19 = vadd.f32 %v10735_v26, %v17269_v45  ;;  %v13764_v51 = vpop.f32.mrb[8].mxu1  ;;  %v13701_v57 = vpop.f32.mrb[9].mxu0 }
 0x4a4   : > { %v13702_v14 = vadd.f32 %v13701_v57, %v13700_v18  ;;  %v13765_v28 = vpop.f32.mrb[9].mxu1  ;;  %v13703_v61 = vpop.f32.mrb[10].mxu0 }
 0x4a5   : > { %v10804_v21 = vadd.f32 %v10803_v32, %v17320_v19  ;;  %v13766_v50 = vadd.f32 %v13765_v28, %v13764_v51  ;;  %v13767_v40 = vpop.f32.mrb[10].mxu1  ;;  %v13704_v46 = vpop.f32.mrb[11].mxu0 }
 0x4a6   : > { %v13705_v16 = vadd.f32 %v13704_v46, %v13703_v61  ;;  %v13768_v4 = vpop.f32.mrb[11].mxu1 }
 0x4a7   : > { %v10740_v49 = vadd.f32 %v13766_v50, %v13702_v14  ;;  %v13769_v36 = vadd.f32 %v13768_v4, %v13767_v40 }
 0x4a9   : > { %v17324_v37 = vadd.f32 %v10740_v49, %v17272_v44  ;;  %v10743_v52 = vadd.f32 %v13769_v36, %v13705_v16 }
 0x4aa   : > { %v13706_v45 = vpop.f32.mrb[12].mxu0 }
 0x4ab   : > { %v10805_v22 = vadd.f32 %v10804_v21, %v17324_v37  ;;  %v17328_v60 = vadd.f32 %v10743_v52, %v17275_v56  ;;  %v13770_v27 = vpop.f32.mrb[12].mxu1  ;;  %v13707_v58 = vpop.f32.mrb[13].mxu0 }
 0x4ac   : > { %v13708_v5 = vadd.f32 %v13707_v58, %v13706_v45  ;;  %v13771_v47 = vpop.f32.mrb[13].mxu1  ;;  %v13709_v8 = vpop.f32.mrb[14].mxu0 }
 0x4ad   : > { %v10806_v7 = vadd.f32 %v10805_v22, %v17328_v60  ;;  %v13772_v41 = vadd.f32 %v13771_v47, %v13770_v27  ;;  %v13773_v9 = vpop.f32.mrb[14].mxu1  ;;  %v13710_v54 = vpop.f32.mrb[15].mxu0 }
 0x4ae   : > { %v13711_v42 = vadd.f32 %v13710_v54, %v13709_v8  ;;  %v13774_v44 = vpop.f32.mrb[15].mxu1 }
 0x4af   : > { %v10748_v25 = vadd.f32 %v13772_v41, %v13708_v5  ;;  %v13775_v2 = vadd.f32 %v13774_v44, %v13773_v9 }
 0x4b1   : > { %v17332_v33 = vadd.f32 %v10748_v25, %v17278_v38  ;;  %v10751_v29 = vadd.f32 %v13775_v2, %v13711_v42 }
 0x4b2   : > { %v13712_v56 = vpop.f32.mrb[16].mxu0 }
 0x4b3   : > { %v10807_v62 = vadd.f32 %v10806_v7, %v17332_v33  ;;  %v17336_v11 = vadd.f32 %v10751_v29, %v17281_v3  ;;  %v13776_v53 = vpop.f32.mrb[16].mxu1  ;;  %v13713_v13 = vpop.f32.mrb[17].mxu0 }
 0x4b4   : > { %v13714_v63 = vadd.f32 %v13713_v13, %v13712_v56  ;;  %v13777_v55 = vpop.f32.mrb[17].mxu1  ;;  %v13715_v24 = vpop.f32.mrb[18].mxu0 }
 0x4b5   : > { %v10808_v39 = vadd.f32 %v10807_v62, %v17336_v11  ;;  %v13778_v0 = vadd.f32 %v13777_v55, %v13776_v53  ;;  %v13779_v30 = vpop.f32.mrb[18].mxu1  ;;  %v13716_v34 = vpop.f32.mrb[19].mxu0 }
 0x4b6   : > { %v13717_v20 = vadd.f32 %v13716_v34, %v13715_v24  ;;  %v13780_v38 = vpop.f32.mrb[19].mxu1 }
 0x4b7   : > { %v10756_v17 = vadd.f32 %v13778_v0, %v13714_v63  ;;  %v13781_v26 = vadd.f32 %v13780_v38, %v13779_v30 }
 0x4b9   : > { %v17340_v18 = vadd.f32 %v10756_v17, %v17284_v1  ;;  %v10759_v32 = vadd.f32 %v13781_v26, %v13717_v20 }
 0x4ba   : > { %v13718_v3 = vpop.f32.mrb[20].mxu0 }
 0x4bb   : > { %v10809_v51 = vadd.f32 %v10808_v39, %v17340_v18  ;;  %v17344_v57 = vadd.f32 %v10759_v32, %v17287_v10  ;;  %v13782_v14 = vpop.f32.mrb[20].mxu1  ;;  %v13719_v28 = vpop.f32.mrb[21].mxu0 }
 0x4bc   : > { %v13720_v61 = vadd.f32 %v13719_v28, %v13718_v3  ;;  %v13783_v21 = vpop.f32.mrb[21].mxu1  ;;  %v13721_v50 = vpop.f32.mrb[22].mxu0 }
 0x4bd   : > { %v10810_v40 = vadd.f32 %v10809_v51, %v17344_v57  ;;  %v13784_v46 = vadd.f32 %v13783_v21, %v13782_v14  ;;  %v13785_v16 = vpop.f32.mrb[22].mxu1  ;;  %v13722_v4 = vpop.f32.mrb[23].mxu0 }
 0x4be   : > { %v13723_v49 = vadd.f32 %v13722_v4, %v13721_v50  ;;  %v13786_v1 = vpop.f32.mrb[23].mxu1 }
 0x4bf   : > { %v10764_v36 = vadd.f32 %v13784_v46, %v13720_v61  ;;  %v13787_v52 = vadd.f32 %v13786_v1, %v13785_v16 }
 0x4c1   : > { %v10796_v45 = vadd.f32 %v10764_v36, %v17290_v59  ;;  %v10767_v22 = vadd.f32 %v13787_v52, %v13723_v49 }
 0x4c2   : > { %v13724_v27 = vpop.f32.mrb[24].mxu0 }
 0x4c3   : > { %v10811_v10 = vadd.f32 %v10810_v40, %v10796_v45  ;;  %v10797_v58 = vadd.f32 %v10767_v22, %v17293_v35  ;;  %v13788_v5 = vpop.f32.mrb[24].mxu1  ;;  %v13725_v47 = vpop.f32.mrb[25].mxu0 }
 0x4c4   : > { %v13726_v8 = vadd.f32 %v13725_v47, %v13724_v27  ;;  %v13789_v7 = vpop.f32.mrb[25].mxu1  ;;  %v13727_v41 = vpop.f32.mrb[26].mxu0 }
 0x4c5   : > { %v10812_v9 = vadd.f32 %v10811_v10, %v10797_v58  ;;  %v13790_v54 = vadd.f32 %v13789_v7, %v13788_v5  ;;  %v13791_v42 = vpop.f32.mrb[26].mxu1  ;;  %v13728_v44 = vpop.f32.mrb[27].mxu0 }
 0x4c6   : > { %v13729_v25 = vadd.f32 %v13728_v44, %v13727_v41  ;;  %v13792_v2 = vpop.f32.mrb[27].mxu1 }
 0x4c7   : > { %v10772_v29 = vadd.f32 %v13790_v54, %v13726_v8  ;;  %v13793_v56 = vadd.f32 %v13792_v2, %v13791_v42 }
 0x4c9   : > { %v10798_v59 = vadd.f32 %v10772_v29, %v17296_v48  ;;  %v10775_v62 = vadd.f32 %v13793_v56, %v13729_v25 }
 0x4ca   : > { %v13730_v53 = vpop.f32.mrb[28].mxu0 }
 0x4cb   : > { %v10813_v13 = vadd.f32 %v10812_v9, %v10798_v59  ;;  %v10799_v35 = vadd.f32 %v10775_v62, %v17299_v23  ;;  %v13794_v63 = vpop.f32.mrb[28].mxu1  ;;  %v13731_v55 = vpop.f32.mrb[29].mxu0 }
 0x4cc   : > { %v13732_v24 = vadd.f32 %v13731_v55, %v13730_v53  ;;  %v13795_v39 = vpop.f32.mrb[29].mxu1  ;;  %v13733_v0 = vpop.f32.mrb[30].mxu0 }
 0x4cd   : > { %v10814_v30 = vadd.f32 %v10813_v13, %v10799_v35  ;;  %v13796_v34 = vadd.f32 %v13795_v39, %v13794_v63  ;;  %v13797_v20 = vpop.f32.mrb[30].mxu1  ;;  %v13734_v38 = vpop.f32.mrb[31].mxu0 }
 0x4ce   : > { %v13735_v17 = vadd.f32 %v13734_v38, %v13733_v0  ;;  %v13798_v26 = vpop.f32.mrb[31].mxu1 }
 0x4cf   : > { %v10780_v32 = vadd.f32 %v13796_v34, %v13732_v24  ;;  %v13799_v3 = vadd.f32 %v13798_v26, %v13797_v20 }
 0x4d1   : > { %v10800_v48 = vadd.f32 %v10780_v32, %v17302_v31  ;;  %v10783_v51 = vadd.f32 %v13799_v3, %v13735_v17 }
 0x4d3   : > { %v10815_v14 = vadd.f32 %v10814_v30, %v10800_v48  ;;  %v10801_v28 = vadd.f32 %v10783_v51, %v17305_v6 }
 0x4d5   : > { %v10816_v23 = vadd.f32 %v10815_v14, %v10801_v28 }
 0x4d7   : > { %v10817_v61 = vrot.slane %v10816_v23, 4 }
 0x4d9   : > { %v10818_v21 = vadd.f32 %v10817_v61, %v10816_v23  ;;  %v10878_v61 = vld [vmem:[%s4891_s28] sm:$0x1] }
 0x4db   : > { %v10819_v50 = vrot.slane %v10818_v21, 2 }
 0x4dd   : > { %v10820_v40 = vadd.f32 %v10819_v50, %v10818_v21 }
 0x4df   : > { %v10821_v46 = vrot.slane %v10820_v40, 1 }
 0x4e1   : > { %v10822_v16 = vadd.f32 %v10821_v46, %v10820_v40 }
 0x4e3   : > { %v10823_v4 = vmul.f32 0.0078125, %v10822_v16 }
 0x4e5   : > { %v17354_v49 = vsub.f32 %v17308_v15, %v10823_v4  ;;  %v17357_v1 = vsub.f32 %v17311_v12, %v10823_v4  ;;  %v17360_v31 = vsub.f32 %v17316_v43, %v10823_v4  ;;  %v17363_v36 = vsub.f32 %v17320_v19, %v10823_v4 }
 0x4e6   : > { %v17366_v6 = vsub.f32 %v17324_v37, %v10823_v4  ;;  %v17369_v52 = vsub.f32 %v17328_v60, %v10823_v4  ;;  %v17372_v22 = vsub.f32 %v17332_v33, %v10823_v4  ;;  %v17375_v15 = vsub.f32 %v17336_v11, %v10823_v4 }
 0x4e7   : > { %v17378_v12 = vsub.f32 %v17340_v18, %v10823_v4  ;;  %v17381_v43 = vsub.f32 %v17344_v57, %v10823_v4  ;;  %v17383_v19 = vsub.f32 %v10796_v45, %v10823_v4  ;;  %v17385_v27 = vsub.f32 %v10797_v58, %v10823_v4 }
 0x4e8   : > { %v17387_v37 = vsub.f32 %v10798_v59, %v10823_v4  ;;  %v17389_v60 = vsub.f32 %v10799_v35, %v10823_v4  ;;  %v17391_v10 = vsub.f32 %v10800_v48, %v10823_v4  ;;  %v17393_v33 = vsub.f32 %v10801_v28, %v10823_v4 }
 0x4e9   : > { %v10840_v11 = vmul.f32 %v17354_v49, %v17354_v49  ;;  %v10841_v18 = vmul.f32 %v17357_v1, %v17357_v1  ;;  %v10842_v57 = vmul.f32 %v17360_v31, %v17360_v31  ;;  %v10843_v58 = vmul.f32 %v17363_v36, %v17363_v36 }
 0x4ea   : > { %v10844_v47 = vmul.f32 %v17366_v6, %v17366_v6  ;;  %v10845_v7 = vmul.f32 %v17369_v52, %v17369_v52  ;;  %v10846_v9 = vmul.f32 %v17372_v22, %v17372_v22  ;;  %v10847_v42 = vmul.f32 %v17375_v15, %v17375_v15 }
 0x4eb   : > { %v10856_v45 = vadd.f32 %v10841_v18, %v10840_v11  ;;  %v10848_v25 = vmul.f32 %v17378_v12, %v17378_v12  ;;  %v10849_v29 = vmul.f32 %v17381_v43, %v17381_v43  ;;  %v10850_v59 = vmul.f32 %v17383_v19, %v17383_v19 }
 0x4ec   : > { %v10851_v53 = vmul.f32 %v17385_v27, %v17385_v27  ;;  %v10852_v35 = vmul.f32 %v17387_v37, %v17387_v37  ;;  %v10853_v55 = vmul.f32 %v17389_v60, %v17389_v60  ;;  %v10854_v39 = vmul.f32 %v17391_v10, %v17391_v10 }
 0x4ed   : > { %v10857_v5 = vadd.f32 %v10856_v45, %v10842_v57  ;;  %v10855_v30 = vmul.f32 %v17393_v33, %v17393_v33  ;;  %v10883_v28 = vlaneseq }
 0x4ef   : > { %v10858_v8 = vadd.f32 %v10857_v5, %v10843_v58  ;;  %v10884_v23 = vshrl.u32 %v10883_v28, 7 }
 0x4f1   : > { %v10859_v41 = vadd.f32 %v10858_v8, %v10844_v47  ;;  %v10885_v21 = vsub.s32 0, %v10884_v23  ;;  %v12564_v47 = vld [vmem:[%s4894_s6] ss:$0 sm:$0xff] }
 0x4f3   : > { %v10860_v54 = vadd.f32 %v10859_v41, %v10845_v7 }
 0x4f5   : > { %v10861_v44 = vadd.f32 %v10860_v54, %v10846_v9 }
 0x4f7   : > { %v10862_v2 = vadd.f32 %v10861_v44, %v10847_v42 }
 0x4f9   : > { %v10863_v56 = vadd.f32 %v10862_v2, %v10848_v25 }
 0x4fb   : > { %v10864_v62 = vadd.f32 %v10863_v56, %v10849_v29 }
 0x4fd   : > { %v10865_v13 = vadd.f32 %v10864_v62, %v10850_v59 }
 0x4ff   : > { %v10866_v63 = vadd.f32 %v10865_v13, %v10851_v53 }
 0x501   : > { %v10867_v24 = vadd.f32 %v10866_v63, %v10852_v35 }
 0x503   : > { %v10868_v0 = vadd.f32 %v10867_v24, %v10853_v55 }
 0x505   : > { %v10869_v34 = vadd.f32 %v10868_v0, %v10854_v39 }
 0x507   : > { %v10870_v20 = vadd.f32 %v10869_v34, %v10855_v30 }
 0x509   : > { %v10871_v38 = vrot.slane %v10870_v20, 4 }
 0x50b   : > { %v10872_v17 = vadd.f32 %v10871_v38, %v10870_v20 }
 0x50d   : > { %v10873_v26 = vrot.slane %v10872_v17, 2 }
 0x50f   : > { %v10874_v32 = vadd.f32 %v10873_v26, %v10872_v17 }
 0x511   : > { %v10875_v3 = vrot.slane %v10874_v32, 1 }
 0x513   : > { %v10876_v48 = vadd.f32 %v10875_v3, %v10874_v32 }
 0x515   : > { %v10877_v51 = vmul.f32 0.0078125, %v10876_v48 }
 0x517   : > { %v10879_v14 = vadd.f32 1e-05, %v10877_v51 }
 0x519   : > { %14504 = vrsqrt.f32 %v10879_v14 }
 0x523   : > { %v14505_v50 = vpop.eup %14504 }
 0x524   : > { %v10881_v40 = vmul.f32 %v14505_v50, %v10878_v61 }
 0x526   : > { %v10886_v46 = vrot.slane %v10881_v40, %v10885_v21 }
 0x528   : > { %v10888_v16 = vmul.f32 %v10886_v46, %v17354_v49  ;;  %v10889_v4 = vmul.f32 %v10886_v46, %v17357_v1  ;;  %v10890_v11 = vmul.f32 %v10886_v46, %v17360_v31  ;;  %v10891_v18 = vmul.f32 %v10886_v46, %v17363_v36 }
 0x529   : > { %v10892_v57 = vmul.f32 %v10886_v46, %v17366_v6  ;;  %v10893_v45 = vmul.f32 %v10886_v46, %v17369_v52  ;;  %v10894_v58 = vmul.f32 %v10886_v46, %v17372_v22  ;;  %v10895_v5 = vmul.f32 %v10886_v46, %v17375_v15 }
 0x52a   : > { %v10896_v8 = vmul.f32 %v10886_v46, %v17378_v12  ;;  %v10897_v7 = vmul.f32 %v10886_v46, %v17381_v43  ;;  %v10898_v49 = vmul.f32 %v10886_v46, %v17383_v19  ;;  %v10899_v1 = vmul.f32 %v10886_v46, %v17385_v27 }
 0x52b   : > { %v10900_v31 = vmul.f32 %v10886_v46, %v17387_v37  ;;  %v10901_v36 = vmul.f32 %v10886_v46, %v17389_v60  ;;  %v10902_v6 = vmul.f32 %v10886_v46, %v17391_v10  ;;  %v10903_v52 = vmul.f32 %v10886_v46, %v17393_v33 }
 0x52c   : > { %v10911_v22 = vadd.f32 %v12564_v47, %v10888_v16  ;;  %v10912_v15 = vadd.f32 %v12564_v47, %v10889_v4  ;;  %v10913_v41 = vadd.f32 %v12564_v47, %v10890_v11  ;;  %v10914_v9 = vadd.f32 %v12564_v47, %v10891_v18 }
 0x52d   : > { %v10915_v12 = vadd.f32 %v12564_v47, %v10892_v57  ;;  %v10916_v54 = vadd.f32 %v12564_v47, %v10893_v45  ;;  %v10917_v43 = vadd.f32 %v12564_v47, %v10894_v58  ;;  %v10918_v42 = vadd.f32 %v12564_v47, %v10895_v5 }
 0x52e   : > { %v10919_v19 = vadd.f32 %v12564_v47, %v10896_v8  ;;  %v10920_v44 = vadd.f32 %v12564_v47, %v10897_v7  ;;  %v10921_v27 = vadd.f32 %v12564_v47, %v10898_v49  ;;  %v10922_v25 = vadd.f32 %v12564_v47, %v10899_v1 }
 0x52f   : > { %v10923_v37 = vadd.f32 %v12564_v47, %v10900_v31  ;;  %v10924_v2 = vadd.f32 %v12564_v47, %v10901_v36  ;;  %v10925_v60 = vadd.f32 %v12564_v47, %v10902_v6  ;;  %v10926_v29 = vadd.f32 %v12564_v47, %v10903_v52 }
 0x530   : > { %v10927_v10 = vmax.f32 %v10911_v22, 0.0  ;;  %v10928_v33 = vmax.f32 %v10912_v15, 0.0  ;;  %v10929_v56 = vmax.f32 %v10913_v41, 0.0  ;;  %v10930_v59 = vmax.f32 %v10914_v9, 0.0 }
 0x531   : > { %v10931_v62 = vmax.f32 %v10915_v12, 0.0  ;;  %v10932_v53 = vmax.f32 %v10916_v54, 0.0  ;;  %v10933_v13 = vmax.f32 %v10917_v43, 0.0  ;;  %v10934_v35 = vmax.f32 %v10918_v42, 0.0 }
 0x532   : > { %v10935_v63 = vmax.f32 %v10919_v19, 0.0  ;;  %v10936_v55 = vmax.f32 %v10920_v44, 0.0  ;;  %v10937_v24 = vmax.f32 %v10921_v27, 0.0  ;;  %v10938_v39 = vmax.f32 %v10922_v25, 0.0 }
 0x533   : > { %v10939_v0 = vmax.f32 %v10923_v37, 0.0  ;;  %v10940_v30 = vmax.f32 %v10924_v2, 0.0  ;;  %v10941_v34 = vmax.f32 %v10925_v60, 0.0  ;;  %v10942_v20 = vmax.f32 %v10926_v29, 0.0  ;;  %11029 = sbr.rel (!%p14586_p5) target bundleno = 1352 (0x548), region = 92 }
 0x534   : > { %v12604_v38 = vpack.c.bf16 %v10928_v33, %v10927_v10  ;;  %v12609_v17 = vpack.c.bf16 %v10930_v59, %v10929_v56  ;;  %v12614_v26 = vpack.c.bf16 %v10932_v53, %v10931_v62  ;;  %v12619_v32 = vpack.c.bf16 %v10934_v35, %v10933_v13 }
 0x535   : > { %v12624_v3 = vpack.c.bf16 %v10936_v55, %v10935_v63  ;;  %v12629_v48 = vpack.c.bf16 %v10938_v39, %v10937_v24  ;;  %v12634_v51 = vpack.c.bf16 %v10940_v30, %v10939_v0  ;;  %v12639_v14 = vpack.c.bf16 %v10942_v20, %v10941_v34 }
 0x536   : > { %12605 = vst [vmem:[%s17453_s15] sm:$0xff] %v12604_v38   ;;  %12641 = vst [vmem:[%s17453_s15 + $0x8] sm:$0xff] %v12609_v17  }
 0x537   : > { %12642 = vst [vmem:[%s17453_s15 + $0x10] sm:$0xff] %v12614_v26   ;;  %12643 = vst [vmem:[%s17453_s15 + $0x18] sm:$0xff] %v12619_v32  }
 0x538   : > { %12644 = vst [vmem:[%s17453_s15 + $0x20] sm:$0xff] %v12624_v3   ;;  %12645 = vst [vmem:[%s17453_s15 + $0x28] sm:$0xff] %v12629_v48  }
 0x539   : > { %12646 = vst [vmem:[%s17453_s15 + $0x30] sm:$0xff] %v12634_v51   ;;  %12647 = vst [vmem:[%s17453_s15 + $0x38] sm:$0xff] %v12639_v14  }
 0x53d   : > { %v11047_v28 = vld [vmem:[%s17453_s15] sm:$0xf]  ;;  %v11049_v23 = vld [vmem:[%s17453_s15 + $0x4] sm:$0xf]  ;;  %v11051_v61 = vld [vmem:[%s17453_s15 + $0x8] sm:$0xf] }
 0x53e   : > { %v11053_v21 = vld [vmem:[%s17453_s15 + $0xc] sm:$0xf]  ;;  %v11055_v50 = vld [vmem:[%s17453_s15 + $0x10] sm:$0xf]  ;;  %11048 = vst [vmem:[%s11031_s9] sm:$0xf] %v11047_v28 }
 0x53f   : > { %11050 = vst [vmem:[%s11031_s9 + $0x8] sm:$0xf] %v11049_v23  ;;  %11052 = vst [vmem:[%s11031_s9 + $0x10] sm:$0xf] %v11051_v61  ;;  %v11057_v40 = vld [vmem:[%s17453_s15 + $0x14] sm:$0xf] }
 0x540   : > { %11054 = vst [vmem:[%s11031_s9 + $0x18] sm:$0xf] %v11053_v21  ;;  %11056 = vst [vmem:[%s11031_s9 + $0x20] sm:$0xf] %v11055_v50  ;;  %v11059_v46 = vld [vmem:[%s17453_s15 + $0x18] sm:$0xf] }
 0x541   : > { %v11061_v16 = vld [vmem:[%s17453_s15 + $0x1c] sm:$0xf]  ;;  %11058 = vst [vmem:[%s11031_s9 + $0x28] sm:$0xf] %v11057_v40  ;;  %11060 = vst [vmem:[%s11031_s9 + $0x30] sm:$0xf] %v11059_v46 }
 0x542   : > { %11062 = vst [vmem:[%s11031_s9 + $0x38] sm:$0xf] %v11061_v16  ;;  %v11063_v4 = vld [vmem:[%s17453_s15 + $0x20] sm:$0xf]  ;;  %v11065_v11 = vld [vmem:[%s17453_s15 + $0x24] sm:$0xf] }
 0x543   : > { %v11067_v18 = vld [vmem:[%s17453_s15 + $0x28] sm:$0xf]  ;;  %11064 = vst [vmem:[%s11031_s9 + $0x40] sm:$0xf] %v11063_v4  ;;  %11066 = vst [vmem:[%s11031_s9 + $0x48] sm:$0xf] %v11065_v11 }
 0x544   : > { %11068 = vst [vmem:[%s11031_s9 + $0x50] sm:$0xf] %v11067_v18  ;;  %v11069_v57 = vld [vmem:[%s17453_s15 + $0x2c] sm:$0xf]  ;;  %v11071_v45 = vld [vmem:[%s17453_s15 + $0x30] sm:$0xf] }
 0x545   : > { %v11073_v58 = vld [vmem:[%s17453_s15 + $0x34] sm:$0xf]  ;;  %11070 = vst [vmem:[%s11031_s9 + $0x58] sm:$0xf] %v11069_v57  ;;  %11072 = vst [vmem:[%s11031_s9 + $0x60] sm:$0xf] %v11071_v45 }
 0x546   : > { %11074 = vst [vmem:[%s11031_s9 + $0x68] sm:$0xf] %v11073_v58  ;;  %v11075_v5 = vld [vmem:[%s17453_s15 + $0x38] sm:$0xf]  ;;  %v11077_v47 = vld [vmem:[%s17453_s15 + $0x3c] sm:$0xf] }
 0x547   : > { %11076 = vst [vmem:[%s11031_s9 + $0x70] sm:$0xf] %v11075_v5  ;;  %11078 = vst [vmem:[%s11031_s9 + $0x78] sm:$0xf] %v11077_v47 }
 0x548 PF: > { %p11_p11 = scmp.ge.s32.totalorder %s14574_s19, 4   ;;  %s17501_s15 = smov %s14524_s16 }
 0x549   : > { %s17502_s16 = smov %s14584_s22  ;;  %s17503_s17 = smov %s14574_s19 }
 0x54a   :  { %13 = sbr.rel (!%p11_p11) target bundleno = 2 (0x2), region = 190 }

</bundles_post_ra>
